<compile_context>
chip_gen: v7x
topology: tpu7x:2x2x1
jax: 0.10.0
libtpu: 0.0.40
codegen_flags: <defaults>
</compile_context>

<pallas_src>
import jax
import jax.numpy as jnp
from jax.experimental import pallas as pl
from jax.experimental.pallas import tpu as pltpu


def _round_up(n, m):
    return ((n + m - 1) // m) * m


def _pad_to(a, axis, target):
    pad = target - a.shape[axis]
    if pad == 0:
        return a
    widths = [(0, 0)] * a.ndim
    widths[axis] = (0, pad)
    return jnp.pad(a, widths)


def lstm_fc_kernel(x_ref, w_ih_ref, w_hh_ref, b_ref, w_fc_ref, b_fc_ref, out_ref):
    Bp, S, I = x_ref.shape
    Hp = w_hh_ref.shape[0]

    # ---- Precompute the input projection for ALL timesteps in one MXU pass ----
    # (Bp*S, I) @ (I, 4*Hp) -> (Bp, S, 4*Hp); fold the (hoisted) bias in once.
    x_all = x_ref[...]
    xg = jnp.dot(x_all.reshape(Bp * S, I), w_ih_ref[...],
                 preferred_element_type=jnp.float32).reshape(Bp, S, 4 * Hp)
    xg = xg + jnp.broadcast_to(b_ref[...], (Bp, 4 * Hp))[:, None, :]

    w_hh = w_hh_ref[...]

    h = jnp.zeros((Bp, Hp), jnp.float32)
    c = jnp.zeros((Bp, Hp), jnp.float32)

    # ---- Fully unrolled in-kernel recurrence (static trip count S) ----
    # Gate slices are exact 128-lane tiles because Hp % 128 == 0.
    # Elementwise state math stays in f32 (no bf16 VPU on v5e).
    for t in range(S):
        gates = xg[:, t, :] + jnp.dot(h, w_hh, preferred_element_type=jnp.float32)
        i = jax.nn.sigmoid(gates[:, 0 * Hp:1 * Hp])
        f = jax.nn.sigmoid(gates[:, 1 * Hp:2 * Hp])
        g = jnp.tanh(gates[:, 2 * Hp:3 * Hp])
        o = jax.nn.sigmoid(gates[:, 3 * Hp:4 * Hp])
        c = f * c + i * g
        h = o * jnp.tanh(c)

    # ---- Lane-dense FC head on the last hidden state ----
    out_ref[...] = (jnp.dot(h, w_fc_ref[...], preferred_element_type=jnp.float32)
                    + b_fc_ref[...])


def _prepare_kernel_params(params, H, O):
    """Transpose PyTorch-layout weights and zero-pad H -> Hp (per gate) and O -> Op."""
    Hp = _round_up(H, 128)   # lane-align each gate block
    Op = _round_up(O, 128)   # lane-dense output store

    w_ih = params["w_ih"]                       # (4H, I)
    w_hh = params["w_hh"]                       # (4H, H)
    b = params["b_ih"] + params["b_hh"]         # (4H,)
    w_fc = params["w_fc"]                       # (O, H)
    b_fc = params["b_fc"]                       # (O,)

    def pad_gate_cols(w_t):                     # (K, 4H) -> (K, 4Hp), per-gate padding
        K = w_t.shape[0]
        w4 = _pad_to(w_t.reshape(K, 4, H), 2, Hp)
        return w4.reshape(K, 4 * Hp)

    w_ih_t = pad_gate_cols(w_ih.T)                          # (I, 4Hp)
    w_hh_t = pad_gate_cols(_pad_to(w_hh.T, 0, Hp))          # (Hp, 4Hp)
    b_p = _pad_to(b.reshape(4, H), 1, Hp).reshape(1, 4 * Hp)
    w_fc_t = _pad_to(_pad_to(w_fc.T, 0, Hp), 1, Op)         # (Hp, Op)
    b_fc_p = _pad_to(b_fc, 0, Op).reshape(1, Op)            # (1, Op)
    return w_ih_t, w_hh_t, b_p, w_fc_t, b_fc_p, Hp, Op


def rnn_net_forward(x, params):
    """x: (B, 1, S, I) float32 (MNIST-style NCHW with C=1, as in the PyTorch pipeline)."""
    # Explicit axis so B==1 / S==1 / I==1 are never silently squeezed away.
    x = jnp.squeeze(x, axis=1)                  # (B, S, I), batch_first
    B, S, I = x.shape
    H = params["w_hh"].shape[1]
    O = params["w_fc"].shape[0]

    w_ih_t, w_hh_t, b, w_fc_t, b_fc, Hp, Op = _prepare_kernel_params(params, H, O)

    Bp = _round_up(B, 8)                        # sublane-align the batch dim
    x_p = _pad_to(x.astype(jnp.float32), 0, Bp)

    out_padded = pl.pallas_call(
        lstm_fc_kernel,
        out_shape=jax.ShapeDtypeStruct((Bp, Op), jnp.float32),
        # Single invocation (no grid): every operand lives whole in VMEM.
        in_specs=[pl.BlockSpec(memory_space=pltpu.MemorySpace.VMEM)] * 6,
        out_specs=pl.BlockSpec(memory_space=pltpu.MemorySpace.VMEM),
    )(x_p, w_ih_t, w_hh_t, b, w_fc_t, b_fc)

    return out_padded[:B, :O]


def init_params(key, input_size, hidden_size, output_size):
    """Deterministic PyTorch-style uniform(-1/sqrt(H), 1/sqrt(H)) init, PyTorch layouts."""
    ks = jax.random.split(key, 6)
    bound = 1.0 / jnp.sqrt(jnp.float32(hidden_size))
    u = lambda k, shape: jax.random.uniform(k, shape, jnp.float32, -bound, bound)
    return {
        "w_ih": u(ks[0], (4 * hidden_size, input_size)),   # (4H, I)
        "w_hh": u(ks[1], (4 * hidden_size, hidden_size)),  # (4H, H)
        "b_ih": u(ks[2], (4 * hidden_size,)),
        "b_hh": u(ks[3], (4 * hidden_size,)),
        "w_fc": u(ks[4], (output_size, hidden_size)),      # (O, H)
        "b_fc": u(ks[5], (output_size,)),
    }


def reference_forward(x, params):
    """Pure-JAX reference of the same LSTM + FC (for a correctness check)."""
    x = jnp.squeeze(x, axis=1)
    B, S, I = x.shape
    H = params["w_hh"].shape[1]
    w_ih_t = params["w_ih"].T
    w_hh_t = params["w_hh"].T
    b = (params["b_ih"] + params["b_hh"])[None, :]
    h = jnp.zeros((B, H), jnp.float32)
    c = jnp.zeros((B, H), jnp.float32)
    for t in range(S):
        gates = x[:, t, :] @ w_ih_t + h @ w_hh_t + b
        i = jax.nn.sigmoid(gates[:, 0 * H:1 * H])
        f = jax.nn.sigmoid(gates[:, 1 * H:2 * H])
        g = jnp.tanh(gates[:, 2 * H:3 * H])
        o = jax.nn.sigmoid(gates[:, 3 * H:4 * H])
        c = f * c + i * g
        h = o * jnp.tanh(c)
    return h @ params["w_fc"].T + params["b_fc"][None, :]


if __name__ == "__main__":
    # Full-precision f32 matmuls for the pure-JAX reference (kernel already uses
    # preferred_element_type=f32 on the MXU).
    jax.config.update("jax_default_matmul_precision", "highest")

    # Small shapes consistent with the module's forward:
    # batch=4, channel=1 (squeezed away), seq=8, input=16, hidden=32, out=10.
    B, S, I, H, O = 4, 8, 16, 32, 10
    key = jax.random.PRNGKey(0)
    k_x, k_p = jax.random.split(key)
    x = jax.random.normal(k_x, (B, 1, S, I), jnp.float32)
    params = init_params(k_p, I, H, O)

    out = rnn_net_forward(x, params)
    out = jax.block_until_ready(out)

    ref = reference_forward(x, params)
    assert out.shape == (B, O)
    assert jnp.allclose(out, ref, atol=1e-5, rtol=1e-5), "mismatch vs reference"

    print("KERNEL_OK")
</pallas_src>

<mosaic_0001>
module attributes {stable_mosaic.version = 11 : i64} {
  func.func @lstm_fc_kernel(%arg0: memref<8x8x16xf32, #tpu.memory_space<vmem>>, %arg1: memref<16x512xf32, #tpu.memory_space<vmem>>, %arg2: memref<128x512xf32, #tpu.memory_space<vmem>>, %arg3: memref<1x512xf32, #tpu.memory_space<vmem>>, %arg4: memref<128x128xf32, #tpu.memory_space<vmem>>, %arg5: memref<1x128xf32, #tpu.memory_space<vmem>>, %arg6: memref<8x128xf32, #tpu.memory_space<vmem>>) attributes {dimension_semantics = [], scalar_prefetch = 0 : i64, scratch_operands = 0 : i64, tpu.core_type = #tpu.core_type<tc>} {
    %c0 = arith.constant 0 : index
    %c0_0 = arith.constant 0 : index
    %c0_1 = arith.constant 0 : index
    %0 = vector.load %arg0[%c0, %c0_0, %c0_1] : memref<8x8x16xf32, #tpu.memory_space<vmem>>, vector<8x8x16xf32>
    %1 = vector.shape_cast %0 : vector<8x8x16xf32> to vector<64x16xf32>
    %c0_2 = arith.constant 0 : index
    %c0_3 = arith.constant 0 : index
    %2 = vector.load %arg1[%c0_2, %c0_3] : memref<16x512xf32, #tpu.memory_space<vmem>>, vector<16x512xf32>
    %cst = arith.constant dense<0.000000e+00> : vector<64x512xf32>
    %3 = tpu.matmul %1, %2, %cst {dimension_numbers = #tpu.dot_dimension_numbers<[1], [0], [0], [1], [0, 0, 1, 1], [], []>, precision = #tpu.contract_precision<fp32>} : vector<64x16xf32>, vector<16x512xf32>, vector<64x512xf32> -> vector<64x512xf32>
    %4 = vector.shape_cast %3 : vector<64x512xf32> to vector<8x8x512xf32>
    %c0_4 = arith.constant 0 : index
    %c0_5 = arith.constant 0 : index
    %5 = vector.load %arg3[%c0_4, %c0_5] : memref<1x512xf32, #tpu.memory_space<vmem>>, vector<1x512xf32>
    %6 = vector.shape_cast %5 : vector<1x512xf32> to vector<1x512xf32>
    %7 = vector.broadcast %6 : vector<1x512xf32> to vector<8x512xf32>
    %8 = vector.shape_cast %7 : vector<8x512xf32> to vector<8x1x512xf32>
    %9 = vector.broadcast %8 : vector<8x1x512xf32> to vector<8x8x512xf32>
    %10 = arith.addf %4, %9 : vector<8x8x512xf32>
    %c0_6 = arith.constant 0 : index
    %c0_7 = arith.constant 0 : index
    %11 = vector.load %arg2[%c0_6, %c0_7] : memref<128x512xf32, #tpu.memory_space<vmem>>, vector<128x512xf32>
    %cst_8 = arith.constant 0.000000e+00 : f32
    %12 = vector.broadcast %cst_8 : f32 to vector<8x128xf32>
    %cst_9 = arith.constant 0.000000e+00 : f32
    %13 = vector.broadcast %cst_9 : f32 to vector<8x128xf32>
    %14 = vector.extract_strided_slice %10 {offsets = [0, 0, 0], sizes = [8, 1, 512], strides = [1, 1, 1]} : vector<8x8x512xf32> to vector<8x1x512xf32>
    %15 = vector.shape_cast %14 : vector<8x1x512xf32> to vector<8x512xf32>
    %cst_10 = arith.constant dense<0.000000e+00> : vector<8x512xf32>
    %16 = tpu.matmul %12, %11, %cst_10 {dimension_numbers = #tpu.dot_dimension_numbers<[1], [0], [0], [1], [0, 0, 1, 1], [], []>, precision = #tpu.contract_precision<fp32>} : vector<8x128xf32>, vector<128x512xf32>, vector<8x512xf32> -> vector<8x512xf32>
    %17 = arith.addf %15, %16 : vector<8x512xf32>
    %18 = vector.extract_strided_slice %17 {offsets = [0, 0], sizes = [8, 128], strides = [1, 1]} : vector<8x512xf32> to vector<8x128xf32>
    %19 = arith.negf %18 : vector<8x128xf32>
    %20 = math.exp %19 : vector<8x128xf32>
    %cst_11 = arith.constant 1.000000e+00 : f32
    %21 = vector.broadcast %cst_11 : f32 to vector<8x128xf32>
    %22 = arith.addf %21, %20 : vector<8x128xf32>
    %23 = arith.divf %21, %22 : vector<8x128xf32>
    %24 = vector.extract_strided_slice %17 {offsets = [0, 128], sizes = [8, 128], strides = [1, 1]} : vector<8x512xf32> to vector<8x128xf32>
    %25 = arith.negf %24 : vector<8x128xf32>
    %26 = math.exp %25 : vector<8x128xf32>
    %cst_12 = arith.constant 1.000000e+00 : f32
    %27 = vector.broadcast %cst_12 : f32 to vector<8x128xf32>
    %28 = arith.addf %27, %26 : vector<8x128xf32>
    %29 = arith.divf %27, %28 : vector<8x128xf32>
    %30 = vector.extract_strided_slice %17 {offsets = [0, 256], sizes = [8, 128], strides = [1, 1]} : vector<8x512xf32> to vector<8x128xf32>
    %31 = math.tanh %30 : vector<8x128xf32>
    %32 = vector.extract_strided_slice %17 {offsets = [0, 384], sizes = [8, 128], strides = [1, 1]} : vector<8x512xf32> to vector<8x128xf32>
    %33 = arith.negf %32 : vector<8x128xf32>
    %34 = math.exp %33 : vector<8x128xf32>
    %cst_13 = arith.constant 1.000000e+00 : f32
    %35 = vector.broadcast %cst_13 : f32 to vector<8x128xf32>
    %36 = arith.addf %35, %34 : vector<8x128xf32>
    %37 = arith.divf %35, %36 : vector<8x128xf32>
    %38 = arith.mulf %29, %13 : vector<8x128xf32>
    %39 = arith.mulf %23, %31 : vector<8x128xf32>
    %40 = arith.addf %38, %39 : vector<8x128xf32>
    %41 = math.tanh %40 : vector<8x128xf32>
    %42 = arith.mulf %37, %41 : vector<8x128xf32>
    %43 = vector.extract_strided_slice %10 {offsets = [0, 1, 0], sizes = [8, 1, 512], strides = [1, 1, 1]} : vector<8x8x512xf32> to vector<8x1x512xf32>
    %44 = vector.shape_cast %43 : vector<8x1x512xf32> to vector<8x512xf32>
    %cst_14 = arith.constant dense<0.000000e+00> : vector<8x512xf32>
    %45 = tpu.matmul %42, %11, %cst_14 {dimension_numbers = #tpu.dot_dimension_numbers<[1], [0], [0], [1], [0, 0, 1, 1], [], []>, precision = #tpu.contract_precision<fp32>} : vector<8x128xf32>, vector<128x512xf32>, vector<8x512xf32> -> vector<8x512xf32>
    %46 = arith.addf %44, %45 : vector<8x512xf32>
    %47 = vector.extract_strided_slice %46 {offsets = [0, 0], sizes = [8, 128], strides = [1, 1]} : vector<8x512xf32> to vector<8x128xf32>
    %48 = arith.negf %47 : vector<8x128xf32>
    %49 = math.exp %48 : vector<8x128xf32>
    %cst_15 = arith.constant 1.000000e+00 : f32
    %50 = vector.broadcast %cst_15 : f32 to vector<8x128xf32>
    %51 = arith.addf %50, %49 : vector<8x128xf32>
    %52 = arith.divf %50, %51 : vector<8x128xf32>
    %53 = vector.extract_strided_slice %46 {offsets = [0, 128], sizes = [8, 128], strides = [1, 1]} : vector<8x512xf32> to vector<8x128xf32>
    %54 = arith.negf %53 : vector<8x128xf32>
    %55 = math.exp %54 : vector<8x128xf32>
    %cst_16 = arith.constant 1.000000e+00 : f32
    %56 = vector.broadcast %cst_16 : f32 to vector<8x128xf32>
    %57 = arith.addf %56, %55 : vector<8x128xf32>
    %58 = arith.divf %56, %57 : vector<8x128xf32>
    %59 = vector.extract_strided_slice %46 {offsets = [0, 256], sizes = [8, 128], strides = [1, 1]} : vector<8x512xf32> to vector<8x128xf32>
    %60 = math.tanh %59 : vector<8x128xf32>
    %61 = vector.extract_strided_slice %46 {offsets = [0, 384], sizes = [8, 128], strides = [1, 1]} : vector<8x512xf32> to vector<8x128xf32>
    %62 = arith.negf %61 : vector<8x128xf32>
    %63 = math.exp %62 : vector<8x128xf32>
    %cst_17 = arith.constant 1.000000e+00 : f32
    %64 = vector.broadcast %cst_17 : f32 to vector<8x128xf32>
    %65 = arith.addf %64, %63 : vector<8x128xf32>
    %66 = arith.divf %64, %65 : vector<8x128xf32>
    %67 = arith.mulf %58, %40 : vector<8x128xf32>
    %68 = arith.mulf %52, %60 : vector<8x128xf32>
    %69 = arith.addf %67, %68 : vector<8x128xf32>
    %70 = math.tanh %69 : vector<8x128xf32>
    %71 = arith.mulf %66, %70 : vector<8x128xf32>
    %72 = vector.extract_strided_slice %10 {offsets = [0, 2, 0], sizes = [8, 1, 512], strides = [1, 1, 1]} : vector<8x8x512xf32> to vector<8x1x512xf32>
    %73 = vector.shape_cast %72 : vector<8x1x512xf32> to vector<8x512xf32>
    %cst_18 = arith.constant dense<0.000000e+00> : vector<8x512xf32>
    %74 = tpu.matmul %71, %11, %cst_18 {dimension_numbers = #tpu.dot_dimension_numbers<[1], [0], [0], [1], [0, 0, 1, 1], [], []>, precision = #tpu.contract_precision<fp32>} : vector<8x128xf32>, vector<128x512xf32>, vector<8x512xf32> -> vector<8x512xf32>
    %75 = arith.addf %73, %74 : vector<8x512xf32>
    %76 = vector.extract_strided_slice %75 {offsets = [0, 0], sizes = [8, 128], strides = [1, 1]} : vector<8x512xf32> to vector<8x128xf32>
    %77 = arith.negf %76 : vector<8x128xf32>
    %78 = math.exp %77 : vector<8x128xf32>
    %cst_19 = arith.constant 1.000000e+00 : f32
    %79 = vector.broadcast %cst_19 : f32 to vector<8x128xf32>
    %80 = arith.addf %79, %78 : vector<8x128xf32>
    %81 = arith.divf %79, %80 : vector<8x128xf32>
    %82 = vector.extract_strided_slice %75 {offsets = [0, 128], sizes = [8, 128], strides = [1, 1]} : vector<8x512xf32> to vector<8x128xf32>
    %83 = arith.negf %82 : vector<8x128xf32>
    %84 = math.exp %83 : vector<8x128xf32>
    %cst_20 = arith.constant 1.000000e+00 : f32
    %85 = vector.broadcast %cst_20 : f32 to vector<8x128xf32>
    %86 = arith.addf %85, %84 : vector<8x128xf32>
    %87 = arith.divf %85, %86 : vector<8x128xf32>
    %88 = vector.extract_strided_slice %75 {offsets = [0, 256], sizes = [8, 128], strides = [1, 1]} : vector<8x512xf32> to vector<8x128xf32>
    %89 = math.tanh %88 : vector<8x128xf32>
    %90 = vector.extract_strided_slice %75 {offsets = [0, 384], sizes = [8, 128], strides = [1, 1]} : vector<8x512xf32> to vector<8x128xf32>
    %91 = arith.negf %90 : vector<8x128xf32>
    %92 = math.exp %91 : vector<8x128xf32>
    %cst_21 = arith.constant 1.000000e+00 : f32
    %93 = vector.broadcast %cst_21 : f32 to vector<8x128xf32>
    %94 = arith.addf %93, %92 : vector<8x128xf32>
    %95 = arith.divf %93, %94 : vector<8x128xf32>
    %96 = arith.mulf %87, %69 : vector<8x128xf32>
    %97 = arith.mulf %81, %89 : vector<8x128xf32>
    %98 = arith.addf %96, %97 : vector<8x128xf32>
    %99 = math.tanh %98 : vector<8x128xf32>
    %100 = arith.mulf %95, %99 : vector<8x128xf32>
    %101 = vector.extract_strided_slice %10 {offsets = [0, 3, 0], sizes = [8, 1, 512], strides = [1, 1, 1]} : vector<8x8x512xf32> to vector<8x1x512xf32>
    %102 = vector.shape_cast %101 : vector<8x1x512xf32> to vector<8x512xf32>
    %cst_22 = arith.constant dense<0.000000e+00> : vector<8x512xf32>
    %103 = tpu.matmul %100, %11, %cst_22 {dimension_numbers = #tpu.dot_dimension_numbers<[1], [0], [0], [1], [0, 0, 1, 1], [], []>, precision = #tpu.contract_precision<fp32>} : vector<8x128xf32>, vector<128x512xf32>, vector<8x512xf32> -> vector<8x512xf32>
    %104 = arith.addf %102, %103 : vector<8x512xf32>
    %105 = vector.extract_strided_slice %104 {offsets = [0, 0], sizes = [8, 128], strides = [1, 1]} : vector<8x512xf32> to vector<8x128xf32>
    %106 = arith.negf %105 : vector<8x128xf32>
    %107 = math.exp %106 : vector<8x128xf32>
    %cst_23 = arith.constant 1.000000e+00 : f32
    %108 = vector.broadcast %cst_23 : f32 to vector<8x128xf32>
    %109 = arith.addf %108, %107 : vector<8x128xf32>
    %110 = arith.divf %108, %109 : vector<8x128xf32>
    %111 = vector.extract_strided_slice %104 {offsets = [0, 128], sizes = [8, 128], strides = [1, 1]} : vector<8x512xf32> to vector<8x128xf32>
    %112 = arith.negf %111 : vector<8x128xf32>
    %113 = math.exp %112 : vector<8x128xf32>
    %cst_24 = arith.constant 1.000000e+00 : f32
    %114 = vector.broadcast %cst_24 : f32 to vector<8x128xf32>
    %115 = arith.addf %114, %113 : vector<8x128xf32>
    %116 = arith.divf %114, %115 : vector<8x128xf32>
    %117 = vector.extract_strided_slice %104 {offsets = [0, 256], sizes = [8, 128], strides = [1, 1]} : vector<8x512xf32> to vector<8x128xf32>
    %118 = math.tanh %117 : vector<8x128xf32>
    %119 = vector.extract_strided_slice %104 {offsets = [0, 384], sizes = [8, 128], strides = [1, 1]} : vector<8x512xf32> to vector<8x128xf32>
    %120 = arith.negf %119 : vector<8x128xf32>
    %121 = math.exp %120 : vector<8x128xf32>
    %cst_25 = arith.constant 1.000000e+00 : f32
    %122 = vector.broadcast %cst_25 : f32 to vector<8x128xf32>
    %123 = arith.addf %122, %121 : vector<8x128xf32>
    %124 = arith.divf %122, %123 : vector<8x128xf32>
    %125 = arith.mulf %116, %98 : vector<8x128xf32>
    %126 = arith.mulf %110, %118 : vector<8x128xf32>
    %127 = arith.addf %125, %126 : vector<8x128xf32>
    %128 = math.tanh %127 : vector<8x128xf32>
    %129 = arith.mulf %124, %128 : vector<8x128xf32>
    %130 = vector.extract_strided_slice %10 {offsets = [0, 4, 0], sizes = [8, 1, 512], strides = [1, 1, 1]} : vector<8x8x512xf32> to vector<8x1x512xf32>
    %131 = vector.shape_cast %130 : vector<8x1x512xf32> to vector<8x512xf32>
    %cst_26 = arith.constant dense<0.000000e+00> : vector<8x512xf32>
    %132 = tpu.matmul %129, %11, %cst_26 {dimension_numbers = #tpu.dot_dimension_numbers<[1], [0], [0], [1], [0, 0, 1, 1], [], []>, precision = #tpu.contract_precision<fp32>} : vector<8x128xf32>, vector<128x512xf32>, vector<8x512xf32> -> vector<8x512xf32>
    %133 = arith.addf %131, %132 : vector<8x512xf32>
    %134 = vector.extract_strided_slice %133 {offsets = [0, 0], sizes = [8, 128], strides = [1, 1]} : vector<8x512xf32> to vector<8x128xf32>
    %135 = arith.negf %134 : vector<8x128xf32>
    %136 = math.exp %135 : vector<8x128xf32>
    %cst_27 = arith.constant 1.000000e+00 : f32
    %137 = vector.broadcast %cst_27 : f32 to vector<8x128xf32>
    %138 = arith.addf %137, %136 : vector<8x128xf32>
    %139 = arith.divf %137, %138 : vector<8x128xf32>
    %140 = vector.extract_strided_slice %133 {offsets = [0, 128], sizes = [8, 128], strides = [1, 1]} : vector<8x512xf32> to vector<8x128xf32>
    %141 = arith.negf %140 : vector<8x128xf32>
    %142 = math.exp %141 : vector<8x128xf32>
    %cst_28 = arith.constant 1.000000e+00 : f32
    %143 = vector.broadcast %cst_28 : f32 to vector<8x128xf32>
    %144 = arith.addf %143, %142 : vector<8x128xf32>
    %145 = arith.divf %143, %144 : vector<8x128xf32>
    %146 = vector.extract_strided_slice %133 {offsets = [0, 256], sizes = [8, 128], strides = [1, 1]} : vector<8x512xf32> to vector<8x128xf32>
    %147 = math.tanh %146 : vector<8x128xf32>
    %148 = vector.extract_strided_slice %133 {offsets = [0, 384], sizes = [8, 128], strides = [1, 1]} : vector<8x512xf32> to vector<8x128xf32>
    %149 = arith.negf %148 : vector<8x128xf32>
    %150 = math.exp %149 : vector<8x128xf32>
    %cst_29 = arith.constant 1.000000e+00 : f32
    %151 = vector.broadcast %cst_29 : f32 to vector<8x128xf32>
    %152 = arith.addf %151, %150 : vector<8x128xf32>
    %153 = arith.divf %151, %152 : vector<8x128xf32>
    %154 = arith.mulf %145, %127 : vector<8x128xf32>
    %155 = arith.mulf %139, %147 : vector<8x128xf32>
    %156 = arith.addf %154, %155 : vector<8x128xf32>
    %157 = math.tanh %156 : vector<8x128xf32>
    %158 = arith.mulf %153, %157 : vector<8x128xf32>
    %159 = vector.extract_strided_slice %10 {offsets = [0, 5, 0], sizes = [8, 1, 512], strides = [1, 1, 1]} : vector<8x8x512xf32> to vector<8x1x512xf32>
    %160 = vector.shape_cast %159 : vector<8x1x512xf32> to vector<8x512xf32>
    %cst_30 = arith.constant dense<0.000000e+00> : vector<8x512xf32>
    %161 = tpu.matmul %158, %11, %cst_30 {dimension_numbers = #tpu.dot_dimension_numbers<[1], [0], [0], [1], [0, 0, 1, 1], [], []>, precision = #tpu.contract_precision<fp32>} : vector<8x128xf32>, vector<128x512xf32>, vector<8x512xf32> -> vector<8x512xf32>
    %162 = arith.addf %160, %161 : vector<8x512xf32>
    %163 = vector.extract_strided_slice %162 {offsets = [0, 0], sizes = [8, 128], strides = [1, 1]} : vector<8x512xf32> to vector<8x128xf32>
    %164 = arith.negf %163 : vector<8x128xf32>
    %165 = math.exp %164 : vector<8x128xf32>
    %cst_31 = arith.constant 1.000000e+00 : f32
    %166 = vector.broadcast %cst_31 : f32 to vector<8x128xf32>
    %167 = arith.addf %166, %165 : vector<8x128xf32>
    %168 = arith.divf %166, %167 : vector<8x128xf32>
    %169 = vector.extract_strided_slice %162 {offsets = [0, 128], sizes = [8, 128], strides = [1, 1]} : vector<8x512xf32> to vector<8x128xf32>
    %170 = arith.negf %169 : vector<8x128xf32>
    %171 = math.exp %170 : vector<8x128xf32>
    %cst_32 = arith.constant 1.000000e+00 : f32
    %172 = vector.broadcast %cst_32 : f32 to vector<8x128xf32>
    %173 = arith.addf %172, %171 : vector<8x128xf32>
    %174 = arith.divf %172, %173 : vector<8x128xf32>
    %175 = vector.extract_strided_slice %162 {offsets = [0, 256], sizes = [8, 128], strides = [1, 1]} : vector<8x512xf32> to vector<8x128xf32>
    %176 = math.tanh %175 : vector<8x128xf32>
    %177 = vector.extract_strided_slice %162 {offsets = [0, 384], sizes = [8, 128], strides = [1, 1]} : vector<8x512xf32> to vector<8x128xf32>
    %178 = arith.negf %177 : vector<8x128xf32>
    %179 = math.exp %178 : vector<8x128xf32>
    %cst_33 = arith.constant 1.000000e+00 : f32
    %180 = vector.broadcast %cst_33 : f32 to vector<8x128xf32>
    %181 = arith.addf %180, %179 : vector<8x128xf32>
    %182 = arith.divf %180, %181 : vector<8x128xf32>
    %183 = arith.mulf %174, %156 : vector<8x128xf32>
    %184 = arith.mulf %168, %176 : vector<8x128xf32>
    %185 = arith.addf %183, %184 : vector<8x128xf32>
    %186 = math.tanh %185 : vector<8x128xf32>
    %187 = arith.mulf %182, %186 : vector<8x128xf32>
    %188 = vector.extract_strided_slice %10 {offsets = [0, 6, 0], sizes = [8, 1, 512], strides = [1, 1, 1]} : vector<8x8x512xf32> to vector<8x1x512xf32>
    %189 = vector.shape_cast %188 : vector<8x1x512xf32> to vector<8x512xf32>
    %cst_34 = arith.constant dense<0.000000e+00> : vector<8x512xf32>
    %190 = tpu.matmul %187, %11, %cst_34 {dimension_numbers = #tpu.dot_dimension_numbers<[1], [0], [0], [1], [0, 0, 1, 1], [], []>, precision = #tpu.contract_precision<fp32>} : vector<8x128xf32>, vector<128x512xf32>, vector<8x512xf32> -> vector<8x512xf32>
    %191 = arith.addf %189, %190 : vector<8x512xf32>
    %192 = vector.extract_strided_slice %191 {offsets = [0, 0], sizes = [8, 128], strides = [1, 1]} : vector<8x512xf32> to vector<8x128xf32>
    %193 = arith.negf %192 : vector<8x128xf32>
    %194 = math.exp %193 : vector<8x128xf32>
    %cst_35 = arith.constant 1.000000e+00 : f32
    %195 = vector.broadcast %cst_35 : f32 to vector<8x128xf32>
    %196 = arith.addf %195, %194 : vector<8x128xf32>
    %197 = arith.divf %195, %196 : vector<8x128xf32>
    %198 = vector.extract_strided_slice %191 {offsets = [0, 128], sizes = [8, 128], strides = [1, 1]} : vector<8x512xf32> to vector<8x128xf32>
    %199 = arith.negf %198 : vector<8x128xf32>
    %200 = math.exp %199 : vector<8x128xf32>
    %cst_36 = arith.constant 1.000000e+00 : f32
    %201 = vector.broadcast %cst_36 : f32 to vector<8x128xf32>
    %202 = arith.addf %201, %200 : vector<8x128xf32>
    %203 = arith.divf %201, %202 : vector<8x128xf32>
    %204 = vector.extract_strided_slice %191 {offsets = [0, 256], sizes = [8, 128], strides = [1, 1]} : vector<8x512xf32> to vector<8x128xf32>
    %205 = math.tanh %204 : vector<8x128xf32>
    %206 = vector.extract_strided_slice %191 {offsets = [0, 384], sizes = [8, 128], strides = [1, 1]} : vector<8x512xf32> to vector<8x128xf32>
    %207 = arith.negf %206 : vector<8x128xf32>
    %208 = math.exp %207 : vector<8x128xf32>
    %cst_37 = arith.constant 1.000000e+00 : f32
    %209 = vector.broadcast %cst_37 : f32 to vector<8x128xf32>
    %210 = arith.addf %209, %208 : vector<8x128xf32>
    %211 = arith.divf %209, %210 : vector<8x128xf32>
    %212 = arith.mulf %203, %185 : vector<8x128xf32>
    %213 = arith.mulf %197, %205 : vector<8x128xf32>
    %214 = arith.addf %212, %213 : vector<8x128xf32>
    %215 = math.tanh %214 : vector<8x128xf32>
    %216 = arith.mulf %211, %215 : vector<8x128xf32>
    %217 = vector.extract_strided_slice %10 {offsets = [0, 7, 0], sizes = [8, 1, 512], strides = [1, 1, 1]} : vector<8x8x512xf32> to vector<8x1x512xf32>
    %218 = vector.shape_cast %217 : vector<8x1x512xf32> to vector<8x512xf32>
    %cst_38 = arith.constant dense<0.000000e+00> : vector<8x512xf32>
    %219 = tpu.matmul %216, %11, %cst_38 {dimension_numbers = #tpu.dot_dimension_numbers<[1], [0], [0], [1], [0, 0, 1, 1], [], []>, precision = #tpu.contract_precision<fp32>} : vector<8x128xf32>, vector<128x512xf32>, vector<8x512xf32> -> vector<8x512xf32>
    %220 = arith.addf %218, %219 : vector<8x512xf32>
    %221 = vector.extract_strided_slice %220 {offsets = [0, 0], sizes = [8, 128], strides = [1, 1]} : vector<8x512xf32> to vector<8x128xf32>
    %222 = arith.negf %221 : vector<8x128xf32>
    %223 = math.exp %222 : vector<8x128xf32>
    %cst_39 = arith.constant 1.000000e+00 : f32
    %224 = vector.broadcast %cst_39 : f32 to vector<8x128xf32>
    %225 = arith.addf %224, %223 : vector<8x128xf32>
    %226 = arith.divf %224, %225 : vector<8x128xf32>
    %227 = vector.extract_strided_slice %220 {offsets = [0, 128], sizes = [8, 128], strides = [1, 1]} : vector<8x512xf32> to vector<8x128xf32>
    %228 = arith.negf %227 : vector<8x128xf32>
    %229 = math.exp %228 : vector<8x128xf32>
    %cst_40 = arith.constant 1.000000e+00 : f32
    %230 = vector.broadcast %cst_40 : f32 to vector<8x128xf32>
    %231 = arith.addf %230, %229 : vector<8x128xf32>
    %232 = arith.divf %230, %231 : vector<8x128xf32>
    %233 = vector.extract_strided_slice %220 {offsets = [0, 256], sizes = [8, 128], strides = [1, 1]} : vector<8x512xf32> to vector<8x128xf32>
    %234 = math.tanh %233 : vector<8x128xf32>
    %235 = vector.extract_strided_slice %220 {offsets = [0, 384], sizes = [8, 128], strides = [1, 1]} : vector<8x512xf32> to vector<8x128xf32>
    %236 = arith.negf %235 : vector<8x128xf32>
    %237 = math.exp %236 : vector<8x128xf32>
    %cst_41 = arith.constant 1.000000e+00 : f32
    %238 = vector.broadcast %cst_41 : f32 to vector<8x128xf32>
    %239 = arith.addf %238, %237 : vector<8x128xf32>
    %240 = arith.divf %238, %239 : vector<8x128xf32>
    %241 = arith.mulf %232, %214 : vector<8x128xf32>
    %242 = arith.mulf %226, %234 : vector<8x128xf32>
    %243 = arith.addf %241, %242 : vector<8x128xf32>
    %244 = math.tanh %243 : vector<8x128xf32>
    %245 = arith.mulf %240, %244 : vector<8x128xf32>
    %c0_42 = arith.constant 0 : index
    %c0_43 = arith.constant 0 : index
    %246 = vector.load %arg4[%c0_42, %c0_43] : memref<128x128xf32, #tpu.memory_space<vmem>>, vector<128x128xf32>
    %cst_44 = arith.constant dense<0.000000e+00> : vector<8x128xf32>
    %247 = tpu.matmul %245, %246, %cst_44 {dimension_numbers = #tpu.dot_dimension_numbers<[1], [0], [0], [1], [0, 0, 1, 1], [], []>, precision = #tpu.contract_precision<fp32>} : vector<8x128xf32>, vector<128x128xf32>, vector<8x128xf32> -> vector<8x128xf32>
    %c0_45 = arith.constant 0 : index
    %c0_46 = arith.constant 0 : index
    %248 = vector.load %arg5[%c0_45, %c0_46] : memref<1x128xf32, #tpu.memory_space<vmem>>, vector<1x128xf32>
    %249 = vector.broadcast %248 : vector<1x128xf32> to vector<8x128xf32>
    %250 = arith.addf %247, %249 : vector<8x128xf32>
    %c0_47 = arith.constant 0 : index
    %c0_48 = arith.constant 0 : index
    %251 = vector.load %arg6[%c0_47, %c0_48] : memref<8x128xf32, #tpu.memory_space<vmem>>, vector<8x128xf32>
    tpu.vector_store %arg6[%c0_47, %c0_48], %250 {strides = array<i32>} : memref<8x128xf32, #tpu.memory_space<vmem>>, vector<8x128xf32>,
    return
  }
}

</mosaic_0001>

<bundles_post_ra>
// kernel: tpu_custom_call.1
= control target key start
LH: loop header
LB: loop body
LE: loop exit
PB: predicated region body
PF: predicated region fallthrough
CT: control target
= control target key end

     0   :  { %11 = vsyncpa [#allocation3], 0  ;;  %s29477_s0 = inlined_call_operand.hbm [shape: f32[8,8,16], index: 0, kind: input, shape index: {}]   ;;  %s29478_s1 = inlined_call_operand.hbm [shape: f32[16,512], index: 1, kind: input, shape index: {}]   ;;  %s29479_s2 = inlined_call_operand.hbm [shape: f32[128,512], index: 2, kind: input, shape index: {}]   ;;  %s29480_s3 = inlined_call_operand.vmem [shape: f32[1,512], index: 3, kind: input, shape index: {}]   ;;  %s29481_s4 = inlined_call_operand.hbm [shape: f32[128,128], index: 4, kind: input, shape index: {}]   ;;  %s29482_s5 = inlined_call_operand.vmem [shape: f32[1,128], index: 5, kind: input, shape index: {}]   ;;  %s29483_s6 = inlined_call_operand.hbm [shape: f32[8,128], index: 6, kind: output, shape index: {}]  }
   0x1   :  { %12 = vsyncpa [#allocation6], 0 }
   0x2   :  { %13 = vsyncpa [#allocation9], 0 }
   0x3   :  { %14 = vsyncpa [#allocation4], 0  ;;  %s24384_s21 = smov [#allocation5]   ;;  %s24266_s25 = scalar_lea.hbm %s29478_s1, 1024 }
   0x4   :  { %s32_s22 = sshll.u32 %s24384_s21, 4  ;;  %p24267_p0 = scmp.ne.s32.totalorder %s29478_s1, %s24266_s25  ;;  %s33_s22 = int_to_ptr.vmem [resolvable:$true] %s32_s22 }
   0x5   :  { %p24270_p1 = scmp.lt.u32.totalorder %s24266_s25, %s29478_s1 }
   0x7   :  { %p24272_p2 = pnand %p24270_p1, %p24267_p0 }
   0x9   :  { %24275 = shalt.err (!%p24272_p2)
}
   0xa   :  { %s24276_s30 = scalar_lea.vmem %s33_s22, 1024  ;;  %p24281_p4 = scmp.lt.s32.totalorder %s33_s22, %s33_s22 }
   0xb   :  { %p24277_p3 = scmp.ne.s32.totalorder %s33_s22, %s24276_s30  ;;  %p24282_p5 = scmp.lt.s32.totalorder %s24276_s30, %s24276_s30 }
   0xd   :  { %p24283_p6 = por %p24282_p5, %p24281_p4 }
   0xf   :  { %p24284_p7 = pnand %p24283_p6, %p24277_p3 }
  0x11   :  { %24287 = shalt.err (!%p24284_p7)
}
  0x12   :  { %s24385_s7 = smov 512   ;;  %s24386_s8 = smov 32  }
  0x13   :  { %38 = dma.hbm_to_vmem [thread:$0]  %s29478_s1, 1024, %s33_s22, [#allocation6], %s24385_s7, %s24385_s7, %s24386_s8  }
  0x14   :  { %s24387_s11 = smov [#allocation2]   ;;  %s24288_s15 = scalar_lea.hbm %s29477_s0, 1024 }
  0x15   :  { %s20_s12 = sshll.u32 %s24387_s11, 4  ;;  %p24289_p8 = scmp.ne.s32.totalorder %s29477_s0, %s24288_s15  ;;  %s21_s12 = int_to_ptr.vmem [resolvable:$true] %s20_s12 }
  0x16   :  { %p24292_p9 = scmp.lt.u32.totalorder %s24288_s15, %s29477_s0 }
  0x18   :  { %p24294_p10 = pnand %p24292_p9, %p24289_p8 }
  0x1a   :  { %24297 = shalt.err (!%p24294_p10)
}
  0x1b   :  { %s24298_s20 = scalar_lea.vmem %s21_s12, 1024  ;;  %p24303_p12 = scmp.lt.s32.totalorder %s21_s12, %s21_s12 }
  0x1c   :  { %p24299_p11 = scmp.ne.s32.totalorder %s21_s12, %s24298_s20  ;;  %p24304_p13 = scmp.lt.s32.totalorder %s24298_s20, %s24298_s20 }
  0x1e   :  { %p24305_p0 = por %p24304_p13, %p24303_p12 }
  0x20   :  { %p24306_p1 = pnand %p24305_p0, %p24299_p11 }
  0x22   :  { %24309 = shalt.err (!%p24306_p1)
}
  0x23   :  { %s24388_s1 = smov 128   ;;  %s24389_s21 = smov 8  }
  0x24   :  { %26 = dma.hbm_to_vmem [thread:$0]  %s29477_s0, 1024, %s21_s12, [#allocation3], %s24388_s1, %s24388_s1, %s24389_s21  }
  0x25   :  { %s24390_s24 = smov [#allocation7]   ;;  %s24391_s26 = smov [#allocation8]  }
  0x26   :  { %s44_s25 = sshll.u32 %s24390_s24, 4  ;;  %s58_s27 = sshll.u32 %s24391_s26, 4  ;;  %s45_s25 = int_to_ptr.vmem [resolvable:$true] %s44_s25  ;;  %s24462_s27 = int_to_ptr.vmem [resolvable:$true] %s58_s27 }
  0x27   :  { %s24310_s30 = scalar_lea.hbm %s29479_s2, 8192 }
  0x28   :  { %p24311_p2 = scmp.ne.s32.totalorder %s29479_s2, %s24310_s30  ;;  %p24314_p3 = scmp.lt.u32.totalorder %s24310_s30, %s29479_s2 }
  0x2a   :  { %p24316_p4 = pnand %p24314_p3, %p24311_p2 }
  0x2c   :  { %24319 = shalt.err (!%p24316_p4)
}
  0x2d   :  { %s24320_s0 = scalar_lea.vmem %s45_s25, 8192  ;;  %p24325_p6 = scmp.lt.s32.totalorder %s45_s25, %s45_s25 }
  0x2e   :  { %p24321_p5 = scmp.ne.s32.totalorder %s45_s25, %s24320_s0  ;;  %p24326_p7 = scmp.lt.s32.totalorder %s24320_s0, %s24320_s0 }
  0x30   :  { %p24327_p8 = por %p24326_p7, %p24325_p6 }
  0x32   :  { %p24328_p9 = pnand %p24327_p8, %p24321_p5 }
  0x34   :  { %24331 = shalt.err (!%p24328_p9)
}
  0x35   :  { %50 = dma.hbm_to_vmem [thread:$0]  %s29479_s2, 8192, %s45_s25, [#allocation6], %s24385_s7, %s24385_s7, %s24386_s8  }
  0x36   :  { %s24332_s17 = scalar_lea.hbm %s29481_s4, 2048 }
  0x37   :  { %p24333_p10 = scmp.ne.s32.totalorder %s29481_s4, %s24332_s17  ;;  %p24336_p11 = scmp.lt.u32.totalorder %s24332_s17, %s29481_s4 }
  0x39   :  { %p24338_p12 = pnand %p24336_p11, %p24333_p10 }
  0x3b   :  { %24341 = shalt.err (!%p24338_p12)
}
  0x3c   :  { %s24342_s23 = scalar_lea.vmem %s24462_s27, 2048  ;;  %p24347_p0 = scmp.lt.s32.totalorder %s24462_s27, %s24462_s27 }
  0x3d   :  { %p24343_p13 = scmp.ne.s32.totalorder %s24462_s27, %s24342_s23  ;;  %p24348_p1 = scmp.lt.s32.totalorder %s24342_s23, %s24342_s23 }
  0x3f   :  { %p24349_p2 = por %p24348_p1, %p24347_p0 }
  0x41   :  { %p24350_p3 = pnand %p24349_p2, %p24343_p13 }
  0x43   :  { %24353 = shalt.err (!%p24350_p3)
}
  0x44   :  { %64 = dma.hbm_to_vmem [thread:$0]  %s29481_s4, 2048, %s24462_s27, [#allocation9], %s24388_s1, %s24388_s1, %s24389_s21  }
  0x45   :  { %24376 = dma.done.wait [#allocation3], 1024  }
  0x46   :  { %24377 = vsyncadd [#allocation3], 4294966272 }
  0x47   :  { %24378 = dma.done.wait [#allocation6], 9216  }
  0x48   :  { %24379 = vsyncadd [#allocation6], 4294958080 }
  0x49   :  { %24380 = dma.done.wait [#allocation9], 2048  }
  0x4a   :  { %24381 = vsyncadd [#allocation9], 4294965248  ;;  %v29495_v0 = vmov 0.0   ;;  %vm95_vm0 = vcmask 130048   ;;  %v88_v1 = vld [vmem:[#allocation5 + $0x8] sm:$0xff]  ;;  %v87_v3 = vld [vmem:[#allocation5] sm:$0xff] }
  0x4b   :  { %623 = vmatprep.mubr.f32.mxu0 %v29495_v0  ;;  %188 = vmatprep.mubr.f32.mxu1 %v29495_v0  ;;  %v92_v2 = vld [vmem:[#allocation5 + $0x28] sm:$0xff]  ;;  %v120_v4 = vand.u32 4294901760, %v88_v1  ;;  %v91_v6 = vld [vmem:[#allocation5 + $0x20] sm:$0xff]  ;;  %v122_v7 = vand.u32 4294901760, %v87_v3  ;;  %v81_v13 = vld [vmem:[#allocation2 + $0x10] sm:$0xff]  ;;  %vm4111_vm1 = vcmask 1041409  }
  0x4c   :  { %v124_v5 = vand.u32 4294901760, %v92_v2  ;;  %v79_v8 = vld [vmem:[#allocation2] sm:$0xff]  ;;  %v80_v9 = vld [vmem:[#allocation2 + $0x8] sm:$0xff]  ;;  %v126_v10 = vand.u32 4294901760, %v91_v6  ;;  %v82_v22 = vld [vmem:[#allocation2 + $0x18] sm:$0xff]  ;;  %v103_v26 = vsel %vm95_vm0, %v81_v13, 0 }
  0x4d   :  { %v97_v11 = vsel %vm95_vm0, %v79_v8, 0  ;;  %v100_v12 = vsel %vm95_vm0, %v80_v9, 0  ;;  %v24505_v15 = vsub.f32 %v88_v1, %v120_v4  ;;  %v24509_v17 = vsub.f32 %v87_v3, %v122_v7  ;;  %v83_v39 = vld [vmem:[#allocation2 + $0x20] sm:$0xff]  ;;  %v84_v40 = vld [vmem:[#allocation2 + $0x28] sm:$0xff]  ;;  %v85_v53 = vld [vmem:[#allocation2 + $0x30] sm:$0xff]  ;;  %s24396_s21 = smov [#allocation10]  }
  0x4e   :  { %v24503_v14 = vpack.c.bf16 %v124_v5, %v120_v4  ;;  %v24507_v16 = vsub.f32 %v92_v2, %v124_v5  ;;  %v24511_v18 = vpack.c.bf16 %v126_v10, %v122_v7  ;;  %v24513_v19 = vsub.f32 %v91_v6, %v126_v10  ;;  %v86_v1 = vld [vmem:[#allocation2 + $0x38] sm:$0xff]  ;;  %s19118_s24 = sshll.u32 %s24396_s21, 4  ;;  %s19119_s24 = int_to_ptr.vmem [resolvable:$true] %s19118_s24 }
  0x4f   :  { %v24515_v20 = vand.u32 4294901760, %v97_v11  ;;  %v24517_v21 = vand.u32 4294901760, %v100_v12  ;;  %v279_v23 = vand.u32 4294901760, %v24505_v15  ;;  %v285_v25 = vand.u32 4294901760, %v24509_v17  ;;  %s24354_s25 = scalar_lea.vmem %s19119_s24, 128  ;;  %p24359_p5 = scmp.lt.s32.totalorder %s19119_s24, %s19119_s24 }
  0x50   :  { %19647 = vmatprep.subr.bf16.mxu0 %v24503_v14  ;;  %19635 = vmatprep.subr.bf16.mxu1 %v24503_v14  ;;  %v291_v24 = vand.u32 4294901760, %v24507_v16  ;;  %v297_v29 = vand.u32 4294901760, %v24513_v19  ;;  %v24534_v30 = vand.u32 4294901760, %v103_v26  ;;  %v106_v34 = vsel %vm95_vm0, %v82_v22, 0  ;;  %p24355_p4 = scmp.ne.s32.totalorder %s19119_s24, %s24354_s25  ;;  %p24360_p6 = scmp.lt.s32.totalorder %s24354_s25, %s24354_s25 }
  0x51   :  { %30039 = vst [vmem:[#allocation15_spill] sm:$0xff] %v24515_v20  ;;  %30040 = vst [vmem:[#allocation16_spill] sm:$0xff] %v24517_v21  ;;  %19649 = vmatpush1.bf16.msra.mxu0 %v24511_v18  ;;  %19637 = vmatpush1.bf16.msra.mxu1 %v24511_v18  ;;  %v24528_v27 = vsub.f32 %v97_v11, %v24515_v20  ;;  %v24531_v28 = vsub.f32 %v100_v12, %v24517_v21  ;;  %v24550_v44 = vand.u32 4294901760, %v106_v34  ;;  %vm4114_vm2 = vcmask 1042434  }
  0x52   :  { %30043 = vst [vmem:[#allocation19_spill] sm:$0xff] %v24534_v30  ;;  %v280_v31 = vsub.f32 %v24505_v15, %v279_v23  ;;  %v292_v32 = vsub.f32 %v24507_v16, %v291_v24  ;;  %v286_v33 = vsub.f32 %v24509_v17, %v285_v25  ;;  %v298_v37 = vsub.f32 %v24513_v19, %v297_v29  ;;  %p24361_p7 = por %p24360_p6, %p24359_p5 }
  0x53   :  { %30041 = vst [vmem:[#allocation17_spill] sm:$0xff] %v24528_v27  ;;  %30042 = vst [vmem:[#allocation18_spill] sm:$0xff] %v24531_v28  ;;  %v24541_v35 = vand.u32 4294901760, %v24528_v27  ;;  %v24544_v36 = vand.u32 4294901760, %v24531_v28  ;;  %v24548_v38 = vsub.f32 %v103_v26, %v24534_v30  ;;  %v24562_v50 = vsub.f32 %v106_v34, %v24550_v44 }
  0x54   :  { %v281_v41 = vand.u32 4294901760, %v280_v31  ;;  %v293_v42 = vand.u32 4294901760, %v292_v32  ;;  %v287_v43 = vand.u32 4294901760, %v286_v33  ;;  %30047 = vst [vmem:[#allocation23_spill] sm:$0xff] %v24550_v44  ;;  %v299_v46 = vand.u32 4294901760, %v298_v37  ;;  %v24654_v32 = vld [vmem:[#allocation7 + $0x8] sm:$0xff]  ;;  %p24362_p8 = pnand %p24361_p7, %p24355_p4 }
  0x55   :  { %30044 = vst [vmem:[#allocation20_spill] sm:$0xff] %v24541_v35  ;;  %30045 = vst [vmem:[#allocation21_spill] sm:$0xff] %v24544_v36  ;;  %627 = vmatmul.mubr.f32.vlgmr.msra.gmra.mrb[0].mxu0 %v24541_v35  ;;  %v192_v45 = vsub.f32 %v24528_v27, %v24541_v35  ;;  %v203_v47 = vsub.f32 %v24531_v28, %v24544_v36  ;;  %v24558_v48 = vand.u32 4294901760, %v24548_v38  ;;  %v109_v51 = vsel %vm95_vm0, %v83_v39, 0  ;;  %v24656_v33 = vld [vmem:[#allocation7 + $0x28] sm:$0xff]  ;;  %v90_v39 = vld [vmem:[#allocation5 + $0x18] sm:$0xff] }
  0x56   :  { %30046 = vst [vmem:[#allocation22_spill] sm:$0xff] %v24548_v38  ;;  %632 = vmatprep.mubr.f32.mxu0 %v29495_v0  ;;  %v19638_v49 = vpack.c.bf16 %v293_v42, %v281_v41  ;;  %30049 = vst [vmem:[#allocation25_spill] sm:$0xff] %v24562_v50  ;;  %v112_v52 = vsel %vm95_vm0, %v84_v40, 0  ;;  %v19640_v55 = vpack.c.bf16 %v299_v46, %v287_v43  ;;  %v24572_v58 = vand.u32 4294901760, %v109_v51  ;;  %v94_v40 = vld [vmem:[#allocation5 + $0x38] sm:$0xff] }
  0x57   :  { %30048 = vst [vmem:[#allocation24_spill] sm:$0xff] %v24558_v48  ;;  %v24566_v54 = vand.u32 4294901760, %v192_v45  ;;  %v24568_v56 = vand.u32 4294901760, %v203_v47  ;;  %v214_v57 = vsub.f32 %v24548_v38, %v24558_v48  ;;  %v24577_v59 = vand.u32 4294901760, %v24562_v50 }
  0x58   :  { %19639 = vmatprep.subr.bf16.mxu1 %v19638_v49  ;;  %30052 = vst [vmem:[#allocation28_spill] sm:$0xff] %v24572_v58  ;;  %v24579_v60 = vand.u32 4294901760, %v112_v52  ;;  %v115_v61 = vsel %vm95_vm0, %v85_v53, 0  ;;  %v19650_v62 = vpack.c.bf16 %v291_v24, %v279_v23  ;;  %v24584_v63 = vsub.f32 %v109_v51, %v24572_v58  ;;  %v24703_v51 = vld [vmem:[#allocation7 + $0x48] sm:$0xff]  ;;  %v24709_v53 = vld [vmem:[#allocation7 + $0x40] sm:$0xff] }
  0x59   :  { %30050 = vst [vmem:[#allocation26_spill] sm:$0xff] %v24566_v54  ;;  %30051 = vst [vmem:[#allocation27_spill] sm:$0xff] %v24568_v56  ;;  %194 = vmatmul.mubr.f32.vlgmr.msra.gmra.mrb[0].mxu1 %v24566_v54  ;;  %636 = vmatmul.mubr.f32.gmra.mrb[2].mxu0 %v24544_v36  ;;  %v19652_v2 = vpack.c.bf16 %v297_v29, %v285_v25  ;;  %v19642_v3 = vpack.c.bf16 %v24507_v16, %v24505_v15  ;;  %v24589_v4 = vand.u32 4294901760, %v214_v57  ;;  %v89_v57 = vld [vmem:[#allocation5 + $0x10] sm:$0xff]  ;;  %vm4117_vm3 = vcmask 1043459  }
  0x5a   :  { %30053 = vst [vmem:[#allocation29_spill] sm:$0xff] %v24577_v59  ;;  %30054 = vst [vmem:[#allocation30_spill] sm:$0xff] %v24579_v60  ;;  %19641 = vmatpush1.bf16.msra.mxu1 %v19640_v55  ;;  %199 = vmatprep.mubr.f32.mxu1 %v29495_v0  ;;  %v24591_v5 = vand.u32 4294901760, %v115_v61  ;;  %v225_v6 = vsub.f32 %v24562_v50, %v24577_v59  ;;  %v24598_v7 = vand.u32 4294901760, %v24584_v63  ;;  %v118_v9 = vsel %vm95_vm0, %v86_v1, 0  ;;  %v24711_v55 = vld [vmem:[#allocation7 + $0x60] sm:$0xff] }
  0x5b   :  { %30055 = vst [vmem:[#allocation31_spill] sm:$0xff] %v24584_v63  ;;  %641 = vmatprep.mubr.f32.mxu0 %v29495_v0  ;;  %19651 = vmatprep.subr.bf16.mxu0 %v19650_v62  ;;  %30056 = vst [vmem:[#allocation32_spill] sm:$0xff] %v24589_v4  ;;  %v24601_v8 = vsub.f32 %v112_v52, %v24579_v60  ;;  %v24606_v10 = vand.u32 4294901760, %v118_v9  ;;  %v29487_v34 = vand.u32 4294901760, %v24654_v32  ;;  %v29486_v37 = vand.u32 4294901760, %v24656_v33  ;;  %v24705_v52 = vld [vmem:[#allocation7 + $0x68] sm:$0xff] }
  0x5c   :  { %30057 = vst [vmem:[#allocation33_spill] sm:$0xff] %v24591_v5  ;;  %30058 = vst [vmem:[#allocation34_spill] sm:$0xff] %v24598_v7  ;;  %19653 = vmatpush1.bf16.msra.mxu0 %v19652_v2  ;;  %19643 = vmatprep.subr.bf16.mxu1 %v19642_v3  ;;  %v24611_v11 = vand.u32 4294901760, %v225_v6  ;;  %v236_v12 = vsub.f32 %v24584_v63, %v24598_v7  ;;  %v24619_v15 = vsub.f32 %v115_v61, %v24591_v5  ;;  %v93_v61 = vld [vmem:[#allocation5 + $0x30] sm:$0xff]  ;;  %v24715_v62 = vld [vmem:[#allocation7 + $0x88] sm:$0xff]  ;;  %vm4120_vm4 = vcmask 1044484  }
  0x5d   :  { %205 = vmatmul.mubr.f32.gmra.mrb[2].mxu1 %v24568_v56  ;;  %645 = vmatmul.mubr.f32.gmra.mrb[4].mxu0 %v24558_v48  ;;  %30059 = vst [vmem:[#allocation35_spill] sm:$0xff] %v24601_v8  ;;  %v24616_v13 = vand.u32 4294901760, %v24601_v8  ;;  %v24633_v23 = vsub.f32 %v118_v9, %v24606_v10  ;;  %v954_v42 = vand.u32 4294901760, %v90_v39  ;;  %v958_v43 = vand.u32 4294901760, %v94_v40  ;;  %v24717_v1 = vld [vmem:[#allocation7 + $0xa8] sm:$0xff]  ;;  %v24723_v6 = vld [vmem:[#allocation7 + $0x80] sm:$0xff] }
  0x5e   :  { %210 = vmatprep.mubr.f32.mxu1 %v29495_v0  ;;  %650 = vmatprep.mubr.f32.mxu0 %v29495_v0  ;;  %30060 = vst [vmem:[#allocation36_spill] sm:$0xff] %v24611_v11  ;;  %30062 = vst [vmem:[#allocation38_spill] sm:$0xff] %v24619_v15  ;;  %v24630_v22 = vand.u32 4294901760, %v24619_v15  ;;  %v24672_v45 = vpack.c.bf16 %v29486_v37, %v29487_v34  ;;  %v19644_v46 = vpack.c.bf16 %v24513_v19, %v24509_v17  ;;  %v24695_v17 = vld [vmem:[#allocation7] sm:$0xff]  ;;  %v24747_v37 = vld [vmem:[#allocation7 + $0x108] sm:$0xff]  ;;  %vm4123_vm5 = vcmask 1045509  }
  0x5f   :  { %19655 = vmatprep.subr.bf16.mxu0 %v24503_v14  ;;  %30061 = vst [vmem:[#allocation37_spill] sm:$0xff] %v24616_v13  ;;  %v24625_v14 = vand.u32 4294901760, %v236_v12  ;;  %v247_v16 = vsub.f32 %v24601_v8, %v24616_v13  ;;  %30065 = vst [vmem:[#allocation41_spill] sm:$0xff] %v24633_v23  ;;  %v24644_v26 = vand.u32 4294901760, %v24633_v23  ;;  %v24681_v47 = vpack.c.bf16 %v958_v43, %v954_v42  ;;  %v24725_v9 = vld [vmem:[#allocation7 + $0xa0] sm:$0xff]  ;;  %v24727_v12 = vld [vmem:[#allocation7 + $0xc8] sm:$0xff] }
  0x60   :  { %30064 = vst [vmem:[#allocation40_spill] sm:$0xff] %v24630_v22  ;;  %v258_v25 = vsub.f32 %v24619_v15, %v24630_v22  ;;  %30070 = vst [vmem:[#allocation46_spill] sm:$0xff] %v24672_v45  ;;  %v29485_v19 = vand.u32 4294901760, %v24695_v17  ;;  %v24719_v2 = vsub.f32 %v90_v39, %v954_v42  ;;  %v24721_v3 = vsub.f32 %v94_v40, %v958_v43  ;;  %v24737_v39 = vld [vmem:[#allocation7 + $0xe8] sm:$0xff]  ;;  %v24739_v40 = vld [vmem:[#allocation7 + $0xc0] sm:$0xff] }
  0x61   :  { %216 = vmatmul.mubr.f32.gmra.mrb[4].mxu1 %v24589_v4  ;;  %654 = vmatmul.mubr.f32.gmra.mrb[6].mxu0 %v24577_v59  ;;  %30063 = vst [vmem:[#allocation39_spill] sm:$0xff] %v24625_v14  ;;  %v24639_v24 = vand.u32 4294901760, %v247_v16  ;;  %30067 = vst [vmem:[#allocation43_spill] sm:$0xff] %v24644_v26  ;;  %v269_v31 = vsub.f32 %v24633_v23, %v24644_v26  ;;  %v24741_v42 = vld [vmem:[#allocation7 + $0xe0] sm:$0xff]  ;;  %v2140_v43 = vand.u32 4294901760, %v24709_v53  ;;  %v24749_v34 = vld [vmem:[#allocation7 + $0x128] sm:$0xff] }
  0x62   :  { %221 = vmatprep.mubr.f32.mxu1 %v29495_v0  ;;  %659 = vmatprep.mubr.f32.mxu0 %v29495_v0  ;;  %v24650_v29 = vand.u32 4294901760, %v258_v25  ;;  %30071 = vst [vmem:[#allocation47_spill] sm:$0xff] %v24681_v47  ;;  %v2150_v25 = vand.u32 4294901760, %v24717_v1  ;;  %v30073_v59 = vand.u32 4294901760, %v24703_v51  ;;  %v30074_v48 = vand.u32 4294901760, %v24705_v52 }
  0x63   :  { %30066 = vst [vmem:[#allocation42_spill] sm:$0xff] %v24639_v24  ;;  %v24664_v41 = vand.u32 4294901760, %v269_v31  ;;  %v2146_v31 = vand.u32 4294901760, %v24715_v62  ;;  %v30080_v35 = vand.u32 4294901760, %v24725_v9  ;;  %v30083_v56 = vand.u32 4294901760, %v24721_v3 }
  0x64   :  { %30068 = vst [vmem:[#allocation44_spill] sm:$0xff] %v24650_v29  ;;  %v30087_v54 = vand.u32 4294901760, %v24739_v40  ;;  %v30090_v15 = vand.u32 4294901760, %v24747_v37  ;;  %v30096_v63 = vand.u32 4294901760, %v24654_v32  ;;  %vm4126_vm6 = vcmask 1046534  }
  0x65   :  { %227 = vmatmul.mubr.f32.gmra.mrb[6].mxu1 %v24611_v11  ;;  %663 = vmatmul.mubr.f32.gmra.mrb[8].mxu0 %v24598_v7  ;;  %30069 = vst [vmem:[#allocation45_spill] sm:$0xff] %v24664_v41  ;;  %v24759_v7 = vld [vmem:[#allocation7 + $0x120] sm:$0xff]  ;;  %v30082_v11 = vand.u32 4294901760, %v24719_v2  ;;  %vm4129_vm7 = vcmask 1047559   ;;  %vm24395_vm8 = vmmov 0  }
  0x66   :  { %232 = vmatprep.mubr.f32.mxu1 %v29495_v0  ;;  %668 = vmatprep.mubr.f32.mxu0 %v29495_v0 }
  0x67   :  { %v1114_v4 = vsub.f32 %v24719_v2, %v30082_v11  ;;  %v30091_v11 = vand.u32 4294901760, %v24749_v34 }
  0x69   :  { %238 = vmatmul.mubr.f32.gmra.mrb[8].mxu1 %v24625_v14  ;;  %672 = vmatmul.mubr.f32.gmra.mrb[10].mxu0 %v24616_v13  ;;  %v24757_v13 = vld [vmem:[#allocation7 + $0x100] sm:$0xff]  ;;  %v24823_v8 = vpack.c.bf16 %v30091_v11, %v30090_v15  ;;  %v24840_v15 = vsub.f32 %v24654_v32, %v30096_v63  ;;  %v30097_v11 = vand.u32 4294901760, %v24656_v33  ;;  %v30100_v32 = vand.u32 4294901760, %v24703_v51 }
  0x6a   :  { %243 = vmatprep.mubr.f32.mxu1 %v29495_v0  ;;  %677 = vmatprep.mubr.f32.mxu0 %v29495_v0 }
  0x6b   :  { %30092 = vst [vmem:[#allocation56_spill] sm:$0xff] %v24823_v8 }
  0x6d   :  { %249 = vmatmul.mubr.f32.gmra.mrb[10].mxu1 %v24639_v24  ;;  %681 = vmatmul.mubr.f32.gmra.mrb[12].mxu0 %v24630_v22 }
  0x6e   :  { %254 = vmatprep.mubr.f32.mxu1 %v29495_v0  ;;  %686 = vmatprep.mubr.f32.mxu0 %v29495_v0 }
  0x71   :  { %260 = vmatmul.mubr.f32.gmra.mrb[12].mxu1 %v24650_v29  ;;  %690 = vmatmul.mubr.f32.gmra.mrb[14].mxu0 %v24644_v26  ;;  %v2148_v26 = vand.u32 4294901760, %v24723_v6 }
  0x72   :  { %265 = vmatprep.mubr.f32.mxu1 %v29495_v0  ;;  %772 = vmatprep.mubr.f32.mxu0 %v29495_v0 }
  0x73   :  { %v24797_v14 = vpack.c.bf16 %v30080_v35, %v2148_v26  ;;  %v30088_v35 = vand.u32 4294901760, %v24741_v42 }
  0x75   :  { %271 = vmatmul.mubr.f32.gmra.mrb[14].mxu1 %v24664_v41  ;;  %774 = vmatmul.mubr.f32.vlgmr.msra.gmra.mrb[0].mxu0 %v24515_v20  ;;  %v24775_v41 = vpack.c.bf16 %v30074_v48, %v30073_v59  ;;  %v24791_v48 = vld [vmem:[#allocation7 + $0x168] sm:$0xff]  ;;  %v24793_v59 = vpack.c.bf16 %v2150_v25, %v2146_v31  ;;  %30081 = vst [vmem:[#allocation53_spill] sm:$0xff] %v24797_v14 }
  0x76   :  { %361 = vmatprep.mubr.f32.mxu1 %v29495_v0  ;;  %779 = vmatprep.mubr.f32.mxu0 %v29495_v0  ;;  %v24817_v23 = vpack.c.bf16 %v30088_v35, %v30087_v54  ;;  %v24835_v35 = vld [vmem:[#allocation7 + $0x160] sm:$0xff] }
  0x77   :  { %19657 = vmatpush1.bf16.msra.mxu0 %v24511_v18  ;;  %v24697_v18 = vld [vmem:[#allocation7 + $0x20] sm:$0xff]  ;;  %30075 = vst [vmem:[#allocation49_spill] sm:$0xff] %v24775_v41  ;;  %30079 = vst [vmem:[#allocation52_spill] sm:$0xff] %v24793_v59 }
  0x78   :  { %19683 = vmatprep.subr.bf16.mxu0 %v24672_v45  ;;  %v29484_v49 = vand.u32 4294901760, %v24697_v18  ;;  %v24799_v45 = vld [vmem:[#allocation7 + $0x140] sm:$0xff]  ;;  %30089 = vst [vmem:[#allocation55_spill] sm:$0xff] %v24817_v23 }
  0x79   :  { %363 = vmatmul.mubr.f32.vlgmr.msra.gmra.mrb[0].mxu1 %v24515_v20  ;;  %781 = vmatmul.mubr.f32.gmra.mrb[2].mxu0 %v24517_v21 }
  0x7a   :  { %19645 = vmatpush1.bf16.msra.mxu1 %v19644_v46  ;;  %368 = vmatprep.mubr.f32.mxu1 %v29495_v0  ;;  %v24733_v16 = vpack.c.bf16 %v29484_v49, %v29485_v19  ;;  %v2144_v46 = vand.u32 4294901760, %v24711_v55  ;;  %v956_v49 = vand.u32 4294901760, %v89_v57  ;;  %v960_v19 = vand.u32 4294901760, %v93_v61 }
  0x7b   :  { %786 = vmatprep.mubr.f32.mxu0 %v29495_v0  ;;  %19659 = vmatprep.subr.bf16.mxu1 %v24681_v47  ;;  %v30077_v47 = vmov 0.0  }
  0x7c   :  { %30072 = vst [vmem:[#allocation48_spill] sm:$0xff] %v24733_v16  ;;  %v24777_v36 = vpack.c.bf16 %v2144_v46, %v2140_v43  ;;  %v24785_v22 = vpack.c.bf16 %v960_v19, %v956_v49  ;;  %v24787_v29 = vsub.f32 %v89_v57, %v956_v49  ;;  %v24789_v24 = vsub.f32 %v93_v61, %v960_v19 }
  0x7d   :  { %370 = vmatmul.mubr.f32.gmra.mrb[2].mxu1 %v24517_v21  ;;  %788 = vmatmul.mubr.f32.gmra.mrb[4].mxu0 %v24534_v30  ;;  %v1126_v49 = vsub.f32 %v24721_v3, %v30083_v56  ;;  %v30084_v19 = vand.u32 4294901760, %v24727_v12  ;;  %v30085_v57 = vand.u32 4294901760, %v24737_v39  ;;  %v24845_v56 = vsub.f32 %v24656_v33, %v30097_v11 }
  0x7e   :  { %375 = vmatprep.mubr.f32.mxu1 %v29495_v0  ;;  %793 = vmatprep.mubr.f32.mxu0 %v29495_v0  ;;  %30076 = vst [vmem:[#allocation50_spill] sm:$0xff] %v24777_v36  ;;  %30078 = vst [vmem:[#allocation51_spill] sm:$0xff] %v24785_v22  ;;  %v24863_v33 = vsub.f32 %v24703_v51, %v30100_v32  ;;  %v30101_v11 = vand.u32 4294901760, %v24705_v52  ;;  %v24881_v51 = vsub.f32 %v24717_v1, %v2150_v25 }
  0x7f   :  { %v24811_v61 = vpack.c.bf16 %v30085_v57, %v30084_v19  ;;  %v30093_v19 = vand.u32 4294901760, %v24757_v13  ;;  %v30094_v57 = vand.u32 4294901760, %v24759_v7  ;;  %v30109_v32 = vand.u32 4294901760, %v24741_v42 }
  0x81   :  { %377 = vmatmul.mubr.f32.gmra.mrb[4].mxu1 %v24534_v30  ;;  %795 = vmatmul.mubr.f32.gmra.mrb[6].mxu0 %v24550_v44  ;;  %30086 = vst [vmem:[#allocation54_spill] sm:$0xff] %v24811_v61 }
  0x82   :  { %382 = vmatprep.mubr.f32.mxu1 %v29495_v0  ;;  %800 = vmatprep.mubr.f32.mxu0 %v29495_v0 }
  0x85   :  { %384 = vmatmul.mubr.f32.gmra.mrb[6].mxu1 %v24550_v44  ;;  %802 = vmatmul.mubr.f32.gmra.mrb[8].mxu0 %v24572_v58 }
  0x86   :  { %389 = vmatprep.mubr.f32.mxu1 %v29495_v0  ;;  %807 = vmatprep.mubr.f32.mxu0 %v29495_v0 }
  0x89   :  { %391 = vmatmul.mubr.f32.gmra.mrb[8].mxu1 %v24572_v58  ;;  %809 = vmatmul.mubr.f32.gmra.mrb[10].mxu0 %v24579_v60  ;;  %v1127_v58 = vand.u32 4294901760, %v1126_v49 }
  0x8a   :  { %396 = vmatprep.mubr.f32.mxu1 %v29495_v0  ;;  %814 = vmatprep.mubr.f32.mxu0 %v29495_v0  ;;  %v24781_v0 = vld [vmem:[#allocation7 + $0x148] sm:$0xff] }
  0x8d   :  { %398 = vmatmul.mubr.f32.gmra.mrb[10].mxu1 %v24579_v60  ;;  %816 = vmatmul.mubr.f32.gmra.mrb[12].mxu0 %v24591_v5  ;;  %v24832_v60 = vpack.c.bf16 %v30094_v57, %v30093_v19  ;;  %v30098_v57 = vand.u32 4294901760, %v24695_v17  ;;  %v1115_v19 = vand.u32 4294901760, %v1114_v4  ;;  %v30102_v4 = vand.u32 4294901760, %v24781_v0 }
  0x8e   :  { %403 = vmatprep.mubr.f32.mxu1 %v30077_v47  ;;  %821 = vmatprep.mubr.f32.mxu0 %v30077_v47 }
  0x8f   :  { %30095 = vst [vmem:[#allocation57_spill] sm:$0xff] %v24832_v60  ;;  %v24853_v54 = vsub.f32 %v24695_v17, %v30098_v57  ;;  %v24868_v60 = vsub.f32 %v24705_v52, %v30101_v11  ;;  %v24871_v17 = vsub.f32 %v24709_v53, %v2140_v43  ;;  %v30103_v52 = vand.u32 4294901760, %v24791_v48 }
  0x90   :  { %v29528_v43 = vand.u32 4294901760, %v24840_v15 }
  0x91   :  { %405 = vmatmul.mubr.f32.gmra.mrb[12].mxu1 %v24591_v5  ;;  %823 = vmatmul.mubr.f32.gmra.mrb[14].mxu0 %v24606_v10  ;;  %v30099_v5 = vand.u32 4294901760, %v24697_v18  ;;  %v24889_v53 = vpack.c.bf16 %v30103_v52, %v30102_v4  ;;  %v29527_v1 = vand.u32 4294901760, %v24853_v54  ;;  %v24911_v4 = vld [vmem:[#allocation7 + $0x188] sm:$0xff]  ;;  %v30107_v52 = vand.u32 4294901760, %v24737_v39 }
  0x92   :  { %410 = vmatprep.mubr.f32.mxu1 %v30077_v47  ;;  %897 = vmatprep.mubr.f32.mxu0 %v30077_v47 }
  0x93   :  { %v24858_v63 = vsub.f32 %v24697_v18, %v30099_v5  ;;  %v24875_v5 = vsub.f32 %v24711_v55, %v2144_v46  ;;  %v24878_v18 = vsub.f32 %v24715_v62, %v2146_v31  ;;  %30104 = vst [vmem:[#allocation58_spill] sm:$0xff] %v24889_v53  ;;  %v29525_v55 = vand.u32 4294901760, %v24845_v56 }
  0x94   :  { %v24894_v62 = vsub.f32 %v24723_v6, %v2148_v26  ;;  %v29529_v31 = vand.u32 4294901760, %v24863_v33  ;;  %v30105_v46 = vand.u32 4294901760, %v24725_v9  ;;  %v19662_v6 = vpack.c.bf16 %v1127_v58, %v1115_v19  ;;  %v24919_v26 = vld [vmem:[#allocation7 + $0x1a8] sm:$0xff]  ;;  %v24980_v58 = vld [vmem:[#allocation7 + $0x180] sm:$0xff] }
  0x95   :  { %412 = vmatmul.mubr.f32.gmra.mrb[14].mxu1 %v24606_v10  ;;  %899 = vmatmul.mubr.f32.vlgmr.msra.gmra.mrb[0].mxu0 %v24515_v20  ;;  %v29526_v25 = vand.u32 4294901760, %v24858_v63  ;;  %v30106_v19 = vand.u32 4294901760, %v24727_v12  ;;  %v24930_v57 = vsub.f32 %v24737_v39, %v30107_v52  ;;  %v24949_v39 = vpack.c.bf16 %v29525_v55, %v29528_v43  ;;  %v30192_v20 = vld [vmem:[#allocation38_spill] sm:$0xff] }
  0x96   :  { %19685 = vmatpush1.bf16.msra.mxu0 %v24733_v16  ;;  %490 = vmatprep.mubr.f32.mxu1 %v30077_v47  ;;  %v24904_v49 = vsub.f32 %v24725_v9, %v30105_v46  ;;  %v30108_v46 = vand.u32 4294901760, %v24739_v40  ;;  %v2182_v52 = vand.u32 4294901760, %v24919_v26 }
  0x97   :  { %904 = vmatprep.mubr.f32.mxu0 %v30077_v47  ;;  %19687 = vmatprep.subr.bf16.mxu0 %v24775_v41  ;;  %v24925_v11 = vsub.f32 %v24727_v12, %v30106_v19  ;;  %v24943_v12 = vsub.f32 %v24741_v42, %v30109_v32  ;;  %30110 = vst [vmem:[#allocation59_spill] sm:$0xff] %v24949_v39  ;;  %v30112_v42 = vand.u32 4294901760, %v24868_v60  ;;  %v30115_v19 = vand.u32 4294901760, %v24721_v3 }
  0x98   :  { %v24935_v9 = vsub.f32 %v24739_v40, %v30108_v46  ;;  %v24955_v40 = vpack.c.bf16 %v29526_v25, %v29527_v1  ;;  %v30114_v46 = vand.u32 4294901760, %v24719_v2  ;;  %v30117_v25 = vand.u32 4294901760, %v24871_v17 }
  0x99   :  { %493 = vmatmul.mubr.f32.vlgmr.msra.gmra.mrb[0].mxu1 %v24528_v27  ;;  %906 = vmatmul.mubr.f32.gmra.mrb[2].mxu0 %v24517_v21  ;;  %v24964_v32 = vpack.c.bf16 %v30112_v42, %v29529_v31  ;;  %v30118_v1 = vand.u32 4294901760, %v24875_v5  ;;  %v24982_v42 = vld [vmem:[#allocation7 + $0x1a0] sm:$0xff]  ;;  %v24984_v31 = vld [vmem:[#allocation7 + $0x1c8] sm:$0xff]  ;;  %v30127_v39 = vand.u32 4294901760, %v24904_v49  ;;  %v30142_v27 = vand.u32 4294901760, %v24943_v12  ;;  %v30160_v21 = vld [vmem:[#allocation57_spill] sm:$0xff] }
  0x9a   :  { %19689 = vmatpush1.bf16.msra.mxu0 %v24777_v36  ;;  %19661 = vmatpush1.bf16.msra.mxu1 %v24785_v22  ;;  %30111 = vst [vmem:[#allocation60_spill] sm:$0xff] %v24955_v40  ;;  %v24970_v55 = vpack.c.bf16 %v30115_v19, %v30114_v46  ;;  %v30120_v46 = vand.u32 4294901760, %v24787_v29  ;;  %v30121_v19 = vand.u32 4294901760, %v24789_v24  ;;  %v30126_v40 = vand.u32 4294901760, %v24894_v62  ;;  %v2126_v22 = vld [vmem:[#allocation7 + $0x1e0] sm:$0xff] }
  0x9b   :  { %498 = vmatprep.mubr.f32.mxu1 %v30077_v47  ;;  %911 = vmatprep.mubr.f32.mxu0 %v30077_v47  ;;  %30113 = vst [vmem:[#allocation61_spill] sm:$0xff] %v24964_v32  ;;  %v24976_v43 = vpack.c.bf16 %v30118_v1, %v30117_v25  ;;  %v30123_v1 = vand.u32 4294901760, %v24878_v18  ;;  %v30124_v25 = vand.u32 4294901760, %v24881_v51  ;;  %v30141_v36 = vand.u32 4294901760, %v24935_v9 }
  0x9c   :  { %30116 = vst [vmem:[#allocation62_spill] sm:$0xff] %v24970_v55  ;;  %19691 = vmatprep.subr.bf16.mxu0 %v24793_v59  ;;  %19663 = vmatprep.subr.bf16.mxu1 %v19662_v6  ;;  %v24990_v32 = vpack.c.bf16 %v30121_v19, %v30120_v46  ;;  %v25002_v55 = vpack.c.bf16 %v30127_v39, %v30126_v40  ;;  %v25006_v6 = vld [vmem:[#allocation7 + $0x1e8] sm:$0xff]  ;;  %v30131_v19 = vand.u32 4294901760, %v24757_v13  ;;  %v2186_v46 = vand.u32 4294901760, %v24984_v31  ;;  %v2122_v59 = vld [vmem:[#allocation7 + $0x1c0] sm:$0xff] }
  0x9d   :  { %30119 = vst [vmem:[#allocation63_spill] sm:$0xff] %v24976_v43  ;;  %v24996_v43 = vpack.c.bf16 %v30124_v25, %v30123_v1  ;;  %501 = vmatmul.mubr.f32.gmra.mrb[2].mxu1 %v24531_v28  ;;  %913 = vmatmul.mubr.f32.gmra.mrb[4].mxu0 %v24534_v30  ;;  %v30130_v25 = vand.u32 4294901760, %v24749_v34  ;;  %v30133_v40 = vand.u32 4294901760, %v24925_v11  ;;  %v2190_v28 = vand.u32 4294901760, %v25006_v6 }
  0x9e   :  { %30122 = vst [vmem:[#allocation64_spill] sm:$0xff] %v24990_v32  ;;  %30128 = vst [vmem:[#allocation66_spill] sm:$0xff] %v25002_v55  ;;  %v30129_v32 = vand.u32 4294901760, %v24747_v37  ;;  %19693 = vmatpush1.bf16.msra.mxu0 %v24797_v14  ;;  %506 = vmatprep.mubr.f32.mxu1 %v30077_v47  ;;  %v25027_v55 = vsub.f32 %v24757_v13, %v30131_v19  ;;  %v30134_v13 = vand.u32 4294901760, %v24930_v57 }
  0x9f   :  { %30125 = vst [vmem:[#allocation65_spill] sm:$0xff] %v24996_v43  ;;  %v25018_v39 = vsub.f32 %v24749_v34, %v30130_v25  ;;  %918 = vmatprep.mubr.f32.mxu0 %v30077_v47  ;;  %19695 = vmatprep.subr.bf16.mxu0 %v24811_v61  ;;  %v2180_v34 = vand.u32 4294901760, %v24980_v58  ;;  %v2184_v25 = vand.u32 4294901760, %v24982_v42  ;;  %v30136_v43 = vand.u32 4294901760, %v24799_v45 }
  0xa0   :  { %v25013_v1 = vsub.f32 %v24747_v37, %v30129_v32  ;;  %v30132_v37 = vand.u32 4294901760, %v24759_v7  ;;  %v25043_v19 = vpack.c.bf16 %v30134_v13, %v30133_v40  ;;  %v30139_v61 = vand.u32 4294901760, %v24911_v4 }
  0xa1   :  { %v25060_v40 = vpack.c.bf16 %v30142_v27, %v30141_v36  ;;  %509 = vmatmul.mubr.f32.gmra.mrb[4].mxu1 %v24548_v38  ;;  %920 = vmatmul.mubr.f32.gmra.mrb[6].mxu0 %v24550_v44  ;;  %v30146_v13 = vmov %v30136_v43  ;;  %v2192_v27 = vand.u32 4294901760, %v2126_v22  ;;  %v30155_v38 = vand.u32 4294901760, %v25027_v55 }
  0xa2   :  { %v25032_v32 = vsub.f32 %v24759_v7, %v30132_v37  ;;  %30135 = vst [vmem:[#allocation67_spill] sm:$0xff] %v25043_v19  ;;  %v30137_v7 = vand.u32 4294901760, %v24835_v35  ;;  %v25053_v14 = vpack.c.bf16 %v2182_v52, %v30139_v61  ;;  %v30144_v61 = vand.u32 4294901760, %v24781_v0  ;;  %19697 = vmatpush1.bf16.msra.mxu0 %v24817_v23  ;;  %514 = vmatprep.mubr.f32.mxu1 %v30077_v47 }
  0xa3   :  { %30143 = vst [vmem:[#allocation70_spill] sm:$0xff] %v25060_v40  ;;  %v30145_v19 = vand.u32 4294901760, %v24791_v48  ;;  %925 = vmatprep.mubr.f32.mxu0 %v30077_v47  ;;  %19699 = vmatprep.subr.bf16.mxu0 %v24823_v8  ;;  %v30149_v36 = vand.u32 4294901760, %v25013_v1  ;;  %v30150_v40 = vand.u32 4294901760, %v25018_v39 }
  0xa4   :  { %v25049_v37 = vpack.c.bf16 %v30137_v7, %v30136_v43  ;;  %30140 = vst [vmem:[#allocation69_spill] sm:$0xff] %v25053_v14  ;;  %v25069_v7 = vsub.f32 %v24781_v0, %v30144_v61  ;;  %v25083_v43 = vsub.f32 %v24799_v45, %v30146_v13  ;;  %v30147_v0 = vand.u32 4294901760, %v24835_v35 }
  0xa5   :  { %v25074_v41 = vsub.f32 %v24791_v48, %v30145_v19  ;;  %v25092_v48 = vpack.c.bf16 %v2184_v25, %v2180_v34  ;;  %v2188_v19 = vand.u32 4294901760, %v2122_v59  ;;  %v25098_v23 = vpack.c.bf16 %v30150_v40, %v30149_v36  ;;  %517 = vmatmul.mubr.f32.gmra.mrb[6].mxu1 %v24562_v50  ;;  %v30158_v40 = vld [vmem:[#allocation28_spill] sm:$0xff]  ;;  %v30170_v50 = vld [vmem:[#allocation31_spill] sm:$0xff] }
  0xa6   :  { %30138 = vst [vmem:[#allocation68_spill] sm:$0xff] %v25049_v37  ;;  %v25088_v61 = vsub.f32 %v24835_v35, %v30147_v0  ;;  %v25100_v45 = vpack.c.bf16 %v2190_v28, %v2186_v46  ;;  %v30153_v13 = vand.u32 4294901760, %v24840_v15  ;;  %v30154_v0 = vand.u32 4294901760, %v24845_v56  ;;  %927 = vmatmul.mubr.f32.gmra.mrb[8].mxu0 %v30158_v40  ;;  %522 = vmatprep.mubr.f32.mxu1 %v30077_v47 }
  0xa7   :  { %30148 = vst [vmem:[#allocation71_spill] sm:$0xff] %v25092_v48  ;;  %30151 = vst [vmem:[#allocation72_spill] sm:$0xff] %v25098_v23  ;;  %v30156_v16 = vand.u32 4294901760, %v25032_v32  ;;  %19701 = vmatpush1.bf16.msra.mxu0 %v30160_v21  ;;  %v25131_v36 = vsub.f32 %v24980_v58, %v2180_v34  ;;  %v25134_v23 = vsub.f32 %v24982_v42, %v2184_v25  ;;  %932 = vmatprep.mubr.f32.mxu0 %v30077_v47 }
  0xa8   :  { %30152 = vst [vmem:[#allocation73_spill] sm:$0xff] %v25100_v45  ;;  %v2236_v35 = vsub.f32 %v24840_v15, %v30153_v13  ;;  %v2248_v8 = vsub.f32 %v24845_v56, %v30154_v0  ;;  %v30159_v13 = vand.u32 4294901760, %v24911_v4  ;;  %v25124_v0 = vsub.f32 %v24919_v26, %v2182_v52  ;;  %19703 = vmatprep.subr.bf16.mxu0 %v24889_v53 }
  0xa9   :  { %v25112_v44 = vpack.c.bf16 %v30156_v16, %v30155_v38  ;;  %v25138_v26 = vpack.c.bf16 %v2192_v27, %v2188_v19  ;;  %v30164_v16 = vand.u32 4294901760, %v25074_v41  ;;  %v30166_v42 = vand.u32 4294901760, %v24858_v63  ;;  %525 = vmatmul.mubr.f32.gmra.mrb[8].mxu1 %v30170_v50 }
  0xaa   :  { %v25121_v30 = vsub.f32 %v24911_v4, %v30159_v13  ;;  %v30162_v4 = vand.u32 4294901760, %v24853_v54  ;;  %v30163_v13 = vand.u32 4294901760, %v25069_v7  ;;  %v2237_v58 = vand.u32 4294901760, %v2236_v35  ;;  %530 = vmatprep.mubr.f32.mxu1 %v30077_v47 }
  0xab   :  { %30157 = vst [vmem:[#allocation74_spill] sm:$0xff] %v25112_v44  ;;  %30161 = vst [vmem:[#allocation75_spill] sm:$0xff] %v25138_v26  ;;  %v2249_v34 = vand.u32 4294901760, %v2248_v8  ;;  %v2254_v25 = vsub.f32 %v24858_v63, %v30166_v42  ;;  %v30167_v44 = vand.u32 4294901760, %v25083_v43  ;;  %v30168_v53 = vand.u32 4294901760, %v25088_v61  ;;  %19705 = vmatpush1.bf16.msra.mxu0 %v25049_v37 }
  0xac   :  { %v2242_v52 = vsub.f32 %v24853_v54, %v30162_v4  ;;  %v25147_v38 = vpack.c.bf16 %v30164_v16, %v30163_v13  ;;  %v30171_v4 = vld [vmem:[#allocation30_spill] sm:$0xff]  ;;  %v29574_v40 = vand.u32 4294901760, %v25121_v30  ;;  %v25163_v8 = vsub.f32 %v24984_v31, %v2186_v46  ;;  %19707 = vmatprep.subr.bf16.mxu0 %v25053_v14  ;;  %v30182_v14 = vld [vmem:[#allocation33_spill] sm:$0xff] }
  0xad   :  { %v25156_v21 = vpack.c.bf16 %v30168_v53, %v30167_v44  ;;  %934 = vmatmul.mubr.f32.gmra.mrb[10].mxu0 %v30171_v4  ;;  %v25166_v35 = vsub.f32 %v25006_v6, %v2190_v28  ;;  %v25172_v13 = vsub.f32 %v2122_v59, %v2188_v19  ;;  %v25174_v42 = vsub.f32 %v2126_v22, %v2192_v27 }
  0xae   :  { %30165 = vst [vmem:[#allocation76_spill] sm:$0xff] %v25147_v38  ;;  %939 = vmatprep.mubr.f32.mxu0 %v30077_v47  ;;  %v2243_v31 = vand.u32 4294901760, %v2242_v52  ;;  %v30172_v28 = vand.u32 4294901760, %v24863_v33  ;;  %v30173_v46 = vand.u32 4294901760, %v24868_v60  ;;  %v30174_v59 = vand.u32 4294901760, %v25124_v0  ;;  %v30181_v38 = vld [vmem:[#allocation35_spill] sm:$0xff] }
  0xaf   :  { %30169 = vst [vmem:[#allocation77_spill] sm:$0xff] %v25156_v21  ;;  %v2255_v22 = vand.u32 4294901760, %v2254_v25  ;;  %v30176_v27 = vand.u32 4294901760, %v24871_v17  ;;  %v30177_v52 = vand.u32 4294901760, %v24787_v29  ;;  %v30179_v21 = vand.u32 4294901760, %v25134_v23  ;;  %533 = vmatmul.mubr.f32.gmra.mrb[10].mxu1 %v30181_v38  ;;  %19709 = vmatpush1.bf16.msra.mxu0 %v25092_v48 }
  0xb0   :  { %v2260_v6 = vsub.f32 %v24863_v33, %v30172_v28  ;;  %v2272_v16 = vsub.f32 %v24868_v60, %v30173_v46  ;;  %v25188_v19 = vpack.c.bf16 %v30174_v59, %v29574_v40  ;;  %v30178_v28 = vand.u32 4294901760, %v25131_v36  ;;  %538 = vmatprep.mubr.f32.mxu1 %v30077_v47  ;;  %19711 = vmatprep.subr.bf16.mxu0 %v25100_v45 }
  0xb1   :  { %v2266_v53 = vsub.f32 %v24871_v17, %v30176_v27  ;;  %v1120_v44 = vsub.f32 %v24787_v29, %v30177_v52  ;;  %941 = vmatmul.mubr.f32.gmra.mrb[12].mxu0 %v30182_v14  ;;  %v30183_v25 = vand.u32 4294901760, %v24875_v5  ;;  %v30184_v27 = vand.u32 4294901760, %v24789_v24 }
  0xb2   :  { %30175 = vst [vmem:[#allocation78_spill] sm:$0xff] %v25188_v19  ;;  %v25200_v46 = vpack.c.bf16 %v30179_v21, %v30178_v28  ;;  %v30185_v21 = vand.u32 4294901760, %v24878_v18  ;;  %v29584_v38 = vand.u32 4294901760, %v25172_v13  ;;  %946 = vmatprep.mubr.f32.mxu0 %v30077_v47  ;;  %v25224_v19 = vpack.c.bf16 %v2249_v34, %v2237_v58 }
  0xb3   :  { %v2278_v59 = vsub.f32 %v24875_v5, %v30183_v25  ;;  %v1132_v40 = vsub.f32 %v24789_v24, %v30184_v27  ;;  %v29583_v27 = vand.u32 4294901760, %v25174_v42  ;;  %v2261_v52 = vand.u32 4294901760, %v2260_v6  ;;  %541 = vmatmul.mubr.f32.gmra.mrb[12].mxu1 %v30192_v20  ;;  %19713 = vmatpush1.bf16.msra.mxu0 %v25138_v26 }
  0xb4   :  { %30180 = vst [vmem:[#allocation79_spill] sm:$0xff] %v25200_v46  ;;  %v2284_v28 = vsub.f32 %v24878_v18, %v30185_v21  ;;  %v30186_v46 = vand.u32 4294901760, %v24881_v51  ;;  %30187 = vst [vmem:[#allocation80_spill] sm:$0xff] %v25224_v19  ;;  %v2273_v48 = vand.u32 4294901760, %v2272_v16  ;;  %v30188_v37 = vand.u32 4294901760, %v25163_v8  ;;  %546 = vmatprep.mubr.f32.mxu1 %v30077_v47  ;;  %19715 = vmatprep.subr.bf16.mxu0 %v25224_v19 }
  0xb5   :  { %v30189_v21 = vand.u32 4294901760, %v25166_v35  ;;  %v2267_v14 = vand.u32 4294901760, %v2266_v53  ;;  %v25236_v4 = vpack.c.bf16 %v29583_v27, %v29584_v38  ;;  %948 = vmatmul.mubr.f32.gmra.mrb[14].mxu0 %v24606_v10  ;;  %v2279_v58 = vand.u32 4294901760, %v2278_v59 }
  0xb6   :  { %v2296_v25 = vsub.f32 %v24881_v51, %v30186_v46  ;;  %v1121_v46 = vand.u32 4294901760, %v1120_v44  ;;  %v1133_v34 = vand.u32 4294901760, %v1132_v40  ;;  %v30193_v16 = vand.u32 4294901760, %v24894_v62  ;;  %2226 = vmatprep.mubr.f32.mxu0 %v30077_v47 }
  0xb7   :  { %v25230_v50 = vpack.c.bf16 %v30189_v21, %v30188_v37  ;;  %30191 = vst [vmem:[#allocation82_spill] sm:$0xff] %v25236_v4  ;;  %v30194_v37 = vand.u32 4294901760, %v24904_v49  ;;  %v25248_v53 = vpack.c.bf16 %v2255_v22, %v2243_v31  ;;  %v2285_v21 = vand.u32 4294901760, %v2284_v28  ;;  %v30199_v4 = vld [vmem:[#allocation41_spill] sm:$0xff] }
  0xb8   :  { %v2290_v6 = vsub.f32 %v24894_v62, %v30193_v16  ;;  %v2297_v27 = vand.u32 4294901760, %v2296_v25  ;;  %v25252_v40 = vpack.c.bf16 %v2273_v48, %v2261_v52  ;;  %v30197_v59 = vand.u32 4294901760, %v24925_v11  ;;  %549 = vmatmul.mubr.f32.gmra.mrb[14].mxu1 %v30199_v4 }
  0xb9   :  { %30190 = vst [vmem:[#allocation81_spill] sm:$0xff] %v25230_v50  ;;  %v2302_v44 = vsub.f32 %v24904_v49, %v30194_v37  ;;  %30195 = vst [vmem:[#allocation38_spill] sm:$0xff] %v25248_v53  ;;  %v30198_v37 = vand.u32 4294901760, %v24930_v57  ;;  %2227 = vmatmul.mubr.f32.vlgmr.msra.gmra.mrb[16].mxu0 %v30077_v47  ;;  %v25262_v31 = vpack.c.bf16 %v2279_v58, %v2267_v14  ;;  %1022 = vmatprep.mubr.f32.mxu1 %v30077_v47 }
  0xba   :  { %30196 = vst [vmem:[#allocation83_spill] sm:$0xff] %v25252_v40  ;;  %v2308_v16 = vsub.f32 %v24925_v11, %v30197_v59  ;;  %v19664_v22 = vpack.c.bf16 %v1133_v34, %v1121_v46  ;;  %v2291_v28 = vand.u32 4294901760, %v2290_v6  ;;  %19717 = vmatpush1.bf16.msra.mxu0 %v25248_v53  ;;  %v25266_v48 = vpack.c.bf16 %v2297_v27, %v2285_v21  ;;  %v30206_v21 = vld [vmem:[#allocation26_spill] sm:$0xff] }
  0xbb   :  { %v2320_v38 = vsub.f32 %v24930_v57, %v30198_v37  ;;  %30200 = vst [vmem:[#allocation41_spill] sm:$0xff] %v25262_v31  ;;  %v2303_v25 = vand.u32 4294901760, %v2302_v44  ;;  %v30202_v52 = vand.u32 4294901760, %v24935_v9  ;;  %v30203_v37 = vand.u32 4294901760, %v24943_v12  ;;  %19719 = vmatprep.subr.bf16.mxu0 %v25252_v40  ;;  %2457 = vmatprep.mubr.f32.mxu0 %v30077_v47 }
  0xbc   :  { %30201 = vst [vmem:[#allocation84_spill] sm:$0xff] %v25266_v48  ;;  %v2309_v14 = vand.u32 4294901760, %v2308_v16  ;;  %v30204_v58 = vand.u32 4294901760, %v25013_v1  ;;  %v30205_v6 = vand.u32 4294901760, %v25018_v39  ;;  %v19666_v44 = vpack.c.bf16 %v24721_v3, %v24719_v2  ;;  %1028 = vmatmul.mubr.f32.vlgmr.msra.gmra.mrb[16].mxu1 %v30206_v21 }
  0xbd   :  { %v2314_v59 = vsub.f32 %v24935_v9, %v30202_v52  ;;  %v2326_v19 = vsub.f32 %v24943_v12, %v30203_v37  ;;  %v2321_v46 = vand.u32 4294901760, %v2320_v38  ;;  %v25285_v52 = vpack.c.bf16 %v2303_v25, %v2291_v28  ;;  %19665 = vmatpush1.bf16.msra.mxu1 %v19664_v22  ;;  %1033 = vmatprep.mubr.f32.mxu1 %v30077_v47  ;;  %v30213_v22 = vld [vmem:[#allocation27_spill] sm:$0xff] }
  0xbe   :  { %v2332_v34 = vsub.f32 %v25013_v1, %v30204_v58  ;;  %v2344_v27 = vsub.f32 %v25018_v39, %v30205_v6  ;;  %v30208_v16 = vand.u32 4294901760, %v25027_v55  ;;  %v30209_v37 = vand.u32 4294901760, %v25032_v32  ;;  %19721 = vmatpush1.bf16.msra.mxu0 %v25262_v31  ;;  %19667 = vmatprep.subr.bf16.mxu1 %v19666_v44 }
  0xbf   :  { %30207 = vst [vmem:[#allocation26_spill] sm:$0xff] %v25285_v52  ;;  %v2315_v6 = vand.u32 4294901760, %v2314_v59  ;;  %v2327_v40 = vand.u32 4294901760, %v2326_v19  ;;  %v30210_v53 = vand.u32 4294901760, %v25069_v7  ;;  %v30211_v3 = vand.u32 4294901760, %v25074_v41  ;;  %19723 = vmatprep.subr.bf16.mxu0 %v25266_v48 }
  0xc0   :  { %v2338_v38 = vsub.f32 %v25027_v55, %v30208_v16  ;;  %v2350_v58 = vsub.f32 %v25032_v32, %v30209_v37  ;;  %v25302_v25 = vpack.c.bf16 %v2321_v46, %v2309_v14  ;;  %v2333_v21 = vand.u32 4294901760, %v2332_v34  ;;  %1039 = vmatmul.mubr.f32.gmra.mrb[18].mxu1 %v30213_v22  ;;  %v30220_v22 = vld [vmem:[#allocation32_spill] sm:$0xff] }
  0xc1   :  { %v2356_v2 = vsub.f32 %v25069_v7, %v30210_v53  ;;  %v2368_v28 = vsub.f32 %v25074_v41, %v30211_v3  ;;  %v2345_v16 = vand.u32 4294901760, %v2344_v27  ;;  %v30214_v37 = vand.u32 4294901760, %v25083_v43  ;;  %1044 = vmatprep.mubr.f32.mxu1 %v30077_v47 }
  0xc2   :  { %30212 = vst [vmem:[#allocation85_spill] sm:$0xff] %v25302_v25  ;;  %v2339_v19 = vand.u32 4294901760, %v2338_v38  ;;  %v2351_v59 = vand.u32 4294901760, %v2350_v58  ;;  %v30215_v31 = vand.u32 4294901760, %v25088_v61  ;;  %19725 = vmatpush1.bf16.msra.mxu0 %v25285_v52  ;;  %v25313_v14 = vpack.c.bf16 %v2327_v40, %v2315_v6 }
  0xc3   :  { %v2362_v53 = vsub.f32 %v25083_v43, %v30214_v37  ;;  %v2357_v46 = vand.u32 4294901760, %v2356_v2  ;;  %v2369_v34 = vand.u32 4294901760, %v2368_v28  ;;  %19727 = vmatprep.subr.bf16.mxu0 %v25302_v25  ;;  %v25316_v27 = vpack.c.bf16 %v2345_v16, %v2333_v21  ;;  %v25779_v25 = vld [vmem:[#allocation7 + $0x1f8] sm:$0xff] }
  0xc4   :  { %v2374_v3 = vsub.f32 %v25088_v61, %v30215_v31  ;;  %30216 = vst [vmem:[#allocation27_spill] sm:$0xff] %v25313_v14  ;;  %v30218_v44 = vand.u32 4294901760, %v25121_v30  ;;  %v30219_v58 = vand.u32 4294901760, %v25124_v0  ;;  %1050 = vmatmul.mubr.f32.gmra.mrb[20].mxu1 %v30220_v22  ;;  %v25325_v37 = vpack.c.bf16 %v2351_v59, %v2339_v19 }
  0xc5   :  { %30217 = vst [vmem:[#allocation86_spill] sm:$0xff] %v25316_v27  ;;  %v2363_v40 = vand.u32 4294901760, %v2362_v53  ;;  %1055 = vmatprep.mubr.f32.mxu1 %v30077_v47  ;;  %v25329_v2 = vpack.c.bf16 %v2369_v34, %v2357_v46  ;;  %v30223_v28 = vand.u32 4294901760, %v25131_v36  ;;  %v30224_v16 = vand.u32 4294901760, %v25134_v23  ;;  %v30227_v34 = vld [vmem:[#allocation36_spill] sm:$0xff] }
  0xc6   :  { %v2380_v38 = vsub.f32 %v25121_v30, %v30218_v44  ;;  %v2392_v31 = vsub.f32 %v25124_v0, %v30219_v58  ;;  %30221 = vst [vmem:[#allocation32_spill] sm:$0xff] %v25325_v37  ;;  %v2375_v6 = vand.u32 4294901760, %v2374_v3  ;;  %19729 = vmatpush1.bf16.msra.mxu0 %v25313_v14  ;;  %v30225_v53 = vand.u32 4294901760, %v25163_v8 }
  0xc7   :  { %30222 = vst [vmem:[#allocation87_spill] sm:$0xff] %v25329_v2  ;;  %v2386_v21 = vsub.f32 %v25131_v36, %v30223_v28  ;;  %v2398_v44 = vsub.f32 %v25134_v23, %v30224_v16  ;;  %19731 = vmatprep.subr.bf16.mxu0 %v25316_v27  ;;  %v30226_v58 = vand.u32 4294901760, %v25166_v35 }
  0xc8   :  { %v2381_v19 = vand.u32 4294901760, %v2380_v38  ;;  %v2393_v59 = vand.u32 4294901760, %v2392_v31  ;;  %v2404_v3 = vsub.f32 %v25163_v8, %v30225_v53  ;;  %1061 = vmatmul.mubr.f32.gmra.mrb[22].mxu1 %v30227_v34  ;;  %v25345_v22 = vpack.c.bf16 %v2375_v6, %v2363_v40  ;;  %v30232_v34 = vld [vmem:[#allocation39_spill] sm:$0xff] }
  0xc9   :  { %v2416_v46 = vsub.f32 %v25166_v35, %v30226_v58  ;;  %1066 = vmatprep.mubr.f32.mxu1 %v30077_v47  ;;  %v2387_v28 = vand.u32 4294901760, %v2386_v21  ;;  %v2399_v16 = vand.u32 4294901760, %v2398_v44  ;;  %v30229_v38 = vand.u32 4294901760, %v25172_v13 }
  0xca   :  { %30228 = vst [vmem:[#allocation36_spill] sm:$0xff] %v25345_v22  ;;  %19733 = vmatpush1.bf16.msra.mxu0 %v25325_v37  ;;  %v30230_v53 = vand.u32 4294901760, %v25174_v42  ;;  %v25356_v58 = vpack.c.bf16 %v2393_v59, %v2381_v19  ;;  %v2405_v40 = vand.u32 4294901760, %v2404_v3  ;;  %v25374_v59 = vpack.c.bf16 %v24845_v56, %v24840_v15  ;;  %v30238_v3 = vld [vmem:[#allocation44_spill] sm:$0xff]  ;;  %v30244_v15 = vld [vmem:[#allocation15_spill] sm:$0xff] }
  0xcb   :  { %v2410_v31 = vsub.f32 %v25172_v13, %v30229_v38  ;;  %19735 = vmatprep.subr.bf16.mxu0 %v25329_v2  ;;  %v2417_v6 = vand.u32 4294901760, %v2416_v46  ;;  %v25361_v21 = vpack.c.bf16 %v2399_v16, %v2387_v28  ;;  %v25386_v46 = vpack.c.bf16 %v24868_v60, %v24863_v33  ;;  %v30241_v28 = vld [vmem:[#allocation45_spill] sm:$0xff]  ;;  %v30248_v33 = vld [vmem:[#allocation16_spill] sm:$0xff]  ;;  %v30275_v16 = vld [vmem:[#allocation55_spill] sm:$0xff] }
  0xcc   :  { %v2422_v27 = vsub.f32 %v25174_v42, %v30230_v53  ;;  %30231 = vst [vmem:[#allocation88_spill] sm:$0xff] %v25356_v58  ;;  %1072 = vmatmul.mubr.f32.gmra.mrb[24].mxu1 %v30232_v34  ;;  %v30235_v53 = vld [vmem:[#allocation42_spill] sm:$0xff]  ;;  %30237 = vst [vmem:[#allocation90_spill] sm:$0xff] %v25374_v59  ;;  %v25394_v56 = vpack.c.bf16 %v24875_v5, %v24871_v17  ;;  %v25401_v60 = vpack.c.bf16 %v24881_v51, %v24878_v18  ;;  %v25692_v2 = vld [vmem:[#allocation7 + $0x170] sm:$0xff] }
  0xcd   :  { %1077 = vmatprep.mubr.f32.mxu1 %v30077_v47  ;;  %30233 = vst [vmem:[#allocation39_spill] sm:$0xff] %v25361_v21  ;;  %v2411_v44 = vand.u32 4294901760, %v2410_v31  ;;  %v25364_v37 = vpack.c.bf16 %v2417_v6, %v2405_v40  ;;  %30240 = vst [vmem:[#allocation91_spill] sm:$0xff] %v25386_v46  ;;  %v25422_v17 = vpack.c.bf16 %v24943_v12, %v24935_v9  ;;  %v30260_v12 = vld [vmem:[#allocation30_spill] sm:$0xff]  ;;  %v30276_v31 = vld [vmem:[#allocation56_spill] sm:$0xff] }
  0xce   :  { %19737 = vmatpush1.bf16.msra.mxu0 %v25345_v22  ;;  %v2423_v38 = vand.u32 4294901760, %v2422_v27  ;;  %v25381_v27 = vpack.c.bf16 %v24858_v63, %v24853_v54  ;;  %30242 = vst [vmem:[#allocation45_spill] sm:$0xff] %v25394_v56  ;;  %v19668_v54 = vpack.c.bf16 %v24789_v24, %v24787_v29  ;;  %30243 = vst [vmem:[#allocation92_spill] sm:$0xff] %v25401_v60  ;;  %v30247_v29 = vld [vmem:[#allocation47_spill] sm:$0xff]  ;;  %v30277_v40 = vld [vmem:[#allocation25_spill] sm:$0xff] }
  0xcf   :  { %19739 = vmatprep.subr.bf16.mxu0 %v25356_v58  ;;  %30234 = vst [vmem:[#allocation89_spill] sm:$0xff] %v25364_v37  ;;  %v25408_v63 = vpack.c.bf16 %v24904_v49, %v24894_v62  ;;  %v25414_v24 = vpack.c.bf16 %v24930_v57, %v24925_v11  ;;  %30249 = vst [vmem:[#allocation47_spill] sm:$0xff] %v25422_v17  ;;  %v25427_v5 = vpack.c.bf16 %v25018_v39, %v25013_v1  ;;  %v30251_v57 = vld [vmem:[#allocation19_spill] sm:$0xff]  ;;  %v30257_v11 = vld [vmem:[#allocation28_spill] sm:$0xff] }
  0xd0   :  { %1083 = vmatmul.mubr.f32.gmra.mrb[26].mxu1 %v30235_v53  ;;  %v25369_v19 = vpack.c.bf16 %v2423_v38, %v2411_v44  ;;  %30239 = vst [vmem:[#allocation44_spill] sm:$0xff] %v25381_v27  ;;  %v25434_v18 = vpack.c.bf16 %v25032_v32, %v25027_v55  ;;  %v25439_v51 = vpack.c.bf16 %v25074_v41, %v25069_v7  ;;  %v30254_v62 = vld [vmem:[#allocation23_spill] sm:$0xff]  ;;  %v30263_v1 = vld [vmem:[#allocation46_spill] sm:$0xff]  ;;  %v30264_v39 = vld [vmem:[#allocation48_spill] sm:$0xff] }
  0xd1   :  { %1088 = vmatprep.mubr.f32.mxu1 %v30077_v47  ;;  %30245 = vst [vmem:[#allocation15_spill] sm:$0xff] %v25408_v63  ;;  %30246 = vst [vmem:[#allocation93_spill] sm:$0xff] %v25414_v24  ;;  %v25446_v49 = vpack.c.bf16 %v25088_v61, %v25083_v43  ;;  %v25451_v55 = vpack.c.bf16 %v25124_v0, %v25121_v30  ;;  %v25458_v41 = vpack.c.bf16 %v25134_v23, %v25131_v36  ;;  %v30262_v23 = vld [vmem:[#allocation33_spill] sm:$0xff]  ;;  %v30267_v7 = vld [vmem:[#allocation50_spill] sm:$0xff] }
  0xd2   :  { %19741 = vmatpush1.bf16.msra.mxu0 %v25361_v21  ;;  %30236 = vst [vmem:[#allocation42_spill] sm:$0xff] %v25369_v19  ;;  %30250 = vst [vmem:[#allocation16_spill] sm:$0xff] %v25427_v5  ;;  %v25463_v9 = vpack.c.bf16 %v25166_v35, %v25163_v8  ;;  %v25470_v30 = vpack.c.bf16 %v25174_v42, %v25172_v13  ;;  %v30265_v32 = vld [vmem:[#allocation49_spill] sm:$0xff]  ;;  %v30268_v61 = vld [vmem:[#allocation51_spill] sm:$0xff] }
  0xd3   :  { %19743 = vmatprep.subr.bf16.mxu0 %v25364_v37  ;;  %30252 = vst [vmem:[#allocation19_spill] sm:$0xff] %v25434_v18  ;;  %30253 = vst [vmem:[#allocation94_spill] sm:$0xff] %v25439_v51  ;;  %v30266_v43 = vld [vmem:[#allocation17_spill] sm:$0xff]  ;;  %v30269_v36 = vld [vmem:[#allocation52_spill] sm:$0xff] }
  0xd4   :  { %1094 = vmatmul.mubr.f32.gmra.mrb[28].mxu1 %v30238_v3  ;;  %30255 = vst [vmem:[#allocation23_spill] sm:$0xff] %v25446_v49  ;;  %30256 = vst [vmem:[#allocation95_spill] sm:$0xff] %v25451_v55  ;;  %v30270_v0 = vld [vmem:[#allocation62_spill] sm:$0xff]  ;;  %v30272_v35 = vld [vmem:[#allocation53_spill] sm:$0xff] }
  0xd5   :  { %1099 = vmatprep.mubr.f32.mxu1 %v30077_v47  ;;  %30258 = vst [vmem:[#allocation28_spill] sm:$0xff] %v25458_v41  ;;  %30259 = vst [vmem:[#allocation96_spill] sm:$0xff] %v25463_v9  ;;  %v30271_v8 = vld [vmem:[#allocation18_spill] sm:$0xff]  ;;  %v30278_v6 = vld [vmem:[#allocation57_spill] sm:$0xff] }
  0xd6   :  { %19745 = vmatpush1.bf16.msra.mxu0 %v25369_v19  ;;  %30261 = vst [vmem:[#allocation30_spill] sm:$0xff] %v25470_v30  ;;  %v30273_v13 = vld [vmem:[#allocation54_spill] sm:$0xff]  ;;  %v30280_v44 = vld [vmem:[#allocation31_spill] sm:$0xff]  ;;  %v30281_v38 = vld [vmem:[#allocation68_spill] sm:$0xff] }
  0xd7   :  { %19747 = vmatprep.subr.bf16.mxu0 %v25374_v59  ;;  %v30274_v42 = vld [vmem:[#allocation22_spill] sm:$0xff]  ;;  %v30282_v53 = vld [vmem:[#allocation69_spill] sm:$0xff]  ;;  %v30283_v3 = vld [vmem:[#allocation35_spill] sm:$0xff] }
  0xd8   :  { %1105 = vmatmul.mubr.f32.gmra.mrb[30].mxu1 %v30241_v28  ;;  %v30279_v34 = vld [vmem:[#allocation58_spill] sm:$0xff]  ;;  %v30284_v28 = vld [vmem:[#allocation71_spill] sm:$0xff]  ;;  %v25690_v22 = vld [vmem:[#allocation7 + $0x150] sm:$0xff] }
  0xd9   :  { %2458 = vmatmul.mubr.f32.vlgmr.msra.gmra.mrb[16].mxu0 %v30077_v47  ;;  %1195 = vmatprep.mubr.f32.mxu1 %v30077_v47 }
  0xda   :  { %19749 = vmatpush1.bf16.msra.mxu0 %v25381_v27  ;;  %2592 = vmatprep.mubr.f32.mxu0 %v30077_v47  ;;  %v25670_v27 = vld [vmem:[#allocation7 + $0x130] sm:$0xff] }
  0xdb   :  { %19751 = vmatprep.subr.bf16.mxu0 %v25386_v46  ;;  %v25660_v46 = vld [vmem:[#allocation7 + $0x110] sm:$0xff] }
  0xdc   :  { %1197 = vmatmul.mubr.f32.vlgmr.msra.gmra.mrb[16].mxu1 %v30244_v15 }
  0xdd   :  { %19669 = vmatpush1.bf16.msra.mxu1 %v19668_v54  ;;  %1202 = vmatprep.mubr.f32.mxu1 %v30077_v47  ;;  %v30285_v54 = vld [vmem:[#allocation59_spill] sm:$0xff] }
  0xde   :  { %19753 = vmatpush1.bf16.msra.mxu0 %v25394_v56  ;;  %19671 = vmatprep.subr.bf16.mxu1 %v30247_v29  ;;  %v25658_v56 = vld [vmem:[#allocation7 + $0x138] sm:$0xff] }
  0xdf   :  { %19755 = vmatprep.subr.bf16.mxu0 %v25401_v60  ;;  %v25656_v60 = vld [vmem:[#allocation7 + $0x118] sm:$0xff] }
  0xe0   :  { %1204 = vmatmul.mubr.f32.gmra.mrb[18].mxu1 %v30248_v33  ;;  %v30331_v58 = vand.u32 4294901760, %v25656_v60 }
  0xe1   :  { %1209 = vmatprep.mubr.f32.mxu1 %v30077_v47 }
  0xe2   :  { %19757 = vmatpush1.bf16.msra.mxu0 %v25408_v63 }
  0xe3   :  { %19759 = vmatprep.subr.bf16.mxu0 %v25414_v24 }
  0xe4   :  { %1211 = vmatmul.mubr.f32.gmra.mrb[20].mxu1 %v30251_v57 }
  0xe5   :  { %1216 = vmatprep.mubr.f32.mxu1 %v30077_v47 }
  0xe6   :  { %19761 = vmatpush1.bf16.msra.mxu0 %v25422_v17 }
  0xe7   :  { %19763 = vmatprep.subr.bf16.mxu0 %v25427_v5  ;;  %v25641_v5 = vld [vmem:[#allocation7 + $0xf0] sm:$0xff] }
  0xe8   :  { %1218 = vmatmul.mubr.f32.gmra.mrb[22].mxu1 %v30254_v62 }
  0xe9   :  { %1223 = vmatprep.mubr.f32.mxu1 %v30077_v47 }
  0xea   :  { %19765 = vmatpush1.bf16.msra.mxu0 %v25434_v18  ;;  %v25639_v18 = vld [vmem:[#allocation7 + $0xd0] sm:$0xff] }
  0xeb   :  { %19767 = vmatprep.subr.bf16.mxu0 %v25439_v51  ;;  %v25633_v51 = vld [vmem:[#allocation7 + $0xd8] sm:$0xff] }
  0xec   :  { %1225 = vmatmul.mubr.f32.gmra.mrb[24].mxu1 %v30257_v11 }
  0xed   :  { %1230 = vmatprep.mubr.f32.mxu1 %v30077_v47 }
  0xee   :  { %19769 = vmatpush1.bf16.msra.mxu0 %v25446_v49 }
  0xef   :  { %19771 = vmatprep.subr.bf16.mxu0 %v25451_v55  ;;  %v25612_v55 = vld [vmem:[#allocation7 + $0xb0] sm:$0xff] }
  0xf0   :  { %1232 = vmatmul.mubr.f32.gmra.mrb[26].mxu1 %v30260_v12 }
  0xf1   :  { %1237 = vmatprep.mubr.f32.mxu1 %v30077_v47 }
  0xf2   :  { %19773 = vmatpush1.bf16.msra.mxu0 %v25458_v41  ;;  %v25610_v41 = vld [vmem:[#allocation7 + $0x90] sm:$0xff] }
  0xf3   :  { %19775 = vmatprep.subr.bf16.mxu0 %v25463_v9 }
  0xf4   :  { %1239 = vmatmul.mubr.f32.gmra.mrb[28].mxu1 %v30262_v23 }
  0xf5   :  { %1244 = vmatprep.mubr.f32.mxu1 %v30077_v47 }
  0xf6   :  { %19777 = vmatpush1.bf16.msra.mxu0 %v25470_v30  ;;  %v25637_v30 = vld [vmem:[#allocation7 + $0xf8] sm:$0xff] }
  0xf7   :  { %19779 = vmatprep.subr.bf16.mxu0 %v30263_v1 }
  0xf8   :  { %1246 = vmatmul.mubr.f32.gmra.mrb[30].mxu1 %v24606_v10 }
  0xf9   :  { %2593 = vmatmul.mubr.f32.vlgmr.msra.gmra.mrb[16].mxu0 %v30077_v47  ;;  %1324 = vmatprep.mubr.f32.mxu1 %v30077_v47 }
  0xfa   :  { %19781 = vmatpush1.bf16.msra.mxu0 %v30264_v39  ;;  %2695 = vmatprep.mubr.f32.mxu0 %v30077_v47 }
  0xfb   :  { %19783 = vmatprep.subr.bf16.mxu0 %v30265_v32 }
  0xfc   :  { %1327 = vmatmul.mubr.f32.vlgmr.msra.gmra.mrb[16].mxu1 %v30266_v43  ;;  %v30286_v43 = vld [vmem:[#allocation60_spill] sm:$0xff] }
  0xfd   :  { %19673 = vmatpush1.bf16.msra.mxu1 %v30268_v61  ;;  %1332 = vmatprep.mubr.f32.mxu1 %v30077_v47 }
  0xfe   :  { %19785 = vmatpush1.bf16.msra.mxu0 %v30267_v7  ;;  %19675 = vmatprep.subr.bf16.mxu1 %v30270_v0  ;;  %v30287_v0 = vld [vmem:[#allocation61_spill] sm:$0xff] }
  0xff   :  { %19787 = vmatprep.subr.bf16.mxu0 %v30269_v36 }
 0x100   :  { %1335 = vmatmul.mubr.f32.gmra.mrb[18].mxu1 %v30271_v8  ;;  %v30288_v8 = vld [vmem:[#allocation20_spill] sm:$0xff] }
 0x101   :  { %1340 = vmatprep.mubr.f32.mxu1 %v30077_v47 }
 0x102   :  { %19789 = vmatpush1.bf16.msra.mxu0 %v30272_v35 }
 0x103   :  { %19791 = vmatprep.subr.bf16.mxu0 %v30273_v13 }
 0x104   :  { %1343 = vmatmul.mubr.f32.gmra.mrb[20].mxu1 %v30274_v42  ;;  %v30290_v42 = vld [vmem:[#allocation64_spill] sm:$0xff] }
 0x105   :  { %1348 = vmatprep.mubr.f32.mxu1 %v30077_v47 }
 0x106   :  { %19793 = vmatpush1.bf16.msra.mxu0 %v30275_v16 }
 0x107   :  { %19795 = vmatprep.subr.bf16.mxu0 %v30276_v31 }
 0x108   :  { %1351 = vmatmul.mubr.f32.gmra.mrb[22].mxu1 %v30277_v40  ;;  %v30291_v40 = vld [vmem:[#allocation65_spill] sm:$0xff] }
 0x109   :  { %1356 = vmatprep.mubr.f32.mxu1 %v30077_v47 }
 0x10a   :  { %19797 = vmatpush1.bf16.msra.mxu0 %v30278_v6 }
 0x10b   :  { %19799 = vmatprep.subr.bf16.mxu0 %v30279_v34 }
 0x10c   :  { %1359 = vmatmul.mubr.f32.gmra.mrb[24].mxu1 %v30280_v44  ;;  %v30293_v44 = vld [vmem:[#allocation66_spill] sm:$0xff] }
 0x10d   :  { %1364 = vmatprep.mubr.f32.mxu1 %v30077_v47 }
 0x10e   :  { %19801 = vmatpush1.bf16.msra.mxu0 %v30281_v38 }
 0x10f   :  { %19803 = vmatprep.subr.bf16.mxu0 %v30282_v53 }
 0x110   :  { %1367 = vmatmul.mubr.f32.gmra.mrb[26].mxu1 %v30283_v3  ;;  %v30294_v3 = vld [vmem:[#allocation67_spill] sm:$0xff] }
 0x111   :  { %1372 = vmatprep.mubr.f32.mxu1 %v30077_v47 }
 0x112   :  { %19805 = vmatpush1.bf16.msra.mxu0 %v30284_v28 }
 0x113   :  { %19807 = vmatprep.subr.bf16.mxu0 %v25100_v45 }
 0x114   :  { %1375 = vmatmul.mubr.f32.gmra.mrb[28].mxu1 %v30192_v20  ;;  %v30289_v20 = vld [vmem:[#allocation63_spill] sm:$0xff] }
 0x115   :  { %1380 = vmatprep.mubr.f32.mxu1 %v30077_v47 }
 0x116   :  { %19809 = vmatpush1.bf16.msra.mxu0 %v25138_v26 }
 0x117   :  { %19811 = vmatprep.subr.bf16.mxu0 %v30285_v54  ;;  %v25606_v54 = vld [vmem:[#allocation7 + $0xb8] sm:$0xff] }
 0x118   :  { %1383 = vmatmul.mubr.f32.gmra.mrb[30].mxu1 %v30199_v4  ;;  %v30292_v4 = vld [vmem:[#allocation21_spill] sm:$0xff] }
 0x119   :  { %2696 = vmatmul.mubr.f32.vlgmr.msra.gmra.mrb[16].mxu0 %v30077_v47  ;;  %1457 = vmatprep.mubr.f32.mxu1 %v30077_v47 }
 0x11a   :  { %19813 = vmatpush1.bf16.msra.mxu0 %v30286_v43  ;;  %2862 = vmatprep.mubr.f32.mxu0 %v30077_v47  ;;  %v25604_v43 = vld [vmem:[#allocation7 + $0x98] sm:$0xff] }
 0x11b   :  { %19815 = vmatprep.subr.bf16.mxu0 %v30287_v0  ;;  %v30295_v0 = vld [vmem:[#allocation24_spill] sm:$0xff] }
 0x11c   :  { %1461 = vmatmul.mubr.f32.vlgmr.msra.gmra.mrb[16].mxu1 %v30288_v8  ;;  %v30296_v8 = vld [vmem:[#allocation70_spill] sm:$0xff] }
 0x11d   :  { %19677 = vmatpush1.bf16.msra.mxu1 %v30290_v42  ;;  %1466 = vmatprep.mubr.f32.mxu1 %v30077_v47  ;;  %v30297_v42 = vld [vmem:[#allocation72_spill] sm:$0xff] }
 0x11e   :  { %19817 = vmatpush1.bf16.msra.mxu0 %v30289_v20  ;;  %19679 = vmatprep.subr.bf16.mxu1 %v30247_v29  ;;  %v30298_v20 = vld [vmem:[#allocation29_spill] sm:$0xff]  ;;  %v30300_v29 = vld [vmem:[#allocation76_spill] sm:$0xff] }
 0x11f   :  { %19819 = vmatprep.subr.bf16.mxu0 %v30291_v40  ;;  %v30299_v40 = vld [vmem:[#allocation74_spill] sm:$0xff] }
 0x120   :  { %1470 = vmatmul.mubr.f32.gmra.mrb[18].mxu1 %v30292_v4  ;;  %v30301_v4 = vld [vmem:[#allocation34_spill] sm:$0xff] }
 0x121   :  { %1475 = vmatprep.mubr.f32.mxu1 %v30077_v47 }
 0x122   :  { %19821 = vmatpush1.bf16.msra.mxu0 %v30293_v44  ;;  %v30302_v44 = vld [vmem:[#allocation77_spill] sm:$0xff] }
 0x123   :  { %19823 = vmatprep.subr.bf16.mxu0 %v30294_v3  ;;  %v30305_v3 = vld [vmem:[#allocation79_spill] sm:$0xff] }
 0x124   :  { %1479 = vmatmul.mubr.f32.gmra.mrb[20].mxu1 %v30295_v0  ;;  %v30303_v0 = vld [vmem:[#allocation78_spill] sm:$0xff] }
 0x125   :  { %1484 = vmatprep.mubr.f32.mxu1 %v30077_v47 }
 0x126   :  { %19825 = vmatpush1.bf16.msra.mxu0 %v30296_v8  ;;  %v30304_v8 = vld [vmem:[#allocation37_spill] sm:$0xff] }
 0x127   :  { %19827 = vmatprep.subr.bf16.mxu0 %v30297_v42  ;;  %v25602_v42 = vld [vmem:[#allocation7 + $0x70] sm:$0xff] }
 0x128   :  { %1488 = vmatmul.mubr.f32.gmra.mrb[22].mxu1 %v30298_v20  ;;  %v30306_v20 = vld [vmem:[#allocation40_spill] sm:$0xff] }
 0x129   :  { %1493 = vmatprep.mubr.f32.mxu1 %v30077_v47 }
 0x12a   :  { %19829 = vmatpush1.bf16.msra.mxu0 %v30299_v40  ;;  %v25546_v40 = vld [vmem:[#allocation7 + $0x18] sm:$0xff] }
 0x12b   :  { %19831 = vmatprep.subr.bf16.mxu0 %v30300_v29  ;;  %v25548_v29 = vld [vmem:[#allocation7 + $0x38] sm:$0xff]  ;;  %v30323_v59 = vand.u32 4294901760, %v25546_v40 }
 0x12c   :  { %1497 = vmatmul.mubr.f32.gmra.mrb[24].mxu1 %v30301_v4  ;;  %v30307_v4 = vld [vmem:[#allocation82_spill] sm:$0xff]  ;;  %v30324_v37 = vand.u32 4294901760, %v25548_v29 }
 0x12d   :  { %1502 = vmatprep.mubr.f32.mxu1 %v30077_v47  ;;  %v25679_v19 = vsub.f32 %v25546_v40, %v30323_v59  ;;  %v29656_v59 = vand.u32 4294901760, %v25641_v5 }
 0x12e   :  { %19833 = vmatpush1.bf16.msra.mxu0 %v30302_v44  ;;  %v25684_v21 = vsub.f32 %v25548_v29, %v30324_v37 }
 0x12f   :  { %19835 = vmatprep.subr.bf16.mxu0 %v30303_v0  ;;  %v30308_v0 = vld [vmem:[#allocation43_spill] sm:$0xff] }
 0x130   :  { %1506 = vmatmul.mubr.f32.gmra.mrb[26].mxu1 %v30304_v8  ;;  %v29599_v8 = vand.u32 4294901760, %v25546_v40  ;;  %v30344_v52 = vand.u32 4294901760, %v25684_v21 }
 0x131   :  { %1511 = vmatprep.mubr.f32.mxu1 %v30077_v47 }
 0x132   :  { %19837 = vmatpush1.bf16.msra.mxu0 %v30305_v3  ;;  %v29598_v3 = vand.u32 4294901760, %v25548_v29  ;;  %v3090_v48 = vsub.f32 %v25684_v21, %v30344_v52 }
 0x133   :  { %19839 = vmatprep.subr.bf16.mxu0 %v25230_v50 }
 0x134   :  { %1515 = vmatmul.mubr.f32.gmra.mrb[28].mxu1 %v30306_v20  ;;  %v25565_v20 = vpack.c.bf16 %v29598_v3, %v29599_v8  ;;  %v25593_v3 = vld [vmem:[#allocation7 + $0x58] sm:$0xff] }
 0x135   :  { %1520 = vmatprep.mubr.f32.mxu1 %v30077_v47  ;;  %v25595_v8 = vld [vmem:[#allocation7 + $0x78] sm:$0xff]  ;;  %v30311_v17 = vand.u32 4294901760, %v25593_v3  ;;  %v30327_v40 = vand.u32 4294901760, %v25593_v3 }
 0x136   :  { %19841 = vmatpush1.bf16.msra.mxu0 %v30307_v4  ;;  %30309 = vst [vmem:[#allocation33_spill] sm:$0xff] %v25565_v20  ;;  %v25598_v4 = vld [vmem:[#allocation7 + $0x50] sm:$0xff]  ;;  %v30312_v49 = vand.u32 4294901760, %v25595_v8 }
 0x137   :  { %19843 = vmatprep.subr.bf16.mxu0 %v30263_v1 }
 0x138   :  { %1524 = vmatmul.mubr.f32.gmra.mrb[30].mxu1 %v30308_v0  ;;  %v2072_v0 = vld [vmem:[#allocation7 + $0x30] sm:$0xff]  ;;  %v25631_v24 = vpack.c.bf16 %v30312_v49, %v30311_v17  ;;  %v30317_v49 = vand.u32 4294901760, %v25604_v43 }
 0x139   :  { %2863 = vmatmul.mubr.f32.vlgmr.msra.gmra.mrb[16].mxu0 %v30077_v47  ;;  %1606 = vmatprep.mubr.f32.mxu1 %v30077_v47  ;;  %v2978_v44 = vand.u32 4294901760, %v2072_v0 }
 0x13a   :  { %19845 = vmatpush1.bf16.msra.mxu0 %v30264_v39  ;;  %2965 = vmatprep.mubr.f32.mxu0 %v30077_v47  ;;  %30313 = vst [vmem:[#allocation51_spill] sm:$0xff] %v25631_v24 }
 0x13b   :  { %19847 = vmatprep.subr.bf16.mxu0 %v30265_v32  ;;  %v25700_v29 = vsub.f32 %v2072_v0, %v2978_v44  ;;  %v25732_v0 = vld [vmem:[#allocation7 + $0x190] sm:$0xff] }
 0x13c   :  { %1608 = vmatmul.mubr.f32.vlgmr.msra.gmra.mrb[16].mxu1 %v30244_v15 }
 0x13d   :  { %19681 = vmatpush1.bf16.msra.mxu1 %v30268_v61  ;;  %1613 = vmatprep.mubr.f32.mxu1 %v30077_v47  ;;  %v2068_v61 = vld [vmem:[#allocation7 + $0x10] sm:$0xff]  ;;  %v30346_v52 = vand.u32 4294901760, %v25700_v29 }
 0x13e   :  { %19849 = vmatpush1.bf16.msra.mxu0 %v30267_v7  ;;  %19875 = vmatprep.subr.bf16.mxu1 %v25565_v20  ;;  %v2974_v50 = vand.u32 4294901760, %v2068_v61 }
 0x13f   :  { %19851 = vmatprep.subr.bf16.mxu0 %v30269_v36 }
 0x140   :  { %1615 = vmatmul.mubr.f32.gmra.mrb[18].mxu1 %v30248_v33  ;;  %v25622_v9 = vpack.c.bf16 %v2978_v44, %v2974_v50  ;;  %v25694_v14 = vsub.f32 %v2068_v61, %v2974_v50  ;;  %v30325_v50 = vand.u32 4294901760, %v25637_v30  ;;  %v25721_v61 = vld [vmem:[#allocation7 + $0x198] sm:$0xff]  ;;  %v25727_v44 = vsub.f32 %v25593_v3, %v30327_v40 }
 0x141   :  { %1620 = vmatprep.mubr.f32.mxu1 %v30077_v47  ;;  %v30329_v3 = vand.u32 4294901760, %v25639_v18 }
 0x142   :  { %19853 = vmatpush1.bf16.msra.mxu0 %v30272_v35  ;;  %30310 = vst [vmem:[#allocation17_spill] sm:$0xff] %v25622_v9 }
 0x143   :  { %19855 = vmatprep.subr.bf16.mxu0 %v30273_v13  ;;  %v25746_v40 = vpack.c.bf16 %v29656_v59, %v30329_v3  ;;  %v30340_v3 = vand.u32 4294901760, %v25690_v22  ;;  %v25790_v59 = vld [vmem:[#allocation7 + $0x1d0] sm:$0xff] }
 0x144   :  { %1622 = vmatmul.mubr.f32.gmra.mrb[20].mxu1 %v30251_v57 }
 0x145   :  { %1627 = vmatprep.mubr.f32.mxu1 %v30077_v47  ;;  %30330 = vst [vmem:[#allocation31_spill] sm:$0xff] %v25746_v40 }
 0x146   :  { %19857 = vmatpush1.bf16.msra.mxu0 %v30275_v16 }
 0x147   :  { %19859 = vmatprep.subr.bf16.mxu0 %v30276_v31 }
 0x148   :  { %1629 = vmatmul.mubr.f32.gmra.mrb[22].mxu1 %v30254_v62 }
 0x149   :  { %1634 = vmatprep.mubr.f32.mxu1 %v30077_v47 }
 0x14a   :  { %19861 = vmatpush1.bf16.msra.mxu0 %v30278_v6 }
 0x14b   :  { %19863 = vmatprep.subr.bf16.mxu0 %v30279_v34 }
 0x14c   :  { %1636 = vmatmul.mubr.f32.gmra.mrb[24].mxu1 %v30257_v11 }
 0x14d   :  { %1641 = vmatprep.mubr.f32.mxu1 %v30077_v47 }
 0x14e   :  { %19865 = vmatpush1.bf16.msra.mxu0 %v30281_v38 }
 0x14f   :  { %19867 = vmatprep.subr.bf16.mxu0 %v30282_v53 }
 0x150   :  { %1643 = vmatmul.mubr.f32.gmra.mrb[26].mxu1 %v30260_v12 }
 0x151   :  { %1648 = vmatprep.mubr.f32.mxu1 %v30077_v47 }
 0x152   :  { %19869 = vmatpush1.bf16.msra.mxu0 %v30284_v28 }
 0x153   :  { %19871 = vmatprep.subr.bf16.mxu0 %v25100_v45 }
 0x154   :  { %1650 = vmatmul.mubr.f32.gmra.mrb[28].mxu1 %v30262_v23 }
 0x155   :  { %1655 = vmatprep.mubr.f32.mxu1 %v30077_v47 }
 0x156   :  { %19873 = vmatpush1.bf16.msra.mxu0 %v25138_v26 }
 0x157   :  { %20067 = vmatprep.subr.bf16.mxu0 %v30263_v1  ;;  %v30314_v1 = vand.u32 4294901760, %v25598_v4 }
 0x158   :  { %1657 = vmatmul.mubr.f32.gmra.mrb[30].mxu1 %v24606_v10 }
 0x159   :  { %2966 = vmatmul.mubr.f32.vlgmr.msra.gmra.mrb[16].mxu0 %v30077_v47  ;;  %1731 = vmatprep.mubr.f32.mxu1 %v30077_v47 }
 0x15a   :  { %20069 = vmatpush1.bf16.msra.mxu0 %v30264_v39  ;;  %4228 = vmatprep.mubr.f32.mxu0 %v30077_v47  ;;  %v30315_v39 = vand.u32 4294901760, %v25602_v42 }
 0x15b   :  { %20071 = vmatprep.subr.bf16.mxu0 %v30265_v32  ;;  %v30318_v32 = vand.u32 4294901760, %v25606_v54 }
 0x15c   :  { %1733 = vmatmul.mubr.f32.vlgmr.msra.gmra.mrb[16].mxu1 %v30244_v15  ;;  %v25648_v17 = vpack.c.bf16 %v30315_v39, %v30314_v1  ;;  %v30320_v15 = vand.u32 4294901760, %v25610_v41  ;;  %v30321_v1 = vand.u32 4294901760, %v25612_v55 }
 0x15d   :  { %v25654_v63 = vpack.c.bf16 %v30318_v32, %v30317_v49  ;;  %19877 = vmatpush1.bf16.msra.mxu1 %v25622_v9  ;;  %1738 = vmatprep.mubr.f32.mxu1 %v30077_v47  ;;  %v25672_v32 = vld [vmem:[#allocation7 + $0x158] sm:$0xff]  ;;  %v30348_v9 = vand.u32 4294901760, %v25602_v42 }
 0x15e   :  { %30316 = vst [vmem:[#allocation62_spill] sm:$0xff] %v25648_v17  ;;  %v25668_v39 = vpack.c.bf16 %v30321_v1, %v30320_v15  ;;  %v25674_v49 = vld [vmem:[#allocation7 + $0x178] sm:$0xff]  ;;  %19879 = vmatprep.subr.bf16.mxu1 %v25631_v24  ;;  %v29651_v15 = vand.u32 4294901760, %v25633_v51  ;;  %20073 = vmatpush1.bf16.msra.mxu0 %v30267_v7 }
 0x15f   :  { %30319 = vst [vmem:[#allocation18_spill] sm:$0xff] %v25654_v63  ;;  %20075 = vmatprep.subr.bf16.mxu0 %v30269_v36  ;;  %v30334_v36 = vand.u32 4294901760, %v25660_v46  ;;  %v25811_v20 = vsub.f32 %v25602_v42, %v30348_v9 }
 0x160   :  { %30322 = vst [vmem:[#allocation22_spill] sm:$0xff] %v25668_v39  ;;  %1740 = vmatmul.mubr.f32.gmra.mrb[18].mxu1 %v30248_v33  ;;  %v25719_v1 = vpack.c.bf16 %v30325_v50, %v29651_v15  ;;  %v25730_v33 = vld [vmem:[#allocation7 + $0x1b8] sm:$0xff]  ;;  %v30328_v50 = vand.u32 4294901760, %v25595_v8 }
 0x161   :  { %19881 = vmatpush1.bf16.msra.mxu1 %v25648_v17  ;;  %1745 = vmatprep.mubr.f32.mxu1 %v30077_v47 }
 0x162   :  { %19883 = vmatprep.subr.bf16.mxu1 %v25654_v63  ;;  %30326 = vst [vmem:[#allocation25_spill] sm:$0xff] %v25719_v1  ;;  %20077 = vmatpush1.bf16.msra.mxu0 %v30272_v35  ;;  %v25738_v15 = vsub.f32 %v25595_v8, %v30328_v50  ;;  %v30332_v35 = vand.u32 4294901760, %v25658_v56  ;;  %v30335_v8 = vand.u32 4294901760, %v25670_v27  ;;  %v30345_v63 = vand.u32 4294901760, %v25694_v14 }
 0x163   :  { %20079 = vmatprep.subr.bf16.mxu0 %v30273_v13  ;;  %v30338_v13 = vand.u32 4294901760, %v25674_v49 }
 0x164   :  { %1747 = vmatmul.mubr.f32.gmra.mrb[20].mxu1 %v30251_v57  ;;  %v25752_v37 = vpack.c.bf16 %v30332_v35, %v30331_v58  ;;  %v25758_v50 = vpack.c.bf16 %v30335_v8, %v30334_v36  ;;  %v30337_v57 = vand.u32 4294901760, %v25672_v32  ;;  %v30341_v58 = vand.u32 4294901760, %v25692_v2  ;;  %v25775_v36 = vld [vmem:[#allocation7 + $0x1b0] sm:$0xff]  ;;  %v25777_v8 = vld [vmem:[#allocation7 + $0x1d8] sm:$0xff] }
 0x165   :  { %19885 = vmatpush1.bf16.msra.mxu1 %v25668_v39  ;;  %1752 = vmatprep.mubr.f32.mxu1 %v30077_v47  ;;  %v25792_v39 = vld [vmem:[#allocation7 + $0x1f0] sm:$0xff]  ;;  %v3084_v17 = vsub.f32 %v25694_v14, %v30345_v63  ;;  %v30355_v42 = vand.u32 4294901760, %v25738_v15 }
 0x166   :  { %30333 = vst [vmem:[#allocation35_spill] sm:$0xff] %v25752_v37  ;;  %30336 = vst [vmem:[#allocation20_spill] sm:$0xff] %v25758_v50  ;;  %v25764_v7 = vpack.c.bf16 %v30338_v13, %v30337_v57  ;;  %v25772_v35 = vpack.c.bf16 %v30341_v58, %v30340_v3  ;;  %v30343_v13 = vand.u32 4294901760, %v25679_v19  ;;  %19887 = vmatprep.subr.bf16.mxu1 %v25719_v1  ;;  %20081 = vmatpush1.bf16.msra.mxu0 %v30275_v16 }
 0x167   :  { %v3096_v1 = vsub.f32 %v25700_v29, %v30346_v52  ;;  %v30347_v58 = vand.u32 4294901760, %v25598_v4  ;;  %20083 = vmatprep.subr.bf16.mxu0 %v30276_v31  ;;  %v30350_v52 = vand.u32 4294901760, %v25721_v61  ;;  %v30351_v3 = vand.u32 4294901760, %v25730_v33 }
 0x168   :  { %30339 = vst [vmem:[#allocation64_spill] sm:$0xff] %v25764_v7  ;;  %30342 = vst [vmem:[#allocation21_spill] sm:$0xff] %v25772_v35  ;;  %v3078_v57 = vsub.f32 %v25679_v19, %v30343_v13  ;;  %1754 = vmatmul.mubr.f32.gmra.mrb[22].mxu1 %v30254_v62  ;;  %v30349_v13 = vand.u32 4294901760, %v25604_v43  ;;  %v30354_v16 = vand.u32 4294901760, %v25606_v54 }
 0x169   :  { %v25806_v24 = vsub.f32 %v25598_v4, %v30347_v58  ;;  %19889 = vmatpush1.bf16.msra.mxu1 %v25746_v40  ;;  %1759 = vmatprep.mubr.f32.mxu1 %v30077_v47  ;;  %v3091_v58 = vand.u32 4294901760, %v3090_v48  ;;  %v25832_v63 = vpack.c.bf16 %v30351_v3, %v30350_v52  ;;  %v900_v48 = vpop.f32.mrb[0].mxu0 }
 0x16a   :  { %v25821_v4 = vsub.f32 %v25604_v43, %v30349_v13  ;;  %v3079_v62 = vand.u32 4294901760, %v3078_v57  ;;  %19891 = vmatprep.subr.bf16.mxu1 %v25752_v37  ;;  %v3085_v43 = vand.u32 4294901760, %v3084_v17  ;;  %v30353_v13 = vand.u32 4294901760, %v25727_v44  ;;  %20085 = vmatpush1.bf16.msra.mxu0 %v30278_v6  ;;  %v902_v52 = vpop.f32.mrb[1].mxu0 }
 0x16b   :  { %30352 = vst [vmem:[#allocation24_spill] sm:$0xff] %v25832_v63  ;;  %v25840_v9 = vsub.f32 %v25606_v54, %v30354_v16  ;;  %v3097_v57 = vand.u32 4294901760, %v3096_v1  ;;  %v3114_v37 = vsub.f32 %v25738_v15, %v30355_v42  ;;  %20087 = vmatprep.subr.bf16.mxu0 %v30279_v34  ;;  %v30356_v16 = vand.u32 4294901760, %v25732_v0 }
 0x16c   :  { %v3102_v31 = vsub.f32 %v25727_v44, %v30353_v13  ;;  %1761 = vmatmul.mubr.f32.gmra.mrb[24].mxu1 %v30257_v11  ;;  %v30357_v54 = vand.u32 4294901760, %v25775_v36  ;;  %v30359_v6 = vand.u32 4294901760, %v25610_v41  ;;  %v30360_v17 = vand.u32 4294901760, %v25612_v55 }
 0x16d   :  { %19893 = vmatpush1.bf16.msra.mxu1 %v25758_v50  ;;  %1766 = vmatprep.mubr.f32.mxu1 %v30077_v47  ;;  %v30361_v11 = vand.u32 4294901760, %v25777_v8  ;;  %v30364_v1 = vand.u32 4294901760, %v25790_v59  ;;  %v25881_v34 = vpack.c.bf16 %v3091_v58, %v3079_v62  ;;  %v30368_v50 = vand.u32 4294901760, %v25633_v51  ;;  %v907_v62 = vpop.f32.mrb[2].mxu0 }
 0x16e   :  { %v25854_v13 = vpack.c.bf16 %v30357_v54, %v30356_v16  ;;  %v25860_v42 = vsub.f32 %v25610_v41, %v30359_v6  ;;  %v25865_v3 = vsub.f32 %v25612_v55, %v30360_v17  ;;  %v30362_v16 = vand.u32 4294901760, %v25779_v25  ;;  %19895 = vmatprep.subr.bf16.mxu1 %v25764_v7  ;;  %20089 = vmatpush1.bf16.msra.mxu0 %v30281_v38 }
 0x16f   :  { %v30365_v41 = vand.u32 4294901760, %v25792_v39  ;;  %30367 = vst [vmem:[#allocation40_spill] sm:$0xff] %v25881_v34  ;;  %v3103_v55 = vand.u32 4294901760, %v3102_v31  ;;  %v25888_v40 = vsub.f32 %v25633_v51, %v30368_v50  ;;  %v25896_v58 = vpack.c.bf16 %v3097_v57, %v3085_v43  ;;  %20091 = vmatprep.subr.bf16.mxu0 %v30282_v53 }
 0x170   :  { %30358 = vst [vmem:[#allocation29_spill] sm:$0xff] %v25854_v13  ;;  %v25873_v54 = vpack.c.bf16 %v30362_v16, %v30361_v11  ;;  %v30369_v11 = vand.u32 4294901760, %v25637_v30  ;;  %v30371_v31 = vand.u32 4294901760, %v25806_v24  ;;  %v30372_v7 = vand.u32 4294901760, %v25811_v20  ;;  %1768 = vmatmul.mubr.f32.gmra.mrb[26].mxu1 %v30260_v12 }
 0x171   :  { %v25879_v6 = vpack.c.bf16 %v30365_v41, %v30364_v1  ;;  %v494_v1 = vpop.f32.mrb[0].mxu1  ;;  %30370 = vst [vmem:[#allocation43_spill] sm:$0xff] %v25896_v58  ;;  %v3115_v41 = vand.u32 4294901760, %v3114_v37  ;;  %v30374_v43 = vand.u32 4294901760, %v25821_v4  ;;  %19897 = vmatpush1.bf16.msra.mxu1 %v25772_v35  ;;  %1773 = vmatprep.mubr.f32.mxu1 %v30077_v47  ;;  %v30377_v12 = vand.u32 4294901760, %v25641_v5 }
 0x172   :  { %30363 = vst [vmem:[#allocation34_spill] sm:$0xff] %v25873_v54  ;;  %v25893_v16 = vsub.f32 %v25637_v30, %v30369_v11  ;;  %v3108_v17 = vsub.f32 %v25806_v24, %v30371_v31  ;;  %v3120_v51 = vsub.f32 %v25811_v20, %v30372_v7  ;;  %v25905_v50 = vadd.f32 %v900_v48, %v494_v1  ;;  %v496_v30 = vpop.f32.mrb[1].mxu1  ;;  %v909_v11 = vpop.f32.mrb[3].mxu0 }
 0x173   :  { %30366 = vst [vmem:[#allocation37_spill] sm:$0xff] %v25879_v6  ;;  %v3126_v37 = vsub.f32 %v25821_v4, %v30374_v43  ;;  %v25913_v38 = vadd.f32 %v902_v52, %v496_v30  ;;  %v30376_v7 = vand.u32 4294901760, %v25639_v18  ;;  %v25925_v1 = vsub.f32 %v25641_v5, %v30377_v12  ;;  %19899 = vmatprep.subr.bf16.mxu1 %v25832_v63  ;;  %v914_v5 = vpop.f32.mrb[4].mxu0 }
 0x174   :  { %30373 = vst [vmem:[#allocation97_spill] sm:$0xff] %v25905_v50  ;;  %v30378_v43 = vand.u32 4294901760, %v25840_v9  ;;  %v30379_v57 = vand.u32 4294901760, %v25656_v60  ;;  %20093 = vmatpush1.bf16.msra.mxu0 %v30284_v28  ;;  %v25939_v12 = vpack.c.bf16 %v3115_v41, %v3103_v55  ;;  %v3109_v53 = vand.u32 4294901760, %v3108_v17  ;;  %1775 = vmatmul.mubr.f32.gmra.mrb[28].mxu1 %v30262_v23 }
 0x175   :  { %30375 = vst [vmem:[#allocation98_spill] sm:$0xff] %v25913_v38  ;;  %v25920_v48 = vsub.f32 %v25639_v18, %v30376_v7  ;;  %v502_v7 = vpop.f32.mrb[2].mxu1  ;;  %v3121_v38 = vand.u32 4294901760, %v3120_v51  ;;  %v30381_v50 = vand.u32 4294901760, %v25658_v56  ;;  %20095 = vmatprep.subr.bf16.mxu0 %v25100_v45  ;;  %v30383_v28 = vand.u32 4294901760, %v25860_v42  ;;  %19901 = vmatpush1.bf16.msra.mxu1 %v25854_v13 }
 0x176   :  { %v3138_v52 = vsub.f32 %v25840_v9, %v30378_v43  ;;  %v25936_v18 = vsub.f32 %v25656_v60, %v30379_v57  ;;  %30380 = vst [vmem:[#allocation99_spill] sm:$0xff] %v25939_v12  ;;  %v25947_v31 = vadd.f32 %v907_v62, %v502_v7  ;;  %v504_v30 = vpop.f32.mrb[3].mxu1  ;;  %v916_v60 = vpop.f32.mrb[5].mxu0  ;;  %v3127_v57 = vand.u32 4294901760, %v3126_v37  ;;  %1780 = vmatprep.mubr.f32.mxu1 %v30077_v47 }
 0x177   :  { %v25944_v43 = vsub.f32 %v25658_v56, %v30381_v50  ;;  %v3132_v55 = vsub.f32 %v25860_v42, %v30383_v28  ;;  %v30384_v17 = vand.u32 4294901760, %v25865_v3  ;;  %v25956_v51 = vadd.f32 %v909_v11, %v504_v30  ;;  %19903 = vmatprep.subr.bf16.mxu1 %v25873_v54  ;;  %v510_v23 = vpop.f32.mrb[4].mxu1  ;;  %v921_v56 = vpop.f32.mrb[6].mxu0 }
 0x178   :  { %30382 = vst [vmem:[#allocation100_spill] sm:$0xff] %v25947_v31  ;;  %v30386_v62 = vand.u32 4294901760, %v25660_v46  ;;  %v3139_v28 = vand.u32 4294901760, %v3138_v52  ;;  %v30387_v37 = vand.u32 4294901760, %v25888_v40  ;;  %v30388_v30 = vand.u32 4294901760, %v25893_v16  ;;  %20097 = vmatpush1.bf16.msra.mxu0 %v25138_v26  ;;  %v512_v26 = vpop.f32.mrb[5].mxu1  ;;  %1782 = vmatmul.mubr.f32.gmra.mrb[30].mxu1 %v24606_v10 }
 0x179   :  { %v3144_v41 = vsub.f32 %v25865_v3, %v30384_v17  ;;  %30385 = vst [vmem:[#allocation101_spill] sm:$0xff] %v25956_v51  ;;  %v25976_v45 = vpack.c.bf16 %v3121_v38, %v3109_v53  ;;  %v30390_v52 = vand.u32 4294901760, %v25670_v27  ;;  %v25990_v17 = vadd.f32 %v914_v5, %v510_v23  ;;  %v923_v38 = vpop.f32.mrb[7].mxu0  ;;  %19905 = vmatpush1.bf16.msra.mxu1 %v25879_v6 }
 0x17a   :  { %v25965_v50 = vsub.f32 %v25660_v46, %v30386_v62  ;;  %v3150_v11 = vsub.f32 %v25888_v40, %v30387_v37  ;;  %v3162_v7 = vsub.f32 %v25893_v16, %v30388_v30  ;;  %v30391_v37 = vand.u32 4294901760, %v25672_v32  ;;  %v30392_v30 = vld [vmem:[#allocation80_spill] sm:$0xff]  ;;  %3068 = vmatprep.mubr.f32.mxu1 %v30077_v47  ;;  %19907 = vmatprep.subr.bf16.mxu1 %v25881_v34 }
 0x17b   :  { %30389 = vst [vmem:[#allocation102_spill] sm:$0xff] %v25976_v45  ;;  %v25982_v62 = vsub.f32 %v25670_v27, %v30390_v52  ;;  %20099 = vmatprep.subr.bf16.mxu0 %v30392_v30  ;;  %30393 = vst [vmem:[#allocation103_spill] sm:$0xff] %v25990_v17  ;;  %v3133_v53 = vand.u32 4294901760, %v3132_v55  ;;  %v3145_v46 = vand.u32 4294901760, %v3144_v41  ;;  %v30394_v31 = vand.u32 4294901760, %v25674_v49  ;;  %v928_v30 = vpop.f32.mrb[8].mxu0 }
 0x17c   :  { %v25987_v51 = vsub.f32 %v25672_v32, %v30391_v37  ;;  %v25998_v52 = vadd.f32 %v916_v60, %v512_v26  ;;  %v30396_v32 = vand.u32 4294901760, %v25920_v48  ;;  %v30397_v10 = vand.u32 4294901760, %v25925_v1  ;;  %v518_v37 = vpop.f32.mrb[6].mxu1  ;;  %3069 = vmatmul.mubr.f32.vlgmr.msra.gmra.mrb[32].mxu1 %v30077_v47 }
 0x17d   :  { %v25996_v27 = vsub.f32 %v25674_v49, %v30394_v31  ;;  %v26010_v49 = vpack.c.bf16 %v3139_v28, %v3127_v57  ;;  %v3151_v26 = vand.u32 4294901760, %v3150_v11  ;;  %v3163_v31 = vand.u32 4294901760, %v3162_v7  ;;  %v520_v11 = vpop.f32.mrb[7].mxu1  ;;  %v930_v7 = vpop.f32.mrb[9].mxu0  ;;  %19909 = vmatpush1.bf16.msra.mxu1 %v25896_v58  ;;  %3299 = vmatprep.mubr.f32.mxu1 %v30077_v47 }
 0x17e   :  { %30395 = vst [vmem:[#allocation104_spill] sm:$0xff] %v25998_v52  ;;  %v3156_v5 = vsub.f32 %v25920_v48, %v30396_v32  ;;  %v3168_v55 = vsub.f32 %v25925_v1, %v30397_v10  ;;  %v30399_v60 = vand.u32 4294901760, %v25936_v18  ;;  %v30400_v32 = vand.u32 4294901760, %v25944_v43  ;;  %19911 = vmatprep.subr.bf16.mxu1 %v25939_v12 }
 0x17f   :  { %30398 = vst [vmem:[#allocation105_spill] sm:$0xff] %v26010_v49  ;;  %v30401_v17 = vand.u32 4294901760, %v25690_v22  ;;  %v26025_v28 = vadd.f32 %v921_v56, %v518_v37  ;;  %v26036_v41 = vadd.f32 %v923_v38, %v520_v11  ;;  %v30409_v11 = vand.u32 4294901760, %v25730_v33 }
 0x180   :  { %v3174_v23 = vsub.f32 %v25936_v18, %v30399_v60  ;;  %v3186_v52 = vsub.f32 %v25944_v43, %v30400_v32  ;;  %v26028_v60 = vpack.c.bf16 %v3145_v46, %v3133_v53  ;;  %v30404_v32 = vand.u32 4294901760, %v25692_v2 }
 0x181   :  { %v26023_v57 = vsub.f32 %v25690_v22, %v30401_v17  ;;  %30402 = vst [vmem:[#allocation106_spill] sm:$0xff] %v26025_v28  ;;  %30405 = vst [vmem:[#allocation108_spill] sm:$0xff] %v26036_v41  ;;  %v3157_v22 = vand.u32 4294901760, %v3156_v5  ;;  %v3169_v56 = vand.u32 4294901760, %v3168_v55  ;;  %v30406_v17 = vand.u32 4294901760, %v25965_v50  ;;  %v526_v55 = vpop.f32.mrb[8].mxu1  ;;  %19913 = vmatpush1.bf16.msra.mxu1 %v25976_v45 }
 0x182   :  { %30403 = vst [vmem:[#allocation107_spill] sm:$0xff] %v26028_v60  ;;  %v26034_v10 = vsub.f32 %v25692_v2, %v30404_v32  ;;  %v26044_v46 = vpack.c.bf16 %v3163_v31, %v3151_v26  ;;  %v3175_v53 = vand.u32 4294901760, %v3174_v23  ;;  %v30408_v2 = vand.u32 4294901760, %v25721_v61  ;;  %v935_v32 = vpop.f32.mrb[10].mxu0  ;;  %19915 = vmatprep.subr.bf16.mxu1 %v26010_v49 }
 0x183   :  { %v3180_v37 = vsub.f32 %v25965_v50, %v30406_v17  ;;  %v26054_v5 = vsub.f32 %v25730_v33, %v30409_v11  ;;  %v3187_v17 = vand.u32 4294901760, %v3186_v52  ;;  %v30410_v34 = vand.u32 4294901760, %v25982_v62  ;;  %v937_v58 = vpop.f32.mrb[11].mxu0 }
 0x184   :  { %30407 = vst [vmem:[#allocation109_spill] sm:$0xff] %v26044_v46  ;;  %v26049_v38 = vsub.f32 %v25721_v61, %v30408_v2  ;;  %v30411_v26 = vand.u32 4294901760, %v25987_v51  ;;  %v26063_v61 = vadd.f32 %v928_v30, %v526_v55  ;;  %v528_v2 = vpop.f32.mrb[9].mxu1  ;;  %v30413_v33 = vand.u32 4294901760, %v25996_v27 }
 0x185   :  { %v3192_v12 = vsub.f32 %v25982_v62, %v30410_v34  ;;  %v30414_v41 = vand.u32 4294901760, %v25732_v0  ;;  %v26074_v28 = vadd.f32 %v930_v7, %v528_v2  ;;  %v3181_v30 = vand.u32 4294901760, %v3180_v37  ;;  %v942_v37 = vpop.f32.mrb[12].mxu0  ;;  %19917 = vmatpush1.bf16.msra.mxu1 %v26028_v60 }
 0x186   :  { %v3198_v31 = vsub.f32 %v25987_v51, %v30411_v26  ;;  %30412 = vst [vmem:[#allocation110_spill] sm:$0xff] %v26063_v61  ;;  %v3210_v11 = vsub.f32 %v25996_v27, %v30413_v33  ;;  %v26077_v26 = vpack.c.bf16 %v3169_v56, %v3157_v22  ;;  %v30417_v55 = vand.u32 4294901760, %v25775_v36  ;;  %v534_v56 = vpop.f32.mrb[10].mxu1  ;;  %19919 = vmatprep.subr.bf16.mxu1 %v26044_v46 }
 0x187   :  { %v26072_v34 = vsub.f32 %v25732_v0, %v30414_v41  ;;  %30415 = vst [vmem:[#allocation111_spill] sm:$0xff] %v26074_v28  ;;  %v30418_v0 = vand.u32 4294901760, %v25777_v8  ;;  %v30419_v7 = vand.u32 4294901760, %v25779_v25  ;;  %v3193_v2 = vand.u32 4294901760, %v3192_v12  ;;  %v536_v45 = vpop.f32.mrb[11].mxu1 }
 0x188   :  { %30416 = vst [vmem:[#allocation112_spill] sm:$0xff] %v26077_v26  ;;  %v26082_v23 = vsub.f32 %v25775_v36, %v30417_v55  ;;  %v26097_v36 = vpack.c.bf16 %v3187_v17, %v3175_v53  ;;  %v3199_v55 = vand.u32 4294901760, %v3198_v31  ;;  %v30421_v33 = vand.u32 4294901760, %v26023_v57 }
 0x189   :  { %v26090_v41 = vsub.f32 %v25777_v8, %v30418_v0  ;;  %v26095_v22 = vsub.f32 %v25779_v25, %v30419_v7  ;;  %v26102_v49 = vadd.f32 %v935_v32, %v534_v56  ;;  %v944_v8 = vpop.f32.mrb[13].mxu0  ;;  %v3211_v0 = vand.u32 4294901760, %v3210_v11  ;;  %v542_v56 = vpop.f32.mrb[12].mxu1  ;;  %19921 = vmatpush1.bf16.msra.mxu1 %v26077_v26 }
 0x18a   :  { %30420 = vst [vmem:[#allocation113_spill] sm:$0xff] %v26097_v36  ;;  %v3204_v52 = vsub.f32 %v26023_v57, %v30421_v33  ;;  %v30423_v28 = vand.u32 4294901760, %v26034_v10  ;;  %v26108_v61 = vadd.f32 %v937_v58, %v536_v45  ;;  %v30425_v53 = vand.u32 4294901760, %v25790_v59  ;;  %v544_v7 = vpop.f32.mrb[13].mxu1  ;;  %19923 = vmatprep.subr.bf16.mxu1 %v26097_v36 }
 0x18b   :  { %30422 = vst [vmem:[#allocation114_spill] sm:$0xff] %v26102_v49  ;;  %v30426_v17 = vand.u32 4294901760, %v25792_v39  ;;  %v30428_v58 = vand.u32 4294901760, %v26054_v5  ;;  %v29710_v33 = vand.u32 4294901760, %v26090_v41  ;;  %v26131_v12 = vpack.c.bf16 %v3193_v2, %v3181_v30 }
 0x18c   :  { %v3216_v25 = vsub.f32 %v26034_v10, %v30423_v28  ;;  %30424 = vst [vmem:[#allocation115_spill] sm:$0xff] %v26108_v61  ;;  %v26115_v32 = vsub.f32 %v25790_v59, %v30425_v53  ;;  %v30427_v28 = vand.u32 4294901760, %v26049_v38  ;;  %v949_v53 = vpop.f32.mrb[14].mxu0  ;;  %v26135_v60 = vpack.c.bf16 %v3211_v0, %v3199_v55 }
 0x18d   :  { %v26120_v31 = vsub.f32 %v25792_v39, %v30426_v17  ;;  %v3234_v11 = vsub.f32 %v26054_v5, %v30428_v58  ;;  %30429 = vst [vmem:[#allocation116_spill] sm:$0xff] %v26131_v12  ;;  %v3205_v39 = vand.u32 4294901760, %v3204_v52  ;;  %v26133_v17 = vadd.f32 %v942_v37, %v542_v56  ;;  %v951_v46 = vpop.f32.mrb[15].mxu0  ;;  %19925 = vmatpush1.bf16.msra.mxu1 %v26131_v12  ;;  %v30530_v26 = vld [vmem:[#allocation110_spill] sm:$0xff] }
 0x18e   :  { %v3222_v45 = vsub.f32 %v26049_v38, %v30427_v28  ;;  %30430 = vst [vmem:[#allocation117_spill] sm:$0xff] %v26135_v60  ;;  %v3217_v28 = vand.u32 4294901760, %v3216_v25  ;;  %v30431_v61 = vand.u32 4294901760, %v26072_v34  ;;  %v26140_v49 = vadd.f32 %v944_v8, %v544_v7  ;;  %v550_v25 = vpop.f32.mrb[14].mxu1  ;;  %19927 = vmatprep.subr.bf16.mxu1 %v26135_v60 }
 0x18f   :  { %v30432_v59 = vand.u32 4294901760, %v26082_v23  ;;  %v3235_v55 = vand.u32 4294901760, %v3234_v11  ;;  %v30433_v8 = vand.u32 4294901760, %v26095_v22  ;;  %v26155_v7 = vadd.f32 %v949_v53, %v550_v25 }
 0x190   :  { %v3228_v58 = vsub.f32 %v26072_v34, %v30431_v61  ;;  %v3223_v2 = vand.u32 4294901760, %v3222_v45  ;;  %v3246_v61 = vsub.f32 %v26090_v41, %v29710_v33  ;;  %v26157_v56 = vpack.c.bf16 %v3217_v28, %v3205_v39 }
 0x191   :  { %v3240_v30 = vsub.f32 %v26082_v23, %v30432_v59  ;;  %v3258_v0 = vsub.f32 %v26095_v22, %v30433_v8  ;;  %v552_v59 = vpop.f32.mrb[15].mxu1  ;;  %v30435_v11 = vand.u32 4294901760, %v26115_v32  ;;  %v30436_v36 = vand.u32 4294901760, %v26120_v31 }
 0x192   :  { %30434 = vst [vmem:[#allocation118_spill] sm:$0xff] %v26157_v56  ;;  %v3229_v52 = vand.u32 4294901760, %v3228_v58  ;;  %v26159_v37 = vadd.f32 %v951_v46, %v552_v59  ;;  %v26169_v53 = vpack.c.bf16 %v3235_v55, %v3223_v2  ;;  %v3247_v39 = vand.u32 4294901760, %v3246_v61  ;;  %19929 = vmatpush1.bf16.msra.mxu1 %v26157_v56 }
 0x193   :  { %v3241_v45 = vand.u32 4294901760, %v3240_v30  ;;  %v3252_v33 = vsub.f32 %v26115_v32, %v30435_v11  ;;  %v3264_v8 = vsub.f32 %v26120_v31, %v30436_v36  ;;  %v3259_v28 = vand.u32 4294901760, %v3258_v0 }
 0x194   :  { %30437 = vst [vmem:[#allocation119_spill] sm:$0xff] %v26169_v53  ;;  %19931 = vmatprep.subr.bf16.mxu1 %v26169_v53  ;;  %v26183_v36 = vpack.c.bf16 %v25684_v21, %v25679_v19  ;;  %v26199_v2 = vpack.c.bf16 %v25811_v20, %v25806_v24  ;;  %v26205_v55 = vpack.c.bf16 %v25840_v9, %v25821_v4  ;;  %v30474_v53 = vand.u32 4294901760, %v25727_v44 }
 0x195   :  { %v26172_v46 = vpack.c.bf16 %v3241_v45, %v3229_v52  ;;  %v3253_v58 = vand.u32 4294901760, %v3252_v33  ;;  %v3265_v30 = vand.u32 4294901760, %v3264_v8  ;;  %v26175_v25 = vpack.c.bf16 %v3259_v28, %v3247_v39 }
 0x196   :  { %30441 = vst [vmem:[#allocation123_spill] sm:$0xff] %v26183_v36  ;;  %v26188_v33 = vpack.c.bf16 %v25700_v29, %v25694_v14  ;;  %v26193_v52 = vpack.c.bf16 %v25738_v15, %v25727_v44  ;;  %30444 = vst [vmem:[#allocation126_spill] sm:$0xff] %v26199_v2  ;;  %v26210_v61 = vpack.c.bf16 %v25865_v3, %v25860_v42  ;;  %v30475_v56 = vand.u32 4294901760, %v25738_v15 }
 0x197   :  { %30438 = vst [vmem:[#allocation120_spill] sm:$0xff] %v26172_v46  ;;  %30439 = vst [vmem:[#allocation121_spill] sm:$0xff] %v26175_v25  ;;  %19933 = vmatpush1.bf16.msra.mxu1 %v26172_v46  ;;  %v26178_v59 = vpack.c.bf16 %v3265_v30, %v3253_v58  ;;  %v26215_v0 = vpack.c.bf16 %v25893_v16, %v25888_v40  ;;  %v26220_v45 = vpack.c.bf16 %v25925_v1, %v25920_v48 }
 0x198   :  { %19935 = vmatprep.subr.bf16.mxu1 %v26175_v25  ;;  %30442 = vst [vmem:[#allocation124_spill] sm:$0xff] %v26188_v33  ;;  %30443 = vst [vmem:[#allocation125_spill] sm:$0xff] %v26193_v52  ;;  %v26225_v11 = vpack.c.bf16 %v25944_v43, %v25936_v18  ;;  %v26230_v8 = vpack.c.bf16 %v25982_v62, %v25965_v50  ;;  %v26235_v39 = vpack.c.bf16 %v25996_v27, %v25987_v51 }
 0x199   :  { %30440 = vst [vmem:[#allocation122_spill] sm:$0xff] %v26178_v59  ;;  %30445 = vst [vmem:[#allocation127_spill] sm:$0xff] %v26205_v55  ;;  %v26240_v28 = vpack.c.bf16 %v26034_v10, %v26023_v57  ;;  %v26245_v58 = vpack.c.bf16 %v26054_v5, %v26049_v38  ;;  %v26250_v30 = vpack.c.bf16 %v26082_v23, %v26072_v34  ;;  %v30472_v25 = vand.u32 4294901760, %v25700_v29 }
 0x19a   :  { %30446 = vst [vmem:[#allocation128_spill] sm:$0xff] %v26210_v61  ;;  %30447 = vst [vmem:[#allocation129_spill] sm:$0xff] %v26215_v0  ;;  %v26299_v60 = vpack.c.bf16 %v30475_v56, %v30474_v53  ;;  %v30480_v29 = vand.u32 4294901760, %v25821_v4  ;;  %v30481_v15 = vand.u32 4294901760, %v25840_v9  ;;  %v30483_v56 = vand.u32 4294901760, %v25860_v42 }
 0x19b   :  { %19937 = vmatpush1.bf16.msra.mxu1 %v26178_v59  ;;  %30448 = vst [vmem:[#allocation130_spill] sm:$0xff] %v26220_v45  ;;  %30449 = vst [vmem:[#allocation131_spill] sm:$0xff] %v26225_v11  ;;  %v30471_v59 = vand.u32 4294901760, %v25694_v14  ;;  %v30478_v14 = vand.u32 4294901760, %v25811_v20  ;;  %v30486_v20 = vand.u32 4294901760, %v25888_v40  ;;  %v30489_v4 = vand.u32 4294901760, %v25920_v48 }
 0x19c   :  { %19939 = vmatprep.subr.bf16.mxu1 %v26183_v36  ;;  %30450 = vst [vmem:[#allocation132_spill] sm:$0xff] %v26230_v8  ;;  %30451 = vst [vmem:[#allocation133_spill] sm:$0xff] %v26235_v39  ;;  %v26315_v44 = vpack.c.bf16 %v30481_v15, %v30480_v29  ;;  %v30490_v9 = vand.u32 4294901760, %v25925_v1  ;;  %v30493_v42 = vand.u32 4294901760, %v25944_v43  ;;  %v30495_v40 = vand.u32 4294901760, %v25965_v50 }
 0x19d   :  { %30452 = vst [vmem:[#allocation134_spill] sm:$0xff] %v26240_v28  ;;  %30453 = vst [vmem:[#allocation135_spill] sm:$0xff] %v26245_v58  ;;  %v26292_v46 = vpack.c.bf16 %v30472_v25, %v30471_v59  ;;  %v30487_v25 = vand.u32 4294901760, %v25893_v16  ;;  %v30496_v16 = vand.u32 4294901760, %v25982_v62  ;;  %v30498_v48 = vand.u32 4294901760, %v25987_v51 }
 0x19e   :  { %3300 = vmatmul.mubr.f32.vlgmr.msra.gmra.mrb[32].mxu1 %v30077_v47  ;;  %30454 = vst [vmem:[#allocation136_spill] sm:$0xff] %v26250_v30  ;;  %30476 = vst [vmem:[#allocation141_spill] sm:$0xff] %v26299_v60  ;;  %v30499_v1 = vand.u32 4294901760, %v25996_v27  ;;  %v30502_v43 = vand.u32 4294901760, %v26034_v10  ;;  %v30504_v50 = vand.u32 4294901760, %v26049_v38  ;;  %v30505_v62 = vand.u32 4294901760, %v26054_v5 }
 0x19f   :  { %19941 = vmatpush1.bf16.msra.mxu1 %v26188_v33  ;;  %3434 = vmatprep.mubr.f32.mxu1 %v30077_v47  ;;  %v30469_v33 = vand.u32 4294901760, %v25684_v21  ;;  %30473 = vst [vmem:[#allocation140_spill] sm:$0xff] %v26292_v46  ;;  %v30477_v21 = vand.u32 4294901760, %v25806_v24  ;;  %30482 = vst [vmem:[#allocation143_spill] sm:$0xff] %v26315_v44  ;;  %v30484_v24 = vand.u32 4294901760, %v25865_v3  ;;  %v26329_v59 = vpack.c.bf16 %v30487_v25, %v30486_v20 }
 0x1a0   :  { %19943 = vmatprep.subr.bf16.mxu1 %v26193_v52  ;;  %v30468_v52 = vand.u32 4294901760, %v25679_v19  ;;  %v30492_v3 = vand.u32 4294901760, %v25936_v18  ;;  %v30501_v18 = vand.u32 4294901760, %v26023_v57  ;;  %v26371_v15 = vpack.c.bf16 %v30505_v62, %v30504_v50 }
 0x1a1   :  { %v26307_v19 = vpack.c.bf16 %v30478_v14, %v30477_v21  ;;  %v26322_v53 = vpack.c.bf16 %v30484_v24, %v30483_v56  ;;  %30488 = vst [vmem:[#allocation145_spill] sm:$0xff] %v26329_v59  ;;  %v26350_v21 = vpack.c.bf16 %v30496_v16, %v30495_v40  ;;  %v26357_v14 = vpack.c.bf16 %v30499_v1, %v30498_v48 }
 0x1a2   :  { %v26285_v36 = vpack.c.bf16 %v30469_v33, %v30468_v52  ;;  %v26336_v33 = vpack.c.bf16 %v30490_v9, %v30489_v4  ;;  %v26343_v52 = vpack.c.bf16 %v30493_v42, %v30492_v3  ;;  %v26364_v29 = vpack.c.bf16 %v30502_v43, %v30501_v18  ;;  %30506 = vst [vmem:[#allocation151_spill] sm:$0xff] %v26371_v15  ;;  %v30516_v9 = vld [vmem:[#allocation40_spill] sm:$0xff] }
 0x1a3   :  { %19945 = vmatpush1.bf16.msra.mxu1 %v26199_v2  ;;  %v30467_v2 = vld [vmem:[#allocation64_spill] sm:$0xff]  ;;  %30479 = vst [vmem:[#allocation142_spill] sm:$0xff] %v26307_v19  ;;  %30485 = vst [vmem:[#allocation144_spill] sm:$0xff] %v26322_v53  ;;  %v30507_v51 = vand.u32 4294901760, %v26072_v34  ;;  %v30508_v27 = vand.u32 4294901760, %v26082_v23  ;;  %v30510_v10 = vand.u32 4294901760, %v26090_v41 }
 0x1a4   :  { %19947 = vmatprep.subr.bf16.mxu1 %v26205_v55  ;;  %v30466_v55 = vld [vmem:[#allocation20_spill] sm:$0xff]  ;;  %30470 = vst [vmem:[#allocation139_spill] sm:$0xff] %v26285_v36  ;;  %30491 = vst [vmem:[#allocation146_spill] sm:$0xff] %v26336_v33  ;;  %v30511_v57 = vand.u32 4294901760, %v26095_v22  ;;  %v30513_v38 = vand.u32 4294901760, %v26115_v32  ;;  %v30514_v5 = vand.u32 4294901760, %v26120_v31 }
 0x1a5   :  { %30494 = vst [vmem:[#allocation147_spill] sm:$0xff] %v26343_v52  ;;  %30497 = vst [vmem:[#allocation148_spill] sm:$0xff] %v26350_v21  ;;  %v26378_v56 = vpack.c.bf16 %v30508_v27, %v30507_v51  ;;  %v1790_v51 = vlaneseq }
 0x1a6   :  { %30500 = vst [vmem:[#allocation149_spill] sm:$0xff] %v26357_v14  ;;  %30503 = vst [vmem:[#allocation150_spill] sm:$0xff] %v26364_v29  ;;  %v26385_v24 = vpack.c.bf16 %v30511_v57, %v30510_v10  ;;  %v26392_v20 = vpack.c.bf16 %v30514_v5, %v30513_v38  ;;  %v1788_v57 = vld [vmem:[%s29480_s3] sm:$0xf] }
 0x1a7   :  { %19949 = vmatpush1.bf16.msra.mxu1 %v26210_v61  ;;  %v30463_v61 = vld [vmem:[#allocation25_spill] sm:$0xff]  ;;  %30509 = vst [vmem:[#allocation152_spill] sm:$0xff] %v26378_v56  ;;  %v1791_v27 = vshrl.u32 %v1790_v51, 7 }
 0x1a8   :  { %19951 = vmatprep.subr.bf16.mxu1 %v26215_v0  ;;  %v30462_v0 = vld [vmem:[#allocation22_spill] sm:$0xff]  ;;  %30512 = vst [vmem:[#allocation153_spill] sm:$0xff] %v26385_v24  ;;  %30515 = vst [vmem:[#allocation154_spill] sm:$0xff] %v26392_v20 }
 0x1a9   :  { %v26469_v10 = vsub.s32 0, %v1791_v27  ;;  %v26474_v38 = vsub.s32 1, %v1791_v27  ;;  %v26476_v5 = vsub.s32 2, %v1791_v27 }
 0x1ab   :  { %19953 = vmatpush1.bf16.msra.mxu1 %v26220_v45  ;;  %v30460_v45 = vld [vmem:[#allocation62_spill] sm:$0xff]  ;;  %v1801_v51 = vrot.slane %v1788_v57, %v26476_v5 }
 0x1ac   :  { %19955 = vmatprep.subr.bf16.mxu1 %v26225_v11  ;;  %v30458_v11 = vld [vmem:[#allocation17_spill] sm:$0xff] }
 0x1af   :  { %19957 = vmatpush1.bf16.msra.mxu1 %v26230_v8  ;;  %v26255_v8 = vpack.c.bf16 %v26095_v22, %v26090_v41 }
 0x1b0   :  { %19959 = vmatprep.subr.bf16.mxu1 %v26235_v39  ;;  %v26260_v39 = vpack.c.bf16 %v26120_v31, %v26115_v32 }
 0x1b1   :  { %30455 = vst [vmem:[#allocation137_spill] sm:$0xff] %v26255_v8 }
 0x1b2   :  { %30456 = vst [vmem:[#allocation138_spill] sm:$0xff] %v26260_v39 }
 0x1b3   :  { %19961 = vmatpush1.bf16.msra.mxu1 %v26240_v28  ;;  %v30457_v28 = vld [vmem:[#allocation33_spill] sm:$0xff] }
 0x1b4   :  { %19963 = vmatprep.subr.bf16.mxu1 %v26245_v58  ;;  %v30459_v58 = vld [vmem:[#allocation51_spill] sm:$0xff] }
 0x1b7   :  { %19965 = vmatpush1.bf16.msra.mxu1 %v26250_v30  ;;  %v30461_v30 = vld [vmem:[#allocation18_spill] sm:$0xff] }
 0x1b8   :  { %19967 = vmatprep.subr.bf16.mxu1 %v26255_v8  ;;  %v30464_v8 = vld [vmem:[#allocation31_spill] sm:$0xff] }
 0x1bb   :  { %19969 = vmatpush1.bf16.msra.mxu1 %v26260_v39  ;;  %v30465_v39 = vld [vmem:[#allocation35_spill] sm:$0xff] }
 0x1bc   :  { %19971 = vmatprep.subr.bf16.mxu1 %v30457_v28 }
 0x1be   :  { %3435 = vmatmul.mubr.f32.vlgmr.msra.gmra.mrb[32].mxu1 %v30077_v47 }
 0x1bf   :  { %19973 = vmatpush1.bf16.msra.mxu1 %v30458_v11  ;;  %3537 = vmatprep.mubr.f32.mxu1 %v30077_v47 }
 0x1c0   :  { %19975 = vmatprep.subr.bf16.mxu1 %v30459_v58 }
 0x1c3   :  { %19977 = vmatpush1.bf16.msra.mxu1 %v30460_v45 }
 0x1c4   :  { %19979 = vmatprep.subr.bf16.mxu1 %v30461_v30 }
 0x1c7   :  { %19981 = vmatpush1.bf16.msra.mxu1 %v30462_v0 }
 0x1c8   :  { %19983 = vmatprep.subr.bf16.mxu1 %v30463_v61 }
 0x1cb   :  { %19985 = vmatpush1.bf16.msra.mxu1 %v30464_v8 }
 0x1cc   :  { %19987 = vmatprep.subr.bf16.mxu1 %v30465_v39 }
 0x1cf   :  { %19989 = vmatpush1.bf16.msra.mxu1 %v30466_v55 }
 0x1d0   :  { %19991 = vmatprep.subr.bf16.mxu1 %v30467_v2 }
 0x1d3   :  { %19993 = vmatpush1.bf16.msra.mxu1 %v25772_v35 }
 0x1d4   :  { %19995 = vmatprep.subr.bf16.mxu1 %v25832_v63 }
 0x1d7   :  { %19997 = vmatpush1.bf16.msra.mxu1 %v25854_v13 }
 0x1d8   :  { %19999 = vmatprep.subr.bf16.mxu1 %v25873_v54 }
 0x1db   :  { %20001 = vmatpush1.bf16.msra.mxu1 %v25879_v6 }
 0x1dc   :  { %20003 = vmatprep.subr.bf16.mxu1 %v26285_v36 }
 0x1de   :  { %3538 = vmatmul.mubr.f32.vlgmr.msra.gmra.mrb[32].mxu1 %v30077_v47 }
 0x1df   :  { %20005 = vmatpush1.bf16.msra.mxu1 %v26292_v46  ;;  %3704 = vmatprep.mubr.f32.mxu1 %v30077_v47 }
 0x1e0   :  { %20007 = vmatprep.subr.bf16.mxu1 %v26299_v60 }
 0x1e3   :  { %20009 = vmatpush1.bf16.msra.mxu1 %v26307_v19 }
 0x1e4   :  { %20011 = vmatprep.subr.bf16.mxu1 %v26315_v44 }
 0x1e7   :  { %20013 = vmatpush1.bf16.msra.mxu1 %v26322_v53 }
 0x1e8   :  { %20015 = vmatprep.subr.bf16.mxu1 %v26329_v59 }
 0x1eb   :  { %20017 = vmatpush1.bf16.msra.mxu1 %v26336_v33 }
 0x1ec   :  { %20019 = vmatprep.subr.bf16.mxu1 %v26343_v52 }
 0x1ef   :  { %20021 = vmatpush1.bf16.msra.mxu1 %v26350_v21 }
 0x1f0   :  { %20023 = vmatprep.subr.bf16.mxu1 %v26357_v14 }
 0x1f3   :  { %20025 = vmatpush1.bf16.msra.mxu1 %v26364_v29 }
 0x1f4   :  { %20027 = vmatprep.subr.bf16.mxu1 %v26371_v15  ;;  %v1797_v15 = vrot.slane %v1788_v57, %v26474_v38 }
 0x1f7   :  { %20029 = vmatpush1.bf16.msra.mxu1 %v26378_v56  ;;  %v1793_v56 = vrot.slane %v1788_v57, %v26469_v10 }
 0x1f8   :  { %20031 = vmatprep.subr.bf16.mxu1 %v26385_v24 }
 0x1f9   :  { %v1806_v21 = vcombine.low %v1793_v56, %v1797_v15  ;;  %v1807_v59 = vcombine.high %v1793_v56, %v1797_v15 }
 0x1fb   :  { %20033 = vmatpush1.bf16.msra.mxu1 %v26392_v20  ;;  %v24393_v20 = vmov 1966171168  }
 0x1fc   :  { %20035 = vmatprep.subr.bf16.mxu1 %v30457_v28  ;;  %v1811_v24 = vunpack.c.l.s4 %v24393_v20 }
 0x1fe   :  { %3705 = vmatmul.mubr.f32.vlgmr.msra.gmra.mrb[32].mxu1 %v30077_v47  ;;  %v1812_v14 = vunpack.c.0.s8 %v1811_v24 }
 0x1ff   :  { %20037 = vmatpush1.bf16.msra.mxu1 %v30458_v11  ;;  %3807 = vmatprep.mubr.f32.mxu1 %v30077_v47 }
 0x200   :  { %20039 = vmatprep.subr.bf16.mxu1 %v30459_v58  ;;  %v1815_v33 = vsub.s32 %v1812_v14, %v1791_v27 }
 0x202   :  { %v1816_v44 = vrot.slane %v1806_v21, %v1815_v33  ;;  %v1823_v60 = vrot.slane %v1807_v59, %v1815_v33 }
 0x203   :  { %20041 = vmatpush1.bf16.msra.mxu1 %v30460_v45 }
 0x204   :  { %20043 = vmatprep.subr.bf16.mxu1 %v30461_v30 }
 0x207   :  { %20045 = vmatpush1.bf16.msra.mxu1 %v30462_v0 }
 0x208   :  { %20047 = vmatprep.subr.bf16.mxu1 %v30463_v61 }
 0x20b   :  { %20049 = vmatpush1.bf16.msra.mxu1 %v30464_v8 }
 0x20c   :  { %20051 = vmatprep.subr.bf16.mxu1 %v30465_v39 }
 0x20f   :  { %20053 = vmatpush1.bf16.msra.mxu1 %v30466_v55 }
 0x210   :  { %20055 = vmatprep.subr.bf16.mxu1 %v30467_v2 }
 0x213   :  { %20057 = vmatpush1.bf16.msra.mxu1 %v25772_v35 }
 0x214   :  { %20059 = vmatprep.subr.bf16.mxu1 %v25832_v63 }
 0x217   :  { %20061 = vmatpush1.bf16.msra.mxu1 %v25854_v13 }
 0x218   :  { %20063 = vmatprep.subr.bf16.mxu1 %v25873_v54 }
 0x21b   :  { %20065 = vmatpush1.bf16.msra.mxu1 %v25879_v6 }
 0x21c   :  { %20259 = vmatprep.subr.bf16.mxu1 %v30457_v28 }
 0x21e   :  { %3808 = vmatmul.mubr.f32.vlgmr.msra.gmra.mrb[32].mxu1 %v30077_v47 }
 0x21f   :  { %20261 = vmatpush1.bf16.msra.mxu1 %v30458_v11  ;;  %5083 = vmatprep.mubr.f32.mxu1 %v30077_v47  ;;  %v30526_v11 = vld [vmem:[#allocation106_spill] sm:$0xff] }
 0x220   :  { %20263 = vmatprep.subr.bf16.mxu1 %v30459_v58 }
 0x223   :  { %20265 = vmatpush1.bf16.msra.mxu1 %v30460_v45 }
 0x224   :  { %20267 = vmatprep.subr.bf16.mxu1 %v30461_v30 }
 0x227   :  { %20269 = vmatpush1.bf16.msra.mxu1 %v30462_v0 }
 0x228   :  { %20271 = vmatprep.subr.bf16.mxu1 %v30463_v61 }
 0x22b   :  { %20273 = vmatpush1.bf16.msra.mxu1 %v30464_v8 }
 0x22c   :  { %20275 = vmatprep.subr.bf16.mxu1 %v30465_v39  ;;  %v26425_v23 = vpop.f32.mrb[16].mxu0 }
 0x22d   :  { %v26427_v34 = vpop.f32.mrb[17].mxu0  ;;  %v3830_v45 = vrot.slane %v26425_v23, 4  ;;  %v3838_v47 = vrot.slane %v26425_v23, 6 }
 0x22f   :  { %20277 = vmatpush1.bf16.msra.mxu1 %v30466_v55  ;;  %v26431_v41 = vpop.f32.mrb[16].mxu1  ;;  %v30520_v55 = vld [vmem:[#allocation100_spill] sm:$0xff] }
 0x230   :  { %20279 = vmatprep.subr.bf16.mxu1 %v30467_v2  ;;  %v26434_v22 = vpop.f32.mrb[17].mxu1  ;;  %v3822_v2 = vrot.slane %v26425_v23, 2 }
 0x233   :  { %20281 = vmatpush1.bf16.msra.mxu1 %v25772_v35  ;;  %v26437_v32 = vpop.f32.mrb[18].mxu1 }
 0x234   :  { %20283 = vmatprep.subr.bf16.mxu1 %v25832_v63  ;;  %v26439_v31 = vpop.f32.mrb[19].mxu1 }
 0x237   :  { %20285 = vmatpush1.bf16.msra.mxu1 %v25854_v13  ;;  %v26443_v25 = vpop.f32.mrb[20].mxu1 }
 0x238   :  { %20287 = vmatprep.subr.bf16.mxu1 %v25873_v54  ;;  %v26446_v4 = vpop.f32.mrb[21].mxu1 }
 0x23b   :  { %20289 = vmatpush1.bf16.msra.mxu1 %v25879_v6  ;;  %v26449_v3 = vpop.f32.mrb[22].mxu1 }
 0x23c   :  { %20291 = vmatprep.subr.bf16.mxu1 %v30516_v9  ;;  %v26451_v42 = vpop.f32.mrb[23].mxu1  ;;  %v26478_v9 = vsub.s32 3, %v1791_v27  ;;  %v3818_v27 = vrot.slane %v26425_v23, 1 }
 0x23e   :  { %v1805_v29 = vrot.slane %v1788_v57, %v26478_v9  ;;  %v30518_v57 = vld [vmem:[#allocation97_spill] sm:$0xff] }
 0x23f   :  { %v26453_v40 = vpop.f32.mrb[24].mxu1 }
 0x240   :  { %v26455_v16 = vpop.f32.mrb[25].mxu1  ;;  %v1808_v52 = vcombine.low %v1801_v51, %v1805_v29  ;;  %v1809_v53 = vcombine.high %v1801_v51, %v1805_v29 }
 0x242   :  { %v1830_v19 = vrot.slane %v1808_v52, %v1815_v33  ;;  %v1837_v46 = vrot.slane %v1809_v53, %v1815_v33 }
 0x243   :  { %v26457_v48 = vpop.f32.mrb[26].mxu1 }
 0x244   :  { %v26459_v1 = vpop.f32.mrb[27].mxu1  ;;  %v1838_v36 = vcombine.low %v1816_v44, %v1830_v19  ;;  %v1839_v20 = vcombine.high %v1816_v44, %v1830_v19  ;;  %v1840_v6 = vcombine.low %v1823_v60, %v1837_v46  ;;  %v1841_v54 = vcombine.high %v1823_v60, %v1837_v46 }
 0x246   :  { %v26484_v13 = vrot.slane %v1838_v36, %v1815_v33  ;;  %v26486_v63 = vrot.slane %v1839_v20, %v1815_v33  ;;  %v26496_v21 = vrot.slane %v1840_v6, %v1815_v33  ;;  %v26498_v59 = vrot.slane %v1841_v54, %v1815_v33 }
 0x247   :  { %v26461_v18 = vpop.f32.mrb[28].mxu1 }
 0x248   :  { %v26463_v43 = vpop.f32.mrb[29].mxu1  ;;  %v26490_v24 = vcombine.high %v26484_v13, %v26484_v13  ;;  %v26494_v14 = vcombine.high %v26486_v63, %v26486_v63  ;;  %v1877_v19 = vrot.slane %v26484_v13, %v26469_v10  ;;  %v26504_v60 = vcombine.high %v26496_v21, %v26496_v21 }
 0x249   :  { %v1881_v46 = vrot.slane %v26484_v13, %v26474_v38  ;;  %v1893_v36 = vrot.slane %v26486_v63, %v26469_v10  ;;  %v1897_v44 = vrot.slane %v26486_v63, %v26474_v38  ;;  %v26514_v54 = vcombine.high %v26498_v59, %v26498_v59 }
 0x24a   :  { %v1909_v6 = vrot.slane %v26490_v24, %v26469_v10  ;;  %v1913_v53 = vrot.slane %v26490_v24, %v26474_v38  ;;  %v1925_v33 = vrot.slane %v26494_v14, %v26469_v10  ;;  %v1929_v52 = vrot.slane %v26494_v14, %v26474_v38 }
 0x24b   :  { %v26465_v50 = vpop.f32.mrb[30].mxu1  ;;  %v1941_v29 = vrot.slane %v26496_v21, %v26469_v10  ;;  %v1945_v15 = vrot.slane %v26496_v21, %v26474_v38  ;;  %v1957_v56 = vrot.slane %v26498_v59, %v26469_v10  ;;  %v26532_v51 = vadd.f32 %v30518_v57, %v1877_v19  ;;  %v30522_v57 = vld [vmem:[#allocation103_spill] sm:$0xff] }
 0x24c   :  { %v26467_v62 = vpop.f32.mrb[31].mxu1  ;;  %v1961_v20 = vrot.slane %v26498_v59, %v26474_v38  ;;  %v1973_v35 = vrot.slane %v26504_v60, %v26469_v10  ;;  %v26540_v39 = vadd.f32 %v30520_v55, %v1893_v36  ;;  %v1977_v8 = vrot.slane %v26504_v60, %v26474_v38  ;;  %v30524_v36 = vld [vmem:[#allocation98_spill] sm:$0xff] }
 0x24d   :  { %30517 = vst [vmem:[#allocation155_spill] sm:$0xff] %v26467_v62  ;;  %30519 = vst [vmem:[#allocation97_spill] sm:$0xff] %v26532_v51  ;;  %v1989_v61 = vrot.slane %v26514_v54, %v26469_v10  ;;  %v3826_v19 = vrot.slane %v26425_v23, 3  ;;  %v26548_v0 = vadd.f32 %v30522_v57, %v1909_v6  ;;  %v1993_v30 = vrot.slane %v26514_v54, %v26474_v38  ;;  %v30528_v6 = vld [vmem:[#allocation101_spill] sm:$0xff]  ;;  %v30532_v62 = vld [vmem:[#allocation104_spill] sm:$0xff] }
 0x24e   :  { %30521 = vst [vmem:[#allocation100_spill] sm:$0xff] %v26540_v39  ;;  %v3878_v55 = vadd.f32 %v26425_v23, %v26532_v51  ;;  %v26556_v58 = vadd.f32 %v30524_v36, %v1881_v46  ;;  %v26559_v28 = vadd.f32 %v30526_v11, %v1925_v33  ;;  %v3834_v10 = vrot.slane %v26425_v23, 5  ;;  %v30534_v36 = vld [vmem:[#allocation114_spill] sm:$0xff] }
 0x24f   :  { %30523 = vst [vmem:[#allocation103_spill] sm:$0xff] %v26548_v0  ;;  %v3882_v12 = vadd.f32 %v3818_v27, %v26540_v39  ;;  %v26564_v57 = vadd.f32 %v30528_v6, %v1897_v44  ;;  %v26567_v38 = vadd.f32 %v30530_v26, %v1941_v29  ;;  %v3886_v51 = vadd.f32 %v3822_v2, %v26548_v0  ;;  %v30536_v39 = vld [vmem:[#allocation108_spill] sm:$0xff] }
 0x250   :  { %30525 = vst [vmem:[#allocation98_spill] sm:$0xff] %v26556_v58  ;;  %30527 = vst [vmem:[#allocation106_spill] sm:$0xff] %v26559_v28  ;;  %v26572_v46 = vadd.f32 %v30532_v62, %v1913_v53  ;;  %v26575_v11 = vadd.f32 %v30534_v36, %v1957_v56  ;;  %v3842_v33 = vrot.slane %v26425_v23, 7  ;;  %v3890_v27 = vadd.f32 %v3826_v19, %v26559_v28  ;;  %v30540_v23 = vld [vmem:[#allocation111_spill] sm:$0xff] }
 0x251   :  { %30529 = vst [vmem:[#allocation101_spill] sm:$0xff] %v26564_v57  ;;  %30531 = vst [vmem:[#allocation110_spill] sm:$0xff] %v26567_v38  ;;  %v26580_v44 = vadd.f32 %v30536_v39, %v1929_v52  ;;  %v26583_v26 = vadd.f32 %v26133_v17, %v1973_v35  ;;  %v3894_v29 = vadd.f32 %v3830_v45, %v26567_v38  ;;  %v19129_v6 = vmul.f32 -1.442695, %v3878_v55  ;;  %v30542_v17 = vld [vmem:[#allocation115_spill] sm:$0xff] }
 0x252   :  { %30533 = vst [vmem:[#allocation104_spill] sm:$0xff] %v26572_v46  ;;  %30535 = vst [vmem:[#allocation114_spill] sm:$0xff] %v26575_v11  ;;  %v26587_v2 = vadd.f32 %v26155_v7, %v1989_v61  ;;  %v3898_v62 = vadd.f32 %v3834_v10, %v26575_v11  ;;  %v19130_v53 = vmul.f32 -1.442695, %v3882_v12  ;;  %v3819_v56 = vrot.slane %v26427_v34, 1 }
 0x253   :  { %30537 = vst [vmem:[#allocation108_spill] sm:$0xff] %v26580_v44  ;;  %30538 = vst [vmem:[#allocation156_spill] sm:$0xff] %v26583_v26  ;;  %v26592_v36 = vadd.f32 %v30540_v23, %v1945_v15  ;;  %v3902_v39 = vadd.f32 %v3838_v47, %v26583_v26  ;;  %v19131_v52 = vmul.f32 -1.442695, %v3886_v51  ;;  %v3823_v35 = vrot.slane %v26427_v34, 2 }
 0x254   :  { %30539 = vst [vmem:[#allocation157_spill] sm:$0xff] %v26587_v2  ;;  %v26597_v19 = vadd.f32 %v30542_v17, %v1961_v20  ;;  %v3906_v45 = vadd.f32 %v3842_v33, %v26587_v2  ;;  %v19132_v7 = vmul.f32 -1.442695, %v3890_v27  ;;  %v3827_v61 = vrot.slane %v26427_v34, 3 }
 0x255   :  { %30541 = vst [vmem:[#allocation111_spill] sm:$0xff] %v26592_v36  ;;  %23242 = vpow2.f32 %v19129_v6  ;;  %v19133_v12 = vmul.f32 -1.442695, %v3894_v29  ;;  %v3831_v55 = vrot.slane %v26427_v34, 4  ;;  %v3879_v15 = vadd.f32 %v26427_v34, %v26556_v58 }
 0x256   :  { %30543 = vst [vmem:[#allocation115_spill] sm:$0xff] %v26597_v19  ;;  %23244 = vpow2.f32 %v19130_v53  ;;  %v19134_v47 = vmul.f32 -1.442695, %v3898_v62  ;;  %v3835_v51 = vrot.slane %v26427_v34, 5  ;;  %v3883_v10 = vadd.f32 %v3819_v56, %v26564_v57 }
 0x257   :  { %23246 = vpow2.f32 %v19131_v52  ;;  %v19135_v20 = vmul.f32 -1.442695, %v3902_v39  ;;  %v3839_v33 = vrot.slane %v26427_v34, 6  ;;  %v3887_v27 = vadd.f32 %v3823_v35, %v26572_v46 }
 0x258   :  { %v26609_v6 = vadd.f32 %v26140_v49, %v1977_v8  ;;  %23248 = vpow2.f32 %v19132_v7  ;;  %v19136_v29 = vmul.f32 -1.442695, %v3906_v45  ;;  %v3891_v23 = vadd.f32 %v3827_v61, %v26580_v44 }
 0x259   :  { %23250 = vpow2.f32 %v19133_v12  ;;  %v3843_v62 = vrot.slane %v26427_v34, 7  ;;  %v3895_v53 = vadd.f32 %v3831_v55, %v26592_v36  ;;  %v19137_v17 = vmul.f32 -1.442695, %v3879_v15 }
 0x25a   :  { %30544 = vst [vmem:[#allocation158_spill] sm:$0xff] %v26609_v6  ;;  %23252 = vpow2.f32 %v19134_v47  ;;  %v3899_v56 = vadd.f32 %v3835_v51, %v26597_v19  ;;  %v19138_v39 = vmul.f32 -1.442695, %v3883_v10  ;;  %v26616_v52 = vadd.f32 %v26159_v37, %v1993_v30  ;;  %v30682_v19 = vld [vmem:[#allocation72_spill] sm:$0xff] }
 0x25b   :  { %23254 = vpow2.f32 %v19135_v20  ;;  %v3903_v49 = vadd.f32 %v3839_v33, %v26609_v6  ;;  %v19139_v8 = vmul.f32 -1.442695, %v3887_v27  ;;  %v19140_v35 = vmul.f32 -1.442695, %v3891_v23  ;;  %v30681_v6 = vld [vmem:[#allocation146_spill] sm:$0xff] }
 0x25c   :  { %30545 = vst [vmem:[#allocation159_spill] sm:$0xff] %v26616_v52  ;;  %23256 = vpow2.f32 %v19136_v29  ;;  %v3907_v45 = vadd.f32 %v3843_v62, %v26616_v52  ;;  %v19141_v34 = vmul.f32 -1.442695, %v3895_v53  ;;  %v19142_v7 = vmul.f32 -1.442695, %v3899_v56  ;;  %v30675_v52 = vld [vmem:[#allocation143_spill] sm:$0xff] }
 0x25d   :  { %23258 = vpow2.f32 %v19137_v17  ;;  %v19143_v12 = vmul.f32 -1.442695, %v3903_v49  ;;  %v1885_v56 = vrot.slane %v26484_v13, %v26476_v5 }
 0x25e   :  { %23260 = vpow2.f32 %v19138_v39  ;;  %v19144_v37 = vmul.f32 -1.442695, %v3907_v45 }
 0x25f   :  { %v23243_v61 = vpop.eup %23242  ;;  %23262 = vpow2.f32 %v19139_v8  ;;  %v1889_v8 = vrot.slane %v26484_v13, %v26478_v9  ;;  %v1933_v13 = vrot.slane %v26494_v14, %v26476_v5 }
 0x260   :  { %v23245_v55 = vpop.eup %23244  ;;  %23264 = vpow2.f32 %v19140_v35  ;;  %v3934_v47 = vadd.f32 1.0, %v23243_v61  ;;  %v1901_v35 = vrot.slane %v26486_v63, %v26476_v5  ;;  %v1917_v61 = vrot.slane %v26490_v24, %v26476_v5 }
 0x261   :  { %v23247_v15 = vpop.eup %23246  ;;  %23266 = vpow2.f32 %v19141_v34  ;;  %v3935_v10 = vadd.f32 1.0, %v23245_v55 }
 0x262   :  { %v23249_v30 = vpop.eup %23248  ;;  %23268 = vpow2.f32 %v19142_v7  ;;  %v3936_v33 = vadd.f32 1.0, %v23247_v15  ;;  %v1905_v7 = vrot.slane %v26486_v63, %v26478_v9  ;;  %v1921_v15 = vrot.slane %v26490_v24, %v26478_v9 }
 0x263   :  { %v23251_v51 = vpop.eup %23250  ;;  %23270 = vpow2.f32 %v19143_v12  ;;  %v3937_v29 = vadd.f32 1.0, %v23249_v30  ;;  %v1949_v63 = vrot.slane %v26496_v21, %v26476_v5  ;;  %v1965_v24 = vrot.slane %v26498_v59, %v26476_v5 }
 0x264   :  { %v23253_v20 = vpop.eup %23252  ;;  %23272 = vpow2.f32 %v19144_v37  ;;  %v3938_v62 = vadd.f32 1.0, %v23251_v51 }
 0x265   :  { %v23255_v27 = vpop.eup %23254  ;;  %23274 = vrcp.f32 %v3934_v47  ;;  %v3939_v17 = vadd.f32 1.0, %v23253_v20  ;;  %v1937_v47 = vrot.slane %v26494_v14, %v26478_v9  ;;  %v1953_v20 = vrot.slane %v26496_v21, %v26478_v9 }
 0x266   :  { %v23257_v23 = vpop.eup %23256  ;;  %23276 = vrcp.f32 %v3935_v10  ;;  %v3940_v49 = vadd.f32 1.0, %v23255_v27  ;;  %v1981_v14 = vrot.slane %v26504_v60, %v26476_v5  ;;  %v1997_v21 = vrot.slane %v26514_v54, %v26476_v5 }
 0x267   :  { %v23259_v53 = vpop.eup %23258  ;;  %23278 = vrcp.f32 %v3936_v33  ;;  %v3941_v34 = vadd.f32 1.0, %v23257_v23 }
 0x268   :  { %v23261_v39 = vpop.eup %23260  ;;  %23280 = vrcp.f32 %v3937_v29  ;;  %v3982_v55 = vadd.f32 1.0, %v23259_v53  ;;  %v1969_v29 = vrot.slane %v26498_v59, %v26478_v9 }
 0x269   :  { %v23263_v45 = vpop.eup %23262  ;;  %23282 = vrcp.f32 %v3938_v62  ;;  %v3983_v30 = vadd.f32 1.0, %v23261_v39  ;;  %v1985_v62 = vrot.slane %v26504_v60, %v26478_v9  ;;  %v26651_v39 = vadd.f32 %v1885_v56, %v26431_v41 }
 0x26a   :  { %v23265_v12 = vpop.eup %23264  ;;  %23284 = vrcp.f32 %v3939_v17  ;;  %v3984_v10 = vadd.f32 1.0, %v23263_v45  ;;  %v26662_v60 = vadd.f32 %v1905_v7, %v26439_v31  ;;  %v26670_v41 = vadd.f32 %v1921_v15, %v26446_v4 }
 0x26b   :  { %v23267_v37 = vpop.eup %23266  ;;  %23286 = vrcp.f32 %v3940_v49  ;;  %v3985_v27 = vadd.f32 1.0, %v23265_v12  ;;  %30546 = vst [vmem:[#allocation160_spill] sm:$0xff] %v26651_v39  ;;  %v26654_v49 = vadd.f32 %v1889_v8, %v26434_v22  ;;  %v26667_v12 = vadd.f32 %v1917_v61, %v26443_v25 }
 0x26c   :  { %v23269_v51 = vpop.eup %23268  ;;  %23288 = vrcp.f32 %v3941_v34  ;;  %v3986_v23 = vadd.f32 1.0, %v23267_v37  ;;  %v26659_v34 = vadd.f32 %v1901_v35, %v26437_v32  ;;  %30549 = vst [vmem:[#allocation163_spill] sm:$0xff] %v26662_v60  ;;  %30551 = vst [vmem:[#allocation165_spill] sm:$0xff] %v26670_v41  ;;  %v26673_v22 = vadd.f32 %v1933_v13, %v26449_v3 }
 0x26d   :  { %v23271_v33 = vpop.eup %23270  ;;  %23290 = vrcp.f32 %v3982_v55  ;;  %v3987_v17 = vadd.f32 1.0, %v23269_v51  ;;  %30547 = vst [vmem:[#allocation161_spill] sm:$0xff] %v26654_v49  ;;  %30550 = vst [vmem:[#allocation164_spill] sm:$0xff] %v26667_v12  ;;  %v26678_v32 = vadd.f32 %v1937_v47, %v26451_v42  ;;  %v26681_v31 = vadd.f32 %v1949_v63, %v26453_v40 }
 0x26e   :  { %v23273_v53 = vpop.eup %23272  ;;  %23292 = vrcp.f32 %v3983_v30  ;;  %v3988_v45 = vadd.f32 1.0, %v23271_v33  ;;  %30548 = vst [vmem:[#allocation162_spill] sm:$0xff] %v26659_v34  ;;  %30552 = vst [vmem:[#allocation166_spill] sm:$0xff] %v26673_v22  ;;  %v26686_v25 = vadd.f32 %v1953_v20, %v26455_v16  ;;  %v26689_v4 = vadd.f32 %v1965_v24, %v26457_v48 }
 0x26f   :  { %v26656_v59 = vpop.eup %23274  ;;  %23294 = vrcp.f32 %v3984_v10  ;;  %v3989_v8 = vadd.f32 1.0, %v23273_v53  ;;  %30553 = vst [vmem:[#allocation167_spill] sm:$0xff] %v26678_v32  ;;  %30554 = vst [vmem:[#allocation168_spill] sm:$0xff] %v26681_v31  ;;  %v26692_v3 = vadd.f32 %v1969_v29, %v26459_v1  ;;  %v26697_v42 = vadd.f32 %v1981_v14, %v26461_v18 }
 0x270   :  { %v26664_v5 = vpop.eup %23276  ;;  %23296 = vrcp.f32 %v3985_v27  ;;  %30555 = vst [vmem:[#allocation169_spill] sm:$0xff] %v26686_v25  ;;  %30556 = vst [vmem:[#allocation170_spill] sm:$0xff] %v26689_v4  ;;  %v26700_v40 = vadd.f32 %v1985_v62, %v26463_v43  ;;  %v26703_v61 = vadd.f32 %v1997_v21, %v26465_v50 }
 0x271   :  { %v26675_v56 = vpop.eup %23278  ;;  %23298 = vrcp.f32 %v3986_v23  ;;  %30557 = vst [vmem:[#allocation171_spill] sm:$0xff] %v26692_v3  ;;  %30558 = vst [vmem:[#allocation172_spill] sm:$0xff] %v26697_v42 }
 0x272   :  { %v26683_v35 = vpop.eup %23280  ;;  %23300 = vrcp.f32 %v3987_v17  ;;  %30559 = vst [vmem:[#allocation173_spill] sm:$0xff] %v26700_v40  ;;  %30560 = vst [vmem:[#allocation174_spill] sm:$0xff] %v26703_v61 }
 0x273   :  { %v26694_v7 = vpop.eup %23282  ;;  %23302 = vrcp.f32 %v3988_v45 }
 0x274   :  { %v26705_v55 = vpop.eup %23284  ;;  %23304 = vrcp.f32 %v3989_v8 }
 0x275   :  { %v26709_v30 = vpop.eup %23286 }
 0x276   :  { %v26712_v63 = vpop.eup %23288 }
 0x277   :  { %v23291_v24 = vpop.eup %23290 }
 0x278   :  { %v23293_v14 = vpop.eup %23292 }
 0x279   :  { %v23295_v53 = vpop.eup %23294 }
 0x2f1   :  { %v3809_v16 = vpop.f32.mrb[32].mxu1 }
 0x2f2   :  { %v3820_v48 = vrot.slane %v3809_v16, 1  ;;  %v3824_v15 = vrot.slane %v3809_v16, 2  ;;  %v3828_v13 = vrot.slane %v3809_v16, 3  ;;  %v3832_v1 = vrot.slane %v3809_v16, 4  ;;  %v26707_v37 = vpop.f32.mrb[33].mxu1 }
 0x2f3   :  { %v3836_v18 = vrot.slane %v3809_v16, 5  ;;  %v3840_v47 = vrot.slane %v3809_v16, 6  ;;  %v3880_v43 = vadd.f32 %v3809_v16, %v26651_v39  ;;  %v3844_v50 = vrot.slane %v3809_v16, 7  ;;  %v23297_v16 = vpop.eup %23296 }
 0x2f4   :  { %v3884_v51 = vadd.f32 %v3820_v48, %v26659_v34  ;;  %v3888_v10 = vadd.f32 %v3824_v15, %v26667_v12  ;;  %v3892_v20 = vadd.f32 %v3828_v13, %v26673_v22  ;;  %v3896_v33 = vadd.f32 %v3832_v1, %v26681_v31  ;;  %v23299_v1 = vpop.eup %23298 }
 0x2f5   :  { %v3900_v27 = vadd.f32 %v3836_v18, %v26689_v4  ;;  %v3904_v29 = vadd.f32 %v3840_v47, %v26697_v42  ;;  %23306 = vtanh.f32 %v3880_v43  ;;  %v3821_v23 = vrot.slane %v26707_v37, 1 }
 0x2f6   :  { %23308 = vtanh.f32 %v3884_v51  ;;  %v3825_v62 = vrot.slane %v26707_v37, 2  ;;  %v3829_v21 = vrot.slane %v26707_v37, 3  ;;  %v3833_v17 = vrot.slane %v26707_v37, 4  ;;  %v23301_v51 = vpop.eup %23300 }
 0x2f7   :  { %23310 = vtanh.f32 %v3888_v10  ;;  %v3837_v45 = vrot.slane %v26707_v37, 5  ;;  %v3841_v8 = vrot.slane %v26707_v37, 6  ;;  %v3908_v48 = vadd.f32 %v3844_v50, %v26703_v61 }
 0x2f8   :  { %23312 = vtanh.f32 %v3892_v20  ;;  %v3881_v15 = vadd.f32 %v26707_v37, %v26654_v49  ;;  %v3885_v13 = vadd.f32 %v3821_v23, %v26662_v60  ;;  %v3889_v18 = vadd.f32 %v3825_v62, %v26670_v41  ;;  %v23303_v49 = vpop.eup %23302 }
 0x2f9   :  { %23314 = vtanh.f32 %v3896_v33  ;;  %v3893_v47 = vadd.f32 %v3829_v21, %v26678_v32  ;;  %v3897_v43 = vadd.f32 %v3833_v17, %v26686_v25  ;;  %v2001_v10 = vrot.slane %v26514_v54, %v26478_v9  ;;  %v23305_v41 = vpop.eup %23304  ;;  %v30561_v54 = vld [vmem:[#allocation155_spill] sm:$0xff] }
 0x2fa   :  { %23316 = vtanh.f32 %v3900_v27  ;;  %v3901_v50 = vadd.f32 %v3837_v45, %v26692_v3  ;;  %v3905_v20 = vadd.f32 %v3841_v8, %v26700_v40  ;;  %v19145_v23 = vmul.f32 -1.442695, %v3881_v15  ;;  %v30670_v40 = vld [vmem:[#allocation61_spill] sm:$0xff]  ;;  %v30672_v32 = vld [vmem:[#allocation63_spill] sm:$0xff] }
 0x2fb   :  { %23318 = vtanh.f32 %v3904_v29  ;;  %v19146_v60 = vmul.f32 -1.442695, %v3885_v13  ;;  %v19147_v33 = vmul.f32 -1.442695, %v3889_v18  ;;  %v19148_v62 = vmul.f32 -1.442695, %v3893_v47 }
 0x2fc   :  { %23320 = vtanh.f32 %v3908_v48  ;;  %v19149_v21 = vmul.f32 -1.442695, %v3897_v43  ;;  %v3845_v17 = vrot.slane %v26707_v37, 7  ;;  %v19150_v25 = vmul.f32 -1.442695, %v3901_v50  ;;  %v30671_v3 = vld [vmem:[#allocation141_spill] sm:$0xff] }
 0x2fd   :  { %23322 = vpow2.f32 %v19145_v23  ;;  %v26739_v27 = vadd.f32 %v2001_v10, %v30561_v54  ;;  %v19151_v45 = vmul.f32 -1.442695, %v3905_v20  ;;  %v4062_v29 = vmul.f32 0.0, %v23291_v24 }
 0x2fe   :  { %23324 = vpow2.f32 %v19146_v60  ;;  %v4063_v15 = vmul.f32 0.0, %v23293_v14  ;;  %v4064_v18 = vmul.f32 0.0, %v23295_v53  ;;  %v4065_v47 = vmul.f32 0.0, %v23297_v16 }
 0x2ff   :  { %v23307_v9 = vpop.eup %23306  ;;  %30562 = vst [vmem:[#allocation155_spill] sm:$0xff] %v26739_v27  ;;  %23326 = vpow2.f32 %v19147_v33  ;;  %v3909_v10 = vadd.f32 %v3845_v17, %v26739_v27  ;;  %v4066_v24 = vmul.f32 0.0, %v23299_v1  ;;  %v4067_v16 = vmul.f32 0.0, %v23301_v51  ;;  %v30669_v27 = vld [vmem:[#allocation140_spill] sm:$0xff] }
 0x300   :  { %v23309_v8 = vpop.eup %23308  ;;  %v4070_v13 = vmul.f32 %v23307_v9, %v26656_v59  ;;  %23328 = vpow2.f32 %v19148_v62  ;;  %v4068_v33 = vmul.f32 0.0, %v23303_v49  ;;  %v4069_v17 = vmul.f32 0.0, %v23305_v41 }
 0x301   :  { %v23311_v48 = vpop.eup %23310  ;;  %v4071_v43 = vmul.f32 %v23309_v8, %v26664_v5  ;;  %23330 = vpow2.f32 %v19149_v21 }
 0x302   :  { %v23313_v60 = vpop.eup %23312  ;;  %v4072_v37 = vmul.f32 %v23311_v48, %v26675_v56  ;;  %v26744_v50 = vadd.f32 %v4070_v13, %v4062_v29  ;;  %23332 = vpow2.f32 %v19150_v25 }
 0x303   :  { %v23315_v20 = vpop.eup %23314  ;;  %v4073_v14 = vmul.f32 %v23313_v60, %v26683_v35  ;;  %v26748_v59 = vadd.f32 %v4071_v43, %v4063_v15  ;;  %23334 = vpow2.f32 %v19151_v45 }
 0x304   :  { %30563 = vst [vmem:[#allocation175_spill] sm:$0xff] %v26744_v50  ;;  %v23317_v53 = vpop.eup %23316  ;;  %v4074_v5 = vmul.f32 %v23315_v20, %v26694_v7  ;;  %v26751_v23 = vadd.f32 %v4072_v37, %v4064_v18  ;;  %23336 = vtanh.f32 %v26744_v50  ;;  %v19152_v7 = vmul.f32 -1.442695, %v3909_v10  ;;  %v30668_v50 = vld [vmem:[#allocation60_spill] sm:$0xff] }
 0x305   :  { %30564 = vst [vmem:[#allocation176_spill] sm:$0xff] %v26748_v59  ;;  %v23319_v56 = vpop.eup %23318  ;;  %v4075_v62 = vmul.f32 %v23317_v53, %v26705_v55  ;;  %v26755_v25 = vadd.f32 %v4073_v14, %v4065_v47  ;;  %23338 = vtanh.f32 %v26748_v59  ;;  %v30667_v59 = vld [vmem:[#allocation139_spill] sm:$0xff] }
 0x306   :  { %30565 = vst [vmem:[#allocation177_spill] sm:$0xff] %v26751_v23  ;;  %v23321_v35 = vpop.eup %23320  ;;  %v4076_v1 = vmul.f32 %v23319_v56, %v26709_v30  ;;  %v26759_v21 = vadd.f32 %v4074_v5, %v4066_v24  ;;  %23340 = vtanh.f32 %v26751_v23  ;;  %v30666_v23 = vld [vmem:[#allocation59_spill] sm:$0xff] }
 0x307   :  { %30566 = vst [vmem:[#allocation178_spill] sm:$0xff] %v26755_v25  ;;  %v23323_v51 = vpop.eup %23322  ;;  %v4077_v9 = vmul.f32 %v23321_v35, %v26712_v63  ;;  %v26763_v54 = vadd.f32 %v4075_v62, %v4067_v16  ;;  %23342 = vtanh.f32 %v26755_v25  ;;  %v30665_v25 = vld [vmem:[#allocation37_spill] sm:$0xff] }
 0x308   :  { %30567 = vst [vmem:[#allocation179_spill] sm:$0xff] %v26759_v21  ;;  %v23325_v49 = vpop.eup %23324  ;;  %v26766_v55 = vadd.f32 %v4076_v1, %v4068_v33  ;;  %23344 = vtanh.f32 %v26759_v21  ;;  %v4038_v45 = vadd.f32 1.0, %v23323_v51  ;;  %v30664_v21 = vld [vmem:[#allocation75_spill] sm:$0xff] }
 0x309   :  { %30568 = vst [vmem:[#allocation180_spill] sm:$0xff] %v26763_v54  ;;  %v23327_v30 = vpop.eup %23326  ;;  %23346 = vtanh.f32 %v26763_v54  ;;  %v4039_v8 = vadd.f32 1.0, %v23325_v49  ;;  %v26770_v29 = vadd.f32 %v4077_v9, %v4069_v17  ;;  %v30663_v54 = vld [vmem:[#allocation34_spill] sm:$0xff] }
 0x30a   :  { %30569 = vst [vmem:[#allocation181_spill] sm:$0xff] %v26766_v55  ;;  %v23329_v15 = vpop.eup %23328  ;;  %23348 = vpow2.f32 %v19152_v7  ;;  %v4040_v41 = vadd.f32 1.0, %v23327_v30 }
 0x30b   :  { %30570 = vst [vmem:[#allocation182_spill] sm:$0xff] %v26770_v29  ;;  %v23331_v63 = vpop.eup %23330  ;;  %v4041_v13 = vadd.f32 1.0, %v23329_v15  ;;  %23350 = vrcp.f32 %v4038_v45 }
 0x30c   :  { %v23333_v48 = vpop.eup %23332  ;;  %v4042_v18 = vadd.f32 1.0, %v23331_v63  ;;  %23352 = vrcp.f32 %v4039_v8 }
 0x30d   :  { %v23335_v47 = vpop.eup %23334  ;;  %v4043_v43 = vadd.f32 1.0, %v23333_v48  ;;  %23354 = vrcp.f32 %v4040_v41 }
 0x30e   :  { %v23337_v60 = vpop.eup %23336  ;;  %v4044_v37 = vadd.f32 1.0, %v23335_v47  ;;  %23356 = vrcp.f32 %v4041_v13 }
 0x30f   :  { %v23339_v10 = vpop.eup %23338  ;;  %23358 = vrcp.f32 %v4042_v18 }
 0x310   :  { %v23341_v20 = vpop.eup %23340  ;;  %23360 = vrcp.f32 %v4043_v43 }
 0x311   :  { %v23343_v24 = vpop.eup %23342  ;;  %23362 = vrcp.f32 %v4044_v37 }
 0x312   :  { %v23345_v14 = vpop.eup %23344  ;;  %23364 = vtanh.f32 %v26766_v55  ;;  %v30662_v55 = vld [vmem:[#allocation73_spill] sm:$0xff] }
 0x313   :  { %v23347_v53 = vpop.eup %23346  ;;  %23366 = vtanh.f32 %v26770_v29  ;;  %v30661_v29 = vld [vmem:[#allocation29_spill] sm:$0xff] }
 0x314   :  { %v23349_v16 = vpop.eup %23348 }
 0x315   :  { %v23351_v5 = vpop.eup %23350  ;;  %v4045_v56 = vadd.f32 1.0, %v23349_v16 }
 0x316   :  { %v23353_v33 = vpop.eup %23352  ;;  %v4094_v62 = vmul.f32 %v23351_v5, %v23337_v60 }
 0x317   :  { %v23355_v35 = vpop.eup %23354  ;;  %23368 = vrcp.f32 %v4045_v56  ;;  %v4095_v1 = vmul.f32 %v23353_v33, %v23339_v10 }
 0x318   :  { %v23357_v7 = vpop.eup %23356  ;;  %v4096_v51 = vmul.f32 %v23355_v35, %v23341_v20 }
 0x319   :  { %v23359_v17 = vpop.eup %23358  ;;  %v4097_v9 = vmul.f32 %v23357_v7, %v23343_v24  ;;  %v4110_v49 = vrot.slane %v4095_v1, 7 }
 0x31a   :  { %v23361_v45 = vpop.eup %23360  ;;  %v4098_v30 = vmul.f32 %v23359_v17, %v23345_v14  ;;  %v4113_v8 = vrot.slane %v4096_v51, 6  ;;  %v30571_v17 = vld [vmem:[#allocation38_spill] sm:$0xff] }
 0x31b   :  { %v23363_v15 = vpop.eup %23362  ;;  %v4099_v41 = vmul.f32 %v23361_v45, %v23347_v53  ;;  %v4112_v63 = vsel %vm4111_vm1, %v4110_v49, %v4094_v62  ;;  %v4116_v13 = vrot.slane %v4097_v9, 5  ;;  %v30572_v9 = vld [vmem:[#allocation43_spill] sm:$0xff] }
 0x31c   :  { %v23365_v48 = vpop.eup %23364  ;;  %v4115_v18 = vsel %vm4114_vm2, %v4113_v8, %v4112_v63  ;;  %v4119_v47 = vrot.slane %v4098_v30, 4  ;;  %v30573_v49 = vld [vmem:[#allocation83_spill] sm:$0xff]  ;;  %v30575_v30 = vmov 0.0   ;;  %v30576_v8 = vld [vmem:[#allocation41_spill] sm:$0xff] }
 0x31d   :  { %v4100_v43 = vmul.f32 %v23365_v48, %v23363_v15  ;;  %v4118_v60 = vsel %vm4117_vm3, %v4116_v13, %v4115_v18  ;;  %v4122_v37 = vrot.slane %v4099_v41, 3  ;;  %v23367_v20 = vpop.eup %23366  ;;  %v30574_v45 = vld [vmem:[#allocation99_spill] sm:$0xff]  ;;  %v30577_v15 = vld [vmem:[#allocation102_spill] sm:$0xff]  ;;  %v30578_v41 = vld [vmem:[#allocation84_spill] sm:$0xff] }
 0x31e   :  { %v4121_v10 = vsel %vm4120_vm4, %v4119_v47, %v4118_v60  ;;  %v30579_v63 = vld [vmem:[#allocation105_spill] sm:$0xff]  ;;  %v30580_v13 = vld [vmem:[#allocation26_spill] sm:$0xff]  ;;  %v30581_v48 = vld [vmem:[#allocation107_spill] sm:$0xff] }
 0x31f   :  { %v4124_v24 = vsel %vm4123_vm5, %v4122_v37, %v4121_v10  ;;  %v4125_v14 = vrot.slane %v4100_v43, 2  ;;  %v30582_v18 = vld [vmem:[#allocation85_spill] sm:$0xff]  ;;  %v30584_v43 = vld [vmem:[#allocation27_spill] sm:$0xff]  ;;  %v30585_v60 = vld [vmem:[#allocation112_spill] sm:$0xff] }
 0x320   :  { %v30583_v47 = vld [vmem:[#allocation109_spill] sm:$0xff]  ;;  %v30586_v37 = vld [vmem:[#allocation86_spill] sm:$0xff] }
 0x321   :  { %v23369_v53 = vpop.eup %23368  ;;  %v4127_v16 = vsel %vm4126_vm6, %v4125_v14, %v4124_v24  ;;  %v30587_v10 = vld [vmem:[#allocation113_spill] sm:$0xff]  ;;  %v30589_v24 = vld [vmem:[#allocation116_spill] sm:$0xff]  ;;  %v30590_v14 = vld [vmem:[#allocation87_spill] sm:$0xff] }
 0x322   :  { %v4101_v5 = vmul.f32 %v23369_v53, %v23367_v20  ;;  %v30588_v20 = vld [vmem:[#allocation32_spill] sm:$0xff]  ;;  %v30591_v53 = vld [vmem:[#allocation117_spill] sm:$0xff] }
 0x324   :  { %v4128_v56 = vrot.slane %v4101_v5, 1  ;;  %v30593_v5 = vld [vmem:[#allocation118_spill] sm:$0xff] }
 0x326   :  { %v4130_v33 = vsel %vm4129_vm7, %v4128_v56, %v4127_v16  ;;  %v30592_v16 = vld [vmem:[#allocation36_spill] sm:$0xff] }
 0x327   :  { %v26781_v62 = vand.u32 4294901760, %v4130_v33  ;;  %v30594_v56 = vld [vmem:[#allocation88_spill] sm:$0xff] }
 0x329   :  { %v26784_v35 = vsub.f32 %v4130_v33, %v26781_v62  ;;  %v30595_v33 = vld [vmem:[#allocation119_spill] sm:$0xff] }
 0x32b   :  { %v26787_v1 = vand.u32 4294901760, %v26784_v35 }
 0x32d   :  { %v4232_v7 = vsub.f32 %v26784_v35, %v26787_v1 }
 0x32f   :  { %v4233_v51 = vand.u32 4294901760, %v4232_v7  ;;  %v30596_v7 = vld [vmem:[#allocation39_spill] sm:$0xff] }
 0x331   :  { %4234 = vmatmul.mubr.f32.vlgmr.msra.gmra.mrb[18].mxu0 %v4233_v51  ;;  %5089 = vmatmul.mubr.f32.vlgmr.msra.gmra.mrb[34].mxu1 %v4233_v51  ;;  %v30597_v51 = vld [vmem:[#allocation120_spill] sm:$0xff] }
 0x332   :  { %20101 = vmatpush1.bf16.msra.mxu0 %v30571_v17  ;;  %20293 = vmatpush1.bf16.msra.mxu1 %v30572_v9  ;;  %v30659_v9 = vld [vmem:[#allocation24_spill] sm:$0xff]  ;;  %v30660_v17 = vld [vmem:[#allocation71_spill] sm:$0xff] }
 0x333   :  { %20103 = vmatprep.subr.bf16.mxu0 %v30573_v49  ;;  %20295 = vmatprep.subr.bf16.mxu1 %v30574_v45  ;;  %v30657_v45 = vld [vmem:[#allocation21_spill] sm:$0xff] }
 0x334   :  { %4464 = vmatprep.mubr.f32.mxu0 %v30575_v30  ;;  %5319 = vmatprep.mubr.f32.mxu1 %v30575_v30  ;;  %v30658_v49 = vld [vmem:[#allocation69_spill] sm:$0xff] }
 0x336   :  { %20105 = vmatpush1.bf16.msra.mxu0 %v30576_v8  ;;  %20297 = vmatpush1.bf16.msra.mxu1 %v30577_v15  ;;  %v30655_v15 = vld [vmem:[#allocation64_spill] sm:$0xff] }
 0x337   :  { %20107 = vmatprep.subr.bf16.mxu0 %v30578_v41  ;;  %20299 = vmatprep.subr.bf16.mxu1 %v30579_v63  ;;  %v30653_v63 = vld [vmem:[#allocation20_spill] sm:$0xff]  ;;  %v30654_v41 = vld [vmem:[#allocation58_spill] sm:$0xff] }
 0x338   :  { %v30656_v8 = vld [vmem:[#allocation68_spill] sm:$0xff] }
 0x33a   :  { %20109 = vmatpush1.bf16.msra.mxu0 %v30580_v13  ;;  %20301 = vmatpush1.bf16.msra.mxu1 %v30581_v48  ;;  %v30651_v48 = vld [vmem:[#allocation35_spill] sm:$0xff]  ;;  %v30652_v13 = vld [vmem:[#allocation57_spill] sm:$0xff] }
 0x33b   :  { %20111 = vmatprep.subr.bf16.mxu0 %v30582_v18  ;;  %20303 = vmatprep.subr.bf16.mxu1 %v30583_v47  ;;  %v30649_v47 = vld [vmem:[#allocation31_spill] sm:$0xff]  ;;  %v30650_v18 = vld [vmem:[#allocation56_spill] sm:$0xff] }
 0x33e   :  { %20113 = vmatpush1.bf16.msra.mxu0 %v30584_v43  ;;  %20305 = vmatpush1.bf16.msra.mxu1 %v30585_v60  ;;  %v30647_v60 = vld [vmem:[#allocation25_spill] sm:$0xff]  ;;  %v30648_v43 = vld [vmem:[#allocation55_spill] sm:$0xff] }
 0x33f   :  { %20115 = vmatprep.subr.bf16.mxu0 %v30586_v37  ;;  %20307 = vmatprep.subr.bf16.mxu1 %v30587_v10  ;;  %v30598_v10 = vld [vmem:[#allocation89_spill] sm:$0xff]  ;;  %v30646_v37 = vld [vmem:[#allocation54_spill] sm:$0xff] }
 0x342   :  { %20117 = vmatpush1.bf16.msra.mxu0 %v30588_v20  ;;  %20309 = vmatpush1.bf16.msra.mxu1 %v30589_v24  ;;  %v30599_v20 = vld [vmem:[#allocation121_spill] sm:$0xff]  ;;  %v30600_v24 = vld [vmem:[#allocation42_spill] sm:$0xff] }
 0x343   :  { %20119 = vmatprep.subr.bf16.mxu0 %v30590_v14  ;;  %20311 = vmatprep.subr.bf16.mxu1 %v30591_v53  ;;  %v30601_v14 = vld [vmem:[#allocation122_spill] sm:$0xff] }
 0x344   :  { %v30602_v53 = vld [vmem:[#allocation90_spill] sm:$0xff] }
 0x346   :  { %20121 = vmatpush1.bf16.msra.mxu0 %v30592_v16  ;;  %20313 = vmatpush1.bf16.msra.mxu1 %v30593_v5  ;;  %v30603_v16 = vld [vmem:[#allocation123_spill] sm:$0xff]  ;;  %v30618_v5 = vld [vmem:[#allocation16_spill] sm:$0xff] }
 0x347   :  { %20123 = vmatprep.subr.bf16.mxu0 %v30594_v56  ;;  %20315 = vmatprep.subr.bf16.mxu1 %v30595_v33  ;;  %v30604_v33 = vld [vmem:[#allocation44_spill] sm:$0xff]  ;;  %v30617_v56 = vld [vmem:[#allocation130_spill] sm:$0xff] }
 0x34a   :  { %20125 = vmatpush1.bf16.msra.mxu0 %v30596_v7  ;;  %20317 = vmatpush1.bf16.msra.mxu1 %v30597_v51  ;;  %v30605_v7 = vld [vmem:[#allocation124_spill] sm:$0xff]  ;;  %v30606_v51 = vld [vmem:[#allocation91_spill] sm:$0xff] }
 0x34b   :  { %20127 = vmatprep.subr.bf16.mxu0 %v30598_v10  ;;  %20319 = vmatprep.subr.bf16.mxu1 %v30599_v20  ;;  %v30607_v10 = vld [vmem:[#allocation125_spill] sm:$0xff]  ;;  %v30612_v20 = vld [vmem:[#allocation15_spill] sm:$0xff] }
 0x34e   :  { %20129 = vmatpush1.bf16.msra.mxu0 %v30600_v24  ;;  %20321 = vmatpush1.bf16.msra.mxu1 %v30601_v14  ;;  %v30608_v14 = vld [vmem:[#allocation45_spill] sm:$0xff]  ;;  %v30611_v24 = vld [vmem:[#allocation127_spill] sm:$0xff] }
 0x34f   :  { %20131 = vmatprep.subr.bf16.mxu0 %v30602_v53  ;;  %20323 = vmatprep.subr.bf16.mxu1 %v30603_v16  ;;  %v30609_v53 = vld [vmem:[#allocation126_spill] sm:$0xff]  ;;  %v30610_v16 = vld [vmem:[#allocation92_spill] sm:$0xff] }
 0x351   :  { %4466 = vmatmul.mubr.f32.vlgmr.msra.gmra.mrb[18].mxu0 %v26781_v62  ;;  %5321 = vmatmul.mubr.f32.vlgmr.msra.gmra.mrb[34].mxu1 %v26781_v62 }
 0x352   :  { %20133 = vmatpush1.bf16.msra.mxu0 %v30604_v33  ;;  %20325 = vmatpush1.bf16.msra.mxu1 %v30605_v7  ;;  %v30613_v33 = vld [vmem:[#allocation128_spill] sm:$0xff]  ;;  %v30614_v7 = vld [vmem:[#allocation93_spill] sm:$0xff] }
 0x353   :  { %20135 = vmatprep.subr.bf16.mxu0 %v30606_v51  ;;  %20327 = vmatprep.subr.bf16.mxu1 %v30607_v10  ;;  %v30615_v51 = vld [vmem:[#allocation129_spill] sm:$0xff]  ;;  %v30616_v10 = vld [vmem:[#allocation47_spill] sm:$0xff] }
 0x354   :  { %4600 = vmatprep.mubr.f32.mxu0 %v30575_v30  ;;  %5455 = vmatprep.mubr.f32.mxu1 %v30575_v30 }
 0x356   :  { %20137 = vmatpush1.bf16.msra.mxu0 %v30608_v14  ;;  %20329 = vmatpush1.bf16.msra.mxu1 %v30609_v53  ;;  %v30619_v14 = vld [vmem:[#allocation131_spill] sm:$0xff] }
 0x357   :  { %20139 = vmatprep.subr.bf16.mxu0 %v30610_v16  ;;  %20331 = vmatprep.subr.bf16.mxu1 %v30611_v24  ;;  %v30620_v53 = vld [vmem:[#allocation19_spill] sm:$0xff]  ;;  %v30621_v16 = vld [vmem:[#allocation132_spill] sm:$0xff]  ;;  %v30622_v24 = vld [vmem:[#allocation94_spill] sm:$0xff] }
 0x35a   :  { %20141 = vmatpush1.bf16.msra.mxu0 %v30612_v20  ;;  %20333 = vmatpush1.bf16.msra.mxu1 %v30613_v33  ;;  %v30623_v20 = vld [vmem:[#allocation133_spill] sm:$0xff]  ;;  %v30624_v33 = vld [vmem:[#allocation23_spill] sm:$0xff] }
 0x35b   :  { %20143 = vmatprep.subr.bf16.mxu0 %v30614_v7  ;;  %20335 = vmatprep.subr.bf16.mxu1 %v30615_v51  ;;  %v30625_v7 = vld [vmem:[#allocation134_spill] sm:$0xff]  ;;  %v30626_v51 = vld [vmem:[#allocation95_spill] sm:$0xff] }
 0x35e   :  { %20145 = vmatpush1.bf16.msra.mxu0 %v30616_v10  ;;  %20337 = vmatpush1.bf16.msra.mxu1 %v30617_v56  ;;  %v30627_v10 = vld [vmem:[#allocation135_spill] sm:$0xff]  ;;  %v30628_v56 = vld [vmem:[#allocation28_spill] sm:$0xff] }
 0x35f   :  { %20147 = vmatprep.subr.bf16.mxu0 %v30618_v5  ;;  %20339 = vmatprep.subr.bf16.mxu1 %v30619_v14  ;;  %v30629_v5 = vld [vmem:[#allocation136_spill] sm:$0xff] }
 0x360   :  { %v30630_v14 = vld [vmem:[#allocation96_spill] sm:$0xff] }
 0x362   :  { %20149 = vmatpush1.bf16.msra.mxu0 %v30620_v53  ;;  %20341 = vmatpush1.bf16.msra.mxu1 %v30621_v16  ;;  %v30631_v53 = vld [vmem:[#allocation137_spill] sm:$0xff]  ;;  %v30632_v16 = vld [vmem:[#allocation30_spill] sm:$0xff] }
 0x363   :  { %20151 = vmatprep.subr.bf16.mxu0 %v30622_v24  ;;  %20343 = vmatprep.subr.bf16.mxu1 %v30623_v20  ;;  %v30633_v24 = vld [vmem:[#allocation138_spill] sm:$0xff] }
 0x364   :  { %v30634_v20 = vld [vmem:[#allocation46_spill] sm:$0xff] }
 0x366   :  { %20153 = vmatpush1.bf16.msra.mxu0 %v30624_v33  ;;  %20345 = vmatpush1.bf16.msra.mxu1 %v30625_v7  ;;  %v30635_v33 = vld [vmem:[#allocation33_spill] sm:$0xff]  ;;  %v30645_v7 = vld [vmem:[#allocation22_spill] sm:$0xff] }
 0x367   :  { %20155 = vmatprep.subr.bf16.mxu0 %v30626_v51  ;;  %20347 = vmatprep.subr.bf16.mxu1 %v30627_v10  ;;  %v30636_v10 = vld [vmem:[#allocation48_spill] sm:$0xff]  ;;  %v30643_v51 = vld [vmem:[#allocation18_spill] sm:$0xff] }
 0x36a   :  { %20157 = vmatpush1.bf16.msra.mxu0 %v30628_v56  ;;  %20349 = vmatpush1.bf16.msra.mxu1 %v30629_v5  ;;  %v30637_v56 = vld [vmem:[#allocation17_spill] sm:$0xff] }
 0x36b   :  { %20159 = vmatprep.subr.bf16.mxu0 %v30630_v14  ;;  %20351 = vmatprep.subr.bf16.mxu1 %v30631_v53  ;;  %v30638_v5 = vld [vmem:[#allocation49_spill] sm:$0xff]  ;;  %v30639_v14 = vld [vmem:[#allocation51_spill] sm:$0xff]  ;;  %v30642_v53 = vld [vmem:[#allocation52_spill] sm:$0xff] }
 0x36e   :  { %20161 = vmatpush1.bf16.msra.mxu0 %v30632_v16  ;;  %20353 = vmatpush1.bf16.msra.mxu1 %v30633_v24  ;;  %v30640_v24 = vld [vmem:[#allocation50_spill] sm:$0xff] }
 0x36f   :  { %20163 = vmatprep.subr.bf16.mxu0 %v30634_v20  ;;  %20355 = vmatprep.subr.bf16.mxu1 %v30635_v33  ;;  %v30641_v16 = vld [vmem:[#allocation62_spill] sm:$0xff] }
 0x371   :  { %4603 = vmatmul.mubr.f32.vlgmr.msra.gmra.mrb[18].mxu0 %v26784_v35  ;;  %5458 = vmatmul.mubr.f32.vlgmr.msra.gmra.mrb[34].mxu1 %v26784_v35  ;;  %v30644_v35 = vld [vmem:[#allocation53_spill] sm:$0xff] }
 0x372   :  { %20165 = vmatpush1.bf16.msra.mxu0 %v30636_v10  ;;  %20357 = vmatpush1.bf16.msra.mxu1 %v30637_v56 }
 0x373   :  { %20167 = vmatprep.subr.bf16.mxu0 %v30638_v5  ;;  %20359 = vmatprep.subr.bf16.mxu1 %v30639_v14 }
 0x374   :  { %4705 = vmatprep.mubr.f32.mxu0 %v30575_v30  ;;  %5560 = vmatprep.mubr.f32.mxu1 %v30575_v30 }
 0x376   :  { %20169 = vmatpush1.bf16.msra.mxu0 %v30640_v24  ;;  %20361 = vmatpush1.bf16.msra.mxu1 %v30641_v16 }
 0x377   :  { %20171 = vmatprep.subr.bf16.mxu0 %v30642_v53  ;;  %20363 = vmatprep.subr.bf16.mxu1 %v30643_v51 }
 0x37a   :  { %20173 = vmatpush1.bf16.msra.mxu0 %v30644_v35  ;;  %20365 = vmatpush1.bf16.msra.mxu1 %v30645_v7 }
 0x37b   :  { %20175 = vmatprep.subr.bf16.mxu0 %v30646_v37  ;;  %20367 = vmatprep.subr.bf16.mxu1 %v30647_v60 }
 0x37e   :  { %20177 = vmatpush1.bf16.msra.mxu0 %v30648_v43  ;;  %20369 = vmatpush1.bf16.msra.mxu1 %v30649_v47 }
 0x37f   :  { %20179 = vmatprep.subr.bf16.mxu0 %v30650_v18  ;;  %20371 = vmatprep.subr.bf16.mxu1 %v30651_v48 }
 0x382   :  { %20181 = vmatpush1.bf16.msra.mxu0 %v30652_v13  ;;  %20373 = vmatpush1.bf16.msra.mxu1 %v30653_v63 }
 0x383   :  { %20183 = vmatprep.subr.bf16.mxu0 %v30654_v41  ;;  %20375 = vmatprep.subr.bf16.mxu1 %v30655_v15 }
 0x386   :  { %20185 = vmatpush1.bf16.msra.mxu0 %v30656_v8  ;;  %20377 = vmatpush1.bf16.msra.mxu1 %v30657_v45 }
 0x387   :  { %20187 = vmatprep.subr.bf16.mxu0 %v30658_v49  ;;  %20379 = vmatprep.subr.bf16.mxu1 %v30659_v9 }
 0x38a   :  { %20189 = vmatpush1.bf16.msra.mxu0 %v30660_v17  ;;  %20381 = vmatpush1.bf16.msra.mxu1 %v30661_v29 }
 0x38b   :  { %20191 = vmatprep.subr.bf16.mxu0 %v30662_v55  ;;  %20383 = vmatprep.subr.bf16.mxu1 %v30663_v54 }
 0x38e   :  { %20193 = vmatpush1.bf16.msra.mxu0 %v30664_v21  ;;  %20385 = vmatpush1.bf16.msra.mxu1 %v30665_v25 }
 0x38f   :  { %20195 = vmatprep.subr.bf16.mxu0 %v30666_v23  ;;  %20387 = vmatprep.subr.bf16.mxu1 %v30667_v59  ;;  %v30673_v23 = vld [vmem:[#allocation142_spill] sm:$0xff]  ;;  %v30674_v59 = vld [vmem:[#allocation65_spill] sm:$0xff] }
 0x391   :  { %4709 = vmatmul.mubr.f32.vlgmr.msra.gmra.mrb[18].mxu0 %v26787_v1  ;;  %5564 = vmatmul.mubr.f32.vlgmr.msra.gmra.mrb[34].mxu1 %v26787_v1  ;;  %v30676_v1 = vld [vmem:[#allocation66_spill] sm:$0xff] }
 0x392   :  { %20197 = vmatpush1.bf16.msra.mxu0 %v30668_v50  ;;  %20389 = vmatpush1.bf16.msra.mxu1 %v30669_v27  ;;  %v30677_v50 = vld [vmem:[#allocation144_spill] sm:$0xff]  ;;  %v30678_v27 = vld [vmem:[#allocation67_spill] sm:$0xff] }
 0x393   :  { %20199 = vmatprep.subr.bf16.mxu0 %v30670_v40  ;;  %20391 = vmatprep.subr.bf16.mxu1 %v30671_v3  ;;  %v30679_v40 = vld [vmem:[#allocation145_spill] sm:$0xff]  ;;  %v30680_v3 = vld [vmem:[#allocation70_spill] sm:$0xff] }
 0x394   :  { %4875 = vmatprep.mubr.f32.mxu0 %v30575_v30  ;;  %5730 = vmatprep.mubr.f32.mxu1 %v30575_v30 }
 0x396   :  { %20201 = vmatpush1.bf16.msra.mxu0 %v30672_v32  ;;  %20393 = vmatpush1.bf16.msra.mxu1 %v30673_v23  ;;  %v30683_v32 = vld [vmem:[#allocation147_spill] sm:$0xff]  ;;  %v30684_v23 = vld [vmem:[#allocation74_spill] sm:$0xff] }
 0x397   :  { %20203 = vmatprep.subr.bf16.mxu0 %v30674_v59  ;;  %20395 = vmatprep.subr.bf16.mxu1 %v30675_v52  ;;  %v30685_v59 = vld [vmem:[#allocation148_spill] sm:$0xff] }
 0x398   :  { %v30686_v52 = vld [vmem:[#allocation76_spill] sm:$0xff] }
 0x39a   :  { %20205 = vmatpush1.bf16.msra.mxu0 %v30676_v1  ;;  %20397 = vmatpush1.bf16.msra.mxu1 %v30677_v50  ;;  %v30687_v1 = vld [vmem:[#allocation149_spill] sm:$0xff] }
 0x39b   :  { %20207 = vmatprep.subr.bf16.mxu0 %v30678_v27  ;;  %20399 = vmatprep.subr.bf16.mxu1 %v30679_v40  ;;  %v30688_v50 = vld [vmem:[#allocation77_spill] sm:$0xff]  ;;  %v30689_v27 = vld [vmem:[#allocation150_spill] sm:$0xff] }
 0x39c   :  { %v30690_v40 = vld [vmem:[#allocation78_spill] sm:$0xff] }
 0x39e   :  { %20209 = vmatpush1.bf16.msra.mxu0 %v30680_v3  ;;  %20401 = vmatpush1.bf16.msra.mxu1 %v30681_v6  ;;  %v30691_v3 = vld [vmem:[#allocation151_spill] sm:$0xff] }
 0x39f   :  { %20211 = vmatprep.subr.bf16.mxu0 %v30682_v19  ;;  %20403 = vmatprep.subr.bf16.mxu1 %v30683_v32  ;;  %v30692_v6 = vld [vmem:[#allocation79_spill] sm:$0xff]  ;;  %v30693_v19 = vld [vmem:[#allocation152_spill] sm:$0xff]  ;;  %v30694_v32 = vld [vmem:[#allocation81_spill] sm:$0xff] }
 0x3a2   :  { %20213 = vmatpush1.bf16.msra.mxu0 %v30684_v23  ;;  %20405 = vmatpush1.bf16.msra.mxu1 %v30685_v59  ;;  %v30695_v23 = vld [vmem:[#allocation153_spill] sm:$0xff]  ;;  %v30696_v59 = vld [vmem:[#allocation82_spill] sm:$0xff] }
 0x3a3   :  { %20215 = vmatprep.subr.bf16.mxu0 %v30686_v52  ;;  %20407 = vmatprep.subr.bf16.mxu1 %v30687_v1  ;;  %v30697_v52 = vld [vmem:[#allocation154_spill] sm:$0xff] }
 0x3a6   :  { %20217 = vmatpush1.bf16.msra.mxu0 %v30688_v50  ;;  %20409 = vmatpush1.bf16.msra.mxu1 %v30689_v27 }
 0x3a7   :  { %20219 = vmatprep.subr.bf16.mxu0 %v30690_v40  ;;  %20411 = vmatprep.subr.bf16.mxu1 %v30691_v3 }
 0x3aa   :  { %20221 = vmatpush1.bf16.msra.mxu0 %v30692_v6  ;;  %20413 = vmatpush1.bf16.msra.mxu1 %v30693_v19 }
 0x3ab   :  { %20223 = vmatprep.subr.bf16.mxu0 %v30694_v32  ;;  %20415 = vmatprep.subr.bf16.mxu1 %v30695_v23 }
 0x3ae   :  { %20225 = vmatpush1.bf16.msra.mxu0 %v30696_v59  ;;  %20417 = vmatpush1.bf16.msra.mxu1 %v30697_v52  ;;  %v30699_v52 = vld [vmem:[#allocation40_spill] sm:$0xff] }
 0x3af   :  { %20227 = vmatprep.subr.bf16.mxu0 %v30634_v20  ;;  %20419 = vmatprep.subr.bf16.mxu1 %v30635_v33 }
 0x3b1   :  { %4877 = vmatmul.mubr.f32.vlgmr.msra.gmra.mrb[18].mxu0 %v26781_v62  ;;  %5732 = vmatmul.mubr.f32.vlgmr.msra.gmra.mrb[34].mxu1 %v26781_v62 }
 0x3b2   :  { %20229 = vmatpush1.bf16.msra.mxu0 %v30636_v10  ;;  %20421 = vmatpush1.bf16.msra.mxu1 %v30637_v56 }
 0x3b3   :  { %20231 = vmatprep.subr.bf16.mxu0 %v30638_v5  ;;  %20423 = vmatprep.subr.bf16.mxu1 %v30639_v14 }
 0x3b4   :  { %4979 = vmatprep.mubr.f32.mxu0 %v30575_v30  ;;  %5834 = vmatprep.mubr.f32.mxu1 %v30575_v30 }
 0x3b6   :  { %20233 = vmatpush1.bf16.msra.mxu0 %v30640_v24  ;;  %20425 = vmatpush1.bf16.msra.mxu1 %v30641_v16 }
 0x3b7   :  { %20235 = vmatprep.subr.bf16.mxu0 %v30642_v53  ;;  %20427 = vmatprep.subr.bf16.mxu1 %v30643_v51 }
 0x3ba   :  { %20237 = vmatpush1.bf16.msra.mxu0 %v30644_v35  ;;  %20429 = vmatpush1.bf16.msra.mxu1 %v30645_v7 }
 0x3bb   :  { %20239 = vmatprep.subr.bf16.mxu0 %v30646_v37  ;;  %20431 = vmatprep.subr.bf16.mxu1 %v30647_v60 }
 0x3be   :  { %20241 = vmatpush1.bf16.msra.mxu0 %v30648_v43  ;;  %20433 = vmatpush1.bf16.msra.mxu1 %v30649_v47 }
 0x3bf   :  { %20243 = vmatprep.subr.bf16.mxu0 %v30650_v18  ;;  %20435 = vmatprep.subr.bf16.mxu1 %v30651_v48 }
 0x3c2   :  { %20245 = vmatpush1.bf16.msra.mxu0 %v30652_v13  ;;  %20437 = vmatpush1.bf16.msra.mxu1 %v30653_v63 }
 0x3c3   :  { %20247 = vmatprep.subr.bf16.mxu0 %v30654_v41  ;;  %20439 = vmatprep.subr.bf16.mxu1 %v30655_v15 }
 0x3c6   :  { %20249 = vmatpush1.bf16.msra.mxu0 %v30656_v8  ;;  %20441 = vmatpush1.bf16.msra.mxu1 %v30657_v45 }
 0x3c7   :  { %20251 = vmatprep.subr.bf16.mxu0 %v30658_v49  ;;  %20443 = vmatprep.subr.bf16.mxu1 %v30659_v9 }
 0x3ca   :  { %20253 = vmatpush1.bf16.msra.mxu0 %v30660_v17  ;;  %20445 = vmatpush1.bf16.msra.mxu1 %v30661_v29 }
 0x3cb   :  { %20255 = vmatprep.subr.bf16.mxu0 %v30662_v55  ;;  %20447 = vmatprep.subr.bf16.mxu1 %v30663_v54 }
 0x3ce   :  { %20257 = vmatpush1.bf16.msra.mxu0 %v30664_v21  ;;  %20449 = vmatpush1.bf16.msra.mxu1 %v30665_v25 }
 0x3cf   :  { %20451 = vmatprep.subr.bf16.mxu0 %v30634_v20  ;;  %20643 = vmatprep.subr.bf16.mxu1 %v30635_v33 }
 0x3d1   :  { %4981 = vmatmul.mubr.f32.vlgmr.msra.gmra.mrb[18].mxu0 %v26781_v62  ;;  %5836 = vmatmul.mubr.f32.vlgmr.msra.gmra.mrb[34].mxu1 %v26781_v62  ;;  %v30698_v62 = vld [vmem:[#allocation80_spill] sm:$0xff] }
 0x3d2   :  { %20453 = vmatpush1.bf16.msra.mxu0 %v30636_v10  ;;  %20645 = vmatpush1.bf16.msra.mxu1 %v30637_v56 }
 0x3d3   :  { %20455 = vmatprep.subr.bf16.mxu0 %v30638_v5  ;;  %20647 = vmatprep.subr.bf16.mxu1 %v30639_v14 }
 0x3d4   :  { %6273 = vmatprep.mubr.f32.mxu0 %v30575_v30  ;;  %7128 = vmatprep.mubr.f32.mxu1 %v30575_v30 }
 0x3d6   :  { %20457 = vmatpush1.bf16.msra.mxu0 %v30640_v24  ;;  %20649 = vmatpush1.bf16.msra.mxu1 %v30641_v16 }
 0x3d7   :  { %20459 = vmatprep.subr.bf16.mxu0 %v30642_v53  ;;  %20651 = vmatprep.subr.bf16.mxu1 %v30643_v51 }
 0x3da   :  { %20461 = vmatpush1.bf16.msra.mxu0 %v30644_v35  ;;  %20653 = vmatpush1.bf16.msra.mxu1 %v30645_v7 }
 0x3db   :  { %20463 = vmatprep.subr.bf16.mxu0 %v30646_v37  ;;  %20655 = vmatprep.subr.bf16.mxu1 %v30647_v60 }
 0x3de   :  { %20465 = vmatpush1.bf16.msra.mxu0 %v30648_v43  ;;  %20657 = vmatpush1.bf16.msra.mxu1 %v30649_v47 }
 0x3df   :  { %20467 = vmatprep.subr.bf16.mxu0 %v30650_v18  ;;  %20659 = vmatprep.subr.bf16.mxu1 %v30651_v48 }
 0x3e2   :  { %20469 = vmatpush1.bf16.msra.mxu0 %v30652_v13  ;;  %20661 = vmatpush1.bf16.msra.mxu1 %v30653_v63 }
 0x3e3   :  { %20471 = vmatprep.subr.bf16.mxu0 %v30654_v41  ;;  %20663 = vmatprep.subr.bf16.mxu1 %v30655_v15 }
 0x3e6   :  { %20473 = vmatpush1.bf16.msra.mxu0 %v30656_v8  ;;  %20665 = vmatpush1.bf16.msra.mxu1 %v30657_v45 }
 0x3e7   :  { %20475 = vmatprep.subr.bf16.mxu0 %v30658_v49  ;;  %20667 = vmatprep.subr.bf16.mxu1 %v30659_v9 }
 0x3ea   :  { %20477 = vmatpush1.bf16.msra.mxu0 %v30660_v17  ;;  %20669 = vmatpush1.bf16.msra.mxu1 %v30661_v29 }
 0x3eb   :  { %20479 = vmatprep.subr.bf16.mxu0 %v30662_v55  ;;  %20671 = vmatprep.subr.bf16.mxu1 %v30663_v54  ;;  %v30700_v54 = vld [vmem:[#allocation100_spill] sm:$0xff]  ;;  %v30701_v55 = vld [vmem:[#allocation97_spill] sm:$0xff] }
 0x3ee   :  { %20481 = vmatpush1.bf16.msra.mxu0 %v30664_v21  ;;  %20673 = vmatpush1.bf16.msra.mxu1 %v30665_v25 }
 0x3ef   :  { %20483 = vmatprep.subr.bf16.mxu0 %v30698_v62  ;;  %20675 = vmatprep.subr.bf16.mxu1 %v30699_v52 }
 0x4a4   :  { %v4982_v59 = vpop.f32.mrb[18].mxu0  ;;  %v27005_v23 = vpop.f32.mrb[34].mxu1 }
 0x4a5   :  { %v5846_v32 = vrot.slane %v4982_v59, 7  ;;  %v5850_v19 = vrot.slane %v4982_v59, 1  ;;  %v5854_v6 = vrot.slane %v4982_v59, 2  ;;  %v5858_v3 = vrot.slane %v4982_v59, 3  ;;  %v27007_v40 = vpop.f32.mrb[19].mxu0  ;;  %v27009_v27 = vpop.f32.mrb[35].mxu1 }
 0x4a6   :  { %v5862_v50 = vrot.slane %v4982_v59, 4  ;;  %v5866_v1 = vrot.slane %v4982_v59, 5  ;;  %v5870_v21 = vrot.slane %v4982_v59, 6  ;;  %v5910_v25 = vadd.f32 %v4982_v59, %v30700_v54 }
 0x4a7   :  { %v5906_v62 = vadd.f32 %v5846_v32, %v30701_v55  ;;  %v5914_v52 = vadd.f32 %v5850_v19, %v26548_v0  ;;  %v5918_v29 = vadd.f32 %v5854_v6, %v26559_v28  ;;  %v5922_v17 = vadd.f32 %v5858_v3, %v26567_v38 }
 0x4a8   :  { %v5926_v9 = vadd.f32 %v5862_v50, %v26575_v11  ;;  %v5930_v49 = vadd.f32 %v5866_v1, %v26583_v26  ;;  %v19154_v45 = vmul.f32 -1.442695, %v5910_v25  ;;  %v5934_v8 = vadd.f32 %v5870_v21, %v26587_v2 }
 0x4a9   :  { %v19153_v15 = vmul.f32 -1.442695, %v5906_v62  ;;  %v19155_v41 = vmul.f32 -1.442695, %v5914_v52  ;;  %v19156_v63 = vmul.f32 -1.442695, %v5918_v29  ;;  %v5912_v21 = vadd.f32 %v27005_v23, %v26659_v34 }
 0x4aa   :  { %23370 = vpow2.f32 %v19154_v45  ;;  %v19157_v59 = vmul.f32 -1.442695, %v5922_v17  ;;  %v19158_v32 = vmul.f32 -1.442695, %v5926_v9  ;;  %v5848_v19 = vrot.slane %v27005_v23, 7 }
 0x4ab   :  { %23372 = vpow2.f32 %v19153_v15  ;;  %v19159_v6 = vmul.f32 -1.442695, %v5930_v49  ;;  %v5852_v3 = vrot.slane %v27005_v23, 1  ;;  %v19160_v50 = vmul.f32 -1.442695, %v5934_v8 }
 0x4ac   :  { %23374 = vpow2.f32 %v19155_v41  ;;  %v5856_v1 = vrot.slane %v27005_v23, 2  ;;  %v5860_v25 = vrot.slane %v27005_v23, 3  ;;  %v5908_v52 = vadd.f32 %v5848_v19, %v26651_v39 }
 0x4ad   :  { %23376 = vpow2.f32 %v19156_v63  ;;  %v5916_v29 = vadd.f32 %v5852_v3, %v26667_v12  ;;  %v5864_v49 = vrot.slane %v27005_v23, 4  ;;  %v5868_v8 = vrot.slane %v27005_v23, 5 }
 0x4ae   :  { %23378 = vpow2.f32 %v19157_v59  ;;  %v5920_v17 = vadd.f32 %v5856_v1, %v26673_v22  ;;  %v5924_v9 = vadd.f32 %v5860_v25, %v26681_v31  ;;  %v5847_v59 = vrot.slane %v27007_v40, 7 }
 0x4af   :  { %23380 = vpow2.f32 %v19158_v32  ;;  %v5928_v3 = vadd.f32 %v5864_v49, %v26689_v4  ;;  %v5932_v25 = vadd.f32 %v5868_v8, %v26697_v42  ;;  %v5867_v8 = vrot.slane %v27007_v40, 5 }
 0x4b0   :  { %23382 = vpow2.f32 %v19159_v6  ;;  %v5872_v6 = vrot.slane %v27005_v23, 6  ;;  %v5863_v23 = vrot.slane %v27007_v40, 4  ;;  %v5907_v49 = vadd.f32 %v5847_v59, %v26556_v58 }
 0x4b1   :  { %23384 = vpow2.f32 %v19160_v50 }
 0x4b2   :  { %23386 = vtanh.f32 %v5908_v52  ;;  %v5851_v52 = vrot.slane %v27007_v40, 1  ;;  %v5936_v42 = vadd.f32 %v5872_v6, %v26703_v61  ;;  %v19161_v58 = vmul.f32 -1.442695, %v5907_v49 }
 0x4b3   :  { %23388 = vtanh.f32 %v5912_v21 }
 0x4b4   :  { %v23371_v45 = vpop.eup %23370  ;;  %23390 = vtanh.f32 %v5916_v29 }
 0x4b5   :  { %v23373_v15 = vpop.eup %23372  ;;  %v5963_v41 = vadd.f32 1.0, %v23371_v45  ;;  %23392 = vtanh.f32 %v5920_v17  ;;  %v5855_v17 = vrot.slane %v27007_v40, 2 }
 0x4b6   :  { %v23375_v63 = vpop.eup %23374  ;;  %v5962_v62 = vadd.f32 1.0, %v23373_v15  ;;  %23394 = vtanh.f32 %v5924_v9  ;;  %v5859_v9 = vrot.slane %v27007_v40, 3 }
 0x4b7   :  { %v23377_v32 = vpop.eup %23376  ;;  %v5964_v19 = vadd.f32 1.0, %v23375_v63  ;;  %23396 = vrcp.f32 %v5963_v41  ;;  %v5919_v59 = vadd.f32 %v5855_v17, %v26580_v44  ;;  %v5853_v17 = vrot.slane %v27009_v27, 1 }
 0x4b8   :  { %v23379_v50 = vpop.eup %23378  ;;  %v5965_v1 = vadd.f32 1.0, %v23377_v32  ;;  %23398 = vrcp.f32 %v5962_v62  ;;  %v5911_v62 = vadd.f32 %v27007_v40, %v26564_v57  ;;  %v5849_v57 = vrot.slane %v27009_v27, 7 }
 0x4b9   :  { %v23381_v21 = vpop.eup %23380  ;;  %v5966_v29 = vadd.f32 1.0, %v23379_v50  ;;  %23400 = vrcp.f32 %v5964_v19  ;;  %v5871_v50 = vrot.slane %v27007_v40, 6  ;;  %v30703_v40 = vld [vmem:[#allocation158_spill] sm:$0xff] }
 0x4ba   :  { %v23383_v45 = vpop.eup %23382  ;;  %v5967_v15 = vadd.f32 1.0, %v23381_v21  ;;  %23402 = vrcp.f32 %v5965_v1  ;;  %v5915_v21 = vadd.f32 %v5851_v52, %v26572_v46  ;;  %v5931_v31 = vadd.f32 %v5867_v8, %v30703_v40  ;;  %v30705_v8 = vld [vmem:[#allocation161_spill] sm:$0xff] }
 0x4bb   :  { %v23385_v41 = vpop.eup %23384  ;;  %v5968_v63 = vadd.f32 1.0, %v23383_v45  ;;  %23404 = vrcp.f32 %v5966_v29  ;;  %v5923_v29 = vadd.f32 %v5859_v9, %v26592_v36  ;;  %v19162_v52 = vmul.f32 -1.442695, %v5911_v62 }
 0x4bc   :  { %v23387_v32 = vpop.eup %23386  ;;  %v5969_v19 = vadd.f32 1.0, %v23385_v41  ;;  %23406 = vrcp.f32 %v5967_v15  ;;  %v30702_v15 = vld [vmem:[#allocation115_spill] sm:$0xff]  ;;  %v19163_v61 = vmul.f32 -1.442695, %v5915_v21  ;;  %v5857_v36 = vrot.slane %v27009_v27, 2 }
 0x4bd   :  { %v23389_v1 = vpop.eup %23388  ;;  %23408 = vrcp.f32 %v5968_v63  ;;  %v5927_v41 = vadd.f32 %v5863_v23, %v30702_v15  ;;  %v30704_v63 = vld [vmem:[#allocation159_spill] sm:$0xff]  ;;  %v19165_v49 = vmul.f32 -1.442695, %v5923_v29  ;;  %v5861_v23 = vrot.slane %v27009_v27, 3 }
 0x4be   :  { %v23391_v45 = vpop.eup %23390  ;;  %23410 = vrcp.f32 %v5969_v19  ;;  %v5935_v6 = vadd.f32 %v5871_v50, %v30704_v63  ;;  %v19164_v19 = vmul.f32 -1.442695, %v5919_v59  ;;  %v5909_v62 = vadd.f32 %v5849_v57, %v30705_v8  ;;  %v30706_v21 = vld [vmem:[#allocation163_spill] sm:$0xff] }
 0x4bf   :  { %v23393_v4 = vpop.eup %23392  ;;  %23412 = vtanh.f32 %v5928_v3  ;;  %v19166_v50 = vmul.f32 -1.442695, %v5927_v41  ;;  %v19167_v63 = vmul.f32 -1.442695, %v5931_v31  ;;  %v30708_v8 = vld [vmem:[#allocation167_spill] sm:$0xff]  ;;  %v30709_v41 = vld [vmem:[#allocation169_spill] sm:$0xff] }
 0x4c0   :  { %v23395_v46 = vpop.eup %23394  ;;  %23414 = vtanh.f32 %v5932_v25  ;;  %v19168_v57 = vmul.f32 -1.442695, %v5935_v6  ;;  %v19169_v22 = vmul.f32 -1.442695, %v5909_v62 }
 0x4c1   :  { %v23397_v9 = vpop.eup %23396  ;;  %23416 = vtanh.f32 %v5936_v42  ;;  %v5913_v42 = vadd.f32 %v27009_v27, %v30706_v21  ;;  %v5925_v21 = vadd.f32 %v5861_v23, %v30709_v41 }
 0x4c2   :  { %v23399_v44 = vpop.eup %23398  ;;  %v27054_v3 = vmul.f32 %v23397_v9, %v23389_v1  ;;  %23418 = vpow2.f32 %v19161_v58  ;;  %v30707_v1 = vld [vmem:[#allocation165_spill] sm:$0xff] }
 0x4c3   :  { %v23401_v25 = vpop.eup %23400  ;;  %v27058_v40 = vmul.f32 %v23399_v44, %v23387_v32  ;;  %23420 = vpow2.f32 %v19162_v52  ;;  %v5917_v9 = vadd.f32 %v5853_v17, %v30707_v1  ;;  %v5921_v44 = vadd.f32 %v5857_v36, %v30708_v8 }
 0x4c4   :  { %v23403_v59 = vpop.eup %23402  ;;  %v27062_v29 = vmul.f32 %v23401_v25, %v23391_v45  ;;  %23422 = vpow2.f32 %v19163_v61  ;;  %v19170_v61 = vmul.f32 -1.442695, %v5913_v42  ;;  %v19173_v36 = vmul.f32 -1.442695, %v5925_v21 }
 0x4c5   :  { %v23405_v58 = vpop.eup %23404  ;;  %v27065_v15 = vmul.f32 %v23403_v59, %v23393_v4  ;;  %23424 = vpow2.f32 %v19164_v19  ;;  %v19171_v17 = vmul.f32 -1.442695, %v5917_v9  ;;  %v19172_v4 = vmul.f32 -1.442695, %v5921_v44  ;;  %v30710_v44 = vld [vmem:[#allocation171_spill] sm:$0xff] }
 0x4c6   :  { %v23407_v32 = vpop.eup %23406  ;;  %v27068_v52 = vmul.f32 %v23405_v58, %v23395_v46  ;;  %23426 = vpow2.f32 %v19165_v49  ;;  %v5865_v49 = vrot.slane %v27009_v27, 4  ;;  %v5873_v9 = vrot.slane %v27009_v27, 6 }
 0x4c7   :  { %v23409_v45 = vpop.eup %23408  ;;  %23428 = vpow2.f32 %v19166_v50 }
 0x4c8   :  { %v23411_v31 = vpop.eup %23410  ;;  %23430 = vpow2.f32 %v19167_v63  ;;  %v5869_v63 = vrot.slane %v27009_v27, 5 }
 0x4c9   :  { %v23413_v25 = vpop.eup %23412  ;;  %23432 = vpow2.f32 %v19168_v57 }
 0x4ca   :  { %v23415_v19 = vpop.eup %23414  ;;  %v27071_v6 = vmul.f32 %v23413_v25, %v23407_v32  ;;  %23434 = vpow2.f32 %v19169_v22  ;;  %v5929_v32 = vadd.f32 %v5865_v49, %v30710_v44 }
 0x4cb   :  { %v23417_v46 = vpop.eup %23416  ;;  %v27073_v59 = vmul.f32 %v23415_v19, %v23409_v45  ;;  %23436 = vpow2.f32 %v19170_v61 }
 0x4cc   :  { %v23419_v23 = vpop.eup %23418  ;;  %v27076_v62 = vmul.f32 %v23417_v46, %v23411_v31  ;;  %23438 = vpow2.f32 %v19171_v17  ;;  %v30711_v31 = vld [vmem:[#allocation173_spill] sm:$0xff]  ;;  %v30712_v46 = vld [vmem:[#allocation155_spill] sm:$0xff] }
 0x4cd   :  { %v23421_v50 = vpop.eup %23420  ;;  %v6010_v42 = vadd.f32 1.0, %v23419_v23  ;;  %23440 = vpow2.f32 %v19172_v4  ;;  %v5933_v25 = vadd.f32 %v5869_v63, %v30711_v31  ;;  %v5937_v23 = vadd.f32 %v5873_v9, %v30712_v46 }
 0x4ce   :  { %v23423_v58 = vpop.eup %23422  ;;  %v6011_v22 = vadd.f32 1.0, %v23421_v50  ;;  %23442 = vpow2.f32 %v19173_v36 }
 0x4cf   :  { %v23425_v21 = vpop.eup %23424  ;;  %v6012_v57 = vadd.f32 1.0, %v23423_v58  ;;  %23444 = vrcp.f32 %v6010_v42  ;;  %v19174_v58 = vmul.f32 -1.442695, %v5929_v32  ;;  %v19175_v49 = vmul.f32 -1.442695, %v5933_v25  ;;  %v30714_v32 = vld [vmem:[#allocation176_spill] sm:$0xff] }
 0x4d0   :  { %v23427_v45 = vpop.eup %23426  ;;  %v6013_v61 = vadd.f32 1.0, %v23425_v21  ;;  %23446 = vrcp.f32 %v6011_v22  ;;  %v19176_v22 = vmul.f32 -1.442695, %v5937_v23  ;;  %v6099_v31 = vrot.slane %v30714_v32, 7 }
 0x4d1   :  { %v23429_v19 = vpop.eup %23428  ;;  %v6014_v17 = vadd.f32 1.0, %v23427_v45  ;;  %23448 = vrcp.f32 %v6012_v57 }
 0x4d2   :  { %v23431_v27 = vpop.eup %23430  ;;  %v6015_v4 = vadd.f32 1.0, %v23429_v19  ;;  %23450 = vrcp.f32 %v6013_v61  ;;  %v30713_v19 = vld [vmem:[#allocation175_spill] sm:$0xff] }
 0x4d3   :  { %v23433_v50 = vpop.eup %23432  ;;  %v6016_v36 = vadd.f32 1.0, %v23431_v27  ;;  %23452 = vrcp.f32 %v6014_v17  ;;  %v6098_v61 = vrot.slane %v30713_v19, 7 }
 0x4d4   :  { %v23435_v42 = vpop.eup %23434  ;;  %v6017_v41 = vadd.f32 1.0, %v23433_v50  ;;  %23454 = vrcp.f32 %v6015_v4  ;;  %v30715_v50 = vld [vmem:[#allocation177_spill] sm:$0xff] }
 0x4d5   :  { %v23437_v21 = vpop.eup %23436  ;;  %23456 = vrcp.f32 %v6016_v36  ;;  %v6066_v45 = vadd.f32 1.0, %v23435_v42  ;;  %v6100_v36 = vrot.slane %v30715_v50, 7  ;;  %v30716_v42 = vld [vmem:[#allocation178_spill] sm:$0xff] }
 0x4d6   :  { %v23439_v63 = vpop.eup %23438  ;;  %23458 = vrcp.f32 %v6017_v41  ;;  %v6067_v9 = vadd.f32 1.0, %v23437_v21  ;;  %v6101_v44 = vrot.slane %v30716_v42, 7 }
 0x4d7   :  { %v23441_v57 = vpop.eup %23440  ;;  %23460 = vpow2.f32 %v19174_v58  ;;  %v6068_v27 = vadd.f32 1.0, %v23439_v63  ;;  %v30717_v58 = vld [vmem:[#allocation179_spill] sm:$0xff] }
 0x4d8   :  { %v23443_v46 = vpop.eup %23442  ;;  %23462 = vpow2.f32 %v19175_v49  ;;  %v6069_v4 = vadd.f32 1.0, %v23441_v57  ;;  %v6102_v21 = vrot.slane %v30717_v58, 7  ;;  %v30718_v49 = vld [vmem:[#allocation180_spill] sm:$0xff]  ;;  %v30719_v57 = vld [vmem:[#allocation181_spill] sm:$0xff] }
 0x4d9   :  { %v23445_v17 = vpop.eup %23444  ;;  %23464 = vpow2.f32 %v19176_v22  ;;  %v6103_v63 = vrot.slane %v30718_v49, 7  ;;  %v6104_v50 = vrot.slane %v30719_v57, 7 }
 0x4da   :  { %v23447_v25 = vpop.eup %23446  ;;  %v6114_v23 = vmul.f32 %v23445_v17, %v6098_v61  ;;  %23466 = vrcp.f32 %v6066_v45 }
 0x4db   :  { %v23449_v41 = vpop.eup %23448  ;;  %v6115_v8 = vmul.f32 %v23447_v25, %v6099_v31  ;;  %23468 = vrcp.f32 %v6067_v9  ;;  %v6070_v9 = vadd.f32 1.0, %v23443_v46 }
 0x4dc   :  { %v23451_v19 = vpop.eup %23450  ;;  %v6116_v1 = vmul.f32 %v23449_v41, %v6100_v36  ;;  %v27090_v32 = vadd.f32 %v27058_v40, %v6114_v23  ;;  %23470 = vrcp.f32 %v6068_v27  ;;  %v30720_v40 = vld [vmem:[#allocation182_spill] sm:$0xff] }
 0x4dd   :  { %v23453_v22 = vpop.eup %23452  ;;  %v6117_v61 = vmul.f32 %v23451_v19, %v6101_v44  ;;  %v27094_v45 = vadd.f32 %v27054_v3, %v6115_v8  ;;  %23472 = vrcp.f32 %v6069_v4  ;;  %v6105_v36 = vrot.slane %v30720_v40, 7 }
 0x4de   :  { %v23455_v17 = vpop.eup %23454  ;;  %v6118_v42 = vmul.f32 %v23453_v22, %v6102_v21  ;;  %v27097_v31 = vadd.f32 %v27062_v29, %v6116_v1  ;;  %23474 = vtanh.f32 %v27090_v32 }
 0x4df   :  { %v23457_v25 = vpop.eup %23456  ;;  %v6119_v27 = vmul.f32 %v23455_v17, %v6103_v63  ;;  %v27102_v23 = vadd.f32 %v27065_v15, %v6117_v61  ;;  %23476 = vtanh.f32 %v27094_v45 }
 0x4e0   :  { %v23459_v3 = vpop.eup %23458  ;;  %v6120_v8 = vmul.f32 %v23457_v25, %v6104_v50  ;;  %v27106_v44 = vadd.f32 %v27068_v52, %v6118_v42  ;;  %23478 = vtanh.f32 %v27097_v31 }
 0x4e1   :  { %v23461_v29 = vpop.eup %23460  ;;  %v27110_v1 = vadd.f32 %v27071_v6, %v6119_v27  ;;  %23480 = vtanh.f32 %v27102_v23  ;;  %v6121_v46 = vmul.f32 %v23459_v3, %v6105_v36 }
 0x4e2   :  { %v23463_v4 = vpop.eup %23462  ;;  %v6071_v41 = vadd.f32 1.0, %v23461_v29  ;;  %23482 = vrcp.f32 %v6070_v9  ;;  %v27114_v15 = vadd.f32 %v27073_v59, %v6120_v8 }
 0x4e3   :  { %v23465_v58 = vpop.eup %23464  ;;  %v6072_v21 = vadd.f32 1.0, %v23463_v4  ;;  %v27117_v52 = vadd.f32 %v27076_v62, %v6121_v46  ;;  %23484 = vtanh.f32 %v27106_v44 }
 0x4e4   :  { %v23467_v19 = vpop.eup %23466  ;;  %v6073_v49 = vadd.f32 1.0, %v23465_v58  ;;  %23486 = vrcp.f32 %v6071_v41 }
 0x4e5   :  { %v23469_v6 = vpop.eup %23468  ;;  %23488 = vrcp.f32 %v6072_v21 }
 0x4e6   :  { %v23471_v63 = vpop.eup %23470  ;;  %23490 = vrcp.f32 %v6073_v49 }
 0x4e7   :  { %v23473_v22 = vpop.eup %23472  ;;  %23492 = vtanh.f32 %v27110_v1 }
 0x4e8   :  { %v23475_v57 = vpop.eup %23474  ;;  %23494 = vtanh.f32 %v27114_v15 }
 0x4e9   :  { %v23477_v59 = vpop.eup %23476  ;;  %23496 = vtanh.f32 %v27117_v52  ;;  %v6146_v62 = vmul.f32 %v23475_v57, %v23467_v19 }
 0x4ea   :  { %v23479_v50 = vpop.eup %23478  ;;  %v6147_v61 = vmul.f32 %v23477_v59, %v23469_v6 }
 0x4eb   :  { %v23481_v17 = vpop.eup %23480  ;;  %v6148_v42 = vmul.f32 %v23479_v50, %v23471_v63  ;;  %v6162_v9 = vrot.slane %v6146_v62, 1 }
 0x4ec   :  { %v23483_v25 = vpop.eup %23482  ;;  %v6149_v40 = vmul.f32 %v23481_v17, %v23473_v22 }
 0x4ed   :  { %v23485_v36 = vpop.eup %23484  ;;  %v6163_v27 = vsel %vm4111_vm1, %v6147_v61, %v6162_v9  ;;  %v6164_v3 = vrot.slane %v6148_v42, 7 }
 0x4ee   :  { %v23487_v8 = vpop.eup %23486  ;;  %v6150_v29 = vmul.f32 %v23485_v36, %v23483_v25  ;;  %v6166_v46 = vrot.slane %v6149_v40, 6 }
 0x4ef   :  { %v23489_v4 = vpop.eup %23488  ;;  %v6165_v41 = vsel %vm4114_vm2, %v6164_v3, %v6163_v27 }
 0x4f0   :  { %v23491_v58 = vpop.eup %23490  ;;  %v6167_v21 = vsel %vm4117_vm3, %v6166_v46, %v6165_v41  ;;  %v6168_v19 = vrot.slane %v6150_v29, 5  ;;  %v30721_v29 = vld [vmem:[#allocation38_spill] sm:$0xff]  ;;  %v30722_v46 = vld [vmem:[#allocation43_spill] sm:$0xff] }
 0x4f1   :  { %v23493_v49 = vpop.eup %23492  ;;  %v30724_v41 = vld [vmem:[#allocation99_spill] sm:$0xff] }
 0x4f2   :  { %v23495_v6 = vpop.eup %23494  ;;  %v6151_v63 = vmul.f32 %v23493_v49, %v23487_v8  ;;  %v6169_v57 = vsel %vm4120_vm4, %v6168_v19, %v6167_v21  ;;  %v30726_v21 = vld [vmem:[#allocation102_spill] sm:$0xff]  ;;  %v30727_v19 = vld [vmem:[#allocation84_spill] sm:$0xff]  ;;  %v30728_v49 = vld [vmem:[#allocation105_spill] sm:$0xff] }
 0x4f3   :  { %v23497_v22 = vpop.eup %23496  ;;  %v6152_v59 = vmul.f32 %v23495_v6, %v23489_v4  ;;  %v30723_v4 = vld [vmem:[#allocation83_spill] sm:$0xff]  ;;  %v30729_v6 = vld [vmem:[#allocation26_spill] sm:$0xff] }
 0x4f4   :  { %v6153_v62 = vmul.f32 %v23497_v22, %v23491_v58  ;;  %v6170_v50 = vrot.slane %v6151_v63, 4  ;;  %v30725_v58 = vld [vmem:[#allocation41_spill] sm:$0xff]  ;;  %v30730_v63 = vld [vmem:[#allocation107_spill] sm:$0xff] }
 0x4f5   :  { %v6172_v61 = vrot.slane %v6152_v59, 3  ;;  %v30732_v22 = vld [vmem:[#allocation109_spill] sm:$0xff]  ;;  %v30733_v59 = vld [vmem:[#allocation27_spill] sm:$0xff] }
 0x4f6   :  { %v6171_v17 = vsel %vm4123_vm5, %v6170_v50, %v6169_v57  ;;  %v6174_v42 = vrot.slane %v6153_v62, 2  ;;  %v30731_v57 = vld [vmem:[#allocation85_spill] sm:$0xff]  ;;  %v30734_v62 = vld [vmem:[#allocation112_spill] sm:$0xff]  ;;  %v30735_v50 = vld [vmem:[#allocation86_spill] sm:$0xff] }
 0x4f7   :  { %v6173_v9 = vsel %vm4126_vm6, %v6172_v61, %v6171_v17  ;;  %v30736_v61 = vld [vmem:[#allocation113_spill] sm:$0xff]  ;;  %v30737_v17 = vld [vmem:[#allocation32_spill] sm:$0xff] }
 0x4f8   :  { %v6175_v25 = vsel %vm4129_vm7, %v6174_v42, %v6173_v9  ;;  %v30738_v42 = vld [vmem:[#allocation116_spill] sm:$0xff]  ;;  %v30739_v9 = vld [vmem:[#allocation87_spill] sm:$0xff] }
 0x4f9   :  { %v27130_v40 = vand.u32 4294901760, %v6175_v25 }
 0x4fb   :  { %v27133_v36 = vsub.f32 %v6175_v25, %v27130_v40  ;;  %v30740_v25 = vld [vmem:[#allocation117_spill] sm:$0xff] }
 0x4fd   :  { %v27136_v27 = vand.u32 4294901760, %v27133_v36 }
 0x4ff   :  { %v6277_v3 = vsub.f32 %v27133_v36, %v27136_v27 }
 0x501   :  { %v6278_v8 = vand.u32 4294901760, %v6277_v3  ;;  %v30741_v3 = vld [vmem:[#allocation36_spill] sm:$0xff] }
 0x503   :  { %6279 = vmatmul.mubr.f32.vlgmr.msra.gmra.mrb[20].mxu0 %v6278_v8  ;;  %7134 = vmatmul.mubr.f32.vlgmr.msra.gmra.mrb[36].mxu1 %v6278_v8  ;;  %v30742_v8 = vld [vmem:[#allocation118_spill] sm:$0xff] }
 0x504   :  { %20485 = vmatpush1.bf16.msra.mxu0 %v30721_v29  ;;  %20677 = vmatpush1.bf16.msra.mxu1 %v30722_v46  ;;  %v30811_v46 = vld [vmem:[#allocation146_spill] sm:$0xff]  ;;  %v30812_v29 = vld [vmem:[#allocation72_spill] sm:$0xff] }
 0x505   :  { %20487 = vmatprep.subr.bf16.mxu0 %v30723_v4  ;;  %20679 = vmatprep.subr.bf16.mxu1 %v30724_v41  ;;  %v30802_v41 = vld [vmem:[#allocation63_spill] sm:$0xff] }
 0x506   :  { %6509 = vmatprep.mubr.f32.mxu0 %v30575_v30  ;;  %7364 = vmatprep.mubr.f32.mxu1 %v30575_v30  ;;  %v30805_v4 = vld [vmem:[#allocation143_spill] sm:$0xff] }
 0x508   :  { %20489 = vmatpush1.bf16.msra.mxu0 %v30725_v58  ;;  %20681 = vmatpush1.bf16.msra.mxu1 %v30726_v21  ;;  %v30800_v21 = vld [vmem:[#allocation61_spill] sm:$0xff] }
 0x509   :  { %20491 = vmatprep.subr.bf16.mxu0 %v30727_v19  ;;  %20683 = vmatprep.subr.bf16.mxu1 %v30728_v49  ;;  %v30798_v49 = vld [vmem:[#allocation60_spill] sm:$0xff]  ;;  %v30801_v58 = vld [vmem:[#allocation141_spill] sm:$0xff] }
 0x50a   :  { %v30799_v19 = vld [vmem:[#allocation140_spill] sm:$0xff] }
 0x50c   :  { %20493 = vmatpush1.bf16.msra.mxu0 %v30729_v6  ;;  %20685 = vmatpush1.bf16.msra.mxu1 %v30730_v63  ;;  %v30796_v63 = vld [vmem:[#allocation59_spill] sm:$0xff] }
 0x50d   :  { %20495 = vmatprep.subr.bf16.mxu0 %v30731_v57  ;;  %20687 = vmatprep.subr.bf16.mxu1 %v30732_v22  ;;  %v30743_v22 = vld [vmem:[#allocation88_spill] sm:$0xff]  ;;  %v30795_v57 = vld [vmem:[#allocation37_spill] sm:$0xff]  ;;  %v30797_v6 = vld [vmem:[#allocation139_spill] sm:$0xff] }
 0x510   :  { %20497 = vmatpush1.bf16.msra.mxu0 %v30733_v59  ;;  %20689 = vmatpush1.bf16.msra.mxu1 %v30734_v62  ;;  %v30744_v59 = vld [vmem:[#allocation119_spill] sm:$0xff] }
 0x511   :  { %20499 = vmatprep.subr.bf16.mxu0 %v30735_v50  ;;  %20691 = vmatprep.subr.bf16.mxu1 %v30736_v61  ;;  %v30745_v62 = vld [vmem:[#allocation39_spill] sm:$0xff]  ;;  %v30746_v50 = vld [vmem:[#allocation120_spill] sm:$0xff]  ;;  %v30747_v61 = vld [vmem:[#allocation89_spill] sm:$0xff] }
 0x514   :  { %20501 = vmatpush1.bf16.msra.mxu0 %v30737_v17  ;;  %20693 = vmatpush1.bf16.msra.mxu1 %v30738_v42  ;;  %v30748_v17 = vld [vmem:[#allocation121_spill] sm:$0xff]  ;;  %v30749_v42 = vld [vmem:[#allocation42_spill] sm:$0xff] }
 0x515   :  { %20503 = vmatprep.subr.bf16.mxu0 %v30739_v9  ;;  %20695 = vmatprep.subr.bf16.mxu1 %v30740_v25  ;;  %v30750_v9 = vld [vmem:[#allocation122_spill] sm:$0xff] }
 0x516   :  { %v30751_v25 = vld [vmem:[#allocation90_spill] sm:$0xff] }
 0x518   :  { %20505 = vmatpush1.bf16.msra.mxu0 %v30741_v3  ;;  %20697 = vmatpush1.bf16.msra.mxu1 %v30742_v8  ;;  %v30752_v3 = vld [vmem:[#allocation123_spill] sm:$0xff]  ;;  %v30767_v8 = vld [vmem:[#allocation16_spill] sm:$0xff] }
 0x519   :  { %20507 = vmatprep.subr.bf16.mxu0 %v30743_v22  ;;  %20699 = vmatprep.subr.bf16.mxu1 %v30744_v59  ;;  %v30753_v59 = vld [vmem:[#allocation44_spill] sm:$0xff]  ;;  %v30766_v22 = vld [vmem:[#allocation130_spill] sm:$0xff] }
 0x51c   :  { %20509 = vmatpush1.bf16.msra.mxu0 %v30745_v62  ;;  %20701 = vmatpush1.bf16.msra.mxu1 %v30746_v50  ;;  %v30754_v62 = vld [vmem:[#allocation124_spill] sm:$0xff]  ;;  %v30755_v50 = vld [vmem:[#allocation91_spill] sm:$0xff] }
 0x51d   :  { %20511 = vmatprep.subr.bf16.mxu0 %v30747_v61  ;;  %20703 = vmatprep.subr.bf16.mxu1 %v30748_v17  ;;  %v30756_v61 = vld [vmem:[#allocation125_spill] sm:$0xff]  ;;  %v30761_v17 = vld [vmem:[#allocation15_spill] sm:$0xff] }
 0x520   :  { %20513 = vmatpush1.bf16.msra.mxu0 %v30749_v42  ;;  %20705 = vmatpush1.bf16.msra.mxu1 %v30750_v9  ;;  %v30757_v9 = vld [vmem:[#allocation45_spill] sm:$0xff]  ;;  %v30760_v42 = vld [vmem:[#allocation127_spill] sm:$0xff] }
 0x521   :  { %20515 = vmatprep.subr.bf16.mxu0 %v30751_v25  ;;  %20707 = vmatprep.subr.bf16.mxu1 %v30752_v3  ;;  %v30758_v25 = vld [vmem:[#allocation126_spill] sm:$0xff]  ;;  %v30759_v3 = vld [vmem:[#allocation92_spill] sm:$0xff] }
 0x523   :  { %6511 = vmatmul.mubr.f32.vlgmr.msra.gmra.mrb[20].mxu0 %v27130_v40  ;;  %7366 = vmatmul.mubr.f32.vlgmr.msra.gmra.mrb[36].mxu1 %v27130_v40 }
 0x524   :  { %20517 = vmatpush1.bf16.msra.mxu0 %v30753_v59  ;;  %20709 = vmatpush1.bf16.msra.mxu1 %v30754_v62  ;;  %v30762_v59 = vld [vmem:[#allocation128_spill] sm:$0xff]  ;;  %v30763_v62 = vld [vmem:[#allocation93_spill] sm:$0xff] }
 0x525   :  { %20519 = vmatprep.subr.bf16.mxu0 %v30755_v50  ;;  %20711 = vmatprep.subr.bf16.mxu1 %v30756_v61  ;;  %v30764_v50 = vld [vmem:[#allocation129_spill] sm:$0xff]  ;;  %v30765_v61 = vld [vmem:[#allocation47_spill] sm:$0xff] }
 0x526   :  { %6645 = vmatprep.mubr.f32.mxu0 %v30575_v30  ;;  %7500 = vmatprep.mubr.f32.mxu1 %v30575_v30 }
 0x528   :  { %20521 = vmatpush1.bf16.msra.mxu0 %v30757_v9  ;;  %20713 = vmatpush1.bf16.msra.mxu1 %v30758_v25  ;;  %v30768_v9 = vld [vmem:[#allocation131_spill] sm:$0xff] }
 0x529   :  { %20523 = vmatprep.subr.bf16.mxu0 %v30759_v3  ;;  %20715 = vmatprep.subr.bf16.mxu1 %v30760_v42  ;;  %v30769_v25 = vld [vmem:[#allocation19_spill] sm:$0xff]  ;;  %v30770_v3 = vld [vmem:[#allocation132_spill] sm:$0xff]  ;;  %v30771_v42 = vld [vmem:[#allocation94_spill] sm:$0xff] }
 0x52c   :  { %20525 = vmatpush1.bf16.msra.mxu0 %v30761_v17  ;;  %20717 = vmatpush1.bf16.msra.mxu1 %v30762_v59  ;;  %v30772_v17 = vld [vmem:[#allocation133_spill] sm:$0xff]  ;;  %v30773_v59 = vld [vmem:[#allocation23_spill] sm:$0xff] }
 0x52d   :  { %20527 = vmatprep.subr.bf16.mxu0 %v30763_v62  ;;  %20719 = vmatprep.subr.bf16.mxu1 %v30764_v50  ;;  %v30774_v62 = vld [vmem:[#allocation134_spill] sm:$0xff]  ;;  %v30775_v50 = vld [vmem:[#allocation95_spill] sm:$0xff] }
 0x530   :  { %20529 = vmatpush1.bf16.msra.mxu0 %v30765_v61  ;;  %20721 = vmatpush1.bf16.msra.mxu1 %v30766_v22  ;;  %v30776_v61 = vld [vmem:[#allocation135_spill] sm:$0xff]  ;;  %v30777_v22 = vld [vmem:[#allocation28_spill] sm:$0xff] }
 0x531   :  { %20531 = vmatprep.subr.bf16.mxu0 %v30767_v8  ;;  %20723 = vmatprep.subr.bf16.mxu1 %v30768_v9  ;;  %v30778_v8 = vld [vmem:[#allocation136_spill] sm:$0xff] }
 0x532   :  { %v30779_v9 = vld [vmem:[#allocation96_spill] sm:$0xff] }
 0x534   :  { %20533 = vmatpush1.bf16.msra.mxu0 %v30769_v25  ;;  %20725 = vmatpush1.bf16.msra.mxu1 %v30770_v3  ;;  %v30780_v25 = vld [vmem:[#allocation137_spill] sm:$0xff]  ;;  %v30781_v3 = vld [vmem:[#allocation30_spill] sm:$0xff] }
 0x535   :  { %20535 = vmatprep.subr.bf16.mxu0 %v30771_v42  ;;  %20727 = vmatprep.subr.bf16.mxu1 %v30772_v17  ;;  %v30782_v42 = vld [vmem:[#allocation138_spill] sm:$0xff]  ;;  %v30794_v17 = vld [vmem:[#allocation75_spill] sm:$0xff] }
 0x538   :  { %20537 = vmatpush1.bf16.msra.mxu0 %v30773_v59  ;;  %20729 = vmatpush1.bf16.msra.mxu1 %v30774_v62  ;;  %v30792_v62 = vld [vmem:[#allocation73_spill] sm:$0xff]  ;;  %v30793_v59 = vld [vmem:[#allocation34_spill] sm:$0xff] }
 0x539   :  { %20539 = vmatprep.subr.bf16.mxu0 %v30775_v50  ;;  %20731 = vmatprep.subr.bf16.mxu1 %v30776_v61  ;;  %v30790_v61 = vld [vmem:[#allocation71_spill] sm:$0xff]  ;;  %v30791_v50 = vld [vmem:[#allocation29_spill] sm:$0xff] }
 0x53c   :  { %20541 = vmatpush1.bf16.msra.mxu0 %v30777_v22  ;;  %20733 = vmatpush1.bf16.msra.mxu1 %v30778_v8  ;;  %v30788_v8 = vld [vmem:[#allocation69_spill] sm:$0xff]  ;;  %v30789_v22 = vld [vmem:[#allocation24_spill] sm:$0xff] }
 0x53d   :  { %20543 = vmatprep.subr.bf16.mxu0 %v30779_v9  ;;  %20735 = vmatprep.subr.bf16.mxu1 %v30780_v25  ;;  %v30786_v25 = vld [vmem:[#allocation68_spill] sm:$0xff]  ;;  %v30787_v9 = vld [vmem:[#allocation21_spill] sm:$0xff] }
 0x540   :  { %20545 = vmatpush1.bf16.msra.mxu0 %v30781_v3  ;;  %20737 = vmatpush1.bf16.msra.mxu1 %v30782_v42  ;;  %v30784_v42 = vld [vmem:[#allocation58_spill] sm:$0xff]  ;;  %v30785_v3 = vld [vmem:[#allocation64_spill] sm:$0xff] }
 0x541   :  { %20547 = vmatprep.subr.bf16.mxu0 %v30634_v20  ;;  %20739 = vmatprep.subr.bf16.mxu1 %v30635_v33 }
 0x543   :  { %6648 = vmatmul.mubr.f32.vlgmr.msra.gmra.mrb[20].mxu0 %v27133_v36  ;;  %7503 = vmatmul.mubr.f32.vlgmr.msra.gmra.mrb[36].mxu1 %v27133_v36  ;;  %v30783_v36 = vld [vmem:[#allocation20_spill] sm:$0xff] }
 0x544   :  { %20549 = vmatpush1.bf16.msra.mxu0 %v30636_v10  ;;  %20741 = vmatpush1.bf16.msra.mxu1 %v30637_v56 }
 0x545   :  { %20551 = vmatprep.subr.bf16.mxu0 %v30638_v5  ;;  %20743 = vmatprep.subr.bf16.mxu1 %v30639_v14 }
 0x546   :  { %6750 = vmatprep.mubr.f32.mxu0 %v30575_v30  ;;  %7605 = vmatprep.mubr.f32.mxu1 %v30575_v30 }
 0x548   :  { %20553 = vmatpush1.bf16.msra.mxu0 %v30640_v24  ;;  %20745 = vmatpush1.bf16.msra.mxu1 %v30641_v16 }
 0x549   :  { %20555 = vmatprep.subr.bf16.mxu0 %v30642_v53  ;;  %20747 = vmatprep.subr.bf16.mxu1 %v30643_v51 }
 0x54c   :  { %20557 = vmatpush1.bf16.msra.mxu0 %v30644_v35  ;;  %20749 = vmatpush1.bf16.msra.mxu1 %v30645_v7 }
 0x54d   :  { %20559 = vmatprep.subr.bf16.mxu0 %v30646_v37  ;;  %20751 = vmatprep.subr.bf16.mxu1 %v30647_v60 }
 0x550   :  { %20561 = vmatpush1.bf16.msra.mxu0 %v30648_v43  ;;  %20753 = vmatpush1.bf16.msra.mxu1 %v30649_v47 }
 0x551   :  { %20563 = vmatprep.subr.bf16.mxu0 %v30650_v18  ;;  %20755 = vmatprep.subr.bf16.mxu1 %v30651_v48 }
 0x554   :  { %20565 = vmatpush1.bf16.msra.mxu0 %v30652_v13  ;;  %20757 = vmatpush1.bf16.msra.mxu1 %v30783_v36 }
 0x555   :  { %20567 = vmatprep.subr.bf16.mxu0 %v30784_v42  ;;  %20759 = vmatprep.subr.bf16.mxu1 %v30785_v3 }
 0x558   :  { %20569 = vmatpush1.bf16.msra.mxu0 %v30786_v25  ;;  %20761 = vmatpush1.bf16.msra.mxu1 %v30787_v9 }
 0x559   :  { %20571 = vmatprep.subr.bf16.mxu0 %v30788_v8  ;;  %20763 = vmatprep.subr.bf16.mxu1 %v30789_v22 }
 0x55c   :  { %20573 = vmatpush1.bf16.msra.mxu0 %v30790_v61  ;;  %20765 = vmatpush1.bf16.msra.mxu1 %v30791_v50 }
 0x55d   :  { %20575 = vmatprep.subr.bf16.mxu0 %v30792_v62  ;;  %20767 = vmatprep.subr.bf16.mxu1 %v30793_v59 }
 0x560   :  { %20577 = vmatpush1.bf16.msra.mxu0 %v30794_v17  ;;  %20769 = vmatpush1.bf16.msra.mxu1 %v30795_v57 }
 0x561   :  { %20579 = vmatprep.subr.bf16.mxu0 %v30796_v63  ;;  %20771 = vmatprep.subr.bf16.mxu1 %v30797_v6  ;;  %v30803_v63 = vld [vmem:[#allocation142_spill] sm:$0xff]  ;;  %v30804_v6 = vld [vmem:[#allocation65_spill] sm:$0xff] }
 0x563   :  { %6754 = vmatmul.mubr.f32.vlgmr.msra.gmra.mrb[20].mxu0 %v27136_v27  ;;  %7609 = vmatmul.mubr.f32.vlgmr.msra.gmra.mrb[36].mxu1 %v27136_v27  ;;  %v30806_v27 = vld [vmem:[#allocation66_spill] sm:$0xff] }
 0x564   :  { %20581 = vmatpush1.bf16.msra.mxu0 %v30798_v49  ;;  %20773 = vmatpush1.bf16.msra.mxu1 %v30799_v19  ;;  %v30807_v49 = vld [vmem:[#allocation144_spill] sm:$0xff]  ;;  %v30808_v19 = vld [vmem:[#allocation67_spill] sm:$0xff] }
 0x565   :  { %20583 = vmatprep.subr.bf16.mxu0 %v30800_v21  ;;  %20775 = vmatprep.subr.bf16.mxu1 %v30801_v58  ;;  %v30809_v21 = vld [vmem:[#allocation145_spill] sm:$0xff]  ;;  %v30810_v58 = vld [vmem:[#allocation70_spill] sm:$0xff] }
 0x566   :  { %6920 = vmatprep.mubr.f32.mxu0 %v30575_v30  ;;  %7775 = vmatprep.mubr.f32.mxu1 %v30575_v30 }
 0x568   :  { %20585 = vmatpush1.bf16.msra.mxu0 %v30802_v41  ;;  %20777 = vmatpush1.bf16.msra.mxu1 %v30803_v63  ;;  %v30813_v41 = vld [vmem:[#allocation147_spill] sm:$0xff]  ;;  %v30814_v63 = vld [vmem:[#allocation74_spill] sm:$0xff] }
 0x569   :  { %20587 = vmatprep.subr.bf16.mxu0 %v30804_v6  ;;  %20779 = vmatprep.subr.bf16.mxu1 %v30805_v4  ;;  %v30815_v6 = vld [vmem:[#allocation148_spill] sm:$0xff] }
 0x56a   :  { %v30816_v4 = vld [vmem:[#allocation76_spill] sm:$0xff] }
 0x56c   :  { %20589 = vmatpush1.bf16.msra.mxu0 %v30806_v27  ;;  %20781 = vmatpush1.bf16.msra.mxu1 %v30807_v49  ;;  %v30817_v27 = vld [vmem:[#allocation149_spill] sm:$0xff] }
 0x56d   :  { %20591 = vmatprep.subr.bf16.mxu0 %v30808_v19  ;;  %20783 = vmatprep.subr.bf16.mxu1 %v30809_v21  ;;  %v30818_v49 = vld [vmem:[#allocation77_spill] sm:$0xff]  ;;  %v30819_v19 = vld [vmem:[#allocation150_spill] sm:$0xff] }
 0x56e   :  { %v30820_v21 = vld [vmem:[#allocation78_spill] sm:$0xff] }
 0x570   :  { %20593 = vmatpush1.bf16.msra.mxu0 %v30810_v58  ;;  %20785 = vmatpush1.bf16.msra.mxu1 %v30811_v46  ;;  %v30821_v58 = vld [vmem:[#allocation151_spill] sm:$0xff] }
 0x571   :  { %20595 = vmatprep.subr.bf16.mxu0 %v30812_v29  ;;  %20787 = vmatprep.subr.bf16.mxu1 %v30813_v41  ;;  %v30822_v46 = vld [vmem:[#allocation79_spill] sm:$0xff]  ;;  %v30823_v29 = vld [vmem:[#allocation152_spill] sm:$0xff]  ;;  %v30824_v41 = vld [vmem:[#allocation81_spill] sm:$0xff] }
 0x574   :  { %20597 = vmatpush1.bf16.msra.mxu0 %v30814_v63  ;;  %20789 = vmatpush1.bf16.msra.mxu1 %v30815_v6  ;;  %v30825_v63 = vld [vmem:[#allocation153_spill] sm:$0xff]  ;;  %v30826_v6 = vld [vmem:[#allocation82_spill] sm:$0xff] }
 0x575   :  { %20599 = vmatprep.subr.bf16.mxu0 %v30816_v4  ;;  %20791 = vmatprep.subr.bf16.mxu1 %v30817_v27  ;;  %v30827_v4 = vld [vmem:[#allocation154_spill] sm:$0xff] }
 0x578   :  { %20601 = vmatpush1.bf16.msra.mxu0 %v30818_v49  ;;  %20793 = vmatpush1.bf16.msra.mxu1 %v30819_v19 }
 0x579   :  { %20603 = vmatprep.subr.bf16.mxu0 %v30820_v21  ;;  %20795 = vmatprep.subr.bf16.mxu1 %v30821_v58 }
 0x57c   :  { %20605 = vmatpush1.bf16.msra.mxu0 %v30822_v46  ;;  %20797 = vmatpush1.bf16.msra.mxu1 %v30823_v29 }
 0x57d   :  { %20607 = vmatprep.subr.bf16.mxu0 %v30824_v41  ;;  %20799 = vmatprep.subr.bf16.mxu1 %v30825_v63 }
 0x580   :  { %20609 = vmatpush1.bf16.msra.mxu0 %v30826_v6  ;;  %20801 = vmatpush1.bf16.msra.mxu1 %v30827_v4  ;;  %v30829_v4 = vld [vmem:[#allocation40_spill] sm:$0xff] }
 0x581   :  { %20611 = vmatprep.subr.bf16.mxu0 %v30634_v20  ;;  %20803 = vmatprep.subr.bf16.mxu1 %v30635_v33 }
 0x583   :  { %6922 = vmatmul.mubr.f32.vlgmr.msra.gmra.mrb[20].mxu0 %v27130_v40  ;;  %7777 = vmatmul.mubr.f32.vlgmr.msra.gmra.mrb[36].mxu1 %v27130_v40 }
 0x584   :  { %20613 = vmatpush1.bf16.msra.mxu0 %v30636_v10  ;;  %20805 = vmatpush1.bf16.msra.mxu1 %v30637_v56 }
 0x585   :  { %20615 = vmatprep.subr.bf16.mxu0 %v30638_v5  ;;  %20807 = vmatprep.subr.bf16.mxu1 %v30639_v14 }
 0x586   :  { %7024 = vmatprep.mubr.f32.mxu0 %v30575_v30  ;;  %7879 = vmatprep.mubr.f32.mxu1 %v30575_v30 }
 0x588   :  { %20617 = vmatpush1.bf16.msra.mxu0 %v30640_v24  ;;  %20809 = vmatpush1.bf16.msra.mxu1 %v30641_v16 }
 0x589   :  { %20619 = vmatprep.subr.bf16.mxu0 %v30642_v53  ;;  %20811 = vmatprep.subr.bf16.mxu1 %v30643_v51 }
 0x58c   :  { %20621 = vmatpush1.bf16.msra.mxu0 %v30644_v35  ;;  %20813 = vmatpush1.bf16.msra.mxu1 %v30645_v7 }
 0x58d   :  { %20623 = vmatprep.subr.bf16.mxu0 %v30646_v37  ;;  %20815 = vmatprep.subr.bf16.mxu1 %v30647_v60 }
 0x590   :  { %20625 = vmatpush1.bf16.msra.mxu0 %v30648_v43  ;;  %20817 = vmatpush1.bf16.msra.mxu1 %v30649_v47 }
 0x591   :  { %20627 = vmatprep.subr.bf16.mxu0 %v30650_v18  ;;  %20819 = vmatprep.subr.bf16.mxu1 %v30651_v48 }
 0x594   :  { %20629 = vmatpush1.bf16.msra.mxu0 %v30652_v13  ;;  %20821 = vmatpush1.bf16.msra.mxu1 %v30783_v36 }
 0x595   :  { %20631 = vmatprep.subr.bf16.mxu0 %v30784_v42  ;;  %20823 = vmatprep.subr.bf16.mxu1 %v30785_v3 }
 0x598   :  { %20633 = vmatpush1.bf16.msra.mxu0 %v30786_v25  ;;  %20825 = vmatpush1.bf16.msra.mxu1 %v30787_v9 }
 0x599   :  { %20635 = vmatprep.subr.bf16.mxu0 %v30788_v8  ;;  %20827 = vmatprep.subr.bf16.mxu1 %v30789_v22 }
 0x59c   :  { %20637 = vmatpush1.bf16.msra.mxu0 %v30790_v61  ;;  %20829 = vmatpush1.bf16.msra.mxu1 %v30791_v50 }
 0x59d   :  { %20639 = vmatprep.subr.bf16.mxu0 %v30792_v62  ;;  %20831 = vmatprep.subr.bf16.mxu1 %v30793_v59 }
 0x5a0   :  { %20641 = vmatpush1.bf16.msra.mxu0 %v30794_v17  ;;  %20833 = vmatpush1.bf16.msra.mxu1 %v30795_v57 }
 0x5a1   :  { %20835 = vmatprep.subr.bf16.mxu0 %v30634_v20  ;;  %21027 = vmatprep.subr.bf16.mxu1 %v30635_v33 }
 0x5a3   :  { %7026 = vmatmul.mubr.f32.vlgmr.msra.gmra.mrb[20].mxu0 %v27130_v40  ;;  %7881 = vmatmul.mubr.f32.vlgmr.msra.gmra.mrb[36].mxu1 %v27130_v40  ;;  %v30828_v40 = vld [vmem:[#allocation80_spill] sm:$0xff] }
 0x5a4   :  { %20837 = vmatpush1.bf16.msra.mxu0 %v30636_v10  ;;  %21029 = vmatpush1.bf16.msra.mxu1 %v30637_v56 }
 0x5a5   :  { %20839 = vmatprep.subr.bf16.mxu0 %v30638_v5  ;;  %21031 = vmatprep.subr.bf16.mxu1 %v30639_v14 }
 0x5a6   :  { %8318 = vmatprep.mubr.f32.mxu0 %v30575_v30  ;;  %9173 = vmatprep.mubr.f32.mxu1 %v30575_v30 }
 0x5a8   :  { %20841 = vmatpush1.bf16.msra.mxu0 %v30640_v24  ;;  %21033 = vmatpush1.bf16.msra.mxu1 %v30641_v16 }
 0x5a9   :  { %20843 = vmatprep.subr.bf16.mxu0 %v30642_v53  ;;  %21035 = vmatprep.subr.bf16.mxu1 %v30643_v51 }
 0x5ac   :  { %20845 = vmatpush1.bf16.msra.mxu0 %v30644_v35  ;;  %21037 = vmatpush1.bf16.msra.mxu1 %v30645_v7 }
 0x5ad   :  { %20847 = vmatprep.subr.bf16.mxu0 %v30646_v37  ;;  %21039 = vmatprep.subr.bf16.mxu1 %v30647_v60 }
 0x5b0   :  { %20849 = vmatpush1.bf16.msra.mxu0 %v30648_v43  ;;  %21041 = vmatpush1.bf16.msra.mxu1 %v30649_v47 }
 0x5b1   :  { %20851 = vmatprep.subr.bf16.mxu0 %v30650_v18  ;;  %21043 = vmatprep.subr.bf16.mxu1 %v30651_v48 }
 0x5b4   :  { %20853 = vmatpush1.bf16.msra.mxu0 %v30652_v13  ;;  %21045 = vmatpush1.bf16.msra.mxu1 %v30783_v36 }
 0x5b5   :  { %20855 = vmatprep.subr.bf16.mxu0 %v30784_v42  ;;  %21047 = vmatprep.subr.bf16.mxu1 %v30785_v3 }
 0x5b8   :  { %20857 = vmatpush1.bf16.msra.mxu0 %v30786_v25  ;;  %21049 = vmatpush1.bf16.msra.mxu1 %v30787_v9 }
 0x5b9   :  { %20859 = vmatprep.subr.bf16.mxu0 %v30788_v8  ;;  %21051 = vmatprep.subr.bf16.mxu1 %v30789_v22 }
 0x5bc   :  { %20861 = vmatpush1.bf16.msra.mxu0 %v30790_v61  ;;  %21053 = vmatpush1.bf16.msra.mxu1 %v30791_v50 }
 0x5bd   :  { %20863 = vmatprep.subr.bf16.mxu0 %v30792_v62  ;;  %21055 = vmatprep.subr.bf16.mxu1 %v30793_v59 }
 0x5c0   :  { %20865 = vmatpush1.bf16.msra.mxu0 %v30794_v17  ;;  %21057 = vmatpush1.bf16.msra.mxu1 %v30795_v57 }
 0x5c1   :  { %20867 = vmatprep.subr.bf16.mxu0 %v30828_v40  ;;  %21059 = vmatprep.subr.bf16.mxu1 %v30829_v4 }
 0x676   :  { %v7027_v6 = vpop.f32.mrb[20].mxu0  ;;  %v27354_v63 = vpop.f32.mrb[36].mxu1 }
 0x677   :  { %v7891_v41 = vrot.slane %v7027_v6, 6  ;;  %v7895_v29 = vrot.slane %v7027_v6, 7  ;;  %v7899_v46 = vrot.slane %v7027_v6, 1  ;;  %v7903_v58 = vrot.slane %v7027_v6, 2  ;;  %v27356_v21 = vpop.f32.mrb[21].mxu0  ;;  %v27358_v19 = vpop.f32.mrb[37].mxu1 }
 0x678   :  { %v7907_v49 = vrot.slane %v7027_v6, 3  ;;  %v7911_v27 = vrot.slane %v7027_v6, 4  ;;  %v7915_v17 = vrot.slane %v7027_v6, 5  ;;  %v7959_v57 = vadd.f32 %v7027_v6, %v26548_v0 }
 0x679   :  { %v7951_v40 = vadd.f32 %v7891_v41, %v30701_v55  ;;  %v7955_v4 = vadd.f32 %v7895_v29, %v30700_v54  ;;  %v7963_v59 = vadd.f32 %v7899_v46, %v26559_v28  ;;  %v7967_v62 = vadd.f32 %v7903_v58, %v26567_v38 }
 0x67a   :  { %v7971_v50 = vadd.f32 %v7907_v49, %v26575_v11  ;;  %v7975_v61 = vadd.f32 %v7911_v27, %v26583_v26  ;;  %v19179_v22 = vmul.f32 -1.442695, %v7959_v57  ;;  %v7979_v8 = vadd.f32 %v7915_v17, %v26587_v2  ;;  %v30837_v2 = vld [vmem:[#allocation174_spill] sm:$0xff] }
 0x67b   :  { %v19177_v9 = vmul.f32 -1.442695, %v7951_v40  ;;  %v19178_v25 = vmul.f32 -1.442695, %v7955_v4  ;;  %v19180_v3 = vmul.f32 -1.442695, %v7963_v59  ;;  %v7961_v59 = vadd.f32 %v27354_v63, %v26667_v12 }
 0x67c   :  { %23498 = vpow2.f32 %v19179_v22  ;;  %v19181_v6 = vmul.f32 -1.442695, %v7967_v62  ;;  %v19182_v41 = vmul.f32 -1.442695, %v7971_v50  ;;  %v7893_v29 = vrot.slane %v27354_v63, 6  ;;  %v30830_v62 = vld [vmem:[#allocation166_spill] sm:$0xff] }
 0x67d   :  { %23500 = vpow2.f32 %v19177_v9  ;;  %v7897_v46 = vrot.slane %v27354_v63, 7  ;;  %v19183_v58 = vmul.f32 -1.442695, %v7975_v61  ;;  %v19184_v49 = vmul.f32 -1.442695, %v7979_v8  ;;  %v30831_v61 = vld [vmem:[#allocation168_spill] sm:$0xff] }
 0x67e   :  { %23502 = vpow2.f32 %v19178_v25  ;;  %v7901_v27 = vrot.slane %v27354_v63, 1  ;;  %v7905_v57 = vrot.slane %v27354_v63, 2  ;;  %v7953_v4 = vadd.f32 %v7893_v29, %v26651_v39  ;;  %v30834_v12 = vld [vmem:[#allocation98_spill] sm:$0xff]  ;;  %v30836_v39 = vld [vmem:[#allocation104_spill] sm:$0xff] }
 0x67f   :  { %23504 = vpow2.f32 %v19180_v3  ;;  %v7957_v22 = vadd.f32 %v7897_v46, %v26659_v34  ;;  %v7909_v25 = vrot.slane %v27354_v63, 3  ;;  %v7913_v3 = vrot.slane %v27354_v63, 4 }
 0x680   :  { %23506 = vpow2.f32 %v19181_v6  ;;  %v7965_v50 = vadd.f32 %v7901_v27, %v30830_v62  ;;  %v7969_v17 = vadd.f32 %v7905_v57, %v30831_v61  ;;  %v7892_v29 = vrot.slane %v27356_v21, 6  ;;  %v30833_v61 = vld [vmem:[#allocation172_spill] sm:$0xff] }
 0x681   :  { %23508 = vpow2.f32 %v19182_v41  ;;  %v7896_v27 = vrot.slane %v27356_v21, 7 }
 0x682   :  { %23510 = vpow2.f32 %v19183_v58  ;;  %v7952_v34 = vadd.f32 %v7892_v29, %v30834_v12  ;;  %v30838_v29 = vld [vmem:[#allocation108_spill] sm:$0xff] }
 0x683   :  { %23512 = vpow2.f32 %v19184_v49  ;;  %v7917_v49 = vrot.slane %v27354_v63, 5  ;;  %v7908_v63 = vrot.slane %v27356_v21, 3 }
 0x684   :  { %23514 = vtanh.f32 %v7953_v4  ;;  %v19185_v38 = vmul.f32 -1.442695, %v7952_v34 }
 0x685   :  { %23516 = vtanh.f32 %v7957_v22  ;;  %v30832_v22 = vld [vmem:[#allocation170_spill] sm:$0xff]  ;;  %v7981_v26 = vadd.f32 %v7917_v49, %v30837_v2  ;;  %v30842_v2 = vld [vmem:[#allocation159_spill] sm:$0xff] }
 0x686   :  { %v23499_v9 = vpop.eup %23498  ;;  %23518 = vtanh.f32 %v7961_v59  ;;  %v7973_v59 = vadd.f32 %v7909_v25, %v30832_v22  ;;  %v7912_v25 = vrot.slane %v27356_v21, 4  ;;  %v7916_v22 = vrot.slane %v27356_v21, 5 }
 0x687   :  { %v23501_v8 = vpop.eup %23500  ;;  %v8009_v40 = vadd.f32 1.0, %v23499_v9  ;;  %23520 = vtanh.f32 %v7965_v50  ;;  %v7977_v9 = vadd.f32 %v7913_v3, %v30833_v61  ;;  %v30835_v3 = vld [vmem:[#allocation101_spill] sm:$0xff] }
 0x688   :  { %v23503_v6 = vpop.eup %23502  ;;  %v8007_v41 = vadd.f32 1.0, %v23501_v8  ;;  %23522 = vtanh.f32 %v7969_v17  ;;  %v7900_v17 = vrot.slane %v27356_v21, 1  ;;  %v7904_v8 = vrot.slane %v27356_v21, 2 }
 0x689   :  { %v23505_v46 = vpop.eup %23504  ;;  %v8008_v58 = vadd.f32 1.0, %v23503_v6  ;;  %23524 = vrcp.f32 %v8009_v40  ;;  %v7956_v61 = vadd.f32 %v7896_v27, %v30835_v3  ;;  %v7894_v27 = vrot.slane %v27358_v19, 6 }
 0x68a   :  { %v23507_v57 = vpop.eup %23506  ;;  %v8010_v4 = vadd.f32 1.0, %v23505_v46  ;;  %23526 = vrcp.f32 %v8007_v41  ;;  %v7964_v12 = vadd.f32 %v7900_v17, %v30838_v29  ;;  %v7980_v17 = vadd.f32 %v7916_v22, %v30842_v2  ;;  %v30845_v2 = vld [vmem:[#allocation165_spill] sm:$0xff] }
 0x68b   :  { %v23509_v50 = vpop.eup %23508  ;;  %v8011_v62 = vadd.f32 1.0, %v23507_v57  ;;  %23528 = vrcp.f32 %v8008_v58  ;;  %v19186_v0 = vmul.f32 -1.442695, %v7956_v61  ;;  %v7906_v61 = vrot.slane %v27358_v19, 2 }
 0x68c   :  { %v23511_v6 = vpop.eup %23510  ;;  %v8012_v40 = vadd.f32 1.0, %v23509_v50  ;;  %23530 = vrcp.f32 %v8010_v4  ;;  %v7960_v50 = vadd.f32 %v27356_v21, %v30836_v39  ;;  %v7898_v21 = vrot.slane %v27358_v19, 7 }
 0x68d   :  { %v23513_v46 = vpop.eup %23512  ;;  %v8013_v41 = vadd.f32 1.0, %v23511_v6  ;;  %23532 = vrcp.f32 %v8011_v62  ;;  %v30839_v6 = vld [vmem:[#allocation111_spill] sm:$0xff] }
 0x68e   :  { %v23515_v57 = vpop.eup %23514  ;;  %v8014_v58 = vadd.f32 1.0, %v23513_v46  ;;  %23534 = vrcp.f32 %v8012_v40  ;;  %v7968_v62 = vadd.f32 %v7904_v8, %v30839_v6  ;;  %v30840_v40 = vld [vmem:[#allocation115_spill] sm:$0xff]  ;;  %v19187_v29 = vmul.f32 -1.442695, %v7960_v50 }
 0x68f   :  { %v23517_v4 = vpop.eup %23516  ;;  %23536 = vrcp.f32 %v8013_v41  ;;  %v7972_v3 = vadd.f32 %v7908_v63, %v30840_v40  ;;  %v30841_v41 = vld [vmem:[#allocation158_spill] sm:$0xff]  ;;  %v7902_v6 = vrot.slane %v27358_v19, 1  ;;  %v30843_v63 = vld [vmem:[#allocation161_spill] sm:$0xff] }
 0x690   :  { %v23519_v11 = vpop.eup %23518  ;;  %23538 = vrcp.f32 %v8014_v58  ;;  %v7976_v49 = vadd.f32 %v7912_v25, %v30841_v41  ;;  %v19188_v58 = vmul.f32 -1.442695, %v7964_v12  ;;  %v19189_v34 = vmul.f32 -1.442695, %v7968_v62  ;;  %v30844_v25 = vld [vmem:[#allocation163_spill] sm:$0xff] }
 0x691   :  { %v23521_v46 = vpop.eup %23520  ;;  %23540 = vtanh.f32 %v7973_v59  ;;  %v7954_v40 = vadd.f32 %v7894_v27, %v30843_v63  ;;  %v19190_v22 = vmul.f32 -1.442695, %v7972_v3  ;;  %v7958_v50 = vadd.f32 %v7898_v21, %v30844_v25  ;;  %v30846_v63 = vld [vmem:[#allocation167_spill] sm:$0xff]  ;;  %v30847_v3 = vld [vmem:[#allocation169_spill] sm:$0xff] }
 0x692   :  { %v23523_v39 = vpop.eup %23522  ;;  %23542 = vtanh.f32 %v7977_v9  ;;  %v19191_v62 = vmul.f32 -1.442695, %v7976_v49  ;;  %v19192_v27 = vmul.f32 -1.442695, %v7980_v17  ;;  %v7970_v21 = vadd.f32 %v7906_v61, %v30847_v3 }
 0x693   :  { %v23525_v8 = vpop.eup %23524  ;;  %23544 = vtanh.f32 %v7981_v26 }
 0x694   :  { %v23527_v54 = vpop.eup %23526  ;;  %v27403_v59 = vmul.f32 %v23525_v8, %v23519_v11  ;;  %23546 = vpow2.f32 %v19185_v38  ;;  %v7962_v11 = vadd.f32 %v27358_v19, %v30845_v2 }
 0x695   :  { %v23529_v9 = vpop.eup %23528  ;;  %v27407_v55 = vmul.f32 %v23527_v54, %v23515_v57  ;;  %23548 = vpow2.f32 %v19186_v0  ;;  %v7966_v54 = vadd.f32 %v7902_v6, %v30846_v63  ;;  %v19197_v6 = vmul.f32 -1.442695, %v7970_v21 }
 0x696   :  { %v23531_v26 = vpop.eup %23530  ;;  %v27410_v12 = vmul.f32 %v23529_v9, %v23517_v4  ;;  %23550 = vpow2.f32 %v19187_v29  ;;  %v19193_v4 = vmul.f32 -1.442695, %v7954_v40  ;;  %v19194_v29 = vmul.f32 -1.442695, %v7958_v50 }
 0x697   :  { %v23533_v38 = vpop.eup %23532  ;;  %v27414_v8 = vmul.f32 %v23531_v26, %v23521_v46  ;;  %23552 = vpow2.f32 %v19188_v58  ;;  %v19195_v2 = vmul.f32 -1.442695, %v7962_v11  ;;  %v19196_v46 = vmul.f32 -1.442695, %v7966_v54 }
 0x698   :  { %v23535_v57 = vpop.eup %23534  ;;  %v27417_v0 = vmul.f32 %v23533_v38, %v23523_v39  ;;  %23554 = vpow2.f32 %v19189_v34  ;;  %v7910_v34 = vrot.slane %v27358_v19, 3  ;;  %v7918_v11 = vrot.slane %v27358_v19, 5 }
 0x699   :  { %v23537_v9 = vpop.eup %23536  ;;  %23556 = vpow2.f32 %v19190_v22  ;;  %v7914_v22 = vrot.slane %v27358_v19, 4 }
 0x69a   :  { %v23539_v49 = vpop.eup %23538  ;;  %23558 = vpow2.f32 %v19191_v62 }
 0x69b   :  { %v23541_v25 = vpop.eup %23540  ;;  %23560 = vpow2.f32 %v19192_v27 }
 0x69c   :  { %v23543_v58 = vpop.eup %23542  ;;  %v27420_v17 = vmul.f32 %v23541_v25, %v23535_v57  ;;  %23562 = vpow2.f32 %v19193_v4  ;;  %v30848_v57 = vld [vmem:[#allocation171_spill] sm:$0xff] }
 0x69d   :  { %v23545_v39 = vpop.eup %23544  ;;  %v27422_v26 = vmul.f32 %v23543_v58, %v23537_v9  ;;  %23564 = vpow2.f32 %v19194_v29  ;;  %v7974_v21 = vadd.f32 %v7910_v34, %v30848_v57  ;;  %v30849_v29 = vld [vmem:[#allocation173_spill] sm:$0xff] }
 0x69e   :  { %v23547_v40 = vpop.eup %23546  ;;  %v27425_v61 = vmul.f32 %v23545_v39, %v23539_v49  ;;  %23566 = vpow2.f32 %v19195_v2  ;;  %v7978_v49 = vadd.f32 %v7914_v22, %v30849_v29  ;;  %v30850_v39 = vld [vmem:[#allocation155_spill] sm:$0xff] }
 0x69f   :  { %v23549_v50 = vpop.eup %23548  ;;  %v8055_v62 = vadd.f32 1.0, %v23547_v40  ;;  %23568 = vpow2.f32 %v19196_v46  ;;  %v7982_v40 = vadd.f32 %v7918_v11, %v30850_v39 }
 0x6a0   :  { %v23551_v25 = vpop.eup %23550  ;;  %v8056_v38 = vadd.f32 1.0, %v23549_v50  ;;  %23570 = vpow2.f32 %v19197_v6  ;;  %v19199_v34 = vmul.f32 -1.442695, %v7978_v49 }
 0x6a1   :  { %v23553_v27 = vpop.eup %23552  ;;  %v8057_v54 = vadd.f32 1.0, %v23551_v25  ;;  %23572 = vrcp.f32 %v8055_v62  ;;  %v19198_v25 = vmul.f32 -1.442695, %v7974_v21  ;;  %v8144_v21 = vrot.slane %v27094_v45, 7 }
 0x6a2   :  { %v23555_v4 = vpop.eup %23554  ;;  %v8058_v9 = vadd.f32 1.0, %v23553_v27  ;;  %23574 = vrcp.f32 %v8056_v38  ;;  %v19200_v38 = vmul.f32 -1.442695, %v7982_v40 }
 0x6a3   :  { %v23557_v58 = vpop.eup %23556  ;;  %v8059_v2 = vadd.f32 1.0, %v23555_v4  ;;  %23576 = vrcp.f32 %v8057_v54 }
 0x6a4   :  { %v23559_v19 = vpop.eup %23558  ;;  %v8060_v46 = vadd.f32 1.0, %v23557_v58  ;;  %23578 = vrcp.f32 %v8058_v9  ;;  %v8143_v9 = vrot.slane %v27090_v32, 7 }
 0x6a5   :  { %v23561_v50 = vpop.eup %23560  ;;  %v8061_v6 = vadd.f32 1.0, %v23559_v19  ;;  %23580 = vrcp.f32 %v8059_v2 }
 0x6a6   :  { %v23563_v62 = vpop.eup %23562  ;;  %v8062_v3 = vadd.f32 1.0, %v23561_v50  ;;  %23582 = vrcp.f32 %v8060_v46  ;;  %v8145_v46 = vrot.slane %v27097_v31, 7  ;;  %v8146_v50 = vrot.slane %v27102_v23, 7 }
 0x6a7   :  { %v23565_v27 = vpop.eup %23564  ;;  %23584 = vrcp.f32 %v8061_v6  ;;  %v8111_v4 = vadd.f32 1.0, %v23563_v62  ;;  %v8147_v6 = vrot.slane %v27106_v44, 7  ;;  %v8148_v62 = vrot.slane %v27110_v1, 7 }
 0x6a8   :  { %v23567_v22 = vpop.eup %23566  ;;  %23586 = vrcp.f32 %v8062_v3  ;;  %v8112_v11 = vadd.f32 1.0, %v23565_v27  ;;  %v8149_v31 = vrot.slane %v27114_v15, 7 }
 0x6a9   :  { %v23569_v54 = vpop.eup %23568  ;;  %23588 = vpow2.f32 %v19198_v25  ;;  %v8113_v58 = vadd.f32 1.0, %v23567_v22 }
 0x6aa   :  { %v23571_v39 = vpop.eup %23570  ;;  %23590 = vpow2.f32 %v19199_v34  ;;  %v8114_v19 = vadd.f32 1.0, %v23569_v54 }
 0x6ab   :  { %v23573_v2 = vpop.eup %23572  ;;  %23592 = vpow2.f32 %v19200_v38  ;;  %v8115_v1 = vadd.f32 1.0, %v23571_v39 }
 0x6ac   :  { %v23575_v49 = vpop.eup %23574  ;;  %v8159_v40 = vmul.f32 %v23573_v2, %v8143_v9  ;;  %23594 = vrcp.f32 %v8111_v4 }
 0x6ad   :  { %v23577_v3 = vpop.eup %23576  ;;  %v8160_v25 = vmul.f32 %v23575_v49, %v8144_v21  ;;  %23596 = vrcp.f32 %v8112_v11 }
 0x6ae   :  { %v23579_v32 = vpop.eup %23578  ;;  %v8161_v34 = vmul.f32 %v23577_v3, %v8145_v46  ;;  %v27439_v45 = vadd.f32 %v27407_v55, %v8159_v40  ;;  %23598 = vrcp.f32 %v8113_v58  ;;  %v8150_v55 = vrot.slane %v27117_v52, 7 }
 0x6af   :  { %v23581_v27 = vpop.eup %23580  ;;  %v8162_v38 = vmul.f32 %v23579_v32, %v8146_v50  ;;  %v27443_v22 = vadd.f32 %v27410_v12, %v8160_v25  ;;  %23600 = vrcp.f32 %v8114_v19 }
 0x6b0   :  { %v23583_v23 = vpop.eup %23582  ;;  %v8163_v44 = vmul.f32 %v23581_v27, %v8147_v6  ;;  %v27446_v4 = vadd.f32 %v27403_v59, %v8161_v34  ;;  %23602 = vtanh.f32 %v27439_v45 }
 0x6b1   :  { %v23585_v54 = vpop.eup %23584  ;;  %v8164_v11 = vmul.f32 %v23583_v23, %v8148_v62  ;;  %v27451_v9 = vadd.f32 %v27414_v8, %v8162_v38  ;;  %23604 = vtanh.f32 %v27443_v22 }
 0x6b2   :  { %v23587_v15 = vpop.eup %23586  ;;  %v8165_v12 = vmul.f32 %v23585_v54, %v8149_v31  ;;  %v27455_v58 = vadd.f32 %v27417_v0, %v8163_v44  ;;  %23606 = vtanh.f32 %v27446_v4 }
 0x6b3   :  { %v23589_v59 = vpop.eup %23588  ;;  %v27459_v2 = vadd.f32 %v27420_v17, %v8164_v11  ;;  %23608 = vtanh.f32 %v27451_v9  ;;  %v8166_v52 = vmul.f32 %v23587_v15, %v8150_v55 }
 0x6b4   :  { %v23591_v39 = vpop.eup %23590  ;;  %v8116_v21 = vadd.f32 1.0, %v23589_v59  ;;  %23610 = vrcp.f32 %v8115_v1  ;;  %v27463_v8 = vadd.f32 %v27422_v26, %v8165_v12 }
 0x6b5   :  { %v23593_v19 = vpop.eup %23592  ;;  %v8117_v49 = vadd.f32 1.0, %v23591_v39  ;;  %v27466_v0 = vadd.f32 %v27425_v61, %v8166_v52  ;;  %23612 = vtanh.f32 %v27455_v58 }
 0x6b6   :  { %v23595_v46 = vpop.eup %23594  ;;  %v8118_v40 = vadd.f32 1.0, %v23593_v19  ;;  %23614 = vrcp.f32 %v8116_v21 }
 0x6b7   :  { %v23597_v17 = vpop.eup %23596  ;;  %23616 = vrcp.f32 %v8117_v49 }
 0x6b8   :  { %v23599_v3 = vpop.eup %23598  ;;  %23618 = vrcp.f32 %v8118_v40 }
 0x6b9   :  { %v23601_v50 = vpop.eup %23600  ;;  %23620 = vtanh.f32 %v27459_v2 }
 0x6ba   :  { %v23603_v6 = vpop.eup %23602  ;;  %23622 = vtanh.f32 %v27463_v8 }
 0x6bb   :  { %v23605_v26 = vpop.eup %23604  ;;  %23624 = vtanh.f32 %v27466_v0  ;;  %v8191_v61 = vmul.f32 %v23603_v6, %v23595_v46 }
 0x6bc   :  { %v23607_v25 = vpop.eup %23606  ;;  %v8192_v32 = vmul.f32 %v23605_v26, %v23597_v17 }
 0x6bd   :  { %v23609_v62 = vpop.eup %23608  ;;  %v8193_v34 = vmul.f32 %v23607_v25, %v23599_v3  ;;  %v8207_v27 = vrot.slane %v8191_v61, 2 }
 0x6be   :  { %v23611_v31 = vpop.eup %23610  ;;  %v8194_v38 = vmul.f32 %v23609_v62, %v23601_v50  ;;  %v8208_v23 = vrot.slane %v8192_v32, 1 }
 0x6bf   :  { %v23613_v44 = vpop.eup %23612 }
 0x6c0   :  { %v23615_v1 = vpop.eup %23614  ;;  %v8195_v54 = vmul.f32 %v23613_v44, %v23611_v31  ;;  %v8209_v55 = vsel %vm4111_vm1, %v8208_v23, %v8207_v27  ;;  %v8211_v11 = vrot.slane %v8194_v38, 7  ;;  %v30851_v23 = vld [vmem:[#allocation38_spill] sm:$0xff]  ;;  %v30852_v44 = vld [vmem:[#allocation43_spill] sm:$0xff] }
 0x6c1   :  { %v23617_v15 = vpop.eup %23616  ;;  %v8210_v12 = vsel %vm4114_vm2, %v8193_v34, %v8209_v55  ;;  %v30855_v55 = vld [vmem:[#allocation41_spill] sm:$0xff] }
 0x6c2   :  { %v23619_v59 = vpop.eup %23618  ;;  %v8212_v52 = vsel %vm4117_vm3, %v8211_v11, %v8210_v12  ;;  %v8213_v39 = vrot.slane %v8195_v54, 6  ;;  %v30854_v54 = vld [vmem:[#allocation99_spill] sm:$0xff]  ;;  %v30856_v11 = vld [vmem:[#allocation102_spill] sm:$0xff]  ;;  %v30858_v12 = vld [vmem:[#allocation105_spill] sm:$0xff] }
 0x6c3   :  { %v23621_v21 = vpop.eup %23620 }
 0x6c4   :  { %v23623_v19 = vpop.eup %23622  ;;  %v8196_v49 = vmul.f32 %v23621_v21, %v23615_v1  ;;  %v8214_v46 = vsel %vm4120_vm4, %v8213_v39, %v8212_v52  ;;  %v30853_v1 = vld [vmem:[#allocation83_spill] sm:$0xff]  ;;  %v30861_v39 = vld [vmem:[#allocation85_spill] sm:$0xff] }
 0x6c5   :  { %v23625_v40 = vpop.eup %23624  ;;  %v8197_v17 = vmul.f32 %v23623_v19, %v23617_v15  ;;  %v30857_v15 = vld [vmem:[#allocation84_spill] sm:$0xff]  ;;  %v30860_v52 = vld [vmem:[#allocation107_spill] sm:$0xff]  ;;  %v30862_v21 = vld [vmem:[#allocation109_spill] sm:$0xff] }
 0x6c6   :  { %v8198_v3 = vmul.f32 %v23625_v40, %v23619_v59  ;;  %v8215_v50 = vrot.slane %v8196_v49, 5  ;;  %v30859_v59 = vld [vmem:[#allocation26_spill] sm:$0xff]  ;;  %v30863_v19 = vld [vmem:[#allocation27_spill] sm:$0xff]  ;;  %v30864_v49 = vld [vmem:[#allocation112_spill] sm:$0xff] }
 0x6c7   :  { %v8217_v6 = vrot.slane %v8197_v17, 4  ;;  %v30866_v40 = vld [vmem:[#allocation113_spill] sm:$0xff]  ;;  %v30867_v17 = vld [vmem:[#allocation32_spill] sm:$0xff] }
 0x6c8   :  { %v8216_v26 = vsel %vm4123_vm5, %v8215_v50, %v8214_v46  ;;  %v8219_v61 = vrot.slane %v8198_v3, 3  ;;  %v30865_v46 = vld [vmem:[#allocation86_spill] sm:$0xff]  ;;  %v30868_v3 = vld [vmem:[#allocation116_spill] sm:$0xff]  ;;  %v30869_v50 = vld [vmem:[#allocation87_spill] sm:$0xff] }
 0x6c9   :  { %v8218_v25 = vsel %vm4126_vm6, %v8217_v6, %v8216_v26  ;;  %v30870_v6 = vld [vmem:[#allocation117_spill] sm:$0xff]  ;;  %v30871_v26 = vld [vmem:[#allocation36_spill] sm:$0xff] }
 0x6ca   :  { %v8220_v32 = vsel %vm4129_vm7, %v8219_v61, %v8218_v25  ;;  %v30872_v61 = vld [vmem:[#allocation118_spill] sm:$0xff]  ;;  %v30873_v25 = vld [vmem:[#allocation88_spill] sm:$0xff] }
 0x6cb   :  { %v27479_v62 = vand.u32 4294901760, %v8220_v32 }
 0x6cd   :  { %v27482_v34 = vsub.f32 %v8220_v32, %v27479_v62  ;;  %v30874_v32 = vld [vmem:[#allocation119_spill] sm:$0xff] }
 0x6cf   :  { %v27485_v27 = vand.u32 4294901760, %v27482_v34 }
 0x6d1   :  { %v8322_v31 = vsub.f32 %v27482_v34, %v27485_v27 }
 0x6d3   :  { %v8323_v38 = vand.u32 4294901760, %v8322_v31  ;;  %v30875_v31 = vld [vmem:[#allocation39_spill] sm:$0xff] }
 0x6d5   :  { %8324 = vmatmul.mubr.f32.vlgmr.msra.gmra.mrb[22].mxu0 %v8323_v38  ;;  %9179 = vmatmul.mubr.f32.vlgmr.msra.gmra.mrb[38].mxu1 %v8323_v38  ;;  %v30876_v38 = vld [vmem:[#allocation120_spill] sm:$0xff] }
 0x6d6   :  { %20869 = vmatpush1.bf16.msra.mxu0 %v30851_v23  ;;  %21061 = vmatpush1.bf16.msra.mxu1 %v30852_v44 }
 0x6d7   :  { %20871 = vmatprep.subr.bf16.mxu0 %v30853_v1  ;;  %21063 = vmatprep.subr.bf16.mxu1 %v30854_v54 }
 0x6d8   :  { %8554 = vmatprep.mubr.f32.mxu0 %v30575_v30  ;;  %9409 = vmatprep.mubr.f32.mxu1 %v30575_v30 }
 0x6da   :  { %20873 = vmatpush1.bf16.msra.mxu0 %v30855_v55  ;;  %21065 = vmatpush1.bf16.msra.mxu1 %v30856_v11 }
 0x6db   :  { %20875 = vmatprep.subr.bf16.mxu0 %v30857_v15  ;;  %21067 = vmatprep.subr.bf16.mxu1 %v30858_v12  ;;  %v30939_v12 = vld [vmem:[#allocation146_spill] sm:$0xff]  ;;  %v30940_v15 = vld [vmem:[#allocation72_spill] sm:$0xff] }
 0x6de   :  { %20877 = vmatpush1.bf16.msra.mxu0 %v30859_v59  ;;  %21069 = vmatpush1.bf16.msra.mxu1 %v30860_v52  ;;  %v30930_v52 = vld [vmem:[#allocation63_spill] sm:$0xff] }
 0x6df   :  { %20879 = vmatprep.subr.bf16.mxu0 %v30861_v39  ;;  %21071 = vmatprep.subr.bf16.mxu1 %v30862_v21  ;;  %v30928_v21 = vld [vmem:[#allocation61_spill] sm:$0xff]  ;;  %v30933_v59 = vld [vmem:[#allocation143_spill] sm:$0xff] }
 0x6e0   :  { %v30929_v39 = vld [vmem:[#allocation141_spill] sm:$0xff] }
 0x6e2   :  { %20881 = vmatpush1.bf16.msra.mxu0 %v30863_v19  ;;  %21073 = vmatpush1.bf16.msra.mxu1 %v30864_v49  ;;  %v30926_v49 = vld [vmem:[#allocation60_spill] sm:$0xff] }
 0x6e3   :  { %20883 = vmatprep.subr.bf16.mxu0 %v30865_v46  ;;  %21075 = vmatprep.subr.bf16.mxu1 %v30866_v40  ;;  %v30877_v40 = vld [vmem:[#allocation89_spill] sm:$0xff]  ;;  %v30925_v46 = vld [vmem:[#allocation139_spill] sm:$0xff]  ;;  %v30927_v19 = vld [vmem:[#allocation140_spill] sm:$0xff] }
 0x6e6   :  { %20885 = vmatpush1.bf16.msra.mxu0 %v30867_v17  ;;  %21077 = vmatpush1.bf16.msra.mxu1 %v30868_v3  ;;  %v30878_v17 = vld [vmem:[#allocation121_spill] sm:$0xff]  ;;  %v30879_v3 = vld [vmem:[#allocation42_spill] sm:$0xff] }
 0x6e7   :  { %20887 = vmatprep.subr.bf16.mxu0 %v30869_v50  ;;  %21079 = vmatprep.subr.bf16.mxu1 %v30870_v6  ;;  %v30880_v50 = vld [vmem:[#allocation122_spill] sm:$0xff] }
 0x6e8   :  { %v30881_v6 = vld [vmem:[#allocation90_spill] sm:$0xff] }
 0x6ea   :  { %20889 = vmatpush1.bf16.msra.mxu0 %v30871_v26  ;;  %21081 = vmatpush1.bf16.msra.mxu1 %v30872_v61  ;;  %v30882_v26 = vld [vmem:[#allocation123_spill] sm:$0xff]  ;;  %v30897_v61 = vld [vmem:[#allocation16_spill] sm:$0xff] }
 0x6eb   :  { %20891 = vmatprep.subr.bf16.mxu0 %v30873_v25  ;;  %21083 = vmatprep.subr.bf16.mxu1 %v30874_v32  ;;  %v30883_v32 = vld [vmem:[#allocation44_spill] sm:$0xff]  ;;  %v30896_v25 = vld [vmem:[#allocation130_spill] sm:$0xff] }
 0x6ee   :  { %20893 = vmatpush1.bf16.msra.mxu0 %v30875_v31  ;;  %21085 = vmatpush1.bf16.msra.mxu1 %v30876_v38  ;;  %v30884_v31 = vld [vmem:[#allocation124_spill] sm:$0xff]  ;;  %v30885_v38 = vld [vmem:[#allocation91_spill] sm:$0xff] }
 0x6ef   :  { %20895 = vmatprep.subr.bf16.mxu0 %v30877_v40  ;;  %21087 = vmatprep.subr.bf16.mxu1 %v30878_v17  ;;  %v30886_v40 = vld [vmem:[#allocation125_spill] sm:$0xff]  ;;  %v30891_v17 = vld [vmem:[#allocation15_spill] sm:$0xff] }
 0x6f2   :  { %20897 = vmatpush1.bf16.msra.mxu0 %v30879_v3  ;;  %21089 = vmatpush1.bf16.msra.mxu1 %v30880_v50  ;;  %v30887_v50 = vld [vmem:[#allocation45_spill] sm:$0xff]  ;;  %v30890_v3 = vld [vmem:[#allocation127_spill] sm:$0xff] }
 0x6f3   :  { %20899 = vmatprep.subr.bf16.mxu0 %v30881_v6  ;;  %21091 = vmatprep.subr.bf16.mxu1 %v30882_v26  ;;  %v30888_v6 = vld [vmem:[#allocation126_spill] sm:$0xff]  ;;  %v30889_v26 = vld [vmem:[#allocation92_spill] sm:$0xff] }
 0x6f5   :  { %8556 = vmatmul.mubr.f32.vlgmr.msra.gmra.mrb[22].mxu0 %v27479_v62  ;;  %9411 = vmatmul.mubr.f32.vlgmr.msra.gmra.mrb[38].mxu1 %v27479_v62 }
 0x6f6   :  { %20901 = vmatpush1.bf16.msra.mxu0 %v30883_v32  ;;  %21093 = vmatpush1.bf16.msra.mxu1 %v30884_v31  ;;  %v30892_v32 = vld [vmem:[#allocation128_spill] sm:$0xff]  ;;  %v30893_v31 = vld [vmem:[#allocation93_spill] sm:$0xff] }
 0x6f7   :  { %20903 = vmatprep.subr.bf16.mxu0 %v30885_v38  ;;  %21095 = vmatprep.subr.bf16.mxu1 %v30886_v40  ;;  %v30894_v38 = vld [vmem:[#allocation129_spill] sm:$0xff]  ;;  %v30895_v40 = vld [vmem:[#allocation47_spill] sm:$0xff] }
 0x6f8   :  { %8690 = vmatprep.mubr.f32.mxu0 %v30575_v30  ;;  %9545 = vmatprep.mubr.f32.mxu1 %v30575_v30 }
 0x6fa   :  { %20905 = vmatpush1.bf16.msra.mxu0 %v30887_v50  ;;  %21097 = vmatpush1.bf16.msra.mxu1 %v30888_v6  ;;  %v30898_v50 = vld [vmem:[#allocation131_spill] sm:$0xff] }
 0x6fb   :  { %20907 = vmatprep.subr.bf16.mxu0 %v30889_v26  ;;  %21099 = vmatprep.subr.bf16.mxu1 %v30890_v3  ;;  %v30899_v6 = vld [vmem:[#allocation19_spill] sm:$0xff]  ;;  %v30900_v26 = vld [vmem:[#allocation132_spill] sm:$0xff]  ;;  %v30901_v3 = vld [vmem:[#allocation94_spill] sm:$0xff] }
 0x6fe   :  { %20909 = vmatpush1.bf16.msra.mxu0 %v30891_v17  ;;  %21101 = vmatpush1.bf16.msra.mxu1 %v30892_v32  ;;  %v30902_v17 = vld [vmem:[#allocation133_spill] sm:$0xff]  ;;  %v30903_v32 = vld [vmem:[#allocation23_spill] sm:$0xff] }
 0x6ff   :  { %20911 = vmatprep.subr.bf16.mxu0 %v30893_v31  ;;  %21103 = vmatprep.subr.bf16.mxu1 %v30894_v38  ;;  %v30904_v31 = vld [vmem:[#allocation134_spill] sm:$0xff]  ;;  %v30905_v38 = vld [vmem:[#allocation95_spill] sm:$0xff] }
 0x702   :  { %20913 = vmatpush1.bf16.msra.mxu0 %v30895_v40  ;;  %21105 = vmatpush1.bf16.msra.mxu1 %v30896_v25  ;;  %v30906_v40 = vld [vmem:[#allocation135_spill] sm:$0xff]  ;;  %v30907_v25 = vld [vmem:[#allocation28_spill] sm:$0xff] }
 0x703   :  { %20915 = vmatprep.subr.bf16.mxu0 %v30897_v61  ;;  %21107 = vmatprep.subr.bf16.mxu1 %v30898_v50  ;;  %v30908_v61 = vld [vmem:[#allocation136_spill] sm:$0xff] }
 0x704   :  { %v30909_v50 = vld [vmem:[#allocation96_spill] sm:$0xff] }
 0x706   :  { %20917 = vmatpush1.bf16.msra.mxu0 %v30899_v6  ;;  %21109 = vmatpush1.bf16.msra.mxu1 %v30900_v26  ;;  %v30910_v6 = vld [vmem:[#allocation137_spill] sm:$0xff]  ;;  %v30911_v26 = vld [vmem:[#allocation30_spill] sm:$0xff] }
 0x707   :  { %20919 = vmatprep.subr.bf16.mxu0 %v30901_v3  ;;  %21111 = vmatprep.subr.bf16.mxu1 %v30902_v17  ;;  %v30912_v3 = vld [vmem:[#allocation138_spill] sm:$0xff]  ;;  %v30924_v17 = vld [vmem:[#allocation59_spill] sm:$0xff] }
 0x70a   :  { %20921 = vmatpush1.bf16.msra.mxu0 %v30903_v32  ;;  %21113 = vmatpush1.bf16.msra.mxu1 %v30904_v31  ;;  %v30922_v31 = vld [vmem:[#allocation75_spill] sm:$0xff]  ;;  %v30923_v32 = vld [vmem:[#allocation37_spill] sm:$0xff] }
 0x70b   :  { %20923 = vmatprep.subr.bf16.mxu0 %v30905_v38  ;;  %21115 = vmatprep.subr.bf16.mxu1 %v30906_v40  ;;  %v30920_v40 = vld [vmem:[#allocation73_spill] sm:$0xff]  ;;  %v30921_v38 = vld [vmem:[#allocation34_spill] sm:$0xff] }
 0x70e   :  { %20925 = vmatpush1.bf16.msra.mxu0 %v30907_v25  ;;  %21117 = vmatpush1.bf16.msra.mxu1 %v30908_v61  ;;  %v30918_v61 = vld [vmem:[#allocation71_spill] sm:$0xff]  ;;  %v30919_v25 = vld [vmem:[#allocation29_spill] sm:$0xff] }
 0x70f   :  { %20927 = vmatprep.subr.bf16.mxu0 %v30909_v50  ;;  %21119 = vmatprep.subr.bf16.mxu1 %v30910_v6  ;;  %v30916_v6 = vld [vmem:[#allocation69_spill] sm:$0xff]  ;;  %v30917_v50 = vld [vmem:[#allocation24_spill] sm:$0xff] }
 0x712   :  { %20929 = vmatpush1.bf16.msra.mxu0 %v30911_v26  ;;  %21121 = vmatpush1.bf16.msra.mxu1 %v30912_v3  ;;  %v30914_v3 = vld [vmem:[#allocation68_spill] sm:$0xff]  ;;  %v30915_v26 = vld [vmem:[#allocation21_spill] sm:$0xff] }
 0x713   :  { %20931 = vmatprep.subr.bf16.mxu0 %v30634_v20  ;;  %21123 = vmatprep.subr.bf16.mxu1 %v30635_v33 }
 0x715   :  { %8693 = vmatmul.mubr.f32.vlgmr.msra.gmra.mrb[22].mxu0 %v27482_v34  ;;  %9548 = vmatmul.mubr.f32.vlgmr.msra.gmra.mrb[38].mxu1 %v27482_v34  ;;  %v30913_v34 = vld [vmem:[#allocation64_spill] sm:$0xff] }
 0x716   :  { %20933 = vmatpush1.bf16.msra.mxu0 %v30636_v10  ;;  %21125 = vmatpush1.bf16.msra.mxu1 %v30637_v56 }
 0x717   :  { %20935 = vmatprep.subr.bf16.mxu0 %v30638_v5  ;;  %21127 = vmatprep.subr.bf16.mxu1 %v30639_v14 }
 0x718   :  { %8795 = vmatprep.mubr.f32.mxu0 %v30575_v30  ;;  %9650 = vmatprep.mubr.f32.mxu1 %v30575_v30 }
 0x71a   :  { %20937 = vmatpush1.bf16.msra.mxu0 %v30640_v24  ;;  %21129 = vmatpush1.bf16.msra.mxu1 %v30641_v16 }
 0x71b   :  { %20939 = vmatprep.subr.bf16.mxu0 %v30642_v53  ;;  %21131 = vmatprep.subr.bf16.mxu1 %v30643_v51 }
 0x71e   :  { %20941 = vmatpush1.bf16.msra.mxu0 %v30644_v35  ;;  %21133 = vmatpush1.bf16.msra.mxu1 %v30645_v7 }
 0x71f   :  { %20943 = vmatprep.subr.bf16.mxu0 %v30646_v37  ;;  %21135 = vmatprep.subr.bf16.mxu1 %v30647_v60 }
 0x722   :  { %20945 = vmatpush1.bf16.msra.mxu0 %v30648_v43  ;;  %21137 = vmatpush1.bf16.msra.mxu1 %v30649_v47 }
 0x723   :  { %20947 = vmatprep.subr.bf16.mxu0 %v30650_v18  ;;  %21139 = vmatprep.subr.bf16.mxu1 %v30651_v48 }
 0x726   :  { %20949 = vmatpush1.bf16.msra.mxu0 %v30652_v13  ;;  %21141 = vmatpush1.bf16.msra.mxu1 %v30783_v36 }
 0x727   :  { %20951 = vmatprep.subr.bf16.mxu0 %v30784_v42  ;;  %21143 = vmatprep.subr.bf16.mxu1 %v30913_v34 }
 0x72a   :  { %20953 = vmatpush1.bf16.msra.mxu0 %v30914_v3  ;;  %21145 = vmatpush1.bf16.msra.mxu1 %v30915_v26 }
 0x72b   :  { %20955 = vmatprep.subr.bf16.mxu0 %v30916_v6  ;;  %21147 = vmatprep.subr.bf16.mxu1 %v30917_v50 }
 0x72e   :  { %20957 = vmatpush1.bf16.msra.mxu0 %v30918_v61  ;;  %21149 = vmatpush1.bf16.msra.mxu1 %v30919_v25 }
 0x72f   :  { %20959 = vmatprep.subr.bf16.mxu0 %v30920_v40  ;;  %21151 = vmatprep.subr.bf16.mxu1 %v30921_v38 }
 0x732   :  { %20961 = vmatpush1.bf16.msra.mxu0 %v30922_v31  ;;  %21153 = vmatpush1.bf16.msra.mxu1 %v30923_v32 }
 0x733   :  { %20963 = vmatprep.subr.bf16.mxu0 %v30924_v17  ;;  %21155 = vmatprep.subr.bf16.mxu1 %v30925_v46  ;;  %v30931_v17 = vld [vmem:[#allocation142_spill] sm:$0xff]  ;;  %v30932_v46 = vld [vmem:[#allocation65_spill] sm:$0xff] }
 0x735   :  { %8799 = vmatmul.mubr.f32.vlgmr.msra.gmra.mrb[22].mxu0 %v27485_v27  ;;  %9654 = vmatmul.mubr.f32.vlgmr.msra.gmra.mrb[38].mxu1 %v27485_v27  ;;  %v30934_v27 = vld [vmem:[#allocation66_spill] sm:$0xff] }
 0x736   :  { %20965 = vmatpush1.bf16.msra.mxu0 %v30926_v49  ;;  %21157 = vmatpush1.bf16.msra.mxu1 %v30927_v19  ;;  %v30935_v49 = vld [vmem:[#allocation144_spill] sm:$0xff]  ;;  %v30936_v19 = vld [vmem:[#allocation67_spill] sm:$0xff] }
 0x737   :  { %20967 = vmatprep.subr.bf16.mxu0 %v30928_v21  ;;  %21159 = vmatprep.subr.bf16.mxu1 %v30929_v39  ;;  %v30937_v21 = vld [vmem:[#allocation145_spill] sm:$0xff]  ;;  %v30938_v39 = vld [vmem:[#allocation70_spill] sm:$0xff] }
 0x738   :  { %8965 = vmatprep.mubr.f32.mxu0 %v30575_v30  ;;  %9820 = vmatprep.mubr.f32.mxu1 %v30575_v30 }
 0x73a   :  { %20969 = vmatpush1.bf16.msra.mxu0 %v30930_v52  ;;  %21161 = vmatpush1.bf16.msra.mxu1 %v30931_v17  ;;  %v30941_v52 = vld [vmem:[#allocation147_spill] sm:$0xff]  ;;  %v30942_v17 = vld [vmem:[#allocation74_spill] sm:$0xff] }
 0x73b   :  { %20971 = vmatprep.subr.bf16.mxu0 %v30932_v46  ;;  %21163 = vmatprep.subr.bf16.mxu1 %v30933_v59  ;;  %v30943_v46 = vld [vmem:[#allocation148_spill] sm:$0xff] }
 0x73c   :  { %v30944_v59 = vld [vmem:[#allocation76_spill] sm:$0xff] }
 0x73e   :  { %20973 = vmatpush1.bf16.msra.mxu0 %v30934_v27  ;;  %21165 = vmatpush1.bf16.msra.mxu1 %v30935_v49  ;;  %v30945_v27 = vld [vmem:[#allocation149_spill] sm:$0xff] }
 0x73f   :  { %20975 = vmatprep.subr.bf16.mxu0 %v30936_v19  ;;  %21167 = vmatprep.subr.bf16.mxu1 %v30937_v21  ;;  %v30946_v49 = vld [vmem:[#allocation77_spill] sm:$0xff]  ;;  %v30947_v19 = vld [vmem:[#allocation150_spill] sm:$0xff] }
 0x740   :  { %v30948_v21 = vld [vmem:[#allocation78_spill] sm:$0xff] }
 0x742   :  { %20977 = vmatpush1.bf16.msra.mxu0 %v30938_v39  ;;  %21169 = vmatpush1.bf16.msra.mxu1 %v30939_v12  ;;  %v30949_v39 = vld [vmem:[#allocation151_spill] sm:$0xff] }
 0x743   :  { %20979 = vmatprep.subr.bf16.mxu0 %v30940_v15  ;;  %21171 = vmatprep.subr.bf16.mxu1 %v30941_v52  ;;  %v30950_v12 = vld [vmem:[#allocation79_spill] sm:$0xff]  ;;  %v30951_v15 = vld [vmem:[#allocation152_spill] sm:$0xff]  ;;  %v30952_v52 = vld [vmem:[#allocation81_spill] sm:$0xff] }
 0x746   :  { %20981 = vmatpush1.bf16.msra.mxu0 %v30942_v17  ;;  %21173 = vmatpush1.bf16.msra.mxu1 %v30943_v46  ;;  %v30953_v17 = vld [vmem:[#allocation153_spill] sm:$0xff]  ;;  %v30954_v46 = vld [vmem:[#allocation82_spill] sm:$0xff] }
 0x747   :  { %20983 = vmatprep.subr.bf16.mxu0 %v30944_v59  ;;  %21175 = vmatprep.subr.bf16.mxu1 %v30945_v27  ;;  %v30955_v59 = vld [vmem:[#allocation154_spill] sm:$0xff] }
 0x74a   :  { %20985 = vmatpush1.bf16.msra.mxu0 %v30946_v49  ;;  %21177 = vmatpush1.bf16.msra.mxu1 %v30947_v19 }
 0x74b   :  { %20987 = vmatprep.subr.bf16.mxu0 %v30948_v21  ;;  %21179 = vmatprep.subr.bf16.mxu1 %v30949_v39 }
 0x74e   :  { %20989 = vmatpush1.bf16.msra.mxu0 %v30950_v12  ;;  %21181 = vmatpush1.bf16.msra.mxu1 %v30951_v15 }
 0x74f   :  { %20991 = vmatprep.subr.bf16.mxu0 %v30952_v52  ;;  %21183 = vmatprep.subr.bf16.mxu1 %v30953_v17 }
 0x752   :  { %20993 = vmatpush1.bf16.msra.mxu0 %v30954_v46  ;;  %21185 = vmatpush1.bf16.msra.mxu1 %v30955_v59  ;;  %v30957_v59 = vld [vmem:[#allocation40_spill] sm:$0xff] }
 0x753   :  { %20995 = vmatprep.subr.bf16.mxu0 %v30634_v20  ;;  %21187 = vmatprep.subr.bf16.mxu1 %v30635_v33 }
 0x755   :  { %8967 = vmatmul.mubr.f32.vlgmr.msra.gmra.mrb[22].mxu0 %v27479_v62  ;;  %9822 = vmatmul.mubr.f32.vlgmr.msra.gmra.mrb[38].mxu1 %v27479_v62 }
 0x756   :  { %20997 = vmatpush1.bf16.msra.mxu0 %v30636_v10  ;;  %21189 = vmatpush1.bf16.msra.mxu1 %v30637_v56 }
 0x757   :  { %20999 = vmatprep.subr.bf16.mxu0 %v30638_v5  ;;  %21191 = vmatprep.subr.bf16.mxu1 %v30639_v14 }
 0x758   :  { %9069 = vmatprep.mubr.f32.mxu0 %v30575_v30  ;;  %9924 = vmatprep.mubr.f32.mxu1 %v30575_v30 }
 0x75a   :  { %21001 = vmatpush1.bf16.msra.mxu0 %v30640_v24  ;;  %21193 = vmatpush1.bf16.msra.mxu1 %v30641_v16 }
 0x75b   :  { %21003 = vmatprep.subr.bf16.mxu0 %v30642_v53  ;;  %21195 = vmatprep.subr.bf16.mxu1 %v30643_v51 }
 0x75e   :  { %21005 = vmatpush1.bf16.msra.mxu0 %v30644_v35  ;;  %21197 = vmatpush1.bf16.msra.mxu1 %v30645_v7 }
 0x75f   :  { %21007 = vmatprep.subr.bf16.mxu0 %v30646_v37  ;;  %21199 = vmatprep.subr.bf16.mxu1 %v30647_v60 }
 0x762   :  { %21009 = vmatpush1.bf16.msra.mxu0 %v30648_v43  ;;  %21201 = vmatpush1.bf16.msra.mxu1 %v30649_v47 }
 0x763   :  { %21011 = vmatprep.subr.bf16.mxu0 %v30650_v18  ;;  %21203 = vmatprep.subr.bf16.mxu1 %v30651_v48 }
 0x766   :  { %21013 = vmatpush1.bf16.msra.mxu0 %v30652_v13  ;;  %21205 = vmatpush1.bf16.msra.mxu1 %v30783_v36 }
 0x767   :  { %21015 = vmatprep.subr.bf16.mxu0 %v30784_v42  ;;  %21207 = vmatprep.subr.bf16.mxu1 %v30913_v34 }
 0x76a   :  { %21017 = vmatpush1.bf16.msra.mxu0 %v30914_v3  ;;  %21209 = vmatpush1.bf16.msra.mxu1 %v30915_v26 }
 0x76b   :  { %21019 = vmatprep.subr.bf16.mxu0 %v30916_v6  ;;  %21211 = vmatprep.subr.bf16.mxu1 %v30917_v50 }
 0x76e   :  { %21021 = vmatpush1.bf16.msra.mxu0 %v30918_v61  ;;  %21213 = vmatpush1.bf16.msra.mxu1 %v30919_v25 }
 0x76f   :  { %21023 = vmatprep.subr.bf16.mxu0 %v30920_v40  ;;  %21215 = vmatprep.subr.bf16.mxu1 %v30921_v38 }
 0x772   :  { %21025 = vmatpush1.bf16.msra.mxu0 %v30922_v31  ;;  %21217 = vmatpush1.bf16.msra.mxu1 %v30923_v32 }
 0x773   :  { %21219 = vmatprep.subr.bf16.mxu0 %v30634_v20  ;;  %21411 = vmatprep.subr.bf16.mxu1 %v30635_v33 }
 0x775   :  { %9071 = vmatmul.mubr.f32.vlgmr.msra.gmra.mrb[22].mxu0 %v27479_v62  ;;  %9926 = vmatmul.mubr.f32.vlgmr.msra.gmra.mrb[38].mxu1 %v27479_v62  ;;  %v30956_v62 = vld [vmem:[#allocation80_spill] sm:$0xff] }
 0x776   :  { %21221 = vmatpush1.bf16.msra.mxu0 %v30636_v10  ;;  %21413 = vmatpush1.bf16.msra.mxu1 %v30637_v56 }
 0x777   :  { %21223 = vmatprep.subr.bf16.mxu0 %v30638_v5  ;;  %21415 = vmatprep.subr.bf16.mxu1 %v30639_v14 }
 0x778   :  { %10363 = vmatprep.mubr.f32.mxu0 %v30575_v30  ;;  %11218 = vmatprep.mubr.f32.mxu1 %v30575_v30 }
 0x77a   :  { %21225 = vmatpush1.bf16.msra.mxu0 %v30640_v24  ;;  %21417 = vmatpush1.bf16.msra.mxu1 %v30641_v16 }
 0x77b   :  { %21227 = vmatprep.subr.bf16.mxu0 %v30642_v53  ;;  %21419 = vmatprep.subr.bf16.mxu1 %v30643_v51 }
 0x77e   :  { %21229 = vmatpush1.bf16.msra.mxu0 %v30644_v35  ;;  %21421 = vmatpush1.bf16.msra.mxu1 %v30645_v7 }
 0x77f   :  { %21231 = vmatprep.subr.bf16.mxu0 %v30646_v37  ;;  %21423 = vmatprep.subr.bf16.mxu1 %v30647_v60 }
 0x782   :  { %21233 = vmatpush1.bf16.msra.mxu0 %v30648_v43  ;;  %21425 = vmatpush1.bf16.msra.mxu1 %v30649_v47 }
 0x783   :  { %21235 = vmatprep.subr.bf16.mxu0 %v30650_v18  ;;  %21427 = vmatprep.subr.bf16.mxu1 %v30651_v48 }
 0x786   :  { %21237 = vmatpush1.bf16.msra.mxu0 %v30652_v13  ;;  %21429 = vmatpush1.bf16.msra.mxu1 %v30783_v36  ;;  %v30964_v13 = vld [vmem:[#allocation157_spill] sm:$0xff] }
 0x787   :  { %21239 = vmatprep.subr.bf16.mxu0 %v30784_v42  ;;  %21431 = vmatprep.subr.bf16.mxu1 %v30913_v34  ;;  %v30963_v34 = vld [vmem:[#allocation156_spill] sm:$0xff] }
 0x78a   :  { %21241 = vmatpush1.bf16.msra.mxu0 %v30914_v3  ;;  %21433 = vmatpush1.bf16.msra.mxu1 %v30915_v26  ;;  %v30962_v26 = vld [vmem:[#allocation114_spill] sm:$0xff] }
 0x78b   :  { %21243 = vmatprep.subr.bf16.mxu0 %v30916_v6  ;;  %21435 = vmatprep.subr.bf16.mxu1 %v30917_v50  ;;  %v30961_v50 = vld [vmem:[#allocation110_spill] sm:$0xff] }
 0x78e   :  { %21245 = vmatpush1.bf16.msra.mxu0 %v30918_v61  ;;  %21437 = vmatpush1.bf16.msra.mxu1 %v30919_v25  ;;  %v30960_v25 = vld [vmem:[#allocation103_spill] sm:$0xff] }
 0x78f   :  { %21247 = vmatprep.subr.bf16.mxu0 %v30920_v40  ;;  %21439 = vmatprep.subr.bf16.mxu1 %v30921_v38  ;;  %v30958_v38 = vld [vmem:[#allocation97_spill] sm:$0xff]  ;;  %v30959_v40 = vld [vmem:[#allocation100_spill] sm:$0xff] }
 0x792   :  { %21249 = vmatpush1.bf16.msra.mxu0 %v30922_v31  ;;  %21441 = vmatpush1.bf16.msra.mxu1 %v30923_v32 }
 0x793   :  { %21251 = vmatprep.subr.bf16.mxu0 %v30956_v62  ;;  %21443 = vmatprep.subr.bf16.mxu1 %v30957_v59 }
 0x848   :  { %v9072_v46 = vpop.f32.mrb[22].mxu0  ;;  %v27703_v17 = vpop.f32.mrb[38].mxu1 }
 0x849   :  { %v9936_v52 = vrot.slane %v9072_v46, 5  ;;  %v9940_v15 = vrot.slane %v9072_v46, 6  ;;  %v9944_v12 = vrot.slane %v9072_v46, 7  ;;  %v9948_v39 = vrot.slane %v9072_v46, 1  ;;  %v27705_v21 = vpop.f32.mrb[23].mxu0  ;;  %v27707_v19 = vpop.f32.mrb[39].mxu1 }
 0x84a   :  { %v9952_v49 = vrot.slane %v9072_v46, 2  ;;  %v9956_v27 = vrot.slane %v9072_v46, 3  ;;  %v9960_v31 = vrot.slane %v9072_v46, 4  ;;  %v10008_v32 = vadd.f32 %v9072_v46, %v26559_v28 }
 0x84b   :  { %v9996_v62 = vadd.f32 %v9936_v52, %v30958_v38  ;;  %v10000_v59 = vadd.f32 %v9940_v15, %v30959_v40  ;;  %v10004_v61 = vadd.f32 %v9944_v12, %v30960_v25  ;;  %v10012_v6 = vadd.f32 %v9948_v39, %v30961_v50 }
 0x84c   :  { %v10016_v3 = vadd.f32 %v9952_v49, %v30962_v26  ;;  %v10020_v42 = vadd.f32 %v9956_v27, %v30963_v34  ;;  %v19204_v36 = vmul.f32 -1.442695, %v10008_v32  ;;  %v10024_v48 = vadd.f32 %v9960_v31, %v30964_v13  ;;  %v30965_v31 = vld [vmem:[#allocation160_spill] sm:$0xff]  ;;  %v30973_v34 = vld [vmem:[#allocation98_spill] sm:$0xff] }
 0x84d   :  { %v19201_v18 = vmul.f32 -1.442695, %v9996_v62  ;;  %v19202_v47 = vmul.f32 -1.442695, %v10000_v59  ;;  %v19203_v43 = vmul.f32 -1.442695, %v10004_v61 }
 0x84e   :  { %23626 = vpow2.f32 %v19204_v36  ;;  %v19205_v46 = vmul.f32 -1.442695, %v10012_v6  ;;  %v19206_v52 = vmul.f32 -1.442695, %v10016_v3  ;;  %v9938_v15 = vrot.slane %v27703_v17, 5  ;;  %v30966_v36 = vld [vmem:[#allocation162_spill] sm:$0xff] }
 0x84f   :  { %23628 = vpow2.f32 %v19201_v18  ;;  %v9942_v12 = vrot.slane %v27703_v17, 6  ;;  %v19207_v39 = vmul.f32 -1.442695, %v10020_v42  ;;  %v9946_v49 = vrot.slane %v27703_v17, 7  ;;  %v30967_v18 = vld [vmem:[#allocation164_spill] sm:$0xff]  ;;  %v30968_v61 = vld [vmem:[#allocation166_spill] sm:$0xff] }
 0x850   :  { %23630 = vpow2.f32 %v19202_v47  ;;  %v19208_v27 = vmul.f32 -1.442695, %v10024_v48  ;;  %v9950_v32 = vrot.slane %v27703_v17, 1  ;;  %v9998_v59 = vadd.f32 %v9938_v15, %v30965_v31  ;;  %v30969_v42 = vld [vmem:[#allocation168_spill] sm:$0xff] }
 0x851   :  { %23632 = vpow2.f32 %v19203_v43  ;;  %v10002_v6 = vadd.f32 %v9942_v12, %v30966_v36  ;;  %v10006_v3 = vadd.f32 %v9946_v49, %v30967_v18  ;;  %v10010_v47 = vadd.f32 %v27703_v17, %v30968_v61 }
 0x852   :  { %23634 = vpow2.f32 %v19205_v46  ;;  %v10014_v62 = vadd.f32 %v9950_v32, %v30969_v42  ;;  %v9954_v43 = vrot.slane %v27703_v17, 2  ;;  %v9962_v49 = vrot.slane %v27703_v17, 4 }
 0x853   :  { %23636 = vpow2.f32 %v19206_v52  ;;  %v9958_v52 = vrot.slane %v27703_v17, 3  ;;  %v9945_v18 = vrot.slane %v27705_v21, 7 }
 0x854   :  { %23638 = vpow2.f32 %v19207_v39 }
 0x855   :  { %23640 = vpow2.f32 %v19208_v27  ;;  %v9937_v27 = vrot.slane %v27705_v21, 5 }
 0x856   :  { %23642 = vtanh.f32 %v9998_v59  ;;  %v9941_v59 = vrot.slane %v27705_v21, 6 }
 0x857   :  { %23644 = vtanh.f32 %v10002_v6  ;;  %v9997_v26 = vadd.f32 %v9937_v27, %v30973_v34 }
 0x858   :  { %v23627_v48 = vpop.eup %23626  ;;  %23646 = vtanh.f32 %v10006_v3  ;;  %v30970_v3 = vld [vmem:[#allocation170_spill] sm:$0xff] }
 0x859   :  { %v23629_v46 = vpop.eup %23628  ;;  %v10055_v15 = vadd.f32 1.0, %v23627_v48  ;;  %23648 = vtanh.f32 %v10010_v47  ;;  %v10018_v48 = vadd.f32 %v9954_v43, %v30970_v3  ;;  %v9953_v43 = vrot.slane %v27705_v21, 2  ;;  %v30974_v3 = vld [vmem:[#allocation101_spill] sm:$0xff] }
 0x85a   :  { %v23631_v12 = vpop.eup %23630  ;;  %v10052_v39 = vadd.f32 1.0, %v23629_v46  ;;  %23650 = vtanh.f32 %v10014_v62  ;;  %v30971_v46 = vld [vmem:[#allocation172_spill] sm:$0xff]  ;;  %v9949_v62 = vrot.slane %v27705_v21, 1  ;;  %v10001_v28 = vadd.f32 %v9941_v59, %v30974_v3 }
 0x85b   :  { %v23633_v61 = vpop.eup %23632  ;;  %v10053_v32 = vadd.f32 1.0, %v23631_v12  ;;  %23652 = vrcp.f32 %v10055_v15  ;;  %v10022_v17 = vadd.f32 %v9958_v52, %v30971_v46  ;;  %v30972_v15 = vld [vmem:[#allocation174_spill] sm:$0xff]  ;;  %v9957_v52 = vrot.slane %v27705_v21, 3  ;;  %v30975_v46 = vld [vmem:[#allocation104_spill] sm:$0xff] }
 0x85c   :  { %v23635_v6 = vpop.eup %23634  ;;  %v10054_v42 = vadd.f32 1.0, %v23633_v61  ;;  %23654 = vrcp.f32 %v10052_v39  ;;  %v10026_v12 = vadd.f32 %v9962_v49, %v30972_v15  ;;  %v10005_v25 = vadd.f32 %v9945_v18, %v30975_v46  ;;  %v30976_v49 = vld [vmem:[#allocation108_spill] sm:$0xff] }
 0x85d   :  { %v23637_v47 = vpop.eup %23636  ;;  %v10056_v36 = vadd.f32 1.0, %v23635_v6  ;;  %23656 = vrcp.f32 %v10053_v32  ;;  %v10009_v27 = vadd.f32 %v27705_v21, %v30976_v49  ;;  %v19209_v34 = vmul.f32 -1.442695, %v9997_v26 }
 0x85e   :  { %v23639_v31 = vpop.eup %23638  ;;  %v10057_v13 = vadd.f32 1.0, %v23637_v47  ;;  %23658 = vrcp.f32 %v10054_v42  ;;  %v9961_v42 = vrot.slane %v27705_v21, 4  ;;  %v9939_v59 = vrot.slane %v27707_v19, 5 }
 0x85f   :  { %v23641_v61 = vpop.eup %23640  ;;  %v10058_v39 = vadd.f32 1.0, %v23639_v31  ;;  %23660 = vrcp.f32 %v10056_v36  ;;  %v30977_v31 = vld [vmem:[#allocation111_spill] sm:$0xff]  ;;  %v19210_v40 = vmul.f32 -1.442695, %v10001_v28  ;;  %v9943_v18 = vrot.slane %v27707_v19, 6 }
 0x860   :  { %v23643_v6 = vpop.eup %23642  ;;  %v10059_v32 = vadd.f32 1.0, %v23641_v61  ;;  %23662 = vrcp.f32 %v10057_v13  ;;  %v10013_v36 = vadd.f32 %v9949_v62, %v30977_v31  ;;  %v30978_v13 = vld [vmem:[#allocation115_spill] sm:$0xff]  ;;  %v10021_v46 = vadd.f32 %v9957_v52, %v30841_v41 }
 0x861   :  { %v23645_v47 = vpop.eup %23644  ;;  %23664 = vrcp.f32 %v10058_v39  ;;  %v10017_v3 = vadd.f32 %v9953_v43, %v30978_v13  ;;  %v19211_v38 = vmul.f32 -1.442695, %v10005_v25  ;;  %v9947_v21 = vrot.slane %v27707_v19, 7  ;;  %v30980_v43 = vld [vmem:[#allocation161_spill] sm:$0xff]  ;;  %v30981_v52 = vld [vmem:[#allocation163_spill] sm:$0xff] }
 0x862   :  { %v23647_v15 = vpop.eup %23646  ;;  %23666 = vrcp.f32 %v10059_v32  ;;  %v30979_v32 = vld [vmem:[#allocation159_spill] sm:$0xff]  ;;  %v19212_v31 = vmul.f32 -1.442695, %v10009_v27  ;;  %v19213_v49 = vmul.f32 -1.442695, %v10013_v36  ;;  %v9951_v28 = vrot.slane %v27707_v19, 1 }
 0x863   :  { %v23649_v61 = vpop.eup %23648  ;;  %23668 = vtanh.f32 %v10018_v48  ;;  %v10025_v26 = vadd.f32 %v9961_v42, %v30979_v32  ;;  %v9999_v13 = vadd.f32 %v9939_v59, %v30980_v43  ;;  %v19214_v25 = vmul.f32 -1.442695, %v10017_v3  ;;  %v30982_v27 = vld [vmem:[#allocation165_spill] sm:$0xff] }
 0x864   :  { %v23651_v39 = vpop.eup %23650  ;;  %23670 = vtanh.f32 %v10022_v17  ;;  %v10003_v41 = vadd.f32 %v9943_v18, %v30981_v52  ;;  %v19215_v42 = vmul.f32 -1.442695, %v10021_v46  ;;  %v10007_v36 = vadd.f32 %v9947_v21, %v30982_v27  ;;  %v30983_v3 = vld [vmem:[#allocation169_spill] sm:$0xff] }
 0x865   :  { %v23653_v62 = vpop.eup %23652  ;;  %23672 = vtanh.f32 %v10026_v12  ;;  %v10015_v59 = vadd.f32 %v9951_v28, %v30983_v3 }
 0x866   :  { %v23655_v50 = vpop.eup %23654  ;;  %v27752_v48 = vmul.f32 %v23653_v62, %v23649_v61  ;;  %23674 = vpow2.f32 %v19209_v34  ;;  %v19216_v62 = vmul.f32 -1.442695, %v10025_v26  ;;  %v19219_v21 = vmul.f32 -1.442695, %v10007_v36 }
 0x867   :  { %v23657_v17 = vpop.eup %23656  ;;  %v27756_v60 = vmul.f32 %v23655_v50, %v23643_v6  ;;  %23676 = vpow2.f32 %v19210_v40  ;;  %v10011_v50 = vadd.f32 %v27707_v19, %v30846_v63  ;;  %v9963_v36 = vrot.slane %v27707_v19, 4 }
 0x868   :  { %v23659_v12 = vpop.eup %23658  ;;  %v27759_v37 = vmul.f32 %v23657_v17, %v23645_v47  ;;  %23678 = vpow2.f32 %v19211_v38  ;;  %v19217_v47 = vmul.f32 -1.442695, %v9999_v13  ;;  %v19218_v38 = vmul.f32 -1.442695, %v10003_v41 }
 0x869   :  { %v23661_v61 = vpop.eup %23660  ;;  %v27762_v34 = vmul.f32 %v23659_v12, %v23647_v15  ;;  %23680 = vpow2.f32 %v19212_v31  ;;  %v19220_v31 = vmul.f32 -1.442695, %v10011_v50  ;;  %v19221_v12 = vmul.f32 -1.442695, %v10015_v59 }
 0x86a   :  { %v23663_v6 = vpop.eup %23662  ;;  %v27766_v40 = vmul.f32 %v23661_v61, %v23651_v39  ;;  %23682 = vpow2.f32 %v19213_v49  ;;  %v9955_v49 = vrot.slane %v27707_v19, 2  ;;  %v9959_v41 = vrot.slane %v27707_v19, 3 }
 0x86b   :  { %v23665_v18 = vpop.eup %23664  ;;  %23684 = vpow2.f32 %v19214_v25 }
 0x86c   :  { %v23667_v46 = vpop.eup %23666  ;;  %23686 = vpow2.f32 %v19215_v42 }
 0x86d   :  { %v23669_v15 = vpop.eup %23668  ;;  %23688 = vpow2.f32 %v19216_v62 }
 0x86e   :  { %v23671_v26 = vpop.eup %23670  ;;  %v27769_v17 = vmul.f32 %v23669_v15, %v23663_v6  ;;  %23690 = vpow2.f32 %v19217_v47  ;;  %v10019_v47 = vadd.f32 %v9955_v49, %v30848_v57 }
 0x86f   :  { %v23673_v39 = vpop.eup %23672  ;;  %v27771_v61 = vmul.f32 %v23671_v26, %v23665_v18  ;;  %23692 = vpow2.f32 %v19218_v38  ;;  %v30984_v26 = vld [vmem:[#allocation155_spill] sm:$0xff] }
 0x870   :  { %v23675_v13 = vpop.eup %23674  ;;  %v27774_v28 = vmul.f32 %v23673_v39, %v23667_v46  ;;  %23694 = vpow2.f32 %v19219_v21  ;;  %v10023_v46 = vadd.f32 %v9959_v41, %v30849_v29  ;;  %v10027_v39 = vadd.f32 %v9963_v36, %v30984_v26 }
 0x871   :  { %v23677_v25 = vpop.eup %23676  ;;  %v10100_v42 = vadd.f32 1.0, %v23675_v13  ;;  %23696 = vpow2.f32 %v19220_v31 }
 0x872   :  { %v23679_v62 = vpop.eup %23678  ;;  %v10101_v50 = vadd.f32 1.0, %v23677_v25  ;;  %23698 = vpow2.f32 %v19221_v12  ;;  %v19222_v25 = vmul.f32 -1.442695, %v10019_v47  ;;  %v19223_v49 = vmul.f32 -1.442695, %v10023_v46 }
 0x873   :  { %v23681_v6 = vpop.eup %23680  ;;  %v10102_v59 = vadd.f32 1.0, %v23679_v62  ;;  %23700 = vrcp.f32 %v10100_v42  ;;  %v10189_v47 = vrot.slane %v27443_v22, 7 }
 0x874   :  { %v23683_v18 = vpop.eup %23682  ;;  %v10103_v38 = vadd.f32 1.0, %v23681_v6  ;;  %23702 = vrcp.f32 %v10101_v50  ;;  %v19224_v50 = vmul.f32 -1.442695, %v10027_v39 }
 0x875   :  { %v23685_v15 = vpop.eup %23684  ;;  %v10104_v21 = vadd.f32 1.0, %v23683_v18  ;;  %23704 = vrcp.f32 %v10102_v59 }
 0x876   :  { %v23687_v19 = vpop.eup %23686  ;;  %v10105_v31 = vadd.f32 1.0, %v23685_v15  ;;  %23706 = vrcp.f32 %v10103_v38  ;;  %v10188_v38 = vrot.slane %v27439_v45, 7 }
 0x877   :  { %v23689_v13 = vpop.eup %23688  ;;  %v10106_v12 = vadd.f32 1.0, %v23687_v19  ;;  %23708 = vrcp.f32 %v10104_v21 }
 0x878   :  { %v23691_v42 = vpop.eup %23690  ;;  %v10107_v62 = vadd.f32 1.0, %v23689_v13  ;;  %23710 = vrcp.f32 %v10105_v31  ;;  %v10190_v31 = vrot.slane %v27446_v4, 7  ;;  %v10194_v4 = vrot.slane %v27463_v8, 7 }
 0x879   :  { %v23693_v6 = vpop.eup %23692  ;;  %23712 = vrcp.f32 %v10106_v12  ;;  %v10156_v18 = vadd.f32 1.0, %v23691_v42  ;;  %v10191_v12 = vrot.slane %v27451_v9, 7 }
 0x87a   :  { %v23695_v41 = vpop.eup %23694  ;;  %23714 = vrcp.f32 %v10107_v62  ;;  %v10157_v36 = vadd.f32 1.0, %v23693_v6  ;;  %v10193_v62 = vrot.slane %v27459_v2, 7 }
 0x87b   :  { %v23697_v59 = vpop.eup %23696  ;;  %23716 = vpow2.f32 %v19222_v25  ;;  %v10158_v15 = vadd.f32 1.0, %v23695_v41  ;;  %v10192_v25 = vrot.slane %v27455_v58, 7 }
 0x87c   :  { %v23699_v26 = vpop.eup %23698  ;;  %23718 = vpow2.f32 %v19223_v49  ;;  %v10159_v19 = vadd.f32 1.0, %v23697_v59 }
 0x87d   :  { %v23701_v21 = vpop.eup %23700  ;;  %23720 = vpow2.f32 %v19224_v50  ;;  %v10160_v2 = vadd.f32 1.0, %v23699_v26 }
 0x87e   :  { %v23703_v46 = vpop.eup %23702  ;;  %v10204_v39 = vmul.f32 %v23701_v21, %v10188_v38  ;;  %23722 = vrcp.f32 %v10156_v18 }
 0x87f   :  { %v23705_v13 = vpop.eup %23704  ;;  %v10205_v42 = vmul.f32 %v23703_v46, %v10189_v47  ;;  %23724 = vrcp.f32 %v10157_v36 }
 0x880   :  { %v23707_v45 = vpop.eup %23706  ;;  %v10206_v49 = vmul.f32 %v23705_v13, %v10190_v31  ;;  %v27788_v22 = vadd.f32 %v27756_v60, %v10204_v39  ;;  %23726 = vrcp.f32 %v10158_v15  ;;  %v10195_v60 = vrot.slane %v27466_v0, 7 }
 0x881   :  { %v23709_v6 = vpop.eup %23708  ;;  %v10207_v50 = vmul.f32 %v23707_v45, %v10191_v12  ;;  %v27792_v41 = vadd.f32 %v27759_v37, %v10205_v42  ;;  %23728 = vrcp.f32 %v10159_v19 }
 0x882   :  { %v23711_v9 = vpop.eup %23710  ;;  %v10208_v58 = vmul.f32 %v23709_v6, %v10192_v25  ;;  %v27795_v18 = vadd.f32 %v27762_v34, %v10206_v49  ;;  %23730 = vtanh.f32 %v27788_v22 }
 0x883   :  { %v23713_v59 = vpop.eup %23712  ;;  %v10209_v36 = vmul.f32 %v23711_v9, %v10193_v62  ;;  %v27800_v38 = vadd.f32 %v27752_v48, %v10207_v50  ;;  %23732 = vtanh.f32 %v27792_v41 }
 0x884   :  { %v23715_v37 = vpop.eup %23714  ;;  %v10210_v8 = vmul.f32 %v23713_v59, %v10194_v4  ;;  %v27804_v15 = vadd.f32 %v27766_v40, %v10208_v58  ;;  %23734 = vtanh.f32 %v27795_v18 }
 0x885   :  { %v23717_v34 = vpop.eup %23716  ;;  %v27808_v21 = vadd.f32 %v27769_v17, %v10209_v36  ;;  %23736 = vtanh.f32 %v27800_v38  ;;  %v10211_v0 = vmul.f32 %v23715_v37, %v10195_v60 }
 0x886   :  { %v23719_v26 = vpop.eup %23718  ;;  %v10161_v47 = vadd.f32 1.0, %v23717_v34  ;;  %23738 = vrcp.f32 %v10160_v2  ;;  %v27812_v48 = vadd.f32 %v27771_v61, %v10210_v8 }
 0x887   :  { %v23721_v19 = vpop.eup %23720  ;;  %v10162_v46 = vadd.f32 1.0, %v23719_v26  ;;  %v27815_v40 = vadd.f32 %v27774_v28, %v10211_v0  ;;  %23740 = vtanh.f32 %v27804_v15 }
 0x888   :  { %v23723_v31 = vpop.eup %23722  ;;  %v10163_v39 = vadd.f32 1.0, %v23721_v19  ;;  %23742 = vrcp.f32 %v10161_v47 }
 0x889   :  { %v23725_v17 = vpop.eup %23724  ;;  %23744 = vrcp.f32 %v10162_v46 }
 0x88a   :  { %v23727_v13 = vpop.eup %23726  ;;  %23746 = vrcp.f32 %v10163_v39 }
 0x88b   :  { %v23729_v12 = vpop.eup %23728  ;;  %23748 = vtanh.f32 %v27808_v21 }
 0x88c   :  { %v23731_v25 = vpop.eup %23730  ;;  %23750 = vtanh.f32 %v27812_v48 }
 0x88d   :  { %v23733_v61 = vpop.eup %23732  ;;  %23752 = vtanh.f32 %v27815_v40  ;;  %v10236_v28 = vmul.f32 %v23731_v25, %v23723_v31 }
 0x88e   :  { %v23735_v42 = vpop.eup %23734  ;;  %v10237_v45 = vmul.f32 %v23733_v61, %v23725_v17 }
 0x88f   :  { %v23737_v62 = vpop.eup %23736  ;;  %v10238_v49 = vmul.f32 %v23735_v42, %v23727_v13  ;;  %v10252_v6 = vrot.slane %v10236_v28, 3 }
 0x890   :  { %v23739_v4 = vpop.eup %23738  ;;  %v10239_v50 = vmul.f32 %v23737_v62, %v23729_v12  ;;  %v10253_v9 = vrot.slane %v10237_v45, 2 }
 0x891   :  { %v23741_v58 = vpop.eup %23740  ;;  %v10255_v2 = vrot.slane %v10238_v49, 1 }
 0x892   :  { %v23743_v59 = vpop.eup %23742  ;;  %v10240_v60 = vmul.f32 %v23741_v58, %v23739_v4  ;;  %v10254_v36 = vsel %vm4111_vm1, %v10253_v9, %v10252_v6  ;;  %v30985_v9 = vld [vmem:[#allocation84_spill] sm:$0xff]  ;;  %v30986_v58 = vld [vmem:[#allocation105_spill] sm:$0xff] }
 0x893   :  { %v23745_v37 = vpop.eup %23744  ;;  %v10256_v8 = vsel %vm4114_vm2, %v10255_v2, %v10254_v36  ;;  %v30987_v2 = vld [vmem:[#allocation26_spill] sm:$0xff]  ;;  %v30990_v36 = vld [vmem:[#allocation109_spill] sm:$0xff] }
 0x894   :  { %v23747_v34 = vpop.eup %23746  ;;  %v10257_v0 = vsel %vm4117_vm3, %v10239_v50, %v10256_v8  ;;  %v10258_v26 = vrot.slane %v10240_v60, 7  ;;  %v30989_v60 = vld [vmem:[#allocation85_spill] sm:$0xff]  ;;  %v30992_v8 = vld [vmem:[#allocation112_spill] sm:$0xff] }
 0x895   :  { %v23749_v47 = vpop.eup %23748 }
 0x896   :  { %v23751_v19 = vpop.eup %23750  ;;  %v10241_v46 = vmul.f32 %v23749_v47, %v23743_v59  ;;  %v10259_v31 = vsel %vm4120_vm4, %v10258_v26, %v10257_v0  ;;  %v30988_v59 = vld [vmem:[#allocation107_spill] sm:$0xff]  ;;  %v30994_v0 = vld [vmem:[#allocation113_spill] sm:$0xff]  ;;  %v30995_v26 = vld [vmem:[#allocation32_spill] sm:$0xff] }
 0x897   :  { %v23753_v39 = vpop.eup %23752  ;;  %v10242_v17 = vmul.f32 %v23751_v19, %v23745_v37  ;;  %v30991_v37 = vld [vmem:[#allocation27_spill] sm:$0xff]  ;;  %v30996_v47 = vld [vmem:[#allocation116_spill] sm:$0xff] }
 0x898   :  { %v10243_v13 = vmul.f32 %v23753_v39, %v23747_v34  ;;  %v10260_v12 = vrot.slane %v10241_v46, 6  ;;  %v30993_v34 = vld [vmem:[#allocation86_spill] sm:$0xff]  ;;  %v30997_v19 = vld [vmem:[#allocation87_spill] sm:$0xff]  ;;  %v30998_v46 = vld [vmem:[#allocation117_spill] sm:$0xff] }
 0x899   :  { %v10262_v25 = vrot.slane %v10242_v17, 5  ;;  %v31000_v39 = vld [vmem:[#allocation118_spill] sm:$0xff]  ;;  %v31001_v17 = vld [vmem:[#allocation88_spill] sm:$0xff] }
 0x89a   :  { %v10261_v61 = vsel %vm4123_vm5, %v10260_v12, %v10259_v31  ;;  %v10264_v28 = vrot.slane %v10243_v13, 4  ;;  %v30999_v31 = vld [vmem:[#allocation36_spill] sm:$0xff]  ;;  %v31002_v13 = vld [vmem:[#allocation119_spill] sm:$0xff] }
 0x89b   :  { %v10263_v42 = vsel %vm4126_vm6, %v10262_v25, %v10261_v61  ;;  %v31003_v12 = vld [vmem:[#allocation39_spill] sm:$0xff]  ;;  %v31004_v25 = vld [vmem:[#allocation120_spill] sm:$0xff]  ;;  %v31005_v61 = vld [vmem:[#allocation89_spill] sm:$0xff] }
 0x89c   :  { %v10265_v45 = vsel %vm4129_vm7, %v10264_v28, %v10263_v42  ;;  %v31006_v28 = vld [vmem:[#allocation121_spill] sm:$0xff]  ;;  %v31007_v42 = vld [vmem:[#allocation42_spill] sm:$0xff] }
 0x89d   :  { %v27828_v62 = vand.u32 4294901760, %v10265_v45 }
 0x89f   :  { %v27831_v49 = vsub.f32 %v10265_v45, %v27828_v62  ;;  %v31008_v45 = vld [vmem:[#allocation122_spill] sm:$0xff] }
 0x8a1   :  { %v27834_v6 = vand.u32 4294901760, %v27831_v49 }
 0x8a3   :  { %v10367_v4 = vsub.f32 %v27831_v49, %v27834_v6 }
 0x8a5   :  { %v10368_v50 = vand.u32 4294901760, %v10367_v4  ;;  %v31009_v4 = vld [vmem:[#allocation90_spill] sm:$0xff] }
 0x8a7   :  { %10369 = vmatmul.mubr.f32.vlgmr.msra.gmra.mrb[24].mxu0 %v10368_v50  ;;  %11224 = vmatmul.mubr.f32.vlgmr.msra.gmra.mrb[40].mxu1 %v10368_v50  ;;  %v31010_v50 = vld [vmem:[#allocation123_spill] sm:$0xff] }
 0x8a8   :  { %21253 = vmatpush1.bf16.msra.mxu0 %v30851_v23  ;;  %21445 = vmatpush1.bf16.msra.mxu1 %v30852_v44 }
 0x8a9   :  { %21255 = vmatprep.subr.bf16.mxu0 %v30853_v1  ;;  %21447 = vmatprep.subr.bf16.mxu1 %v30854_v54  ;;  %v31077_v54 = vld [vmem:[#allocation72_spill] sm:$0xff] }
 0x8aa   :  { %10599 = vmatprep.mubr.f32.mxu0 %v30575_v30  ;;  %11454 = vmatprep.mubr.f32.mxu1 %v30575_v30 }
 0x8ac   :  { %21257 = vmatpush1.bf16.msra.mxu0 %v30855_v55  ;;  %21449 = vmatpush1.bf16.msra.mxu1 %v30856_v11  ;;  %v31070_v11 = vld [vmem:[#allocation143_spill] sm:$0xff]  ;;  %v31076_v55 = vld [vmem:[#allocation146_spill] sm:$0xff] }
 0x8ad   :  { %21259 = vmatprep.subr.bf16.mxu0 %v30985_v9  ;;  %21451 = vmatprep.subr.bf16.mxu1 %v30986_v58  ;;  %v31066_v58 = vld [vmem:[#allocation141_spill] sm:$0xff]  ;;  %v31067_v9 = vld [vmem:[#allocation63_spill] sm:$0xff] }
 0x8b0   :  { %21261 = vmatpush1.bf16.msra.mxu0 %v30987_v2  ;;  %21453 = vmatpush1.bf16.msra.mxu1 %v30988_v59  ;;  %v31064_v59 = vld [vmem:[#allocation140_spill] sm:$0xff]  ;;  %v31065_v2 = vld [vmem:[#allocation61_spill] sm:$0xff] }
 0x8b1   :  { %21263 = vmatprep.subr.bf16.mxu0 %v30989_v60  ;;  %21455 = vmatprep.subr.bf16.mxu1 %v30990_v36  ;;  %v31062_v36 = vld [vmem:[#allocation139_spill] sm:$0xff]  ;;  %v31063_v60 = vld [vmem:[#allocation60_spill] sm:$0xff] }
 0x8b4   :  { %21265 = vmatpush1.bf16.msra.mxu0 %v30991_v37  ;;  %21457 = vmatpush1.bf16.msra.mxu1 %v30992_v8  ;;  %v31060_v8 = vld [vmem:[#allocation37_spill] sm:$0xff]  ;;  %v31061_v37 = vld [vmem:[#allocation59_spill] sm:$0xff] }
 0x8b5   :  { %21267 = vmatprep.subr.bf16.mxu0 %v30993_v34  ;;  %21459 = vmatprep.subr.bf16.mxu1 %v30994_v0  ;;  %v31058_v0 = vld [vmem:[#allocation34_spill] sm:$0xff]  ;;  %v31059_v34 = vld [vmem:[#allocation75_spill] sm:$0xff] }
 0x8b8   :  { %21269 = vmatpush1.bf16.msra.mxu0 %v30995_v26  ;;  %21461 = vmatpush1.bf16.msra.mxu1 %v30996_v47  ;;  %v31056_v47 = vld [vmem:[#allocation29_spill] sm:$0xff] }
 0x8b9   :  { %21271 = vmatprep.subr.bf16.mxu0 %v30997_v19  ;;  %21463 = vmatprep.subr.bf16.mxu1 %v30998_v46  ;;  %v31054_v46 = vld [vmem:[#allocation24_spill] sm:$0xff]  ;;  %v31055_v19 = vld [vmem:[#allocation71_spill] sm:$0xff]  ;;  %v31057_v26 = vld [vmem:[#allocation73_spill] sm:$0xff] }
 0x8bc   :  { %21273 = vmatpush1.bf16.msra.mxu0 %v30999_v31  ;;  %21465 = vmatpush1.bf16.msra.mxu1 %v31000_v39  ;;  %v31025_v39 = vld [vmem:[#allocation16_spill] sm:$0xff]  ;;  %v31053_v31 = vld [vmem:[#allocation69_spill] sm:$0xff] }
 0x8bd   :  { %21275 = vmatprep.subr.bf16.mxu0 %v31001_v17  ;;  %21467 = vmatprep.subr.bf16.mxu1 %v31002_v13  ;;  %v31011_v13 = vld [vmem:[#allocation44_spill] sm:$0xff]  ;;  %v31024_v17 = vld [vmem:[#allocation130_spill] sm:$0xff] }
 0x8c0   :  { %21277 = vmatpush1.bf16.msra.mxu0 %v31003_v12  ;;  %21469 = vmatpush1.bf16.msra.mxu1 %v31004_v25  ;;  %v31012_v12 = vld [vmem:[#allocation124_spill] sm:$0xff]  ;;  %v31013_v25 = vld [vmem:[#allocation91_spill] sm:$0xff] }
 0x8c1   :  { %21279 = vmatprep.subr.bf16.mxu0 %v31005_v61  ;;  %21471 = vmatprep.subr.bf16.mxu1 %v31006_v28  ;;  %v31014_v61 = vld [vmem:[#allocation125_spill] sm:$0xff]  ;;  %v31019_v28 = vld [vmem:[#allocation15_spill] sm:$0xff] }
 0x8c4   :  { %21281 = vmatpush1.bf16.msra.mxu0 %v31007_v42  ;;  %21473 = vmatpush1.bf16.msra.mxu1 %v31008_v45  ;;  %v31015_v45 = vld [vmem:[#allocation45_spill] sm:$0xff]  ;;  %v31018_v42 = vld [vmem:[#allocation127_spill] sm:$0xff] }
 0x8c5   :  { %21283 = vmatprep.subr.bf16.mxu0 %v31009_v4  ;;  %21475 = vmatprep.subr.bf16.mxu1 %v31010_v50  ;;  %v31016_v4 = vld [vmem:[#allocation126_spill] sm:$0xff]  ;;  %v31017_v50 = vld [vmem:[#allocation92_spill] sm:$0xff] }
 0x8c7   :  { %10601 = vmatmul.mubr.f32.vlgmr.msra.gmra.mrb[24].mxu0 %v27828_v62  ;;  %11456 = vmatmul.mubr.f32.vlgmr.msra.gmra.mrb[40].mxu1 %v27828_v62 }
 0x8c8   :  { %21285 = vmatpush1.bf16.msra.mxu0 %v31011_v13  ;;  %21477 = vmatpush1.bf16.msra.mxu1 %v31012_v12  ;;  %v31020_v13 = vld [vmem:[#allocation128_spill] sm:$0xff]  ;;  %v31021_v12 = vld [vmem:[#allocation93_spill] sm:$0xff] }
 0x8c9   :  { %21287 = vmatprep.subr.bf16.mxu0 %v31013_v25  ;;  %21479 = vmatprep.subr.bf16.mxu1 %v31014_v61  ;;  %v31022_v25 = vld [vmem:[#allocation129_spill] sm:$0xff]  ;;  %v31023_v61 = vld [vmem:[#allocation47_spill] sm:$0xff] }
 0x8ca   :  { %10735 = vmatprep.mubr.f32.mxu0 %v30575_v30  ;;  %11590 = vmatprep.mubr.f32.mxu1 %v30575_v30 }
 0x8cc   :  { %21289 = vmatpush1.bf16.msra.mxu0 %v31015_v45  ;;  %21481 = vmatpush1.bf16.msra.mxu1 %v31016_v4  ;;  %v31026_v45 = vld [vmem:[#allocation131_spill] sm:$0xff] }
 0x8cd   :  { %21291 = vmatprep.subr.bf16.mxu0 %v31017_v50  ;;  %21483 = vmatprep.subr.bf16.mxu1 %v31018_v42  ;;  %v31027_v4 = vld [vmem:[#allocation19_spill] sm:$0xff]  ;;  %v31028_v50 = vld [vmem:[#allocation132_spill] sm:$0xff]  ;;  %v31029_v42 = vld [vmem:[#allocation94_spill] sm:$0xff] }
 0x8d0   :  { %21293 = vmatpush1.bf16.msra.mxu0 %v31019_v28  ;;  %21485 = vmatpush1.bf16.msra.mxu1 %v31020_v13  ;;  %v31030_v28 = vld [vmem:[#allocation133_spill] sm:$0xff]  ;;  %v31031_v13 = vld [vmem:[#allocation23_spill] sm:$0xff] }
 0x8d1   :  { %21295 = vmatprep.subr.bf16.mxu0 %v31021_v12  ;;  %21487 = vmatprep.subr.bf16.mxu1 %v31022_v25  ;;  %v31032_v12 = vld [vmem:[#allocation134_spill] sm:$0xff]  ;;  %v31033_v25 = vld [vmem:[#allocation95_spill] sm:$0xff] }
 0x8d4   :  { %21297 = vmatpush1.bf16.msra.mxu0 %v31023_v61  ;;  %21489 = vmatpush1.bf16.msra.mxu1 %v31024_v17  ;;  %v31034_v61 = vld [vmem:[#allocation135_spill] sm:$0xff]  ;;  %v31035_v17 = vld [vmem:[#allocation28_spill] sm:$0xff] }
 0x8d5   :  { %21299 = vmatprep.subr.bf16.mxu0 %v31025_v39  ;;  %21491 = vmatprep.subr.bf16.mxu1 %v31026_v45  ;;  %v31036_v39 = vld [vmem:[#allocation136_spill] sm:$0xff] }
 0x8d6   :  { %v31037_v45 = vld [vmem:[#allocation96_spill] sm:$0xff] }
 0x8d8   :  { %21301 = vmatpush1.bf16.msra.mxu0 %v31027_v4  ;;  %21493 = vmatpush1.bf16.msra.mxu1 %v31028_v50  ;;  %v31038_v4 = vld [vmem:[#allocation137_spill] sm:$0xff]  ;;  %v31039_v50 = vld [vmem:[#allocation30_spill] sm:$0xff] }
 0x8d9   :  { %21303 = vmatprep.subr.bf16.mxu0 %v31029_v42  ;;  %21495 = vmatprep.subr.bf16.mxu1 %v31030_v28  ;;  %v31040_v42 = vld [vmem:[#allocation138_spill] sm:$0xff]  ;;  %v31052_v28 = vld [vmem:[#allocation21_spill] sm:$0xff] }
 0x8dc   :  { %21305 = vmatpush1.bf16.msra.mxu0 %v31031_v13  ;;  %21497 = vmatpush1.bf16.msra.mxu1 %v31032_v12  ;;  %v31050_v12 = vld [vmem:[#allocation64_spill] sm:$0xff] }
 0x8dd   :  { %21307 = vmatprep.subr.bf16.mxu0 %v31033_v25  ;;  %21499 = vmatprep.subr.bf16.mxu1 %v31034_v61  ;;  %v31048_v61 = vld [vmem:[#allocation20_spill] sm:$0xff]  ;;  %v31049_v25 = vld [vmem:[#allocation58_spill] sm:$0xff] }
 0x8de   :  { %v31051_v13 = vld [vmem:[#allocation68_spill] sm:$0xff] }
 0x8e0   :  { %21309 = vmatpush1.bf16.msra.mxu0 %v31035_v17  ;;  %21501 = vmatpush1.bf16.msra.mxu1 %v31036_v39  ;;  %v31046_v39 = vld [vmem:[#allocation35_spill] sm:$0xff]  ;;  %v31047_v17 = vld [vmem:[#allocation57_spill] sm:$0xff] }
 0x8e1   :  { %21311 = vmatprep.subr.bf16.mxu0 %v31037_v45  ;;  %21503 = vmatprep.subr.bf16.mxu1 %v31038_v4  ;;  %v31044_v4 = vld [vmem:[#allocation31_spill] sm:$0xff]  ;;  %v31045_v45 = vld [vmem:[#allocation56_spill] sm:$0xff] }
 0x8e4   :  { %21313 = vmatpush1.bf16.msra.mxu0 %v31039_v50  ;;  %21505 = vmatpush1.bf16.msra.mxu1 %v31040_v42  ;;  %v31042_v42 = vld [vmem:[#allocation25_spill] sm:$0xff]  ;;  %v31043_v50 = vld [vmem:[#allocation55_spill] sm:$0xff] }
 0x8e5   :  { %21315 = vmatprep.subr.bf16.mxu0 %v30634_v20  ;;  %21507 = vmatprep.subr.bf16.mxu1 %v30635_v33 }
 0x8e7   :  { %10738 = vmatmul.mubr.f32.vlgmr.msra.gmra.mrb[24].mxu0 %v27831_v49  ;;  %11593 = vmatmul.mubr.f32.vlgmr.msra.gmra.mrb[40].mxu1 %v27831_v49  ;;  %v31041_v49 = vld [vmem:[#allocation54_spill] sm:$0xff] }
 0x8e8   :  { %21317 = vmatpush1.bf16.msra.mxu0 %v30636_v10  ;;  %21509 = vmatpush1.bf16.msra.mxu1 %v30637_v56 }
 0x8e9   :  { %21319 = vmatprep.subr.bf16.mxu0 %v30638_v5  ;;  %21511 = vmatprep.subr.bf16.mxu1 %v30639_v14 }
 0x8ea   :  { %10840 = vmatprep.mubr.f32.mxu0 %v30575_v30  ;;  %11695 = vmatprep.mubr.f32.mxu1 %v30575_v30 }
 0x8ec   :  { %21321 = vmatpush1.bf16.msra.mxu0 %v30640_v24  ;;  %21513 = vmatpush1.bf16.msra.mxu1 %v30641_v16 }
 0x8ed   :  { %21323 = vmatprep.subr.bf16.mxu0 %v30642_v53  ;;  %21515 = vmatprep.subr.bf16.mxu1 %v30643_v51 }
 0x8f0   :  { %21325 = vmatpush1.bf16.msra.mxu0 %v30644_v35  ;;  %21517 = vmatpush1.bf16.msra.mxu1 %v30645_v7 }
 0x8f1   :  { %21327 = vmatprep.subr.bf16.mxu0 %v31041_v49  ;;  %21519 = vmatprep.subr.bf16.mxu1 %v31042_v42 }
 0x8f4   :  { %21329 = vmatpush1.bf16.msra.mxu0 %v31043_v50  ;;  %21521 = vmatpush1.bf16.msra.mxu1 %v31044_v4 }
 0x8f5   :  { %21331 = vmatprep.subr.bf16.mxu0 %v31045_v45  ;;  %21523 = vmatprep.subr.bf16.mxu1 %v31046_v39 }
 0x8f8   :  { %21333 = vmatpush1.bf16.msra.mxu0 %v31047_v17  ;;  %21525 = vmatpush1.bf16.msra.mxu1 %v31048_v61 }
 0x8f9   :  { %21335 = vmatprep.subr.bf16.mxu0 %v31049_v25  ;;  %21527 = vmatprep.subr.bf16.mxu1 %v31050_v12 }
 0x8fc   :  { %21337 = vmatpush1.bf16.msra.mxu0 %v31051_v13  ;;  %21529 = vmatpush1.bf16.msra.mxu1 %v31052_v28 }
 0x8fd   :  { %21339 = vmatprep.subr.bf16.mxu0 %v31053_v31  ;;  %21531 = vmatprep.subr.bf16.mxu1 %v31054_v46 }
 0x900   :  { %21341 = vmatpush1.bf16.msra.mxu0 %v31055_v19  ;;  %21533 = vmatpush1.bf16.msra.mxu1 %v31056_v47 }
 0x901   :  { %21343 = vmatprep.subr.bf16.mxu0 %v31057_v26  ;;  %21535 = vmatprep.subr.bf16.mxu1 %v31058_v0 }
 0x904   :  { %21345 = vmatpush1.bf16.msra.mxu0 %v31059_v34  ;;  %21537 = vmatpush1.bf16.msra.mxu1 %v31060_v8 }
 0x905   :  { %21347 = vmatprep.subr.bf16.mxu0 %v31061_v37  ;;  %21539 = vmatprep.subr.bf16.mxu1 %v31062_v36  ;;  %v31068_v37 = vld [vmem:[#allocation142_spill] sm:$0xff]  ;;  %v31069_v36 = vld [vmem:[#allocation65_spill] sm:$0xff] }
 0x907   :  { %10844 = vmatmul.mubr.f32.vlgmr.msra.gmra.mrb[24].mxu0 %v27834_v6  ;;  %11699 = vmatmul.mubr.f32.vlgmr.msra.gmra.mrb[40].mxu1 %v27834_v6  ;;  %v31071_v6 = vld [vmem:[#allocation66_spill] sm:$0xff] }
 0x908   :  { %21349 = vmatpush1.bf16.msra.mxu0 %v31063_v60  ;;  %21541 = vmatpush1.bf16.msra.mxu1 %v31064_v59  ;;  %v31072_v60 = vld [vmem:[#allocation144_spill] sm:$0xff]  ;;  %v31073_v59 = vld [vmem:[#allocation67_spill] sm:$0xff] }
 0x909   :  { %21351 = vmatprep.subr.bf16.mxu0 %v31065_v2  ;;  %21543 = vmatprep.subr.bf16.mxu1 %v31066_v58  ;;  %v31074_v2 = vld [vmem:[#allocation145_spill] sm:$0xff]  ;;  %v31075_v58 = vld [vmem:[#allocation70_spill] sm:$0xff] }
 0x90a   :  { %11010 = vmatprep.mubr.f32.mxu0 %v30575_v30  ;;  %11865 = vmatprep.mubr.f32.mxu1 %v30575_v30 }
 0x90c   :  { %21353 = vmatpush1.bf16.msra.mxu0 %v31067_v9  ;;  %21545 = vmatpush1.bf16.msra.mxu1 %v31068_v37  ;;  %v31078_v9 = vld [vmem:[#allocation147_spill] sm:$0xff]  ;;  %v31079_v37 = vld [vmem:[#allocation74_spill] sm:$0xff] }
 0x90d   :  { %21355 = vmatprep.subr.bf16.mxu0 %v31069_v36  ;;  %21547 = vmatprep.subr.bf16.mxu1 %v31070_v11  ;;  %v31080_v36 = vld [vmem:[#allocation148_spill] sm:$0xff] }
 0x90e   :  { %v31081_v11 = vld [vmem:[#allocation76_spill] sm:$0xff] }
 0x910   :  { %21357 = vmatpush1.bf16.msra.mxu0 %v31071_v6  ;;  %21549 = vmatpush1.bf16.msra.mxu1 %v31072_v60  ;;  %v31082_v6 = vld [vmem:[#allocation149_spill] sm:$0xff] }
 0x911   :  { %21359 = vmatprep.subr.bf16.mxu0 %v31073_v59  ;;  %21551 = vmatprep.subr.bf16.mxu1 %v31074_v2  ;;  %v31083_v60 = vld [vmem:[#allocation77_spill] sm:$0xff]  ;;  %v31084_v59 = vld [vmem:[#allocation150_spill] sm:$0xff] }
 0x912   :  { %v31085_v2 = vld [vmem:[#allocation78_spill] sm:$0xff] }
 0x914   :  { %21361 = vmatpush1.bf16.msra.mxu0 %v31075_v58  ;;  %21553 = vmatpush1.bf16.msra.mxu1 %v31076_v55  ;;  %v31086_v58 = vld [vmem:[#allocation151_spill] sm:$0xff] }
 0x915   :  { %21363 = vmatprep.subr.bf16.mxu0 %v31077_v54  ;;  %21555 = vmatprep.subr.bf16.mxu1 %v31078_v9  ;;  %v31087_v55 = vld [vmem:[#allocation79_spill] sm:$0xff]  ;;  %v31088_v54 = vld [vmem:[#allocation152_spill] sm:$0xff]  ;;  %v31089_v9 = vld [vmem:[#allocation81_spill] sm:$0xff] }
 0x918   :  { %21365 = vmatpush1.bf16.msra.mxu0 %v31079_v37  ;;  %21557 = vmatpush1.bf16.msra.mxu1 %v31080_v36  ;;  %v31090_v37 = vld [vmem:[#allocation153_spill] sm:$0xff]  ;;  %v31091_v36 = vld [vmem:[#allocation82_spill] sm:$0xff] }
 0x919   :  { %21367 = vmatprep.subr.bf16.mxu0 %v31081_v11  ;;  %21559 = vmatprep.subr.bf16.mxu1 %v31082_v6  ;;  %v31092_v11 = vld [vmem:[#allocation154_spill] sm:$0xff] }
 0x91c   :  { %21369 = vmatpush1.bf16.msra.mxu0 %v31083_v60  ;;  %21561 = vmatpush1.bf16.msra.mxu1 %v31084_v59 }
 0x91d   :  { %21371 = vmatprep.subr.bf16.mxu0 %v31085_v2  ;;  %21563 = vmatprep.subr.bf16.mxu1 %v31086_v58 }
 0x920   :  { %21373 = vmatpush1.bf16.msra.mxu0 %v31087_v55  ;;  %21565 = vmatpush1.bf16.msra.mxu1 %v31088_v54 }
 0x921   :  { %21375 = vmatprep.subr.bf16.mxu0 %v31089_v9  ;;  %21567 = vmatprep.subr.bf16.mxu1 %v31090_v37 }
 0x924   :  { %21377 = vmatpush1.bf16.msra.mxu0 %v31091_v36  ;;  %21569 = vmatpush1.bf16.msra.mxu1 %v31092_v11  ;;  %v31094_v11 = vld [vmem:[#allocation40_spill] sm:$0xff] }
 0x925   :  { %21379 = vmatprep.subr.bf16.mxu0 %v30634_v20  ;;  %21571 = vmatprep.subr.bf16.mxu1 %v30635_v33 }
 0x927   :  { %11012 = vmatmul.mubr.f32.vlgmr.msra.gmra.mrb[24].mxu0 %v27828_v62  ;;  %11867 = vmatmul.mubr.f32.vlgmr.msra.gmra.mrb[40].mxu1 %v27828_v62 }
 0x928   :  { %21381 = vmatpush1.bf16.msra.mxu0 %v30636_v10  ;;  %21573 = vmatpush1.bf16.msra.mxu1 %v30637_v56 }
 0x929   :  { %21383 = vmatprep.subr.bf16.mxu0 %v30638_v5  ;;  %21575 = vmatprep.subr.bf16.mxu1 %v30639_v14 }
 0x92a   :  { %11114 = vmatprep.mubr.f32.mxu0 %v30575_v30  ;;  %11969 = vmatprep.mubr.f32.mxu1 %v30575_v30 }
 0x92c   :  { %21385 = vmatpush1.bf16.msra.mxu0 %v30640_v24  ;;  %21577 = vmatpush1.bf16.msra.mxu1 %v30641_v16 }
 0x92d   :  { %21387 = vmatprep.subr.bf16.mxu0 %v30642_v53  ;;  %21579 = vmatprep.subr.bf16.mxu1 %v30643_v51 }
 0x930   :  { %21389 = vmatpush1.bf16.msra.mxu0 %v30644_v35  ;;  %21581 = vmatpush1.bf16.msra.mxu1 %v30645_v7 }
 0x931   :  { %21391 = vmatprep.subr.bf16.mxu0 %v31041_v49  ;;  %21583 = vmatprep.subr.bf16.mxu1 %v31042_v42 }
 0x934   :  { %21393 = vmatpush1.bf16.msra.mxu0 %v31043_v50  ;;  %21585 = vmatpush1.bf16.msra.mxu1 %v31044_v4 }
 0x935   :  { %21395 = vmatprep.subr.bf16.mxu0 %v31045_v45  ;;  %21587 = vmatprep.subr.bf16.mxu1 %v31046_v39 }
 0x938   :  { %21397 = vmatpush1.bf16.msra.mxu0 %v31047_v17  ;;  %21589 = vmatpush1.bf16.msra.mxu1 %v31048_v61 }
 0x939   :  { %21399 = vmatprep.subr.bf16.mxu0 %v31049_v25  ;;  %21591 = vmatprep.subr.bf16.mxu1 %v31050_v12 }
 0x93c   :  { %21401 = vmatpush1.bf16.msra.mxu0 %v31051_v13  ;;  %21593 = vmatpush1.bf16.msra.mxu1 %v31052_v28 }
 0x93d   :  { %21403 = vmatprep.subr.bf16.mxu0 %v31053_v31  ;;  %21595 = vmatprep.subr.bf16.mxu1 %v31054_v46 }
 0x940   :  { %21405 = vmatpush1.bf16.msra.mxu0 %v31055_v19  ;;  %21597 = vmatpush1.bf16.msra.mxu1 %v31056_v47 }
 0x941   :  { %21407 = vmatprep.subr.bf16.mxu0 %v31057_v26  ;;  %21599 = vmatprep.subr.bf16.mxu1 %v31058_v0 }
 0x944   :  { %21409 = vmatpush1.bf16.msra.mxu0 %v31059_v34  ;;  %21601 = vmatpush1.bf16.msra.mxu1 %v31060_v8 }
 0x945   :  { %21603 = vmatprep.subr.bf16.mxu0 %v30634_v20  ;;  %21795 = vmatprep.subr.bf16.mxu1 %v30635_v33 }
 0x947   :  { %11116 = vmatmul.mubr.f32.vlgmr.msra.gmra.mrb[24].mxu0 %v27828_v62  ;;  %11971 = vmatmul.mubr.f32.vlgmr.msra.gmra.mrb[40].mxu1 %v27828_v62  ;;  %v31093_v62 = vld [vmem:[#allocation80_spill] sm:$0xff] }
 0x948   :  { %21605 = vmatpush1.bf16.msra.mxu0 %v30636_v10  ;;  %21797 = vmatpush1.bf16.msra.mxu1 %v30637_v56 }
 0x949   :  { %21607 = vmatprep.subr.bf16.mxu0 %v30638_v5  ;;  %21799 = vmatprep.subr.bf16.mxu1 %v30639_v14 }
 0x94a   :  { %12408 = vmatprep.mubr.f32.mxu0 %v30575_v30  ;;  %13263 = vmatprep.mubr.f32.mxu1 %v30575_v30 }
 0x94c   :  { %21609 = vmatpush1.bf16.msra.mxu0 %v30640_v24  ;;  %21801 = vmatpush1.bf16.msra.mxu1 %v30641_v16 }
 0x94d   :  { %21611 = vmatprep.subr.bf16.mxu0 %v30642_v53  ;;  %21803 = vmatprep.subr.bf16.mxu1 %v30643_v51 }
 0x950   :  { %21613 = vmatpush1.bf16.msra.mxu0 %v30644_v35  ;;  %21805 = vmatpush1.bf16.msra.mxu1 %v30645_v7 }
 0x951   :  { %21615 = vmatprep.subr.bf16.mxu0 %v31041_v49  ;;  %21807 = vmatprep.subr.bf16.mxu1 %v31042_v42 }
 0x954   :  { %21617 = vmatpush1.bf16.msra.mxu0 %v31043_v50  ;;  %21809 = vmatpush1.bf16.msra.mxu1 %v31044_v4 }
 0x955   :  { %21619 = vmatprep.subr.bf16.mxu0 %v31045_v45  ;;  %21811 = vmatprep.subr.bf16.mxu1 %v31046_v39  ;;  %v31102_v39 = vld [vmem:[#allocation157_spill] sm:$0xff] }
 0x958   :  { %21621 = vmatpush1.bf16.msra.mxu0 %v31047_v17  ;;  %21813 = vmatpush1.bf16.msra.mxu1 %v31048_v61 }
 0x959   :  { %21623 = vmatprep.subr.bf16.mxu0 %v31049_v25  ;;  %21815 = vmatprep.subr.bf16.mxu1 %v31050_v12  ;;  %v31101_v25 = vld [vmem:[#allocation156_spill] sm:$0xff] }
 0x95c   :  { %21625 = vmatpush1.bf16.msra.mxu0 %v31051_v13  ;;  %21817 = vmatpush1.bf16.msra.mxu1 %v31052_v28  ;;  %v31100_v13 = vld [vmem:[#allocation114_spill] sm:$0xff] }
 0x95d   :  { %21627 = vmatprep.subr.bf16.mxu0 %v31053_v31  ;;  %21819 = vmatprep.subr.bf16.mxu1 %v31054_v46  ;;  %v31099_v31 = vld [vmem:[#allocation106_spill] sm:$0xff] }
 0x960   :  { %21629 = vmatpush1.bf16.msra.mxu0 %v31055_v19  ;;  %21821 = vmatpush1.bf16.msra.mxu1 %v31056_v47  ;;  %v31097_v47 = vld [vmem:[#allocation100_spill] sm:$0xff]  ;;  %v31098_v19 = vld [vmem:[#allocation103_spill] sm:$0xff] }
 0x961   :  { %21631 = vmatprep.subr.bf16.mxu0 %v31057_v26  ;;  %21823 = vmatprep.subr.bf16.mxu1 %v31058_v0  ;;  %v31095_v0 = vld [vmem:[#allocation110_spill] sm:$0xff]  ;;  %v31096_v26 = vld [vmem:[#allocation97_spill] sm:$0xff] }
 0x964   :  { %21633 = vmatpush1.bf16.msra.mxu0 %v31059_v34  ;;  %21825 = vmatpush1.bf16.msra.mxu1 %v31060_v8 }
 0x965   :  { %21635 = vmatprep.subr.bf16.mxu0 %v31093_v62  ;;  %21827 = vmatprep.subr.bf16.mxu1 %v31094_v11 }
 0xa1a   :  { %v11117_v36 = vpop.f32.mrb[24].mxu0  ;;  %v28052_v37 = vpop.f32.mrb[40].mxu1 }
 0xa1b   :  { %v11981_v9 = vrot.slane %v11117_v36, 4  ;;  %v11985_v54 = vrot.slane %v11117_v36, 5  ;;  %v11989_v55 = vrot.slane %v11117_v36, 6  ;;  %v11993_v58 = vrot.slane %v11117_v36, 7  ;;  %v28054_v2 = vpop.f32.mrb[25].mxu0  ;;  %v28056_v59 = vpop.f32.mrb[41].mxu1 }
 0xa1c   :  { %v11997_v60 = vrot.slane %v11117_v36, 1  ;;  %v12001_v6 = vrot.slane %v11117_v36, 2  ;;  %v12005_v34 = vrot.slane %v11117_v36, 3  ;;  %v12057_v8 = vadd.f32 %v11117_v36, %v31095_v0 }
 0xa1d   :  { %v12041_v62 = vadd.f32 %v11981_v9, %v31096_v26  ;;  %v12045_v11 = vadd.f32 %v11985_v54, %v31097_v47  ;;  %v12049_v46 = vadd.f32 %v11989_v55, %v31098_v19  ;;  %v12053_v28 = vadd.f32 %v11993_v58, %v31099_v31  ;;  %v31116_v19 = vld [vmem:[#allocation115_spill] sm:$0xff] }
 0xa1e   :  { %v12061_v12 = vadd.f32 %v11997_v60, %v31100_v13  ;;  %v12065_v61 = vadd.f32 %v12001_v6, %v31101_v25  ;;  %v19229_v17 = vmul.f32 -1.442695, %v12057_v8  ;;  %v12069_v45 = vadd.f32 %v12005_v34, %v31102_v39  ;;  %v31103_v34 = vld [vmem:[#allocation160_spill] sm:$0xff]  ;;  %v31111_v25 = vld [vmem:[#allocation101_spill] sm:$0xff] }
 0xa1f   :  { %v19225_v4 = vmul.f32 -1.442695, %v12041_v62  ;;  %v19226_v50 = vmul.f32 -1.442695, %v12045_v11  ;;  %v19227_v42 = vmul.f32 -1.442695, %v12049_v46 }
 0xa20   :  { %v19228_v49 = vmul.f32 -1.442695, %v12053_v28  ;;  %23754 = vpow2.f32 %v19229_v17  ;;  %v19230_v9 = vmul.f32 -1.442695, %v12061_v12  ;;  %v11983_v54 = vrot.slane %v28052_v37, 4  ;;  %v31104_v46 = vld [vmem:[#allocation162_spill] sm:$0xff] }
 0xa21   :  { %23756 = vpow2.f32 %v19225_v4  ;;  %v11987_v55 = vrot.slane %v28052_v37, 5  ;;  %v19231_v58 = vmul.f32 -1.442695, %v12065_v61  ;;  %v11991_v60 = vrot.slane %v28052_v37, 6  ;;  %v31105_v12 = vld [vmem:[#allocation164_spill] sm:$0xff]  ;;  %v31106_v4 = vld [vmem:[#allocation166_spill] sm:$0xff] }
 0xa22   :  { %23758 = vpow2.f32 %v19226_v50  ;;  %v19232_v36 = vmul.f32 -1.442695, %v12069_v45  ;;  %v11995_v8 = vrot.slane %v28052_v37, 7  ;;  %v12043_v11 = vadd.f32 %v11983_v54, %v31103_v34  ;;  %v31107_v50 = vld [vmem:[#allocation168_spill] sm:$0xff]  ;;  %v31110_v34 = vld [vmem:[#allocation98_spill] sm:$0xff] }
 0xa23   :  { %23760 = vpow2.f32 %v19227_v42  ;;  %v12047_v17 = vadd.f32 %v11987_v55, %v31104_v46  ;;  %v12051_v28 = vadd.f32 %v11991_v60, %v31105_v12  ;;  %v12059_v61 = vadd.f32 %v28052_v37, %v31107_v50 }
 0xa24   :  { %23762 = vpow2.f32 %v19228_v49  ;;  %v12055_v6 = vadd.f32 %v11995_v8, %v31106_v4  ;;  %v11999_v62 = vrot.slane %v28052_v37, 1  ;;  %v12003_v55 = vrot.slane %v28052_v37, 2 }
 0xa25   :  { %23764 = vpow2.f32 %v19230_v9  ;;  %v11986_v8 = vrot.slane %v28054_v2, 5 }
 0xa26   :  { %23766 = vpow2.f32 %v19231_v58  ;;  %v11982_v58 = vrot.slane %v28054_v2, 4 }
 0xa27   :  { %23768 = vpow2.f32 %v19232_v36  ;;  %v12046_v0 = vadd.f32 %v11986_v8, %v31111_v25 }
 0xa28   :  { %23770 = vtanh.f32 %v12043_v11  ;;  %v12042_v39 = vadd.f32 %v11982_v58, %v31110_v34  ;;  %v12006_v58 = vrot.slane %v28054_v2, 3  ;;  %v31115_v34 = vld [vmem:[#allocation111_spill] sm:$0xff] }
 0xa29   :  { %23772 = vtanh.f32 %v12047_v17  ;;  %v12058_v8 = vadd.f32 %v28054_v2, %v31115_v34  ;;  %v11996_v34 = vrot.slane %v28056_v59, 7 }
 0xa2a   :  { %v23755_v42 = vpop.eup %23754  ;;  %23774 = vtanh.f32 %v12051_v28  ;;  %v12007_v28 = vrot.slane %v28052_v37, 3  ;;  %v11998_v37 = vrot.slane %v28054_v2, 1  ;;  %v19233_v25 = vmul.f32 -1.442695, %v12042_v39 }
 0xa2b   :  { %v23757_v45 = vpop.eup %23756  ;;  %v12101_v49 = vadd.f32 1.0, %v23755_v42  ;;  %23776 = vtanh.f32 %v12055_v6  ;;  %v11990_v42 = vrot.slane %v28054_v2, 6 }
 0xa2c   :  { %v23759_v9 = vpop.eup %23758  ;;  %v12097_v54 = vadd.f32 1.0, %v23757_v45  ;;  %23778 = vtanh.f32 %v12059_v61  ;;  %v31108_v45 = vld [vmem:[#allocation170_spill] sm:$0xff]  ;;  %v11994_v61 = vrot.slane %v28054_v2, 7 }
 0xa2d   :  { %v23761_v60 = vpop.eup %23760  ;;  %v12098_v36 = vadd.f32 1.0, %v23759_v9  ;;  %23780 = vrcp.f32 %v12101_v49  ;;  %v12063_v4 = vadd.f32 %v11999_v62, %v31108_v45  ;;  %v31109_v49 = vld [vmem:[#allocation172_spill] sm:$0xff]  ;;  %v12002_v62 = vrot.slane %v28054_v2, 2 }
 0xa2e   :  { %v23763_v11 = vpop.eup %23762  ;;  %v12099_v17 = vadd.f32 1.0, %v23761_v60  ;;  %23782 = vrcp.f32 %v12097_v54  ;;  %v12067_v9 = vadd.f32 %v12003_v55, %v31109_v49  ;;  %v31112_v45 = vld [vmem:[#allocation104_spill] sm:$0xff]  ;;  %v12070_v2 = vadd.f32 %v12006_v58, %v30979_v32 }
 0xa2f   :  { %v23765_v6 = vpop.eup %23764  ;;  %v12100_v50 = vadd.f32 1.0, %v23763_v11  ;;  %23784 = vrcp.f32 %v12098_v36  ;;  %v12050_v31 = vadd.f32 %v11990_v42, %v31112_v45  ;;  %v31114_v49 = vld [vmem:[#allocation108_spill] sm:$0xff]  ;;  %v12062_v42 = vadd.f32 %v11998_v37, %v31116_v19 }
 0xa30   :  { %v23767_v12 = vpop.eup %23766  ;;  %v12102_v46 = vadd.f32 1.0, %v23765_v6  ;;  %23786 = vrcp.f32 %v12099_v17  ;;  %v31113_v17 = vld [vmem:[#allocation174_spill] sm:$0xff]  ;;  %v19234_v45 = vmul.f32 -1.442695, %v12046_v0  ;;  %v19237_v0 = vmul.f32 -1.442695, %v12058_v8 }
 0xa31   :  { %v23769_v60 = vpop.eup %23768  ;;  %v12103_v54 = vadd.f32 1.0, %v23767_v12  ;;  %23788 = vrcp.f32 %v12100_v50  ;;  %v12071_v55 = vadd.f32 %v12007_v28, %v31113_v17  ;;  %v12054_v12 = vadd.f32 %v11994_v61, %v31114_v49  ;;  %v31117_v17 = vld [vmem:[#allocation158_spill] sm:$0xff] }
 0xa32   :  { %v23771_v11 = vpop.eup %23770  ;;  %v12104_v36 = vadd.f32 1.0, %v23769_v60  ;;  %23790 = vrcp.f32 %v12102_v46  ;;  %v11984_v46 = vrot.slane %v28056_v59, 4  ;;  %v12066_v47 = vadd.f32 %v12002_v62, %v31117_v17 }
 0xa33   :  { %v23773_v6 = vpop.eup %23772  ;;  %23792 = vrcp.f32 %v12103_v54  ;;  %v11988_v54 = vrot.slane %v28056_v59, 5  ;;  %v19235_v61 = vmul.f32 -1.442695, %v12050_v31  ;;  %v19236_v39 = vmul.f32 -1.442695, %v12054_v12 }
 0xa34   :  { %v23775_v50 = vpop.eup %23774  ;;  %23794 = vrcp.f32 %v12104_v36  ;;  %v11992_v36 = vrot.slane %v28056_v59, 6  ;;  %v12044_v37 = vadd.f32 %v11984_v46, %v30980_v43  ;;  %v19238_v31 = vmul.f32 -1.442695, %v12062_v42 }
 0xa35   :  { %v23777_v60 = vpop.eup %23776  ;;  %23796 = vtanh.f32 %v12063_v4  ;;  %v12048_v62 = vadd.f32 %v11988_v54, %v30981_v52  ;;  %v19239_v58 = vmul.f32 -1.442695, %v12066_v47  ;;  %v12056_v8 = vadd.f32 %v11996_v34, %v30846_v63 }
 0xa36   :  { %v23779_v28 = vpop.eup %23778  ;;  %23798 = vtanh.f32 %v12067_v9  ;;  %v12052_v12 = vadd.f32 %v11992_v36, %v30982_v27 }
 0xa37   :  { %v23781_v49 = vpop.eup %23780  ;;  %23800 = vtanh.f32 %v12071_v55  ;;  %v19242_v47 = vmul.f32 -1.442695, %v12048_v62  ;;  %v19244_v36 = vmul.f32 -1.442695, %v12056_v8 }
 0xa38   :  { %v23783_v4 = vpop.eup %23782  ;;  %v28102_v26 = vmul.f32 %v23781_v49, %v23779_v28  ;;  %23802 = vpow2.f32 %v19233_v25  ;;  %v19240_v25 = vmul.f32 -1.442695, %v12070_v2 }
 0xa39   :  { %v23785_v9 = vpop.eup %23784  ;;  %v28105_v19 = vmul.f32 %v23783_v4, %v23771_v11  ;;  %23804 = vpow2.f32 %v19234_v45  ;;  %v12060_v45 = vadd.f32 %v28056_v59, %v30983_v3 }
 0xa3a   :  { %v23787_v55 = vpop.eup %23786  ;;  %v28108_v17 = vmul.f32 %v23785_v9, %v23773_v6  ;;  %23806 = vpow2.f32 %v19235_v61  ;;  %v19241_v6 = vmul.f32 -1.442695, %v12044_v37  ;;  %v19243_v61 = vmul.f32 -1.442695, %v12052_v12 }
 0xa3b   :  { %v23789_v49 = vpop.eup %23788  ;;  %v28111_v28 = vmul.f32 %v23787_v55, %v23775_v50  ;;  %23808 = vpow2.f32 %v19236_v39  ;;  %v19245_v34 = vmul.f32 -1.442695, %v12060_v45 }
 0xa3c   :  { %v23791_v11 = vpop.eup %23790  ;;  %v28114_v46 = vmul.f32 %v23789_v49, %v23777_v60  ;;  %23810 = vpow2.f32 %v19237_v0  ;;  %v12000_v0 = vrot.slane %v28056_v59, 1 }
 0xa3d   :  { %v23793_v42 = vpop.eup %23792  ;;  %23812 = vpow2.f32 %v19238_v31  ;;  %v12004_v31 = vrot.slane %v28056_v59, 2 }
 0xa3e   :  { %v23795_v54 = vpop.eup %23794  ;;  %23814 = vpow2.f32 %v19239_v58  ;;  %v12008_v58 = vrot.slane %v28056_v59, 3 }
 0xa3f   :  { %v23797_v50 = vpop.eup %23796  ;;  %23816 = vpow2.f32 %v19240_v25 }
 0xa40   :  { %v23799_v2 = vpop.eup %23798  ;;  %v28118_v39 = vmul.f32 %v23797_v50, %v23791_v11  ;;  %23818 = vpow2.f32 %v19241_v6  ;;  %v12064_v11 = vadd.f32 %v12000_v0, %v30848_v57 }
 0xa41   :  { %v23801_v60 = vpop.eup %23800  ;;  %v28120_v4 = vmul.f32 %v23799_v2, %v23793_v42  ;;  %23820 = vpow2.f32 %v19242_v47  ;;  %v12068_v42 = vadd.f32 %v12004_v31, %v30849_v29 }
 0xa42   :  { %v23803_v37 = vpop.eup %23802  ;;  %v28123_v9 = vmul.f32 %v23801_v60, %v23795_v54  ;;  %23822 = vpow2.f32 %v19243_v61  ;;  %v31118_v61 = vld [vmem:[#allocation155_spill] sm:$0xff]  ;;  %v19246_v60 = vmul.f32 -1.442695, %v12064_v11  ;;  %v12234_v11 = vrot.slane %v27792_v41, 7 }
 0xa43   :  { %v23805_v62 = vpop.eup %23804  ;;  %v12145_v55 = vadd.f32 1.0, %v23803_v37  ;;  %23824 = vpow2.f32 %v19244_v36  ;;  %v12072_v50 = vadd.f32 %v12008_v58, %v31118_v61  ;;  %v19247_v0 = vmul.f32 -1.442695, %v12068_v42 }
 0xa44   :  { %v23807_v12 = vpop.eup %23806  ;;  %v12146_v49 = vadd.f32 1.0, %v23805_v62  ;;  %23826 = vpow2.f32 %v19245_v34 }
 0xa45   :  { %v23809_v25 = vpop.eup %23808  ;;  %v12147_v8 = vadd.f32 1.0, %v23807_v12  ;;  %23828 = vrcp.f32 %v12145_v55  ;;  %v19248_v12 = vmul.f32 -1.442695, %v12072_v50 }
 0xa46   :  { %v23811_v45 = vpop.eup %23810  ;;  %v12148_v6 = vadd.f32 1.0, %v23809_v25  ;;  %23830 = vrcp.f32 %v12146_v49 }
 0xa47   :  { %v23813_v47 = vpop.eup %23812  ;;  %v12149_v54 = vadd.f32 1.0, %v23811_v45  ;;  %23832 = vrcp.f32 %v12147_v8  ;;  %v12233_v45 = vrot.slane %v27788_v22, 7 }
 0xa48   :  { %v23815_v59 = vpop.eup %23814  ;;  %v12150_v36 = vadd.f32 1.0, %v23813_v47  ;;  %23834 = vrcp.f32 %v12148_v6 }
 0xa49   :  { %v23817_v2 = vpop.eup %23816  ;;  %v12151_v34 = vadd.f32 1.0, %v23815_v59  ;;  %23836 = vrcp.f32 %v12149_v54  ;;  %v12235_v59 = vrot.slane %v27795_v18, 7  ;;  %v12239_v18 = vrot.slane %v27812_v48, 7 }
 0xa4a   :  { %v23819_v37 = vpop.eup %23818  ;;  %v12152_v62 = vadd.f32 1.0, %v23817_v2  ;;  %23838 = vrcp.f32 %v12150_v36  ;;  %v12236_v2 = vrot.slane %v27800_v38, 7 }
 0xa4b   :  { %v23821_v55 = vpop.eup %23820  ;;  %23840 = vrcp.f32 %v12151_v34  ;;  %v12201_v49 = vadd.f32 1.0, %v23819_v37  ;;  %v12237_v34 = vrot.slane %v27804_v15, 7  ;;  %v12238_v37 = vrot.slane %v27808_v21, 7 }
 0xa4c   :  { %v23823_v31 = vpop.eup %23822  ;;  %23842 = vrcp.f32 %v12152_v62  ;;  %v12202_v58 = vadd.f32 1.0, %v23821_v55  ;;  %v12240_v15 = vrot.slane %v27815_v40, 7 }
 0xa4d   :  { %v23825_v25 = vpop.eup %23824  ;;  %23844 = vpow2.f32 %v19246_v60  ;;  %v12203_v6 = vadd.f32 1.0, %v23823_v31 }
 0xa4e   :  { %v23827_v8 = vpop.eup %23826  ;;  %23846 = vpow2.f32 %v19247_v0  ;;  %v12204_v54 = vadd.f32 1.0, %v23825_v25 }
 0xa4f   :  { %v23829_v47 = vpop.eup %23828  ;;  %23848 = vpow2.f32 %v19248_v12  ;;  %v12205_v48 = vadd.f32 1.0, %v23827_v8 }
 0xa50   :  { %v23831_v42 = vpop.eup %23830  ;;  %v12249_v50 = vmul.f32 %v23829_v47, %v12233_v45  ;;  %23850 = vrcp.f32 %v12201_v49 }
 0xa51   :  { %v23833_v36 = vpop.eup %23832  ;;  %v12250_v60 = vmul.f32 %v23831_v42, %v12234_v11  ;;  %23852 = vrcp.f32 %v12202_v58 }
 0xa52   :  { %v23835_v22 = vpop.eup %23834  ;;  %v12251_v62 = vmul.f32 %v23833_v36, %v12235_v59  ;;  %v28137_v41 = vadd.f32 %v28105_v19, %v12249_v50  ;;  %23854 = vrcp.f32 %v12203_v6 }
 0xa53   :  { %v23837_v0 = vpop.eup %23836  ;;  %v12252_v55 = vmul.f32 %v23835_v22, %v12236_v2  ;;  %v28141_v12 = vadd.f32 %v28108_v17, %v12250_v60  ;;  %23856 = vrcp.f32 %v12204_v54 }
 0xa54   :  { %v23839_v38 = vpop.eup %23838  ;;  %v12253_v31 = vmul.f32 %v23837_v0, %v12237_v34  ;;  %v28145_v49 = vadd.f32 %v28111_v28, %v12251_v62  ;;  %23858 = vtanh.f32 %v28137_v41 }
 0xa55   :  { %v23841_v21 = vpop.eup %23840  ;;  %v12254_v19 = vmul.f32 %v23839_v38, %v12238_v37  ;;  %v28149_v25 = vadd.f32 %v28114_v46, %v12252_v55  ;;  %23860 = vtanh.f32 %v28141_v12 }
 0xa56   :  { %v23843_v17 = vpop.eup %23842  ;;  %v12255_v58 = vmul.f32 %v23841_v21, %v12239_v18  ;;  %v28153_v45 = vadd.f32 %v28102_v26, %v12253_v31  ;;  %23862 = vtanh.f32 %v28145_v49 }
 0xa57   :  { %v23845_v40 = vpop.eup %23844  ;;  %v28157_v28 = vadd.f32 %v28118_v39, %v12254_v19  ;;  %23864 = vtanh.f32 %v28149_v25  ;;  %v12256_v6 = vmul.f32 %v23843_v17, %v12240_v15 }
 0xa58   :  { %v23847_v47 = vpop.eup %23846  ;;  %23866 = vtanh.f32 %v28153_v45  ;;  %v12206_v46 = vadd.f32 1.0, %v23845_v40  ;;  %v28162_v8 = vadd.f32 %v28120_v4, %v12255_v58 }
 0xa59   :  { %v23849_v11 = vpop.eup %23848  ;;  %v12207_v54 = vadd.f32 1.0, %v23847_v47  ;;  %23868 = vrcp.f32 %v12205_v48  ;;  %v28165_v26 = vadd.f32 %v28123_v9, %v12256_v6 }
 0xa5a   :  { %v23851_v42 = vpop.eup %23850  ;;  %v12208_v59 = vadd.f32 1.0, %v23849_v11  ;;  %23870 = vrcp.f32 %v12206_v46 }
 0xa5b   :  { %v23853_v39 = vpop.eup %23852  ;;  %23872 = vrcp.f32 %v12207_v54 }
 0xa5c   :  { %v23855_v50 = vpop.eup %23854  ;;  %23874 = vrcp.f32 %v12208_v59 }
 0xa5d   :  { %v23857_v36 = vpop.eup %23856  ;;  %23876 = vtanh.f32 %v28157_v28 }
 0xa5e   :  { %v23859_v2 = vpop.eup %23858  ;;  %23878 = vtanh.f32 %v28162_v8 }
 0xa5f   :  { %v23861_v4 = vpop.eup %23860  ;;  %23880 = vtanh.f32 %v28165_v26  ;;  %v12281_v34 = vmul.f32 %v23859_v2, %v23851_v42 }
 0xa60   :  { %v23863_v60 = vpop.eup %23862  ;;  %v12282_v9 = vmul.f32 %v23861_v4, %v23853_v39 }
 0xa61   :  { %v23865_v22 = vpop.eup %23864  ;;  %v12283_v37 = vmul.f32 %v23863_v60, %v23855_v50  ;;  %v12297_v62 = vrot.slane %v12281_v34, 4 }
 0xa62   :  { %v23867_v0 = vpop.eup %23866  ;;  %v12284_v18 = vmul.f32 %v23865_v22, %v23857_v36  ;;  %v12298_v55 = vrot.slane %v12282_v9, 3 }
 0xa63   :  { %v23869_v38 = vpop.eup %23868  ;;  %v12300_v15 = vrot.slane %v12283_v37, 2 }
 0xa64   :  { %v23871_v31 = vpop.eup %23870  ;;  %v12285_v21 = vmul.f32 %v23869_v38, %v23867_v0  ;;  %v12299_v19 = vsel %vm4111_vm1, %v12298_v55, %v12297_v62  ;;  %v12302_v48 = vrot.slane %v12284_v18, 1  ;;  %v31119_v18 = vld [vmem:[#allocation99_spill] sm:$0xff]  ;;  %v31120_v55 = vld [vmem:[#allocation41_spill] sm:$0xff]  ;;  %v31121_v38 = vld [vmem:[#allocation102_spill] sm:$0xff] }
 0xa65   :  { %v23873_v17 = vpop.eup %23872  ;;  %v12301_v58 = vsel %vm4114_vm2, %v12300_v15, %v12299_v19  ;;  %v31122_v15 = vld [vmem:[#allocation84_spill] sm:$0xff]  ;;  %v31125_v19 = vld [vmem:[#allocation107_spill] sm:$0xff] }
 0xa66   :  { %v23875_v40 = vpop.eup %23874  ;;  %v12303_v6 = vsel %vm4117_vm3, %v12302_v48, %v12301_v58  ;;  %v31126_v48 = vld [vmem:[#allocation85_spill] sm:$0xff]  ;;  %v31128_v58 = vld [vmem:[#allocation27_spill] sm:$0xff] }
 0xa67   :  { %v23877_v47 = vpop.eup %23876  ;;  %v12304_v46 = vsel %vm4120_vm4, %v12285_v21, %v12303_v6  ;;  %v31124_v21 = vld [vmem:[#allocation26_spill] sm:$0xff] }
 0xa68   :  { %v23879_v11 = vpop.eup %23878  ;;  %v12286_v54 = vmul.f32 %v23877_v47, %v23871_v31  ;;  %v31123_v31 = vld [vmem:[#allocation105_spill] sm:$0xff]  ;;  %v31130_v6 = vld [vmem:[#allocation86_spill] sm:$0xff] }
 0xa69   :  { %v23881_v42 = vpop.eup %23880  ;;  %v12287_v59 = vmul.f32 %v23879_v11, %v23873_v17  ;;  %v31127_v17 = vld [vmem:[#allocation109_spill] sm:$0xff]  ;;  %v31133_v11 = vld [vmem:[#allocation116_spill] sm:$0xff] }
 0xa6a   :  { %v12288_v39 = vmul.f32 %v23881_v42, %v23875_v40  ;;  %v12305_v50 = vrot.slane %v12286_v54, 7  ;;  %v31129_v40 = vld [vmem:[#allocation112_spill] sm:$0xff]  ;;  %v31131_v47 = vld [vmem:[#allocation113_spill] sm:$0xff]  ;;  %v31134_v54 = vld [vmem:[#allocation87_spill] sm:$0xff] }
 0xa6b   :  { %v12307_v36 = vrot.slane %v12287_v59, 6  ;;  %v31135_v42 = vld [vmem:[#allocation117_spill] sm:$0xff]  ;;  %v31136_v59 = vld [vmem:[#allocation36_spill] sm:$0xff] }
 0xa6c   :  { %v12306_v2 = vsel %vm4123_vm5, %v12305_v50, %v12304_v46  ;;  %v12309_v4 = vrot.slane %v12288_v39, 5  ;;  %v31132_v46 = vld [vmem:[#allocation32_spill] sm:$0xff]  ;;  %v31137_v39 = vld [vmem:[#allocation118_spill] sm:$0xff] }
 0xa6d   :  { %v12308_v34 = vsel %vm4126_vm6, %v12307_v36, %v12306_v2  ;;  %v31138_v50 = vld [vmem:[#allocation88_spill] sm:$0xff]  ;;  %v31139_v36 = vld [vmem:[#allocation119_spill] sm:$0xff] }
 0xa6e   :  { %v12310_v60 = vsel %vm4129_vm7, %v12309_v4, %v12308_v34  ;;  %v31140_v2 = vld [vmem:[#allocation39_spill] sm:$0xff]  ;;  %v31141_v4 = vld [vmem:[#allocation120_spill] sm:$0xff]  ;;  %v31142_v34 = vld [vmem:[#allocation89_spill] sm:$0xff] }
 0xa6f   :  { %v28177_v9 = vand.u32 4294901760, %v12310_v60 }
 0xa71   :  { %v28180_v22 = vsub.f32 %v12310_v60, %v28177_v9  ;;  %v31143_v60 = vld [vmem:[#allocation121_spill] sm:$0xff] }
 0xa73   :  { %v28183_v37 = vand.u32 4294901760, %v28180_v22 }
 0xa75   :  { %v12412_v62 = vsub.f32 %v28180_v22, %v28183_v37 }
 0xa77   :  { %v12413_v0 = vand.u32 4294901760, %v12412_v62  ;;  %v31144_v62 = vld [vmem:[#allocation42_spill] sm:$0xff] }
 0xa79   :  { %12414 = vmatmul.mubr.f32.vlgmr.msra.gmra.mrb[26].mxu0 %v12413_v0  ;;  %13269 = vmatmul.mubr.f32.vlgmr.msra.gmra.mrb[42].mxu1 %v12413_v0  ;;  %v31145_v0 = vld [vmem:[#allocation122_spill] sm:$0xff] }
 0xa7a   :  { %21637 = vmatpush1.bf16.msra.mxu0 %v30851_v23  ;;  %21829 = vmatpush1.bf16.msra.mxu1 %v30852_v44  ;;  %v31214_v44 = vld [vmem:[#allocation72_spill] sm:$0xff] }
 0xa7b   :  { %21639 = vmatprep.subr.bf16.mxu0 %v30853_v1  ;;  %21831 = vmatprep.subr.bf16.mxu1 %v31119_v18  ;;  %v31207_v18 = vld [vmem:[#allocation143_spill] sm:$0xff]  ;;  %v31213_v1 = vld [vmem:[#allocation146_spill] sm:$0xff] }
 0xa7c   :  { %12644 = vmatprep.mubr.f32.mxu0 %v30575_v30  ;;  %13499 = vmatprep.mubr.f32.mxu1 %v30575_v30 }
 0xa7e   :  { %21641 = vmatpush1.bf16.msra.mxu0 %v31120_v55  ;;  %21833 = vmatpush1.bf16.msra.mxu1 %v31121_v38  ;;  %v31203_v38 = vld [vmem:[#allocation141_spill] sm:$0xff]  ;;  %v31204_v55 = vld [vmem:[#allocation63_spill] sm:$0xff] }
 0xa7f   :  { %21643 = vmatprep.subr.bf16.mxu0 %v31122_v15  ;;  %21835 = vmatprep.subr.bf16.mxu1 %v31123_v31  ;;  %v31201_v31 = vld [vmem:[#allocation140_spill] sm:$0xff]  ;;  %v31202_v15 = vld [vmem:[#allocation61_spill] sm:$0xff] }
 0xa82   :  { %21645 = vmatpush1.bf16.msra.mxu0 %v31124_v21  ;;  %21837 = vmatpush1.bf16.msra.mxu1 %v31125_v19  ;;  %v31199_v19 = vld [vmem:[#allocation139_spill] sm:$0xff]  ;;  %v31200_v21 = vld [vmem:[#allocation60_spill] sm:$0xff] }
 0xa83   :  { %21647 = vmatprep.subr.bf16.mxu0 %v31126_v48  ;;  %21839 = vmatprep.subr.bf16.mxu1 %v31127_v17  ;;  %v31197_v17 = vld [vmem:[#allocation37_spill] sm:$0xff]  ;;  %v31198_v48 = vld [vmem:[#allocation59_spill] sm:$0xff] }
 0xa86   :  { %21649 = vmatpush1.bf16.msra.mxu0 %v31128_v58  ;;  %21841 = vmatpush1.bf16.msra.mxu1 %v31129_v40  ;;  %v31195_v40 = vld [vmem:[#allocation34_spill] sm:$0xff]  ;;  %v31196_v58 = vld [vmem:[#allocation75_spill] sm:$0xff] }
 0xa87   :  { %21651 = vmatprep.subr.bf16.mxu0 %v31130_v6  ;;  %21843 = vmatprep.subr.bf16.mxu1 %v31131_v47  ;;  %v31193_v47 = vld [vmem:[#allocation29_spill] sm:$0xff] }
 0xa88   :  { %v31194_v6 = vld [vmem:[#allocation73_spill] sm:$0xff] }
 0xa8a   :  { %21653 = vmatpush1.bf16.msra.mxu0 %v31132_v46  ;;  %21845 = vmatpush1.bf16.msra.mxu1 %v31133_v11  ;;  %v31191_v11 = vld [vmem:[#allocation24_spill] sm:$0xff]  ;;  %v31192_v46 = vld [vmem:[#allocation71_spill] sm:$0xff] }
 0xa8b   :  { %21655 = vmatprep.subr.bf16.mxu0 %v31134_v54  ;;  %21847 = vmatprep.subr.bf16.mxu1 %v31135_v42  ;;  %v31146_v42 = vld [vmem:[#allocation90_spill] sm:$0xff]  ;;  %v31190_v54 = vld [vmem:[#allocation69_spill] sm:$0xff] }
 0xa8e   :  { %21657 = vmatpush1.bf16.msra.mxu0 %v31136_v59  ;;  %21849 = vmatpush1.bf16.msra.mxu1 %v31137_v39  ;;  %v31147_v59 = vld [vmem:[#allocation123_spill] sm:$0xff]  ;;  %v31162_v39 = vld [vmem:[#allocation16_spill] sm:$0xff] }
 0xa8f   :  { %21659 = vmatprep.subr.bf16.mxu0 %v31138_v50  ;;  %21851 = vmatprep.subr.bf16.mxu1 %v31139_v36  ;;  %v31148_v36 = vld [vmem:[#allocation44_spill] sm:$0xff]  ;;  %v31161_v50 = vld [vmem:[#allocation130_spill] sm:$0xff] }
 0xa92   :  { %21661 = vmatpush1.bf16.msra.mxu0 %v31140_v2  ;;  %21853 = vmatpush1.bf16.msra.mxu1 %v31141_v4  ;;  %v31149_v2 = vld [vmem:[#allocation124_spill] sm:$0xff]  ;;  %v31150_v4 = vld [vmem:[#allocation91_spill] sm:$0xff] }
 0xa93   :  { %21663 = vmatprep.subr.bf16.mxu0 %v31142_v34  ;;  %21855 = vmatprep.subr.bf16.mxu1 %v31143_v60  ;;  %v31151_v34 = vld [vmem:[#allocation125_spill] sm:$0xff]  ;;  %v31156_v60 = vld [vmem:[#allocation15_spill] sm:$0xff] }
 0xa96   :  { %21665 = vmatpush1.bf16.msra.mxu0 %v31144_v62  ;;  %21857 = vmatpush1.bf16.msra.mxu1 %v31145_v0  ;;  %v31152_v0 = vld [vmem:[#allocation45_spill] sm:$0xff]  ;;  %v31155_v62 = vld [vmem:[#allocation127_spill] sm:$0xff] }
 0xa97   :  { %21667 = vmatprep.subr.bf16.mxu0 %v31146_v42  ;;  %21859 = vmatprep.subr.bf16.mxu1 %v31147_v59  ;;  %v31153_v42 = vld [vmem:[#allocation126_spill] sm:$0xff]  ;;  %v31154_v59 = vld [vmem:[#allocation92_spill] sm:$0xff] }
 0xa99   :  { %12646 = vmatmul.mubr.f32.vlgmr.msra.gmra.mrb[26].mxu0 %v28177_v9  ;;  %13501 = vmatmul.mubr.f32.vlgmr.msra.gmra.mrb[42].mxu1 %v28177_v9 }
 0xa9a   :  { %21669 = vmatpush1.bf16.msra.mxu0 %v31148_v36  ;;  %21861 = vmatpush1.bf16.msra.mxu1 %v31149_v2  ;;  %v31157_v36 = vld [vmem:[#allocation128_spill] sm:$0xff]  ;;  %v31158_v2 = vld [vmem:[#allocation93_spill] sm:$0xff] }
 0xa9b   :  { %21671 = vmatprep.subr.bf16.mxu0 %v31150_v4  ;;  %21863 = vmatprep.subr.bf16.mxu1 %v31151_v34  ;;  %v31159_v4 = vld [vmem:[#allocation129_spill] sm:$0xff]  ;;  %v31160_v34 = vld [vmem:[#allocation47_spill] sm:$0xff] }
 0xa9c   :  { %12780 = vmatprep.mubr.f32.mxu0 %v30575_v30  ;;  %13635 = vmatprep.mubr.f32.mxu1 %v30575_v30 }
 0xa9e   :  { %21673 = vmatpush1.bf16.msra.mxu0 %v31152_v0  ;;  %21865 = vmatpush1.bf16.msra.mxu1 %v31153_v42  ;;  %v31163_v0 = vld [vmem:[#allocation131_spill] sm:$0xff] }
 0xa9f   :  { %21675 = vmatprep.subr.bf16.mxu0 %v31154_v59  ;;  %21867 = vmatprep.subr.bf16.mxu1 %v31155_v62  ;;  %v31164_v42 = vld [vmem:[#allocation19_spill] sm:$0xff]  ;;  %v31165_v59 = vld [vmem:[#allocation132_spill] sm:$0xff]  ;;  %v31166_v62 = vld [vmem:[#allocation94_spill] sm:$0xff] }
 0xaa2   :  { %21677 = vmatpush1.bf16.msra.mxu0 %v31156_v60  ;;  %21869 = vmatpush1.bf16.msra.mxu1 %v31157_v36  ;;  %v31167_v60 = vld [vmem:[#allocation133_spill] sm:$0xff]  ;;  %v31168_v36 = vld [vmem:[#allocation23_spill] sm:$0xff] }
 0xaa3   :  { %21679 = vmatprep.subr.bf16.mxu0 %v31158_v2  ;;  %21871 = vmatprep.subr.bf16.mxu1 %v31159_v4  ;;  %v31169_v2 = vld [vmem:[#allocation134_spill] sm:$0xff]  ;;  %v31170_v4 = vld [vmem:[#allocation95_spill] sm:$0xff] }
 0xaa6   :  { %21681 = vmatpush1.bf16.msra.mxu0 %v31160_v34  ;;  %21873 = vmatpush1.bf16.msra.mxu1 %v31161_v50  ;;  %v31171_v34 = vld [vmem:[#allocation135_spill] sm:$0xff]  ;;  %v31172_v50 = vld [vmem:[#allocation28_spill] sm:$0xff] }
 0xaa7   :  { %21683 = vmatprep.subr.bf16.mxu0 %v31162_v39  ;;  %21875 = vmatprep.subr.bf16.mxu1 %v31163_v0  ;;  %v31173_v39 = vld [vmem:[#allocation136_spill] sm:$0xff] }
 0xaa8   :  { %v31174_v0 = vld [vmem:[#allocation96_spill] sm:$0xff] }
 0xaaa   :  { %21685 = vmatpush1.bf16.msra.mxu0 %v31164_v42  ;;  %21877 = vmatpush1.bf16.msra.mxu1 %v31165_v59  ;;  %v31175_v42 = vld [vmem:[#allocation137_spill] sm:$0xff]  ;;  %v31176_v59 = vld [vmem:[#allocation30_spill] sm:$0xff] }
 0xaab   :  { %21687 = vmatprep.subr.bf16.mxu0 %v31166_v62  ;;  %21879 = vmatprep.subr.bf16.mxu1 %v31167_v60  ;;  %v31177_v62 = vld [vmem:[#allocation138_spill] sm:$0xff]  ;;  %v31189_v60 = vld [vmem:[#allocation21_spill] sm:$0xff] }
 0xaae   :  { %21689 = vmatpush1.bf16.msra.mxu0 %v31168_v36  ;;  %21881 = vmatpush1.bf16.msra.mxu1 %v31169_v2  ;;  %v31187_v2 = vld [vmem:[#allocation64_spill] sm:$0xff] }
 0xaaf   :  { %21691 = vmatprep.subr.bf16.mxu0 %v31170_v4  ;;  %21883 = vmatprep.subr.bf16.mxu1 %v31171_v34  ;;  %v31185_v34 = vld [vmem:[#allocation20_spill] sm:$0xff]  ;;  %v31186_v4 = vld [vmem:[#allocation58_spill] sm:$0xff] }
 0xab0   :  { %v31188_v36 = vld [vmem:[#allocation68_spill] sm:$0xff] }
 0xab2   :  { %21693 = vmatpush1.bf16.msra.mxu0 %v31172_v50  ;;  %21885 = vmatpush1.bf16.msra.mxu1 %v31173_v39  ;;  %v31183_v39 = vld [vmem:[#allocation35_spill] sm:$0xff]  ;;  %v31184_v50 = vld [vmem:[#allocation57_spill] sm:$0xff] }
 0xab3   :  { %21695 = vmatprep.subr.bf16.mxu0 %v31174_v0  ;;  %21887 = vmatprep.subr.bf16.mxu1 %v31175_v42  ;;  %v31181_v42 = vld [vmem:[#allocation31_spill] sm:$0xff]  ;;  %v31182_v0 = vld [vmem:[#allocation56_spill] sm:$0xff] }
 0xab6   :  { %21697 = vmatpush1.bf16.msra.mxu0 %v31176_v59  ;;  %21889 = vmatpush1.bf16.msra.mxu1 %v31177_v62  ;;  %v31179_v62 = vld [vmem:[#allocation25_spill] sm:$0xff]  ;;  %v31180_v59 = vld [vmem:[#allocation55_spill] sm:$0xff] }
 0xab7   :  { %21699 = vmatprep.subr.bf16.mxu0 %v30634_v20  ;;  %21891 = vmatprep.subr.bf16.mxu1 %v30635_v33 }
 0xab9   :  { %12783 = vmatmul.mubr.f32.vlgmr.msra.gmra.mrb[26].mxu0 %v28180_v22  ;;  %13638 = vmatmul.mubr.f32.vlgmr.msra.gmra.mrb[42].mxu1 %v28180_v22  ;;  %v31178_v22 = vld [vmem:[#allocation54_spill] sm:$0xff] }
 0xaba   :  { %21701 = vmatpush1.bf16.msra.mxu0 %v30636_v10  ;;  %21893 = vmatpush1.bf16.msra.mxu1 %v30637_v56 }
 0xabb   :  { %21703 = vmatprep.subr.bf16.mxu0 %v30638_v5  ;;  %21895 = vmatprep.subr.bf16.mxu1 %v30639_v14 }
 0xabc   :  { %12885 = vmatprep.mubr.f32.mxu0 %v30575_v30  ;;  %13740 = vmatprep.mubr.f32.mxu1 %v30575_v30 }
 0xabe   :  { %21705 = vmatpush1.bf16.msra.mxu0 %v30640_v24  ;;  %21897 = vmatpush1.bf16.msra.mxu1 %v30641_v16 }
 0xabf   :  { %21707 = vmatprep.subr.bf16.mxu0 %v30642_v53  ;;  %21899 = vmatprep.subr.bf16.mxu1 %v30643_v51 }
 0xac2   :  { %21709 = vmatpush1.bf16.msra.mxu0 %v30644_v35  ;;  %21901 = vmatpush1.bf16.msra.mxu1 %v30645_v7 }
 0xac3   :  { %21711 = vmatprep.subr.bf16.mxu0 %v31178_v22  ;;  %21903 = vmatprep.subr.bf16.mxu1 %v31179_v62 }
 0xac6   :  { %21713 = vmatpush1.bf16.msra.mxu0 %v31180_v59  ;;  %21905 = vmatpush1.bf16.msra.mxu1 %v31181_v42 }
 0xac7   :  { %21715 = vmatprep.subr.bf16.mxu0 %v31182_v0  ;;  %21907 = vmatprep.subr.bf16.mxu1 %v31183_v39 }
 0xaca   :  { %21717 = vmatpush1.bf16.msra.mxu0 %v31184_v50  ;;  %21909 = vmatpush1.bf16.msra.mxu1 %v31185_v34 }
 0xacb   :  { %21719 = vmatprep.subr.bf16.mxu0 %v31186_v4  ;;  %21911 = vmatprep.subr.bf16.mxu1 %v31187_v2 }
 0xace   :  { %21721 = vmatpush1.bf16.msra.mxu0 %v31188_v36  ;;  %21913 = vmatpush1.bf16.msra.mxu1 %v31189_v60 }
 0xacf   :  { %21723 = vmatprep.subr.bf16.mxu0 %v31190_v54  ;;  %21915 = vmatprep.subr.bf16.mxu1 %v31191_v11 }
 0xad2   :  { %21725 = vmatpush1.bf16.msra.mxu0 %v31192_v46  ;;  %21917 = vmatpush1.bf16.msra.mxu1 %v31193_v47 }
 0xad3   :  { %21727 = vmatprep.subr.bf16.mxu0 %v31194_v6  ;;  %21919 = vmatprep.subr.bf16.mxu1 %v31195_v40 }
 0xad6   :  { %21729 = vmatpush1.bf16.msra.mxu0 %v31196_v58  ;;  %21921 = vmatpush1.bf16.msra.mxu1 %v31197_v17 }
 0xad7   :  { %21731 = vmatprep.subr.bf16.mxu0 %v31198_v48  ;;  %21923 = vmatprep.subr.bf16.mxu1 %v31199_v19  ;;  %v31205_v48 = vld [vmem:[#allocation142_spill] sm:$0xff]  ;;  %v31206_v19 = vld [vmem:[#allocation65_spill] sm:$0xff] }
 0xad9   :  { %12889 = vmatmul.mubr.f32.vlgmr.msra.gmra.mrb[26].mxu0 %v28183_v37  ;;  %13744 = vmatmul.mubr.f32.vlgmr.msra.gmra.mrb[42].mxu1 %v28183_v37  ;;  %v31208_v37 = vld [vmem:[#allocation66_spill] sm:$0xff] }
 0xada   :  { %21733 = vmatpush1.bf16.msra.mxu0 %v31200_v21  ;;  %21925 = vmatpush1.bf16.msra.mxu1 %v31201_v31  ;;  %v31209_v21 = vld [vmem:[#allocation144_spill] sm:$0xff]  ;;  %v31210_v31 = vld [vmem:[#allocation67_spill] sm:$0xff] }
 0xadb   :  { %21735 = vmatprep.subr.bf16.mxu0 %v31202_v15  ;;  %21927 = vmatprep.subr.bf16.mxu1 %v31203_v38  ;;  %v31211_v15 = vld [vmem:[#allocation145_spill] sm:$0xff]  ;;  %v31212_v38 = vld [vmem:[#allocation70_spill] sm:$0xff] }
 0xadc   :  { %13055 = vmatprep.mubr.f32.mxu0 %v30575_v30  ;;  %13910 = vmatprep.mubr.f32.mxu1 %v30575_v30 }
 0xade   :  { %21737 = vmatpush1.bf16.msra.mxu0 %v31204_v55  ;;  %21929 = vmatpush1.bf16.msra.mxu1 %v31205_v48  ;;  %v31215_v55 = vld [vmem:[#allocation147_spill] sm:$0xff]  ;;  %v31216_v48 = vld [vmem:[#allocation74_spill] sm:$0xff] }
 0xadf   :  { %21739 = vmatprep.subr.bf16.mxu0 %v31206_v19  ;;  %21931 = vmatprep.subr.bf16.mxu1 %v31207_v18  ;;  %v31217_v19 = vld [vmem:[#allocation148_spill] sm:$0xff] }
 0xae0   :  { %v31218_v18 = vld [vmem:[#allocation76_spill] sm:$0xff] }
 0xae2   :  { %21741 = vmatpush1.bf16.msra.mxu0 %v31208_v37  ;;  %21933 = vmatpush1.bf16.msra.mxu1 %v31209_v21  ;;  %v31219_v37 = vld [vmem:[#allocation149_spill] sm:$0xff] }
 0xae3   :  { %21743 = vmatprep.subr.bf16.mxu0 %v31210_v31  ;;  %21935 = vmatprep.subr.bf16.mxu1 %v31211_v15  ;;  %v31220_v21 = vld [vmem:[#allocation77_spill] sm:$0xff]  ;;  %v31221_v31 = vld [vmem:[#allocation150_spill] sm:$0xff] }
 0xae4   :  { %v31222_v15 = vld [vmem:[#allocation78_spill] sm:$0xff] }
 0xae6   :  { %21745 = vmatpush1.bf16.msra.mxu0 %v31212_v38  ;;  %21937 = vmatpush1.bf16.msra.mxu1 %v31213_v1  ;;  %v31223_v38 = vld [vmem:[#allocation151_spill] sm:$0xff] }
 0xae7   :  { %21747 = vmatprep.subr.bf16.mxu0 %v31214_v44  ;;  %21939 = vmatprep.subr.bf16.mxu1 %v31215_v55  ;;  %v31224_v1 = vld [vmem:[#allocation79_spill] sm:$0xff]  ;;  %v31225_v44 = vld [vmem:[#allocation152_spill] sm:$0xff]  ;;  %v31226_v55 = vld [vmem:[#allocation81_spill] sm:$0xff] }
 0xaea   :  { %21749 = vmatpush1.bf16.msra.mxu0 %v31216_v48  ;;  %21941 = vmatpush1.bf16.msra.mxu1 %v31217_v19  ;;  %v31227_v48 = vld [vmem:[#allocation153_spill] sm:$0xff]  ;;  %v31228_v19 = vld [vmem:[#allocation82_spill] sm:$0xff] }
 0xaeb   :  { %21751 = vmatprep.subr.bf16.mxu0 %v31218_v18  ;;  %21943 = vmatprep.subr.bf16.mxu1 %v31219_v37  ;;  %v31229_v18 = vld [vmem:[#allocation154_spill] sm:$0xff] }
 0xaee   :  { %21753 = vmatpush1.bf16.msra.mxu0 %v31220_v21  ;;  %21945 = vmatpush1.bf16.msra.mxu1 %v31221_v31 }
 0xaef   :  { %21755 = vmatprep.subr.bf16.mxu0 %v31222_v15  ;;  %21947 = vmatprep.subr.bf16.mxu1 %v31223_v38 }
 0xaf2   :  { %21757 = vmatpush1.bf16.msra.mxu0 %v31224_v1  ;;  %21949 = vmatpush1.bf16.msra.mxu1 %v31225_v44 }
 0xaf3   :  { %21759 = vmatprep.subr.bf16.mxu0 %v31226_v55  ;;  %21951 = vmatprep.subr.bf16.mxu1 %v31227_v48 }
 0xaf6   :  { %21761 = vmatpush1.bf16.msra.mxu0 %v31228_v19  ;;  %21953 = vmatpush1.bf16.msra.mxu1 %v31229_v18  ;;  %v31231_v18 = vld [vmem:[#allocation40_spill] sm:$0xff] }
 0xaf7   :  { %21763 = vmatprep.subr.bf16.mxu0 %v30634_v20  ;;  %21955 = vmatprep.subr.bf16.mxu1 %v30635_v33 }
 0xaf9   :  { %13057 = vmatmul.mubr.f32.vlgmr.msra.gmra.mrb[26].mxu0 %v28177_v9  ;;  %13912 = vmatmul.mubr.f32.vlgmr.msra.gmra.mrb[42].mxu1 %v28177_v9 }
 0xafa   :  { %21765 = vmatpush1.bf16.msra.mxu0 %v30636_v10  ;;  %21957 = vmatpush1.bf16.msra.mxu1 %v30637_v56 }
 0xafb   :  { %21767 = vmatprep.subr.bf16.mxu0 %v30638_v5  ;;  %21959 = vmatprep.subr.bf16.mxu1 %v30639_v14 }
 0xafc   :  { %13159 = vmatprep.mubr.f32.mxu0 %v30575_v30  ;;  %14014 = vmatprep.mubr.f32.mxu1 %v30575_v30 }
 0xafe   :  { %21769 = vmatpush1.bf16.msra.mxu0 %v30640_v24  ;;  %21961 = vmatpush1.bf16.msra.mxu1 %v30641_v16 }
 0xaff   :  { %21771 = vmatprep.subr.bf16.mxu0 %v30642_v53  ;;  %21963 = vmatprep.subr.bf16.mxu1 %v30643_v51 }
 0xb02   :  { %21773 = vmatpush1.bf16.msra.mxu0 %v30644_v35  ;;  %21965 = vmatpush1.bf16.msra.mxu1 %v30645_v7 }
 0xb03   :  { %21775 = vmatprep.subr.bf16.mxu0 %v31178_v22  ;;  %21967 = vmatprep.subr.bf16.mxu1 %v31179_v62 }
 0xb06   :  { %21777 = vmatpush1.bf16.msra.mxu0 %v31180_v59  ;;  %21969 = vmatpush1.bf16.msra.mxu1 %v31181_v42 }
 0xb07   :  { %21779 = vmatprep.subr.bf16.mxu0 %v31182_v0  ;;  %21971 = vmatprep.subr.bf16.mxu1 %v31183_v39 }
 0xb0a   :  { %21781 = vmatpush1.bf16.msra.mxu0 %v31184_v50  ;;  %21973 = vmatpush1.bf16.msra.mxu1 %v31185_v34 }
 0xb0b   :  { %21783 = vmatprep.subr.bf16.mxu0 %v31186_v4  ;;  %21975 = vmatprep.subr.bf16.mxu1 %v31187_v2 }
 0xb0e   :  { %21785 = vmatpush1.bf16.msra.mxu0 %v31188_v36  ;;  %21977 = vmatpush1.bf16.msra.mxu1 %v31189_v60 }
 0xb0f   :  { %21787 = vmatprep.subr.bf16.mxu0 %v31190_v54  ;;  %21979 = vmatprep.subr.bf16.mxu1 %v31191_v11 }
 0xb12   :  { %21789 = vmatpush1.bf16.msra.mxu0 %v31192_v46  ;;  %21981 = vmatpush1.bf16.msra.mxu1 %v31193_v47 }
 0xb13   :  { %21791 = vmatprep.subr.bf16.mxu0 %v31194_v6  ;;  %21983 = vmatprep.subr.bf16.mxu1 %v31195_v40 }
 0xb16   :  { %21793 = vmatpush1.bf16.msra.mxu0 %v31196_v58  ;;  %21985 = vmatpush1.bf16.msra.mxu1 %v31197_v17 }
 0xb17   :  { %21987 = vmatprep.subr.bf16.mxu0 %v30634_v20  ;;  %22179 = vmatprep.subr.bf16.mxu1 %v30635_v33 }
 0xb19   :  { %13161 = vmatmul.mubr.f32.vlgmr.msra.gmra.mrb[26].mxu0 %v28177_v9  ;;  %14016 = vmatmul.mubr.f32.vlgmr.msra.gmra.mrb[42].mxu1 %v28177_v9  ;;  %v31230_v9 = vld [vmem:[#allocation80_spill] sm:$0xff] }
 0xb1a   :  { %21989 = vmatpush1.bf16.msra.mxu0 %v30636_v10  ;;  %22181 = vmatpush1.bf16.msra.mxu1 %v30637_v56 }
 0xb1b   :  { %21991 = vmatprep.subr.bf16.mxu0 %v30638_v5  ;;  %22183 = vmatprep.subr.bf16.mxu1 %v30639_v14 }
 0xb1c   :  { %14453 = vmatprep.mubr.f32.mxu0 %v30575_v30  ;;  %15308 = vmatprep.mubr.f32.mxu1 %v30575_v30 }
 0xb1e   :  { %21993 = vmatpush1.bf16.msra.mxu0 %v30640_v24  ;;  %22185 = vmatpush1.bf16.msra.mxu1 %v30641_v16 }
 0xb1f   :  { %21995 = vmatprep.subr.bf16.mxu0 %v30642_v53  ;;  %22187 = vmatprep.subr.bf16.mxu1 %v30643_v51 }
 0xb22   :  { %21997 = vmatpush1.bf16.msra.mxu0 %v30644_v35  ;;  %22189 = vmatpush1.bf16.msra.mxu1 %v30645_v7 }
 0xb23   :  { %21999 = vmatprep.subr.bf16.mxu0 %v31178_v22  ;;  %22191 = vmatprep.subr.bf16.mxu1 %v31179_v62 }
 0xb26   :  { %22001 = vmatpush1.bf16.msra.mxu0 %v31180_v59  ;;  %22193 = vmatpush1.bf16.msra.mxu1 %v31181_v42 }
 0xb27   :  { %22003 = vmatprep.subr.bf16.mxu0 %v31182_v0  ;;  %22195 = vmatprep.subr.bf16.mxu1 %v31183_v39 }
 0xb2a   :  { %22005 = vmatpush1.bf16.msra.mxu0 %v31184_v50  ;;  %22197 = vmatpush1.bf16.msra.mxu1 %v31185_v34  ;;  %v31238_v50 = vld [vmem:[#allocation157_spill] sm:$0xff] }
 0xb2b   :  { %22007 = vmatprep.subr.bf16.mxu0 %v31186_v4  ;;  %22199 = vmatprep.subr.bf16.mxu1 %v31187_v2  ;;  %v31237_v2 = vld [vmem:[#allocation156_spill] sm:$0xff] }
 0xb2e   :  { %22009 = vmatpush1.bf16.msra.mxu0 %v31188_v36  ;;  %22201 = vmatpush1.bf16.msra.mxu1 %v31189_v60  ;;  %v31236_v60 = vld [vmem:[#allocation110_spill] sm:$0xff] }
 0xb2f   :  { %22011 = vmatprep.subr.bf16.mxu0 %v31190_v54  ;;  %22203 = vmatprep.subr.bf16.mxu1 %v31191_v11  ;;  %v31235_v11 = vld [vmem:[#allocation106_spill] sm:$0xff] }
 0xb32   :  { %22013 = vmatpush1.bf16.msra.mxu0 %v31192_v46  ;;  %22205 = vmatpush1.bf16.msra.mxu1 %v31193_v47  ;;  %v31234_v47 = vld [vmem:[#allocation103_spill] sm:$0xff] }
 0xb33   :  { %22015 = vmatprep.subr.bf16.mxu0 %v31194_v6  ;;  %22207 = vmatprep.subr.bf16.mxu1 %v31195_v40  ;;  %v31232_v40 = vld [vmem:[#allocation97_spill] sm:$0xff]  ;;  %v31233_v6 = vld [vmem:[#allocation100_spill] sm:$0xff] }
 0xb36   :  { %22017 = vmatpush1.bf16.msra.mxu0 %v31196_v58  ;;  %22209 = vmatpush1.bf16.msra.mxu1 %v31197_v17 }
 0xb37   :  { %22019 = vmatprep.subr.bf16.mxu0 %v31230_v9  ;;  %22211 = vmatprep.subr.bf16.mxu1 %v31231_v18 }
 0xbec   :  { %v13162_v19 = vpop.f32.mrb[26].mxu0  ;;  %v28401_v48 = vpop.f32.mrb[42].mxu1 }
 0xbed   :  { %v14026_v55 = vrot.slane %v13162_v19, 3  ;;  %v14030_v44 = vrot.slane %v13162_v19, 4  ;;  %v14034_v1 = vrot.slane %v13162_v19, 5  ;;  %v14038_v38 = vrot.slane %v13162_v19, 6  ;;  %v28403_v15 = vpop.f32.mrb[27].mxu0  ;;  %v28405_v31 = vpop.f32.mrb[43].mxu1 }
 0xbee   :  { %v14042_v21 = vrot.slane %v13162_v19, 7  ;;  %v14046_v37 = vrot.slane %v13162_v19, 1  ;;  %v14050_v58 = vrot.slane %v13162_v19, 2  ;;  %v14106_v17 = vadd.f32 %v13162_v19, %v31100_v13 }
 0xbef   :  { %v14086_v9 = vadd.f32 %v14026_v55, %v31232_v40  ;;  %v14090_v18 = vadd.f32 %v14030_v44, %v31233_v6  ;;  %v14094_v46 = vadd.f32 %v14034_v1, %v31234_v47  ;;  %v14098_v54 = vadd.f32 %v14038_v38, %v31235_v11 }
 0xbf0   :  { %v14102_v36 = vadd.f32 %v14042_v21, %v31236_v60  ;;  %v14110_v4 = vadd.f32 %v14046_v37, %v31237_v2  ;;  %v19254_v34 = vmul.f32 -1.442695, %v14106_v17  ;;  %v14114_v39 = vadd.f32 %v14050_v58, %v31238_v50  ;;  %v31239_v58 = vld [vmem:[#allocation160_spill] sm:$0xff] }
 0xbf1   :  { %v19249_v0 = vmul.f32 -1.442695, %v14086_v9  ;;  %v19250_v42 = vmul.f32 -1.442695, %v14090_v18  ;;  %v19251_v59 = vmul.f32 -1.442695, %v14094_v46 }
 0xbf2   :  { %v19252_v62 = vmul.f32 -1.442695, %v14098_v54  ;;  %23882 = vpow2.f32 %v19254_v34  ;;  %v19253_v55 = vmul.f32 -1.442695, %v14102_v36  ;;  %v14028_v44 = vrot.slane %v28401_v48, 3  ;;  %v31240_v54 = vld [vmem:[#allocation162_spill] sm:$0xff] }
 0xbf3   :  { %23884 = vpow2.f32 %v19249_v0  ;;  %v14032_v1 = vrot.slane %v28401_v48, 4  ;;  %v19255_v38 = vmul.f32 -1.442695, %v14110_v4  ;;  %v14036_v21 = vrot.slane %v28401_v48, 5  ;;  %v31241_v34 = vld [vmem:[#allocation164_spill] sm:$0xff] }
 0xbf4   :  { %23886 = vpow2.f32 %v19250_v42  ;;  %v19256_v19 = vmul.f32 -1.442695, %v14114_v39  ;;  %v14040_v17 = vrot.slane %v28401_v48, 6  ;;  %v14044_v18 = vrot.slane %v28401_v48, 7  ;;  %v31242_v42 = vld [vmem:[#allocation166_spill] sm:$0xff]  ;;  %v31243_v37 = vld [vmem:[#allocation168_spill] sm:$0xff] }
 0xbf5   :  { %23888 = vpow2.f32 %v19251_v59  ;;  %v14088_v46 = vadd.f32 %v14028_v44, %v31239_v58  ;;  %v14092_v36 = vadd.f32 %v14032_v1, %v31240_v54  ;;  %v14096_v0 = vadd.f32 %v14036_v21, %v31241_v34  ;;  %v31247_v58 = vld [vmem:[#allocation101_spill] sm:$0xff]  ;;  %v31248_v60 = vld [vmem:[#allocation104_spill] sm:$0xff] }
 0xbf6   :  { %23890 = vpow2.f32 %v19252_v62  ;;  %v14100_v4 = vadd.f32 %v14040_v17, %v31242_v42  ;;  %v14104_v9 = vadd.f32 %v14044_v18, %v31243_v37  ;;  %v14048_v21 = vrot.slane %v28401_v48, 1  ;;  %v31245_v42 = vld [vmem:[#allocation98_spill] sm:$0xff] }
 0xbf7   :  { %23892 = vpow2.f32 %v19253_v55  ;;  %v14027_v55 = vrot.slane %v28403_v15, 3  ;;  %v14043_v37 = vrot.slane %v28403_v15, 7 }
 0xbf8   :  { %23894 = vpow2.f32 %v19255_v38 }
 0xbf9   :  { %23896 = vpow2.f32 %v19256_v19  ;;  %v14031_v19 = vrot.slane %v28403_v15, 4 }
 0xbfa   :  { %23898 = vtanh.f32 %v14088_v46  ;;  %v31244_v46 = vld [vmem:[#allocation170_spill] sm:$0xff] }
 0xbfb   :  { %23900 = vtanh.f32 %v14092_v36  ;;  %v14108_v36 = vadd.f32 %v28401_v48, %v31244_v46  ;;  %v31246_v46 = vld [vmem:[#allocation172_spill] sm:$0xff]  ;;  %v14091_v13 = vadd.f32 %v14031_v19, %v31247_v58  ;;  %v31252_v58 = vld [vmem:[#allocation115_spill] sm:$0xff] }
 0xbfc   :  { %v23883_v59 = vpop.eup %23882  ;;  %23902 = vtanh.f32 %v14096_v0  ;;  %v14035_v0 = vrot.slane %v28403_v15, 5  ;;  %v14112_v54 = vadd.f32 %v14048_v21, %v31246_v46  ;;  %v31251_v21 = vld [vmem:[#allocation111_spill] sm:$0xff] }
 0xbfd   :  { %v23885_v39 = vpop.eup %23884  ;;  %v14147_v62 = vadd.f32 1.0, %v23883_v59  ;;  %23904 = vtanh.f32 %v14100_v4  ;;  %v14103_v46 = vadd.f32 %v14043_v37, %v31251_v21 }
 0xbfe   :  { %v23887_v50 = vpop.eup %23886  ;;  %v14142_v44 = vadd.f32 1.0, %v23885_v39  ;;  %23906 = vtanh.f32 %v14104_v9  ;;  %v14052_v9 = vrot.slane %v28401_v48, 2  ;;  %v14047_v48 = vrot.slane %v28403_v15, 1 }
 0xbff   :  { %v23889_v1 = vpop.eup %23888  ;;  %v14143_v38 = vadd.f32 1.0, %v23887_v50  ;;  %23908 = vrcp.f32 %v14147_v62  ;;  %v14039_v50 = vrot.slane %v28403_v15, 6  ;;  %v14095_v11 = vadd.f32 %v14035_v0, %v31248_v60 }
 0xc00   :  { %v23891_v17 = vpop.eup %23890  ;;  %v14144_v18 = vadd.f32 1.0, %v23889_v1  ;;  %23910 = vrcp.f32 %v14142_v44  ;;  %v14087_v1 = vadd.f32 %v14027_v55, %v31245_v42  ;;  %v14051_v55 = vrot.slane %v28403_v15, 2  ;;  %v31250_v42 = vld [vmem:[#allocation108_spill] sm:$0xff] }
 0xc01   :  { %v23893_v4 = vpop.eup %23892  ;;  %v14145_v59 = vadd.f32 1.0, %v23891_v17  ;;  %23912 = vrcp.f32 %v14143_v38  ;;  %v14107_v0 = vadd.f32 %v28403_v15, %v31252_v58  ;;  %v19258_v60 = vmul.f32 -1.442695, %v14091_v13 }
 0xc02   :  { %v23895_v39 = vpop.eup %23894  ;;  %v14146_v62 = vadd.f32 1.0, %v23893_v4  ;;  %23914 = vrcp.f32 %v14144_v18  ;;  %v31249_v18 = vld [vmem:[#allocation174_spill] sm:$0xff]  ;;  %v19257_v19 = vmul.f32 -1.442695, %v14087_v1  ;;  %v14115_v37 = vadd.f32 %v14051_v55, %v30979_v32 }
 0xc03   :  { %v23897_v44 = vpop.eup %23896  ;;  %v14148_v34 = vadd.f32 1.0, %v23895_v39  ;;  %23916 = vrcp.f32 %v14145_v59  ;;  %v14116_v47 = vadd.f32 %v14052_v9, %v31249_v18  ;;  %v14099_v39 = vadd.f32 %v14039_v50, %v31250_v42  ;;  %v31253_v18 = vld [vmem:[#allocation158_spill] sm:$0xff] }
 0xc04   :  { %v23899_v17 = vpop.eup %23898  ;;  %v14149_v38 = vadd.f32 1.0, %v23897_v44  ;;  %23918 = vrcp.f32 %v14146_v62  ;;  %v14029_v44 = vrot.slane %v28405_v31, 3  ;;  %v14111_v6 = vadd.f32 %v14047_v48, %v31253_v18 }
 0xc05   :  { %v23901_v4 = vpop.eup %23900  ;;  %23920 = vrcp.f32 %v14148_v34  ;;  %v14033_v34 = vrot.slane %v28405_v31, 4  ;;  %v19259_v50 = vmul.f32 -1.442695, %v14095_v11  ;;  %v19260_v1 = vmul.f32 -1.442695, %v14099_v39 }
 0xc06   :  { %v23903_v59 = vpop.eup %23902  ;;  %23922 = vrcp.f32 %v14149_v38  ;;  %v14037_v38 = vrot.slane %v28405_v31, 5  ;;  %v19261_v15 = vmul.f32 -1.442695, %v14103_v46  ;;  %v14045_v13 = vrot.slane %v28405_v31, 7 }
 0xc07   :  { %v23905_v62 = vpop.eup %23904  ;;  %23924 = vtanh.f32 %v14108_v36  ;;  %v14041_v36 = vrot.slane %v28405_v31, 6  ;;  %v14089_v58 = vadd.f32 %v14029_v44, %v30980_v43  ;;  %v19262_v11 = vmul.f32 -1.442695, %v14107_v0 }
 0xc08   :  { %v23907_v9 = vpop.eup %23906  ;;  %23926 = vtanh.f32 %v14112_v54  ;;  %v14093_v48 = vadd.f32 %v14033_v34, %v30981_v52  ;;  %v19263_v55 = vmul.f32 -1.442695, %v14111_v6  ;;  %v14097_v39 = vadd.f32 %v14037_v38, %v30982_v27 }
 0xc09   :  { %v23909_v42 = vpop.eup %23908  ;;  %23928 = vtanh.f32 %v14116_v47  ;;  %v19264_v32 = vmul.f32 -1.442695, %v14115_v37  ;;  %v14101_v44 = vadd.f32 %v14041_v36, %v30846_v63  ;;  %v19265_v0 = vmul.f32 -1.442695, %v14089_v58 }
 0xc0a   :  { %v23911_v21 = vpop.eup %23910  ;;  %23930 = vpow2.f32 %v19257_v19  ;;  %v19266_v6 = vmul.f32 -1.442695, %v14093_v48 }
 0xc0b   :  { %v23913_v54 = vpop.eup %23912  ;;  %v28453_v40 = vmul.f32 %v23911_v21, %v23899_v17  ;;  %23932 = vpow2.f32 %v19258_v60  ;;  %v14105_v60 = vadd.f32 %v14045_v13, %v30983_v3  ;;  %v19268_v37 = vmul.f32 -1.442695, %v14101_v44 }
 0xc0c   :  { %v23915_v47 = vpop.eup %23914  ;;  %v28456_v18 = vmul.f32 %v23913_v54, %v23901_v4  ;;  %23934 = vpow2.f32 %v19259_v50  ;;  %v14049_v13 = vrot.slane %v28405_v31, 1 }
 0xc0d   :  { %v23917_v19 = vpop.eup %23916  ;;  %v28459_v46 = vmul.f32 %v23915_v47, %v23903_v59  ;;  %23936 = vpow2.f32 %v19260_v1  ;;  %v19267_v59 = vmul.f32 -1.442695, %v14097_v39 }
 0xc0e   :  { %v23919_v17 = vpop.eup %23918  ;;  %v28462_v21 = vmul.f32 %v23917_v19, %v23905_v62  ;;  %23938 = vpow2.f32 %v19261_v15  ;;  %v19269_v62 = vmul.f32 -1.442695, %v14105_v60  ;;  %v14109_v19 = vadd.f32 %v28405_v31, %v30848_v57 }
 0xc0f   :  { %v23921_v4 = vpop.eup %23920  ;;  %v28465_v34 = vmul.f32 %v23919_v17, %v23907_v9  ;;  %23940 = vpow2.f32 %v19262_v11  ;;  %v14113_v60 = vadd.f32 %v14049_v13, %v30849_v29 }
 0xc10   :  { %v23923_v50 = vpop.eup %23922  ;;  %23942 = vpow2.f32 %v19263_v55 }
 0xc11   :  { %v23925_v38 = vpop.eup %23924  ;;  %23944 = vpow2.f32 %v19264_v32  ;;  %v14053_v32 = vrot.slane %v28405_v31, 2  ;;  %v19271_v31 = vmul.f32 -1.442695, %v14113_v60 }
 0xc12   :  { %v23927_v1 = vpop.eup %23926  ;;  %v28467_v36 = vmul.f32 %v23925_v38, %v23909_v42  ;;  %23946 = vpow2.f32 %v19265_v0 }
 0xc13   :  { %v23929_v15 = vpop.eup %23928  ;;  %v28469_v54 = vmul.f32 %v23927_v1, %v23921_v4  ;;  %23948 = vpow2.f32 %v19266_v6  ;;  %v14117_v6 = vadd.f32 %v14053_v32, %v31118_v61  ;;  %v19270_v1 = vmul.f32 -1.442695, %v14109_v19 }
 0xc14   :  { %v23931_v58 = vpop.eup %23930  ;;  %v28471_v9 = vmul.f32 %v23929_v15, %v23923_v50  ;;  %23950 = vpow2.f32 %v19267_v59  ;;  %v14279_v19 = vrot.slane %v28141_v12, 7 }
 0xc15   :  { %v23933_v11 = vpop.eup %23932  ;;  %v14190_v48 = vadd.f32 1.0, %v23931_v58  ;;  %23952 = vpow2.f32 %v19268_v37 }
 0xc16   :  { %v23935_v47 = vpop.eup %23934  ;;  %v14191_v42 = vadd.f32 1.0, %v23933_v11  ;;  %23954 = vpow2.f32 %v19269_v62  ;;  %v19272_v11 = vmul.f32 -1.442695, %v14117_v6 }
 0xc17   :  { %v23937_v55 = vpop.eup %23936  ;;  %v14192_v39 = vadd.f32 1.0, %v23935_v47  ;;  %23956 = vrcp.f32 %v14190_v48 }
 0xc18   :  { %v23939_v44 = vpop.eup %23938  ;;  %v14193_v17 = vadd.f32 1.0, %v23937_v55  ;;  %23958 = vrcp.f32 %v14191_v42  ;;  %v14278_v55 = vrot.slane %v28137_v41, 7 }
 0xc19   :  { %v23941_v0 = vpop.eup %23940  ;;  %v14194_v4 = vadd.f32 1.0, %v23939_v44  ;;  %23960 = vrcp.f32 %v14192_v39 }
 0xc1a   :  { %v23943_v50 = vpop.eup %23942  ;;  %v14195_v59 = vadd.f32 1.0, %v23941_v0  ;;  %23962 = vrcp.f32 %v14193_v17  ;;  %v14280_v0 = vrot.slane %v28145_v49, 7  ;;  %v14284_v49 = vrot.slane %v28162_v8, 7 }
 0xc1b   :  { %v23945_v38 = vpop.eup %23944  ;;  %v14196_v37 = vadd.f32 1.0, %v23943_v50  ;;  %23964 = vrcp.f32 %v14194_v4  ;;  %v14281_v50 = vrot.slane %v28149_v25, 7 }
 0xc1c   :  { %v23947_v62 = vpop.eup %23946  ;;  %v14197_v15 = vadd.f32 1.0, %v23945_v38  ;;  %23966 = vrcp.f32 %v14195_v59  ;;  %v14282_v59 = vrot.slane %v28153_v45, 7 }
 0xc1d   :  { %v23949_v58 = vpop.eup %23948  ;;  %23968 = vrcp.f32 %v14196_v37  ;;  %v14246_v48 = vadd.f32 1.0, %v23947_v62  ;;  %v14283_v37 = vrot.slane %v28157_v28, 7 }
 0xc1e   :  { %v23951_v13 = vpop.eup %23950  ;;  %23970 = vrcp.f32 %v14197_v15  ;;  %v14247_v32 = vadd.f32 1.0, %v23949_v58 }
 0xc1f   :  { %v23953_v47 = vpop.eup %23952  ;;  %23972 = vpow2.f32 %v19270_v1  ;;  %v14248_v39 = vadd.f32 1.0, %v23951_v13 }
 0xc20   :  { %v23955_v42 = vpop.eup %23954  ;;  %23974 = vpow2.f32 %v19271_v31  ;;  %v14249_v17 = vadd.f32 1.0, %v23953_v47 }
 0xc21   :  { %v23957_v44 = vpop.eup %23956  ;;  %23976 = vpow2.f32 %v19272_v11  ;;  %v14250_v28 = vadd.f32 1.0, %v23955_v42 }
 0xc22   :  { %v23959_v60 = vpop.eup %23958  ;;  %v14294_v4 = vmul.f32 %v23957_v44, %v14278_v55  ;;  %23978 = vrcp.f32 %v14246_v48 }
 0xc23   :  { %v23961_v6 = vpop.eup %23960  ;;  %v14295_v38 = vmul.f32 %v23959_v60, %v14279_v19  ;;  %23980 = vrcp.f32 %v14247_v32 }
 0xc24   :  { %v23963_v41 = vpop.eup %23962  ;;  %v14296_v1 = vmul.f32 %v23961_v6, %v14280_v0  ;;  %v28486_v12 = vadd.f32 %v28453_v40, %v14294_v4  ;;  %23982 = vrcp.f32 %v14248_v39  ;;  %v14285_v40 = vrot.slane %v28165_v26, 7 }
 0xc25   :  { %v23965_v62 = vpop.eup %23964  ;;  %v14297_v15 = vmul.f32 %v23963_v41, %v14281_v50  ;;  %v28490_v31 = vadd.f32 %v28456_v18, %v14295_v38  ;;  %23984 = vrcp.f32 %v14249_v17 }
 0xc26   :  { %v23967_v25 = vpop.eup %23966  ;;  %v14298_v45 = vmul.f32 %v23965_v62, %v14282_v59  ;;  %v28493_v58 = vadd.f32 %v28459_v46, %v14296_v1  ;;  %23986 = vtanh.f32 %v28486_v12 }
 0xc27   :  { %v23969_v11 = vpop.eup %23968  ;;  %v14299_v13 = vmul.f32 %v23967_v25, %v14283_v37  ;;  %v28498_v48 = vadd.f32 %v28462_v21, %v14297_v15  ;;  %23988 = vtanh.f32 %v28490_v31 }
 0xc28   :  { %v23971_v8 = vpop.eup %23970  ;;  %v14300_v18 = vmul.f32 %v23969_v11, %v14284_v49  ;;  %v28502_v47 = vadd.f32 %v28465_v34, %v14298_v45  ;;  %23990 = vtanh.f32 %v28493_v58 }
 0xc29   :  { %v23973_v46 = vpop.eup %23972  ;;  %v28506_v32 = vadd.f32 %v28467_v36, %v14299_v13  ;;  %23992 = vtanh.f32 %v28498_v48  ;;  %v14301_v26 = vmul.f32 %v23971_v8, %v14285_v40 }
 0xc2a   :  { %v23975_v42 = vpop.eup %23974  ;;  %v14251_v55 = vadd.f32 1.0, %v23973_v46  ;;  %23994 = vrcp.f32 %v14250_v28  ;;  %v28510_v21 = vadd.f32 %v28469_v54, %v14300_v18 }
 0xc2b   :  { %v23977_v39 = vpop.eup %23976  ;;  %v14252_v44 = vadd.f32 1.0, %v23975_v42  ;;  %v28513_v34 = vadd.f32 %v28471_v9, %v14301_v26  ;;  %23996 = vtanh.f32 %v28502_v47 }
 0xc2c   :  { %v23979_v19 = vpop.eup %23978  ;;  %v14253_v17 = vadd.f32 1.0, %v23977_v39  ;;  %23998 = vrcp.f32 %v14251_v55 }
 0xc2d   :  { %v23981_v36 = vpop.eup %23980  ;;  %24000 = vrcp.f32 %v14252_v44 }
 0xc2e   :  { %v23983_v60 = vpop.eup %23982  ;;  %24002 = vrcp.f32 %v14253_v17 }
 0xc2f   :  { %v23985_v0 = vpop.eup %23984  ;;  %24004 = vtanh.f32 %v28506_v32 }
 0xc30   :  { %v23987_v4 = vpop.eup %23986  ;;  %24006 = vtanh.f32 %v28510_v21 }
 0xc31   :  { %v23989_v54 = vpop.eup %23988  ;;  %24008 = vtanh.f32 %v28513_v34  ;;  %v14326_v9 = vmul.f32 %v23987_v4, %v23979_v19 }
 0xc32   :  { %v23991_v6 = vpop.eup %23990  ;;  %v14327_v50 = vmul.f32 %v23989_v54, %v23981_v36 }
 0xc33   :  { %v23993_v59 = vpop.eup %23992  ;;  %v14328_v38 = vmul.f32 %v23991_v6, %v23983_v60  ;;  %v14342_v41 = vrot.slane %v14326_v9, 5 }
 0xc34   :  { %v23995_v37 = vpop.eup %23994  ;;  %v14329_v1 = vmul.f32 %v23993_v59, %v23985_v0  ;;  %v14343_v62 = vrot.slane %v14327_v50, 4 }
 0xc35   :  { %v23997_v49 = vpop.eup %23996  ;;  %v14345_v15 = vrot.slane %v14328_v38, 3 }
 0xc36   :  { %v23999_v25 = vpop.eup %23998  ;;  %v14330_v45 = vmul.f32 %v23997_v49, %v23995_v37  ;;  %v14344_v28 = vsel %vm4111_vm1, %v14343_v62, %v14342_v41  ;;  %v14347_v11 = vrot.slane %v14329_v1, 2  ;;  %v31254_v41 = vld [vmem:[#allocation43_spill] sm:$0xff]  ;;  %v31257_v62 = vld [vmem:[#allocation41_spill] sm:$0xff]  ;;  %v31258_v49 = vld [vmem:[#allocation102_spill] sm:$0xff] }
 0xc37   :  { %v24001_v40 = vpop.eup %24000  ;;  %v14346_v13 = vsel %vm4114_vm2, %v14345_v15, %v14344_v28  ;;  %v31255_v37 = vld [vmem:[#allocation83_spill] sm:$0xff]  ;;  %v31259_v15 = vld [vmem:[#allocation84_spill] sm:$0xff] }
 0xc38   :  { %v24003_v8 = vpop.eup %24002  ;;  %v14348_v18 = vsel %vm4117_vm3, %v14347_v11, %v14346_v13  ;;  %v14349_v46 = vrot.slane %v14330_v45, 1  ;;  %v31256_v1 = vld [vmem:[#allocation99_spill] sm:$0xff]  ;;  %v31261_v45 = vld [vmem:[#allocation26_spill] sm:$0xff]  ;;  %v31263_v11 = vld [vmem:[#allocation85_spill] sm:$0xff] }
 0xc39   :  { %v24005_v26 = vpop.eup %24004  ;;  %v31262_v28 = vld [vmem:[#allocation107_spill] sm:$0xff] }
 0xc3a   :  { %v24007_v42 = vpop.eup %24006  ;;  %v14331_v55 = vmul.f32 %v24005_v26, %v23999_v25  ;;  %v14350_v39 = vsel %vm4120_vm4, %v14349_v46, %v14348_v18  ;;  %v31260_v25 = vld [vmem:[#allocation105_spill] sm:$0xff]  ;;  %v31265_v13 = vld [vmem:[#allocation27_spill] sm:$0xff]  ;;  %v31267_v18 = vld [vmem:[#allocation86_spill] sm:$0xff] }
 0xc3b   :  { %v24009_v44 = vpop.eup %24008  ;;  %v14332_v19 = vmul.f32 %v24007_v42, %v24001_v40  ;;  %v31264_v40 = vld [vmem:[#allocation109_spill] sm:$0xff]  ;;  %v31269_v26 = vld [vmem:[#allocation32_spill] sm:$0xff] }
 0xc3c   :  { %v14333_v17 = vmul.f32 %v24009_v44, %v24003_v8  ;;  %v14351_v36 = vsel %vm4123_vm5, %v14331_v55, %v14350_v39  ;;  %v31266_v8 = vld [vmem:[#allocation112_spill] sm:$0xff]  ;;  %v31268_v46 = vld [vmem:[#allocation113_spill] sm:$0xff]  ;;  %v31271_v55 = vld [vmem:[#allocation87_spill] sm:$0xff] }
 0xc3d   :  { %v14352_v60 = vrot.slane %v14332_v19, 7  ;;  %v31270_v42 = vld [vmem:[#allocation116_spill] sm:$0xff]  ;;  %v31272_v39 = vld [vmem:[#allocation117_spill] sm:$0xff]  ;;  %v31274_v19 = vld [vmem:[#allocation118_spill] sm:$0xff] }
 0xc3e   :  { %v14354_v0 = vrot.slane %v14333_v17, 6  ;;  %v31273_v44 = vld [vmem:[#allocation36_spill] sm:$0xff] }
 0xc3f   :  { %v14353_v4 = vsel %vm4126_vm6, %v14352_v60, %v14351_v36  ;;  %v31275_v17 = vld [vmem:[#allocation88_spill] sm:$0xff]  ;;  %v31276_v36 = vld [vmem:[#allocation119_spill] sm:$0xff] }
 0xc40   :  { %v14355_v54 = vsel %vm4129_vm7, %v14354_v0, %v14353_v4  ;;  %v31277_v60 = vld [vmem:[#allocation39_spill] sm:$0xff]  ;;  %v31278_v0 = vld [vmem:[#allocation120_spill] sm:$0xff]  ;;  %v31279_v4 = vld [vmem:[#allocation89_spill] sm:$0xff] }
 0xc41   :  { %v28526_v9 = vand.u32 4294901760, %v14355_v54 }
 0xc43   :  { %v28529_v6 = vsub.f32 %v14355_v54, %v28526_v9  ;;  %v31280_v54 = vld [vmem:[#allocation121_spill] sm:$0xff] }
 0xc45   :  { %v28532_v50 = vand.u32 4294901760, %v28529_v6 }
 0xc47   :  { %v14457_v59 = vsub.f32 %v28529_v6, %v28532_v50 }
 0xc49   :  { %v14458_v38 = vand.u32 4294901760, %v14457_v59  ;;  %v31281_v59 = vld [vmem:[#allocation42_spill] sm:$0xff] }
 0xc4b   :  { %14459 = vmatmul.mubr.f32.vlgmr.msra.gmra.mrb[28].mxu0 %v14458_v38  ;;  %15314 = vmatmul.mubr.f32.vlgmr.msra.gmra.mrb[44].mxu1 %v14458_v38  ;;  %v31282_v38 = vld [vmem:[#allocation122_spill] sm:$0xff] }
 0xc4c   :  { %22021 = vmatpush1.bf16.msra.mxu0 %v30851_v23  ;;  %22213 = vmatpush1.bf16.msra.mxu1 %v31254_v41 }
 0xc4d   :  { %22023 = vmatprep.subr.bf16.mxu0 %v31255_v37  ;;  %22215 = vmatprep.subr.bf16.mxu1 %v31256_v1  ;;  %v31349_v1 = vld [vmem:[#allocation146_spill] sm:$0xff]  ;;  %v31350_v37 = vld [vmem:[#allocation72_spill] sm:$0xff] }
 0xc4e   :  { %14689 = vmatprep.mubr.f32.mxu0 %v30575_v30  ;;  %15544 = vmatprep.mubr.f32.mxu1 %v30575_v30 }
 0xc50   :  { %22025 = vmatpush1.bf16.msra.mxu0 %v31257_v62  ;;  %22217 = vmatpush1.bf16.msra.mxu1 %v31258_v49  ;;  %v31340_v49 = vld [vmem:[#allocation63_spill] sm:$0xff] }
 0xc51   :  { %22027 = vmatprep.subr.bf16.mxu0 %v31259_v15  ;;  %22219 = vmatprep.subr.bf16.mxu1 %v31260_v25  ;;  %v31338_v25 = vld [vmem:[#allocation61_spill] sm:$0xff]  ;;  %v31343_v62 = vld [vmem:[#allocation143_spill] sm:$0xff] }
 0xc52   :  { %v31339_v15 = vld [vmem:[#allocation141_spill] sm:$0xff] }
 0xc54   :  { %22029 = vmatpush1.bf16.msra.mxu0 %v31261_v45  ;;  %22221 = vmatpush1.bf16.msra.mxu1 %v31262_v28  ;;  %v31336_v28 = vld [vmem:[#allocation60_spill] sm:$0xff] }
 0xc55   :  { %22031 = vmatprep.subr.bf16.mxu0 %v31263_v11  ;;  %22223 = vmatprep.subr.bf16.mxu1 %v31264_v40  ;;  %v31334_v40 = vld [vmem:[#allocation59_spill] sm:$0xff]  ;;  %v31337_v45 = vld [vmem:[#allocation140_spill] sm:$0xff] }
 0xc56   :  { %v31335_v11 = vld [vmem:[#allocation139_spill] sm:$0xff] }
 0xc58   :  { %22033 = vmatpush1.bf16.msra.mxu0 %v31265_v13  ;;  %22225 = vmatpush1.bf16.msra.mxu1 %v31266_v8  ;;  %v31332_v8 = vld [vmem:[#allocation75_spill] sm:$0xff]  ;;  %v31333_v13 = vld [vmem:[#allocation37_spill] sm:$0xff] }
 0xc59   :  { %22035 = vmatprep.subr.bf16.mxu0 %v31267_v18  ;;  %22227 = vmatprep.subr.bf16.mxu1 %v31268_v46  ;;  %v31330_v46 = vld [vmem:[#allocation73_spill] sm:$0xff]  ;;  %v31331_v18 = vld [vmem:[#allocation34_spill] sm:$0xff] }
 0xc5c   :  { %22037 = vmatpush1.bf16.msra.mxu0 %v31269_v26  ;;  %22229 = vmatpush1.bf16.msra.mxu1 %v31270_v42  ;;  %v31328_v42 = vld [vmem:[#allocation71_spill] sm:$0xff]  ;;  %v31329_v26 = vld [vmem:[#allocation29_spill] sm:$0xff] }
 0xc5d   :  { %22039 = vmatprep.subr.bf16.mxu0 %v31271_v55  ;;  %22231 = vmatprep.subr.bf16.mxu1 %v31272_v39  ;;  %v31283_v39 = vld [vmem:[#allocation90_spill] sm:$0xff]  ;;  %v31327_v55 = vld [vmem:[#allocation24_spill] sm:$0xff] }
 0xc60   :  { %22041 = vmatpush1.bf16.msra.mxu0 %v31273_v44  ;;  %22233 = vmatpush1.bf16.msra.mxu1 %v31274_v19  ;;  %v31284_v44 = vld [vmem:[#allocation123_spill] sm:$0xff]  ;;  %v31299_v19 = vld [vmem:[#allocation16_spill] sm:$0xff] }
 0xc61   :  { %22043 = vmatprep.subr.bf16.mxu0 %v31275_v17  ;;  %22235 = vmatprep.subr.bf16.mxu1 %v31276_v36  ;;  %v31285_v36 = vld [vmem:[#allocation44_spill] sm:$0xff]  ;;  %v31298_v17 = vld [vmem:[#allocation130_spill] sm:$0xff] }
 0xc64   :  { %22045 = vmatpush1.bf16.msra.mxu0 %v31277_v60  ;;  %22237 = vmatpush1.bf16.msra.mxu1 %v31278_v0  ;;  %v31286_v60 = vld [vmem:[#allocation124_spill] sm:$0xff]  ;;  %v31287_v0 = vld [vmem:[#allocation91_spill] sm:$0xff] }
 0xc65   :  { %22047 = vmatprep.subr.bf16.mxu0 %v31279_v4  ;;  %22239 = vmatprep.subr.bf16.mxu1 %v31280_v54  ;;  %v31288_v4 = vld [vmem:[#allocation125_spill] sm:$0xff]  ;;  %v31293_v54 = vld [vmem:[#allocation15_spill] sm:$0xff] }
 0xc68   :  { %22049 = vmatpush1.bf16.msra.mxu0 %v31281_v59  ;;  %22241 = vmatpush1.bf16.msra.mxu1 %v31282_v38  ;;  %v31289_v38 = vld [vmem:[#allocation45_spill] sm:$0xff]  ;;  %v31292_v59 = vld [vmem:[#allocation127_spill] sm:$0xff] }
 0xc69   :  { %22051 = vmatprep.subr.bf16.mxu0 %v31283_v39  ;;  %22243 = vmatprep.subr.bf16.mxu1 %v31284_v44  ;;  %v31290_v39 = vld [vmem:[#allocation126_spill] sm:$0xff]  ;;  %v31291_v44 = vld [vmem:[#allocation92_spill] sm:$0xff] }
 0xc6b   :  { %14691 = vmatmul.mubr.f32.vlgmr.msra.gmra.mrb[28].mxu0 %v28526_v9  ;;  %15546 = vmatmul.mubr.f32.vlgmr.msra.gmra.mrb[44].mxu1 %v28526_v9 }
 0xc6c   :  { %22053 = vmatpush1.bf16.msra.mxu0 %v31285_v36  ;;  %22245 = vmatpush1.bf16.msra.mxu1 %v31286_v60  ;;  %v31294_v36 = vld [vmem:[#allocation128_spill] sm:$0xff]  ;;  %v31295_v60 = vld [vmem:[#allocation93_spill] sm:$0xff] }
 0xc6d   :  { %22055 = vmatprep.subr.bf16.mxu0 %v31287_v0  ;;  %22247 = vmatprep.subr.bf16.mxu1 %v31288_v4  ;;  %v31296_v0 = vld [vmem:[#allocation129_spill] sm:$0xff]  ;;  %v31297_v4 = vld [vmem:[#allocation47_spill] sm:$0xff] }
 0xc6e   :  { %14825 = vmatprep.mubr.f32.mxu0 %v30575_v30  ;;  %15680 = vmatprep.mubr.f32.mxu1 %v30575_v30 }
 0xc70   :  { %22057 = vmatpush1.bf16.msra.mxu0 %v31289_v38  ;;  %22249 = vmatpush1.bf16.msra.mxu1 %v31290_v39  ;;  %v31300_v38 = vld [vmem:[#allocation131_spill] sm:$0xff] }
 0xc71   :  { %22059 = vmatprep.subr.bf16.mxu0 %v31291_v44  ;;  %22251 = vmatprep.subr.bf16.mxu1 %v31292_v59  ;;  %v31301_v39 = vld [vmem:[#allocation19_spill] sm:$0xff]  ;;  %v31302_v44 = vld [vmem:[#allocation132_spill] sm:$0xff]  ;;  %v31303_v59 = vld [vmem:[#allocation94_spill] sm:$0xff] }
 0xc74   :  { %22061 = vmatpush1.bf16.msra.mxu0 %v31293_v54  ;;  %22253 = vmatpush1.bf16.msra.mxu1 %v31294_v36  ;;  %v31304_v54 = vld [vmem:[#allocation133_spill] sm:$0xff]  ;;  %v31305_v36 = vld [vmem:[#allocation23_spill] sm:$0xff] }
 0xc75   :  { %22063 = vmatprep.subr.bf16.mxu0 %v31295_v60  ;;  %22255 = vmatprep.subr.bf16.mxu1 %v31296_v0  ;;  %v31306_v60 = vld [vmem:[#allocation134_spill] sm:$0xff]  ;;  %v31307_v0 = vld [vmem:[#allocation95_spill] sm:$0xff] }
 0xc78   :  { %22065 = vmatpush1.bf16.msra.mxu0 %v31297_v4  ;;  %22257 = vmatpush1.bf16.msra.mxu1 %v31298_v17  ;;  %v31308_v4 = vld [vmem:[#allocation135_spill] sm:$0xff]  ;;  %v31309_v17 = vld [vmem:[#allocation28_spill] sm:$0xff] }
 0xc79   :  { %22067 = vmatprep.subr.bf16.mxu0 %v31299_v19  ;;  %22259 = vmatprep.subr.bf16.mxu1 %v31300_v38  ;;  %v31310_v19 = vld [vmem:[#allocation136_spill] sm:$0xff] }
 0xc7a   :  { %v31311_v38 = vld [vmem:[#allocation96_spill] sm:$0xff] }
 0xc7c   :  { %22069 = vmatpush1.bf16.msra.mxu0 %v31301_v39  ;;  %22261 = vmatpush1.bf16.msra.mxu1 %v31302_v44  ;;  %v31312_v39 = vld [vmem:[#allocation137_spill] sm:$0xff]  ;;  %v31313_v44 = vld [vmem:[#allocation30_spill] sm:$0xff] }
 0xc7d   :  { %22071 = vmatprep.subr.bf16.mxu0 %v31303_v59  ;;  %22263 = vmatprep.subr.bf16.mxu1 %v31304_v54  ;;  %v31314_v59 = vld [vmem:[#allocation138_spill] sm:$0xff]  ;;  %v31326_v54 = vld [vmem:[#allocation69_spill] sm:$0xff] }
 0xc80   :  { %22073 = vmatpush1.bf16.msra.mxu0 %v31305_v36  ;;  %22265 = vmatpush1.bf16.msra.mxu1 %v31306_v60  ;;  %v31324_v60 = vld [vmem:[#allocation68_spill] sm:$0xff]  ;;  %v31325_v36 = vld [vmem:[#allocation21_spill] sm:$0xff] }
 0xc81   :  { %22075 = vmatprep.subr.bf16.mxu0 %v31307_v0  ;;  %22267 = vmatprep.subr.bf16.mxu1 %v31308_v4  ;;  %v31322_v4 = vld [vmem:[#allocation58_spill] sm:$0xff]  ;;  %v31323_v0 = vld [vmem:[#allocation64_spill] sm:$0xff] }
 0xc84   :  { %22077 = vmatpush1.bf16.msra.mxu0 %v31309_v17  ;;  %22269 = vmatpush1.bf16.msra.mxu1 %v31310_v19  ;;  %v31320_v19 = vld [vmem:[#allocation57_spill] sm:$0xff]  ;;  %v31321_v17 = vld [vmem:[#allocation20_spill] sm:$0xff] }
 0xc85   :  { %22079 = vmatprep.subr.bf16.mxu0 %v31311_v38  ;;  %22271 = vmatprep.subr.bf16.mxu1 %v31312_v39  ;;  %v31318_v39 = vld [vmem:[#allocation56_spill] sm:$0xff]  ;;  %v31319_v38 = vld [vmem:[#allocation35_spill] sm:$0xff] }
 0xc88   :  { %22081 = vmatpush1.bf16.msra.mxu0 %v31313_v44  ;;  %22273 = vmatpush1.bf16.msra.mxu1 %v31314_v59  ;;  %v31316_v59 = vld [vmem:[#allocation55_spill] sm:$0xff] }
 0xc89   :  { %22083 = vmatprep.subr.bf16.mxu0 %v30634_v20  ;;  %22275 = vmatprep.subr.bf16.mxu1 %v30635_v33  ;;  %v31317_v44 = vld [vmem:[#allocation31_spill] sm:$0xff] }
 0xc8b   :  { %14828 = vmatmul.mubr.f32.vlgmr.msra.gmra.mrb[28].mxu0 %v28529_v6  ;;  %15683 = vmatmul.mubr.f32.vlgmr.msra.gmra.mrb[44].mxu1 %v28529_v6  ;;  %v31315_v6 = vld [vmem:[#allocation25_spill] sm:$0xff] }
 0xc8c   :  { %22085 = vmatpush1.bf16.msra.mxu0 %v30636_v10  ;;  %22277 = vmatpush1.bf16.msra.mxu1 %v30637_v56 }
 0xc8d   :  { %22087 = vmatprep.subr.bf16.mxu0 %v30638_v5  ;;  %22279 = vmatprep.subr.bf16.mxu1 %v30639_v14 }
 0xc8e   :  { %14930 = vmatprep.mubr.f32.mxu0 %v30575_v30  ;;  %15785 = vmatprep.mubr.f32.mxu1 %v30575_v30 }
 0xc90   :  { %22089 = vmatpush1.bf16.msra.mxu0 %v30640_v24  ;;  %22281 = vmatpush1.bf16.msra.mxu1 %v30641_v16 }
 0xc91   :  { %22091 = vmatprep.subr.bf16.mxu0 %v30642_v53  ;;  %22283 = vmatprep.subr.bf16.mxu1 %v30643_v51 }
 0xc94   :  { %22093 = vmatpush1.bf16.msra.mxu0 %v30644_v35  ;;  %22285 = vmatpush1.bf16.msra.mxu1 %v30645_v7 }
 0xc95   :  { %22095 = vmatprep.subr.bf16.mxu0 %v31178_v22  ;;  %22287 = vmatprep.subr.bf16.mxu1 %v31315_v6 }
 0xc98   :  { %22097 = vmatpush1.bf16.msra.mxu0 %v31316_v59  ;;  %22289 = vmatpush1.bf16.msra.mxu1 %v31317_v44 }
 0xc99   :  { %22099 = vmatprep.subr.bf16.mxu0 %v31318_v39  ;;  %22291 = vmatprep.subr.bf16.mxu1 %v31319_v38 }
 0xc9c   :  { %22101 = vmatpush1.bf16.msra.mxu0 %v31320_v19  ;;  %22293 = vmatpush1.bf16.msra.mxu1 %v31321_v17 }
 0xc9d   :  { %22103 = vmatprep.subr.bf16.mxu0 %v31322_v4  ;;  %22295 = vmatprep.subr.bf16.mxu1 %v31323_v0 }
 0xca0   :  { %22105 = vmatpush1.bf16.msra.mxu0 %v31324_v60  ;;  %22297 = vmatpush1.bf16.msra.mxu1 %v31325_v36 }
 0xca1   :  { %22107 = vmatprep.subr.bf16.mxu0 %v31326_v54  ;;  %22299 = vmatprep.subr.bf16.mxu1 %v31327_v55 }
 0xca4   :  { %22109 = vmatpush1.bf16.msra.mxu0 %v31328_v42  ;;  %22301 = vmatpush1.bf16.msra.mxu1 %v31329_v26 }
 0xca5   :  { %22111 = vmatprep.subr.bf16.mxu0 %v31330_v46  ;;  %22303 = vmatprep.subr.bf16.mxu1 %v31331_v18 }
 0xca8   :  { %22113 = vmatpush1.bf16.msra.mxu0 %v31332_v8  ;;  %22305 = vmatpush1.bf16.msra.mxu1 %v31333_v13 }
 0xca9   :  { %22115 = vmatprep.subr.bf16.mxu0 %v31334_v40  ;;  %22307 = vmatprep.subr.bf16.mxu1 %v31335_v11  ;;  %v31341_v40 = vld [vmem:[#allocation142_spill] sm:$0xff]  ;;  %v31342_v11 = vld [vmem:[#allocation65_spill] sm:$0xff] }
 0xcab   :  { %14934 = vmatmul.mubr.f32.vlgmr.msra.gmra.mrb[28].mxu0 %v28532_v50  ;;  %15789 = vmatmul.mubr.f32.vlgmr.msra.gmra.mrb[44].mxu1 %v28532_v50  ;;  %v31344_v50 = vld [vmem:[#allocation66_spill] sm:$0xff] }
 0xcac   :  { %22117 = vmatpush1.bf16.msra.mxu0 %v31336_v28  ;;  %22309 = vmatpush1.bf16.msra.mxu1 %v31337_v45  ;;  %v31345_v28 = vld [vmem:[#allocation144_spill] sm:$0xff]  ;;  %v31346_v45 = vld [vmem:[#allocation67_spill] sm:$0xff] }
 0xcad   :  { %22119 = vmatprep.subr.bf16.mxu0 %v31338_v25  ;;  %22311 = vmatprep.subr.bf16.mxu1 %v31339_v15  ;;  %v31347_v25 = vld [vmem:[#allocation145_spill] sm:$0xff]  ;;  %v31348_v15 = vld [vmem:[#allocation70_spill] sm:$0xff] }
 0xcae   :  { %15100 = vmatprep.mubr.f32.mxu0 %v30575_v30  ;;  %15955 = vmatprep.mubr.f32.mxu1 %v30575_v30 }
 0xcb0   :  { %22121 = vmatpush1.bf16.msra.mxu0 %v31340_v49  ;;  %22313 = vmatpush1.bf16.msra.mxu1 %v31341_v40  ;;  %v31351_v49 = vld [vmem:[#allocation147_spill] sm:$0xff]  ;;  %v31352_v40 = vld [vmem:[#allocation74_spill] sm:$0xff] }
 0xcb1   :  { %22123 = vmatprep.subr.bf16.mxu0 %v31342_v11  ;;  %22315 = vmatprep.subr.bf16.mxu1 %v31343_v62  ;;  %v31353_v11 = vld [vmem:[#allocation148_spill] sm:$0xff] }
 0xcb2   :  { %v31354_v62 = vld [vmem:[#allocation76_spill] sm:$0xff] }
 0xcb4   :  { %22125 = vmatpush1.bf16.msra.mxu0 %v31344_v50  ;;  %22317 = vmatpush1.bf16.msra.mxu1 %v31345_v28  ;;  %v31355_v50 = vld [vmem:[#allocation149_spill] sm:$0xff] }
 0xcb5   :  { %22127 = vmatprep.subr.bf16.mxu0 %v31346_v45  ;;  %22319 = vmatprep.subr.bf16.mxu1 %v31347_v25  ;;  %v31356_v28 = vld [vmem:[#allocation77_spill] sm:$0xff]  ;;  %v31357_v45 = vld [vmem:[#allocation150_spill] sm:$0xff] }
 0xcb6   :  { %v31358_v25 = vld [vmem:[#allocation78_spill] sm:$0xff] }
 0xcb8   :  { %22129 = vmatpush1.bf16.msra.mxu0 %v31348_v15  ;;  %22321 = vmatpush1.bf16.msra.mxu1 %v31349_v1  ;;  %v31359_v15 = vld [vmem:[#allocation151_spill] sm:$0xff] }
 0xcb9   :  { %22131 = vmatprep.subr.bf16.mxu0 %v31350_v37  ;;  %22323 = vmatprep.subr.bf16.mxu1 %v31351_v49  ;;  %v31360_v1 = vld [vmem:[#allocation79_spill] sm:$0xff]  ;;  %v31361_v37 = vld [vmem:[#allocation152_spill] sm:$0xff]  ;;  %v31362_v49 = vld [vmem:[#allocation81_spill] sm:$0xff] }
 0xcbc   :  { %22133 = vmatpush1.bf16.msra.mxu0 %v31352_v40  ;;  %22325 = vmatpush1.bf16.msra.mxu1 %v31353_v11  ;;  %v31363_v40 = vld [vmem:[#allocation153_spill] sm:$0xff]  ;;  %v31364_v11 = vld [vmem:[#allocation82_spill] sm:$0xff] }
 0xcbd   :  { %22135 = vmatprep.subr.bf16.mxu0 %v31354_v62  ;;  %22327 = vmatprep.subr.bf16.mxu1 %v31355_v50  ;;  %v31365_v62 = vld [vmem:[#allocation154_spill] sm:$0xff] }
 0xcc0   :  { %22137 = vmatpush1.bf16.msra.mxu0 %v31356_v28  ;;  %22329 = vmatpush1.bf16.msra.mxu1 %v31357_v45 }
 0xcc1   :  { %22139 = vmatprep.subr.bf16.mxu0 %v31358_v25  ;;  %22331 = vmatprep.subr.bf16.mxu1 %v31359_v15 }
 0xcc4   :  { %22141 = vmatpush1.bf16.msra.mxu0 %v31360_v1  ;;  %22333 = vmatpush1.bf16.msra.mxu1 %v31361_v37 }
 0xcc5   :  { %22143 = vmatprep.subr.bf16.mxu0 %v31362_v49  ;;  %22335 = vmatprep.subr.bf16.mxu1 %v31363_v40 }
 0xcc8   :  { %22145 = vmatpush1.bf16.msra.mxu0 %v31364_v11  ;;  %22337 = vmatpush1.bf16.msra.mxu1 %v31365_v62  ;;  %v31367_v62 = vld [vmem:[#allocation40_spill] sm:$0xff] }
 0xcc9   :  { %22147 = vmatprep.subr.bf16.mxu0 %v30634_v20  ;;  %22339 = vmatprep.subr.bf16.mxu1 %v30635_v33 }
 0xccb   :  { %15102 = vmatmul.mubr.f32.vlgmr.msra.gmra.mrb[28].mxu0 %v28526_v9  ;;  %15957 = vmatmul.mubr.f32.vlgmr.msra.gmra.mrb[44].mxu1 %v28526_v9 }
 0xccc   :  { %22149 = vmatpush1.bf16.msra.mxu0 %v30636_v10  ;;  %22341 = vmatpush1.bf16.msra.mxu1 %v30637_v56 }
 0xccd   :  { %22151 = vmatprep.subr.bf16.mxu0 %v30638_v5  ;;  %22343 = vmatprep.subr.bf16.mxu1 %v30639_v14 }
 0xcce   :  { %15204 = vmatprep.mubr.f32.mxu0 %v30575_v30  ;;  %16059 = vmatprep.mubr.f32.mxu1 %v30575_v30 }
 0xcd0   :  { %22153 = vmatpush1.bf16.msra.mxu0 %v30640_v24  ;;  %22345 = vmatpush1.bf16.msra.mxu1 %v30641_v16 }
 0xcd1   :  { %22155 = vmatprep.subr.bf16.mxu0 %v30642_v53  ;;  %22347 = vmatprep.subr.bf16.mxu1 %v30643_v51 }
 0xcd4   :  { %22157 = vmatpush1.bf16.msra.mxu0 %v30644_v35  ;;  %22349 = vmatpush1.bf16.msra.mxu1 %v30645_v7 }
 0xcd5   :  { %22159 = vmatprep.subr.bf16.mxu0 %v31178_v22  ;;  %22351 = vmatprep.subr.bf16.mxu1 %v31315_v6 }
 0xcd8   :  { %22161 = vmatpush1.bf16.msra.mxu0 %v31316_v59  ;;  %22353 = vmatpush1.bf16.msra.mxu1 %v31317_v44 }
 0xcd9   :  { %22163 = vmatprep.subr.bf16.mxu0 %v31318_v39  ;;  %22355 = vmatprep.subr.bf16.mxu1 %v31319_v38 }
 0xcdc   :  { %22165 = vmatpush1.bf16.msra.mxu0 %v31320_v19  ;;  %22357 = vmatpush1.bf16.msra.mxu1 %v31321_v17 }
 0xcdd   :  { %22167 = vmatprep.subr.bf16.mxu0 %v31322_v4  ;;  %22359 = vmatprep.subr.bf16.mxu1 %v31323_v0 }
 0xce0   :  { %22169 = vmatpush1.bf16.msra.mxu0 %v31324_v60  ;;  %22361 = vmatpush1.bf16.msra.mxu1 %v31325_v36 }
 0xce1   :  { %22171 = vmatprep.subr.bf16.mxu0 %v31326_v54  ;;  %22363 = vmatprep.subr.bf16.mxu1 %v31327_v55 }
 0xce4   :  { %22173 = vmatpush1.bf16.msra.mxu0 %v31328_v42  ;;  %22365 = vmatpush1.bf16.msra.mxu1 %v31329_v26 }
 0xce5   :  { %22175 = vmatprep.subr.bf16.mxu0 %v31330_v46  ;;  %22367 = vmatprep.subr.bf16.mxu1 %v31331_v18 }
 0xce8   :  { %22177 = vmatpush1.bf16.msra.mxu0 %v31332_v8  ;;  %22369 = vmatpush1.bf16.msra.mxu1 %v31333_v13 }
 0xce9   :  { %22371 = vmatprep.subr.bf16.mxu0 %v30634_v20  ;;  %22563 = vmatprep.subr.bf16.mxu1 %v30635_v33 }
 0xceb   :  { %15206 = vmatmul.mubr.f32.vlgmr.msra.gmra.mrb[28].mxu0 %v28526_v9  ;;  %16061 = vmatmul.mubr.f32.vlgmr.msra.gmra.mrb[44].mxu1 %v28526_v9  ;;  %v31366_v9 = vld [vmem:[#allocation80_spill] sm:$0xff] }
 0xcec   :  { %22373 = vmatpush1.bf16.msra.mxu0 %v30636_v10  ;;  %22565 = vmatpush1.bf16.msra.mxu1 %v30637_v56 }
 0xced   :  { %22375 = vmatprep.subr.bf16.mxu0 %v30638_v5  ;;  %22567 = vmatprep.subr.bf16.mxu1 %v30639_v14 }
 0xcee   :  { %16498 = vmatprep.mubr.f32.mxu0 %v30575_v30  ;;  %17353 = vmatprep.mubr.f32.mxu1 %v30575_v30 }
 0xcf0   :  { %22377 = vmatpush1.bf16.msra.mxu0 %v30640_v24  ;;  %22569 = vmatpush1.bf16.msra.mxu1 %v30641_v16 }
 0xcf1   :  { %22379 = vmatprep.subr.bf16.mxu0 %v30642_v53  ;;  %22571 = vmatprep.subr.bf16.mxu1 %v30643_v51 }
 0xcf4   :  { %22381 = vmatpush1.bf16.msra.mxu0 %v30644_v35  ;;  %22573 = vmatpush1.bf16.msra.mxu1 %v30645_v7 }
 0xcf5   :  { %22383 = vmatprep.subr.bf16.mxu0 %v31178_v22  ;;  %22575 = vmatprep.subr.bf16.mxu1 %v31315_v6 }
 0xcf8   :  { %22385 = vmatpush1.bf16.msra.mxu0 %v31316_v59  ;;  %22577 = vmatpush1.bf16.msra.mxu1 %v31317_v44 }
 0xcf9   :  { %22387 = vmatprep.subr.bf16.mxu0 %v31318_v39  ;;  %22579 = vmatprep.subr.bf16.mxu1 %v31319_v38 }
 0xcfc   :  { %22389 = vmatpush1.bf16.msra.mxu0 %v31320_v19  ;;  %22581 = vmatpush1.bf16.msra.mxu1 %v31321_v17  ;;  %v31374_v19 = vld [vmem:[#allocation157_spill] sm:$0xff] }
 0xcfd   :  { %22391 = vmatprep.subr.bf16.mxu0 %v31322_v4  ;;  %22583 = vmatprep.subr.bf16.mxu1 %v31323_v0  ;;  %v31373_v0 = vld [vmem:[#allocation114_spill] sm:$0xff] }
 0xd00   :  { %22393 = vmatpush1.bf16.msra.mxu0 %v31324_v60  ;;  %22585 = vmatpush1.bf16.msra.mxu1 %v31325_v36  ;;  %v31372_v36 = vld [vmem:[#allocation110_spill] sm:$0xff] }
 0xd01   :  { %22395 = vmatprep.subr.bf16.mxu0 %v31326_v54  ;;  %22587 = vmatprep.subr.bf16.mxu1 %v31327_v55  ;;  %v31371_v55 = vld [vmem:[#allocation106_spill] sm:$0xff] }
 0xd04   :  { %22397 = vmatpush1.bf16.msra.mxu0 %v31328_v42  ;;  %22589 = vmatpush1.bf16.msra.mxu1 %v31329_v26  ;;  %v31370_v26 = vld [vmem:[#allocation103_spill] sm:$0xff] }
 0xd05   :  { %22399 = vmatprep.subr.bf16.mxu0 %v31330_v46  ;;  %22591 = vmatprep.subr.bf16.mxu1 %v31331_v18  ;;  %v31368_v18 = vld [vmem:[#allocation97_spill] sm:$0xff]  ;;  %v31369_v46 = vld [vmem:[#allocation100_spill] sm:$0xff] }
 0xd08   :  { %22401 = vmatpush1.bf16.msra.mxu0 %v31332_v8  ;;  %22593 = vmatpush1.bf16.msra.mxu1 %v31333_v13 }
 0xd09   :  { %22403 = vmatprep.subr.bf16.mxu0 %v31366_v9  ;;  %22595 = vmatprep.subr.bf16.mxu1 %v31367_v62 }
 0xdbe   :  { %v15207_v11 = vpop.f32.mrb[28].mxu0  ;;  %v28750_v40 = vpop.f32.mrb[44].mxu1 }
 0xdbf   :  { %v16071_v49 = vrot.slane %v15207_v11, 2  ;;  %v16075_v37 = vrot.slane %v15207_v11, 3  ;;  %v16079_v1 = vrot.slane %v15207_v11, 4  ;;  %v16083_v15 = vrot.slane %v15207_v11, 5  ;;  %v28752_v25 = vpop.f32.mrb[29].mxu0  ;;  %v28754_v45 = vpop.f32.mrb[45].mxu1 }
 0xdc0   :  { %v16087_v28 = vrot.slane %v15207_v11, 6  ;;  %v16091_v50 = vrot.slane %v15207_v11, 7  ;;  %v16095_v8 = vrot.slane %v15207_v11, 1  ;;  %v16155_v13 = vadd.f32 %v15207_v11, %v31237_v2 }
 0xdc1   :  { %v16131_v9 = vadd.f32 %v16071_v49, %v31368_v18  ;;  %v16135_v62 = vadd.f32 %v16075_v37, %v31369_v46  ;;  %v16139_v42 = vadd.f32 %v16079_v1, %v31370_v26  ;;  %v16143_v54 = vadd.f32 %v16083_v15, %v31371_v55  ;;  %v31385_v55 = vld [vmem:[#allocation174_spill] sm:$0xff]  ;;  %v31387_v46 = vld [vmem:[#allocation111_spill] sm:$0xff] }
 0xdc2   :  { %v16147_v60 = vadd.f32 %v16087_v28, %v31372_v36  ;;  %v16151_v4 = vadd.f32 %v16091_v50, %v31373_v0  ;;  %v19279_v17 = vmul.f32 -1.442695, %v16155_v13  ;;  %v16159_v38 = vadd.f32 %v16095_v8, %v31374_v19  ;;  %v31384_v36 = vld [vmem:[#allocation104_spill] sm:$0xff] }
 0xdc3   :  { %v19273_v39 = vmul.f32 -1.442695, %v16131_v9  ;;  %v19274_v44 = vmul.f32 -1.442695, %v16135_v62  ;;  %v19275_v59 = vmul.f32 -1.442695, %v16139_v42 }
 0xdc4   :  { %v19276_v6 = vmul.f32 -1.442695, %v16143_v54  ;;  %24010 = vpow2.f32 %v19279_v17  ;;  %v19277_v49 = vmul.f32 -1.442695, %v16147_v60  ;;  %v16073_v37 = vrot.slane %v28750_v40, 2  ;;  %v31375_v42 = vld [vmem:[#allocation160_spill] sm:$0xff] }
 0xdc5   :  { %24012 = vpow2.f32 %v19273_v39  ;;  %v16077_v1 = vrot.slane %v28750_v40, 3  ;;  %v19278_v15 = vmul.f32 -1.442695, %v16151_v4  ;;  %v16081_v28 = vrot.slane %v28750_v40, 4  ;;  %v31376_v39 = vld [vmem:[#allocation162_spill] sm:$0xff]  ;;  %v31377_v60 = vld [vmem:[#allocation164_spill] sm:$0xff] }
 0xdc6   :  { %24014 = vpow2.f32 %v19274_v44  ;;  %v19280_v11 = vmul.f32 -1.442695, %v16159_v38  ;;  %v16085_v13 = vrot.slane %v28750_v40, 5  ;;  %v16089_v8 = vrot.slane %v28750_v40, 6  ;;  %v31378_v44 = vld [vmem:[#allocation166_spill] sm:$0xff]  ;;  %v31379_v9 = vld [vmem:[#allocation168_spill] sm:$0xff] }
 0xdc7   :  { %24016 = vpow2.f32 %v19275_v59  ;;  %v16133_v54 = vadd.f32 %v16073_v37, %v31375_v42  ;;  %v16137_v17 = vadd.f32 %v16077_v1, %v31376_v39  ;;  %v16141_v50 = vadd.f32 %v16081_v28, %v31377_v60  ;;  %v31382_v42 = vld [vmem:[#allocation101_spill] sm:$0xff] }
 0xdc8   :  { %24018 = vpow2.f32 %v19276_v6  ;;  %v16145_v4 = vadd.f32 %v16085_v13, %v31378_v44  ;;  %v16149_v62 = vadd.f32 %v16089_v8, %v31379_v9  ;;  %v16093_v2 = vrot.slane %v28750_v40, 7 }
 0xdc9   :  { %24020 = vpow2.f32 %v19277_v49  ;;  %v16072_v1 = vrot.slane %v28752_v25, 2  ;;  %v16092_v39 = vrot.slane %v28752_v25, 7 }
 0xdca   :  { %24022 = vpow2.f32 %v19278_v15 }
 0xdcb   :  { %24024 = vpow2.f32 %v19280_v11  ;;  %v16076_v11 = vrot.slane %v28752_v25, 3 }
 0xdcc   :  { %24026 = vtanh.f32 %v16133_v54  ;;  %v16097_v54 = vrot.slane %v28750_v40, 1 }
 0xdcd   :  { %24028 = vtanh.f32 %v16137_v17  ;;  %v16080_v17 = vrot.slane %v28752_v25, 4  ;;  %v16136_v0 = vadd.f32 %v16076_v11, %v31382_v42 }
 0xdce   :  { %v24011_v59 = vpop.eup %24010  ;;  %24030 = vtanh.f32 %v16141_v50  ;;  %v16161_v26 = vadd.f32 %v16097_v54, %v31385_v55  ;;  %v31389_v54 = vld [vmem:[#allocation158_spill] sm:$0xff] }
 0xdcf   :  { %v24013_v38 = vpop.eup %24012  ;;  %v16193_v6 = vadd.f32 1.0, %v24011_v59  ;;  %24032 = vtanh.f32 %v16145_v4  ;;  %v31380_v4 = vld [vmem:[#allocation170_spill] sm:$0xff]  ;;  %v16156_v55 = vadd.f32 %v28752_v25, %v31389_v54 }
 0xdd0   :  { %v24015_v49 = vpop.eup %24014  ;;  %v16187_v37 = vadd.f32 1.0, %v24013_v38  ;;  %24034 = vtanh.f32 %v16149_v62  ;;  %v16153_v38 = vadd.f32 %v16093_v2, %v31380_v4  ;;  %v16084_v62 = vrot.slane %v28752_v25, 5  ;;  %v31383_v2 = vld [vmem:[#allocation172_spill] sm:$0xff] }
 0xdd1   :  { %v24017_v15 = vpop.eup %24016  ;;  %v16188_v28 = vadd.f32 1.0, %v24015_v49  ;;  %24036 = vrcp.f32 %v16193_v6  ;;  %v16088_v6 = vrot.slane %v28752_v25, 6  ;;  %v31381_v49 = vld [vmem:[#allocation98_spill] sm:$0xff]  ;;  %v16157_v4 = vadd.f32 %v28750_v40, %v31383_v2  ;;  %v31388_v40 = vld [vmem:[#allocation115_spill] sm:$0xff] }
 0xdd2   :  { %v24019_v13 = vpop.eup %24018  ;;  %v16189_v8 = vadd.f32 1.0, %v24017_v15  ;;  %24038 = vrcp.f32 %v16187_v37  ;;  %v16132_v60 = vadd.f32 %v16072_v1, %v31381_v49  ;;  %v16096_v1 = vrot.slane %v28752_v25, 1 }
 0xdd3   :  { %v24021_v50 = vpop.eup %24020  ;;  %v16190_v59 = vadd.f32 1.0, %v24019_v13  ;;  %24040 = vrcp.f32 %v16188_v28  ;;  %v16148_v11 = vadd.f32 %v16088_v6, %v31387_v46  ;;  %v16152_v2 = vadd.f32 %v16092_v39, %v31388_v40 }
 0xdd4   :  { %v24023_v9 = vpop.eup %24022  ;;  %v16191_v44 = vadd.f32 1.0, %v24021_v50  ;;  %24042 = vrcp.f32 %v16189_v8  ;;  %v16140_v50 = vadd.f32 %v16080_v17, %v31384_v36  ;;  %v19281_v42 = vmul.f32 -1.442695, %v16132_v60  ;;  %v31390_v60 = vld [vmem:[#allocation159_spill] sm:$0xff] }
 0xdd5   :  { %v24025_v15 = vpop.eup %24024  ;;  %v16192_v37 = vadd.f32 1.0, %v24023_v9  ;;  %24044 = vrcp.f32 %v16190_v59  ;;  %v31386_v9 = vld [vmem:[#allocation108_spill] sm:$0xff]  ;;  %v19282_v17 = vmul.f32 -1.442695, %v16136_v0  ;;  %v16160_v6 = vadd.f32 %v16096_v1, %v31390_v60 }
 0xdd6   :  { %v24027_v13 = vpop.eup %24026  ;;  %v16194_v28 = vadd.f32 1.0, %v24025_v15  ;;  %24046 = vrcp.f32 %v16191_v44  ;;  %v16144_v59 = vadd.f32 %v16084_v62, %v31386_v9  ;;  %v16074_v44 = vrot.slane %v28754_v45, 2 }
 0xdd7   :  { %v24029_v8 = vpop.eup %24028  ;;  %24048 = vrcp.f32 %v16192_v37  ;;  %v16078_v37 = vrot.slane %v28754_v45, 3  ;;  %v19283_v62 = vmul.f32 -1.442695, %v16140_v50  ;;  %v19285_v0 = vmul.f32 -1.442695, %v16148_v11 }
 0xdd8   :  { %v24031_v49 = vpop.eup %24030  ;;  %24050 = vrcp.f32 %v16194_v28  ;;  %v16082_v28 = vrot.slane %v28754_v45, 4  ;;  %v19284_v46 = vmul.f32 -1.442695, %v16144_v59  ;;  %v16090_v39 = vrot.slane %v28754_v45, 6 }
 0xdd9   :  { %v24033_v15 = vpop.eup %24032  ;;  %24052 = vtanh.f32 %v16153_v38  ;;  %v16086_v38 = vrot.slane %v28754_v45, 5  ;;  %v19286_v25 = vmul.f32 -1.442695, %v16152_v2  ;;  %v16138_v50 = vadd.f32 %v16078_v37, %v30981_v52 }
 0xdda   :  { %v24035_v36 = vpop.eup %24034  ;;  %24054 = vtanh.f32 %v16157_v4  ;;  %v16134_v4 = vadd.f32 %v16074_v44, %v30980_v43  ;;  %v19287_v1 = vmul.f32 -1.442695, %v16156_v55  ;;  %v16142_v59 = vadd.f32 %v16082_v28, %v30982_v27 }
 0xddb   :  { %v24037_v9 = vpop.eup %24036  ;;  %24056 = vtanh.f32 %v16161_v26  ;;  %v19288_v60 = vmul.f32 -1.442695, %v16160_v6  ;;  %v16146_v44 = vadd.f32 %v16086_v38, %v30846_v63  ;;  %v16150_v2 = vadd.f32 %v16090_v39, %v30983_v3 }
 0xddc   :  { %v24039_v18 = vpop.eup %24038  ;;  %24058 = vpow2.f32 %v19281_v42  ;;  %v19290_v55 = vmul.f32 -1.442695, %v16138_v50  ;;  %v16094_v39 = vrot.slane %v28754_v45, 7 }
 0xddd   :  { %v24041_v40 = vpop.eup %24040  ;;  %v28802_v19 = vmul.f32 %v24039_v18, %v24027_v13  ;;  %24060 = vpow2.f32 %v19282_v17  ;;  %v19289_v17 = vmul.f32 -1.442695, %v16134_v4 }
 0xdde   :  { %v24043_v26 = vpop.eup %24042  ;;  %v28805_v54 = vmul.f32 %v24041_v40, %v24029_v8  ;;  %24062 = vpow2.f32 %v19283_v62 }
 0xddf   :  { %v24045_v42 = vpop.eup %24044  ;;  %v28808_v11 = vmul.f32 %v24043_v26, %v24031_v49  ;;  %24064 = vpow2.f32 %v19284_v46  ;;  %v19291_v49 = vmul.f32 -1.442695, %v16142_v59  ;;  %v19292_v46 = vmul.f32 -1.442695, %v16146_v44 }
 0xde0   :  { %v24047_v18 = vpop.eup %24046  ;;  %v28811_v13 = vmul.f32 %v24045_v42, %v24033_v15  ;;  %24066 = vpow2.f32 %v19285_v0  ;;  %v19293_v15 = vmul.f32 -1.442695, %v16150_v2  ;;  %v16158_v2 = vadd.f32 %v28754_v45, %v30849_v29 }
 0xde1   :  { %v24049_v8 = vpop.eup %24048  ;;  %v28814_v40 = vmul.f32 %v24047_v18, %v24035_v36  ;;  %24068 = vpow2.f32 %v19286_v25 }
 0xde2   :  { %v24051_v37 = vpop.eup %24050  ;;  %24070 = vpow2.f32 %v19287_v1 }
 0xde3   :  { %v24053_v62 = vpop.eup %24052  ;;  %24072 = vpow2.f32 %v19288_v60  ;;  %v16098_v60 = vrot.slane %v28754_v45, 1 }
 0xde4   :  { %v24055_v28 = vpop.eup %24054  ;;  %v28816_v6 = vmul.f32 %v24053_v62, %v24049_v8  ;;  %24074 = vpow2.f32 %v19289_v17 }
 0xde5   :  { %v24057_v38 = vpop.eup %24056  ;;  %v28818_v0 = vmul.f32 %v24055_v28, %v24037_v9  ;;  %24076 = vpow2.f32 %v19290_v55  ;;  %v16154_v9 = vadd.f32 %v16094_v39, %v30848_v57  ;;  %v16162_v55 = vadd.f32 %v16098_v60, %v31118_v61 }
 0xde6   :  { %v24059_v36 = vpop.eup %24058  ;;  %v28821_v4 = vmul.f32 %v24057_v38, %v24051_v37  ;;  %24078 = vpow2.f32 %v19291_v49  ;;  %v19295_v39 = vmul.f32 -1.442695, %v16158_v2 }
 0xde7   :  { %v24061_v25 = vpop.eup %24060  ;;  %v16235_v50 = vadd.f32 1.0, %v24059_v36  ;;  %24080 = vpow2.f32 %v19292_v46  ;;  %v19294_v28 = vmul.f32 -1.442695, %v16154_v9  ;;  %v16324_v9 = vrot.slane %v28490_v31, 7 }
 0xde8   :  { %v24063_v26 = vpop.eup %24062  ;;  %v16236_v1 = vadd.f32 1.0, %v24061_v25  ;;  %24082 = vpow2.f32 %v19293_v15  ;;  %v19296_v25 = vmul.f32 -1.442695, %v16162_v55 }
 0xde9   :  { %v24065_v59 = vpop.eup %24064  ;;  %v16237_v42 = vadd.f32 1.0, %v24063_v26  ;;  %24084 = vrcp.f32 %v16235_v50 }
 0xdea   :  { %v24067_v44 = vpop.eup %24066  ;;  %v16238_v18 = vadd.f32 1.0, %v24065_v59  ;;  %24086 = vrcp.f32 %v16236_v1  ;;  %v16323_v59 = vrot.slane %v28486_v12, 7 }
 0xdeb   :  { %v24069_v17 = vpop.eup %24068  ;;  %v16239_v8 = vadd.f32 1.0, %v24067_v44  ;;  %24088 = vrcp.f32 %v16237_v42 }
 0xdec   :  { %v24071_v37 = vpop.eup %24070  ;;  %v16240_v49 = vadd.f32 1.0, %v24069_v17  ;;  %24090 = vrcp.f32 %v16238_v18  ;;  %v16325_v17 = vrot.slane %v28493_v58, 7  ;;  %v16329_v58 = vrot.slane %v28510_v21, 7 }
 0xded   :  { %v24073_v62 = vpop.eup %24072  ;;  %v16241_v46 = vadd.f32 1.0, %v24071_v37  ;;  %24092 = vrcp.f32 %v16239_v8  ;;  %v16326_v37 = vrot.slane %v28498_v48, 7 }
 0xdee   :  { %v24075_v15 = vpop.eup %24074  ;;  %v16242_v38 = vadd.f32 1.0, %v24073_v62  ;;  %24094 = vrcp.f32 %v16240_v49  ;;  %v16327_v49 = vrot.slane %v28502_v47, 7 }
 0xdef   :  { %v24077_v36 = vpop.eup %24076  ;;  %24096 = vrcp.f32 %v16241_v46  ;;  %v16291_v50 = vadd.f32 1.0, %v24075_v15  ;;  %v16328_v46 = vrot.slane %v28506_v32, 7 }
 0xdf0   :  { %v24079_v45 = vpop.eup %24078  ;;  %24098 = vrcp.f32 %v16242_v38  ;;  %v16292_v60 = vadd.f32 1.0, %v24077_v36 }
 0xdf1   :  { %v24081_v26 = vpop.eup %24080  ;;  %24100 = vpow2.f32 %v19294_v28  ;;  %v16293_v42 = vadd.f32 1.0, %v24079_v45 }
 0xdf2   :  { %v24083_v1 = vpop.eup %24082  ;;  %24102 = vpow2.f32 %v19295_v39  ;;  %v16294_v18 = vadd.f32 1.0, %v24081_v26 }
 0xdf3   :  { %v24085_v44 = vpop.eup %24084  ;;  %24104 = vpow2.f32 %v19296_v25  ;;  %v16295_v32 = vadd.f32 1.0, %v24083_v1 }
 0xdf4   :  { %v24087_v2 = vpop.eup %24086  ;;  %v16339_v8 = vmul.f32 %v24085_v44, %v16323_v59  ;;  %24106 = vrcp.f32 %v16291_v50 }
 0xdf5   :  { %v24089_v55 = vpop.eup %24088  ;;  %v16340_v62 = vmul.f32 %v24087_v2, %v16324_v9  ;;  %24108 = vrcp.f32 %v16292_v60 }
 0xdf6   :  { %v24091_v12 = vpop.eup %24090  ;;  %v16341_v28 = vmul.f32 %v24089_v55, %v16325_v17  ;;  %v28835_v31 = vadd.f32 %v28802_v19, %v16339_v8  ;;  %24110 = vrcp.f32 %v16293_v42  ;;  %v16330_v19 = vrot.slane %v28513_v34, 7 }
 0xdf7   :  { %v24093_v15 = vpop.eup %24092  ;;  %v16342_v38 = vmul.f32 %v24091_v12, %v16326_v37  ;;  %v28839_v39 = vadd.f32 %v28805_v54, %v16340_v62  ;;  %24112 = vrcp.f32 %v16294_v18 }
 0xdf8   :  { %v24095_v48 = vpop.eup %24094  ;;  %v16343_v47 = vmul.f32 %v24093_v15, %v16327_v49  ;;  %v28842_v36 = vadd.f32 %v28808_v11, %v16341_v28  ;;  %24114 = vtanh.f32 %v28835_v31 }
 0xdf9   :  { %v24097_v25 = vpop.eup %24096  ;;  %v16344_v45 = vmul.f32 %v24095_v48, %v16328_v46  ;;  %v28847_v50 = vadd.f32 %v28811_v13, %v16342_v38  ;;  %24116 = vtanh.f32 %v28839_v39 }
 0xdfa   :  { %v24099_v21 = vpop.eup %24098  ;;  %v16345_v54 = vmul.f32 %v24097_v25, %v16329_v58  ;;  %v28851_v26 = vadd.f32 %v28814_v40, %v16343_v47  ;;  %24118 = vtanh.f32 %v28842_v36 }
 0xdfb   :  { %v24101_v11 = vpop.eup %24100  ;;  %v28855_v60 = vadd.f32 %v28816_v6, %v16344_v45  ;;  %24120 = vtanh.f32 %v28847_v50  ;;  %v16346_v34 = vmul.f32 %v24099_v21, %v16330_v19 }
 0xdfc   :  { %v24103_v1 = vpop.eup %24102  ;;  %v16296_v59 = vadd.f32 1.0, %v24101_v11  ;;  %24122 = vrcp.f32 %v16295_v32  ;;  %v28859_v13 = vadd.f32 %v28818_v0, %v16345_v54 }
 0xdfd   :  { %v24105_v42 = vpop.eup %24104  ;;  %v16297_v44 = vadd.f32 1.0, %v24103_v1  ;;  %v28862_v40 = vadd.f32 %v28821_v4, %v16346_v34  ;;  %24124 = vtanh.f32 %v28851_v26 }
 0xdfe   :  { %v24107_v9 = vpop.eup %24106  ;;  %v16298_v18 = vadd.f32 1.0, %v24105_v42  ;;  %24126 = vrcp.f32 %v16296_v59 }
 0xdff   :  { %v24109_v6 = vpop.eup %24108  ;;  %24128 = vrcp.f32 %v16297_v44 }
 0xe00   :  { %v24111_v2 = vpop.eup %24110  ;;  %24130 = vrcp.f32 %v16298_v18 }
 0xe01   :  { %v24113_v17 = vpop.eup %24112  ;;  %24132 = vtanh.f32 %v28855_v60 }
 0xe02   :  { %v24115_v8 = vpop.eup %24114  ;;  %24134 = vtanh.f32 %v28859_v13 }
 0xe03   :  { %v24117_v0 = vpop.eup %24116  ;;  %24136 = vtanh.f32 %v28862_v40  ;;  %v16371_v4 = vmul.f32 %v24115_v8, %v24107_v9 }
 0xe04   :  { %v24119_v55 = vpop.eup %24118  ;;  %v16372_v37 = vmul.f32 %v24117_v0, %v24109_v6 }
 0xe05   :  { %v24121_v49 = vpop.eup %24120  ;;  %v16373_v62 = vmul.f32 %v24119_v55, %v24111_v2  ;;  %v16387_v12 = vrot.slane %v16371_v4, 6 }
 0xe06   :  { %v24123_v46 = vpop.eup %24122  ;;  %v16374_v28 = vmul.f32 %v24121_v49, %v24113_v17  ;;  %v16388_v15 = vrot.slane %v16372_v37, 5 }
 0xe07   :  { %v24125_v58 = vpop.eup %24124  ;;  %v16390_v38 = vrot.slane %v16373_v62, 4 }
 0xe08   :  { %v24127_v48 = vpop.eup %24126  ;;  %v16375_v47 = vmul.f32 %v24125_v58, %v24123_v46  ;;  %v16389_v32 = vsel %vm4111_vm1, %v16388_v15, %v16387_v12  ;;  %v16392_v25 = vrot.slane %v16374_v28, 3  ;;  %v31391_v12 = vld [vmem:[#allocation83_spill] sm:$0xff]  ;;  %v31393_v28 = vld [vmem:[#allocation41_spill] sm:$0xff]  ;;  %v31394_v15 = vld [vmem:[#allocation102_spill] sm:$0xff] }
 0xe09   :  { %v24129_v19 = vpop.eup %24128  ;;  %v16391_v45 = vsel %vm4114_vm2, %v16390_v38, %v16389_v32  ;;  %v31392_v46 = vld [vmem:[#allocation99_spill] sm:$0xff]  ;;  %v31395_v58 = vld [vmem:[#allocation84_spill] sm:$0xff]  ;;  %v31396_v38 = vld [vmem:[#allocation105_spill] sm:$0xff] }
 0xe0a   :  { %v24131_v21 = vpop.eup %24130  ;;  %v16393_v54 = vsel %vm4117_vm3, %v16392_v25, %v16391_v45  ;;  %v16394_v11 = vrot.slane %v16375_v47, 2  ;;  %v31400_v47 = vld [vmem:[#allocation109_spill] sm:$0xff]  ;;  %v31401_v32 = vld [vmem:[#allocation27_spill] sm:$0xff]  ;;  %v31402_v25 = vld [vmem:[#allocation112_spill] sm:$0xff] }
 0xe0b   :  { %v24133_v34 = vpop.eup %24132  ;;  %v31404_v45 = vld [vmem:[#allocation113_spill] sm:$0xff] }
 0xe0c   :  { %v24135_v1 = vpop.eup %24134  ;;  %v16376_v59 = vmul.f32 %v24133_v34, %v24127_v48  ;;  %v16395_v42 = vsel %vm4120_vm4, %v16394_v11, %v16393_v54  ;;  %v31397_v48 = vld [vmem:[#allocation26_spill] sm:$0xff]  ;;  %v31406_v54 = vld [vmem:[#allocation116_spill] sm:$0xff]  ;;  %v31407_v11 = vld [vmem:[#allocation87_spill] sm:$0xff] }
 0xe0d   :  { %v24137_v44 = vpop.eup %24136  ;;  %v16377_v9 = vmul.f32 %v24135_v1, %v24129_v19  ;;  %v31403_v19 = vld [vmem:[#allocation86_spill] sm:$0xff]  ;;  %v31408_v34 = vld [vmem:[#allocation117_spill] sm:$0xff]  ;;  %v31409_v1 = vld [vmem:[#allocation36_spill] sm:$0xff] }
 0xe0e   :  { %v16378_v18 = vmul.f32 %v24137_v44, %v24131_v21  ;;  %v16396_v6 = vrot.slane %v16376_v59, 1  ;;  %v31405_v21 = vld [vmem:[#allocation32_spill] sm:$0xff]  ;;  %v31410_v59 = vld [vmem:[#allocation118_spill] sm:$0xff]  ;;  %v31412_v44 = vld [vmem:[#allocation119_spill] sm:$0xff] }
 0xe10   :  { %v16397_v2 = vsel %vm4123_vm5, %v16396_v6, %v16395_v42  ;;  %v16399_v17 = vrot.slane %v16378_v18, 7  ;;  %v31411_v42 = vld [vmem:[#allocation88_spill] sm:$0xff]  ;;  %v31415_v6 = vld [vmem:[#allocation89_spill] sm:$0xff] }
 0xe11   :  { %v16398_v8 = vsel %vm4126_vm6, %v16377_v9, %v16397_v2  ;;  %v31413_v9 = vld [vmem:[#allocation39_spill] sm:$0xff]  ;;  %v31414_v18 = vld [vmem:[#allocation120_spill] sm:$0xff]  ;;  %v31416_v2 = vld [vmem:[#allocation121_spill] sm:$0xff] }
 0xe12   :  { %v16400_v0 = vsel %vm4129_vm7, %v16399_v17, %v16398_v8  ;;  %v31417_v17 = vld [vmem:[#allocation42_spill] sm:$0xff] }
 0xe13   :  { %v28875_v4 = vand.u32 4294901760, %v16400_v0  ;;  %v31418_v8 = vld [vmem:[#allocation122_spill] sm:$0xff] }
 0xe15   :  { %v28878_v55 = vsub.f32 %v16400_v0, %v28875_v4  ;;  %v31419_v0 = vld [vmem:[#allocation90_spill] sm:$0xff] }
 0xe17   :  { %v28881_v37 = vand.u32 4294901760, %v28878_v55 }
 0xe19   :  { %v16502_v49 = vsub.f32 %v28878_v55, %v28881_v37 }
 0xe1b   :  { %v16503_v62 = vand.u32 4294901760, %v16502_v49  ;;  %v31420_v49 = vld [vmem:[#allocation123_spill] sm:$0xff] }
 0xe1d   :  { %16504 = vmatmul.mubr.f32.vlgmr.msra.gmra.mrb[30].mxu0 %v16503_v62  ;;  %17359 = vmatmul.mubr.f32.vlgmr.msra.gmra.mrb[46].mxu1 %v16503_v62  ;;  %v31421_v62 = vld [vmem:[#allocation44_spill] sm:$0xff] }
 0xe1e   :  { %22405 = vmatpush1.bf16.msra.mxu0 %v30851_v23  ;;  %22597 = vmatpush1.bf16.msra.mxu1 %v31254_v41  ;;  %v31398_v23 = vld [vmem:[#allocation107_spill] sm:$0xff]  ;;  %v31399_v41 = vld [vmem:[#allocation85_spill] sm:$0xff] }
 0xe1f   :  { %22407 = vmatprep.subr.bf16.mxu0 %v31391_v12  ;;  %22599 = vmatprep.subr.bf16.mxu1 %v31392_v46  ;;  %v31422_v12 = vld [vmem:[#allocation124_spill] sm:$0xff]  ;;  %v31423_v46 = vld [vmem:[#allocation91_spill] sm:$0xff] }
 0xe20   :  { %16734 = vmatprep.mubr.f32.mxu0 %v30575_v30  ;;  %17589 = vmatprep.mubr.f32.mxu1 %v30575_v30 }
 0xe22   :  { %22409 = vmatpush1.bf16.msra.mxu0 %v31393_v28  ;;  %22601 = vmatpush1.bf16.msra.mxu1 %v31394_v15  ;;  %v31424_v28 = vld [vmem:[#allocation125_spill] sm:$0xff] }
 0xe23   :  { %22411 = vmatprep.subr.bf16.mxu0 %v31395_v58  ;;  %22603 = vmatprep.subr.bf16.mxu1 %v31396_v38  ;;  %v31425_v15 = vld [vmem:[#allocation45_spill] sm:$0xff]  ;;  %v31426_v58 = vld [vmem:[#allocation126_spill] sm:$0xff]  ;;  %v31427_v38 = vld [vmem:[#allocation92_spill] sm:$0xff] }
 0xe26   :  { %22413 = vmatpush1.bf16.msra.mxu0 %v31397_v48  ;;  %22605 = vmatpush1.bf16.msra.mxu1 %v31398_v23  ;;  %v31428_v48 = vld [vmem:[#allocation127_spill] sm:$0xff] }
 0xe27   :  { %22415 = vmatprep.subr.bf16.mxu0 %v31399_v41  ;;  %22607 = vmatprep.subr.bf16.mxu1 %v31400_v47  ;;  %v31429_v23 = vld [vmem:[#allocation15_spill] sm:$0xff]  ;;  %v31430_v41 = vld [vmem:[#allocation128_spill] sm:$0xff]  ;;  %v31431_v47 = vld [vmem:[#allocation93_spill] sm:$0xff] }
 0xe2a   :  { %22417 = vmatpush1.bf16.msra.mxu0 %v31401_v32  ;;  %22609 = vmatpush1.bf16.msra.mxu1 %v31402_v25  ;;  %v31432_v32 = vld [vmem:[#allocation129_spill] sm:$0xff]  ;;  %v31433_v25 = vld [vmem:[#allocation47_spill] sm:$0xff] }
 0xe2b   :  { %22419 = vmatprep.subr.bf16.mxu0 %v31403_v19  ;;  %22611 = vmatprep.subr.bf16.mxu1 %v31404_v45  ;;  %v31434_v19 = vld [vmem:[#allocation130_spill] sm:$0xff]  ;;  %v31435_v45 = vld [vmem:[#allocation16_spill] sm:$0xff] }
 0xe2e   :  { %22421 = vmatpush1.bf16.msra.mxu0 %v31405_v21  ;;  %22613 = vmatpush1.bf16.msra.mxu1 %v31406_v54  ;;  %v31436_v21 = vld [vmem:[#allocation131_spill] sm:$0xff] }
 0xe2f   :  { %22423 = vmatprep.subr.bf16.mxu0 %v31407_v11  ;;  %22615 = vmatprep.subr.bf16.mxu1 %v31408_v34  ;;  %v31437_v54 = vld [vmem:[#allocation19_spill] sm:$0xff]  ;;  %v31438_v11 = vld [vmem:[#allocation132_spill] sm:$0xff]  ;;  %v31439_v34 = vld [vmem:[#allocation94_spill] sm:$0xff] }
 0xe32   :  { %22425 = vmatpush1.bf16.msra.mxu0 %v31409_v1  ;;  %22617 = vmatpush1.bf16.msra.mxu1 %v31410_v59  ;;  %v31440_v1 = vld [vmem:[#allocation133_spill] sm:$0xff]  ;;  %v31441_v59 = vld [vmem:[#allocation23_spill] sm:$0xff] }
 0xe33   :  { %22427 = vmatprep.subr.bf16.mxu0 %v31411_v42  ;;  %22619 = vmatprep.subr.bf16.mxu1 %v31412_v44  ;;  %v31442_v42 = vld [vmem:[#allocation134_spill] sm:$0xff]  ;;  %v31443_v44 = vld [vmem:[#allocation95_spill] sm:$0xff] }
 0xe36   :  { %22429 = vmatpush1.bf16.msra.mxu0 %v31413_v9  ;;  %22621 = vmatpush1.bf16.msra.mxu1 %v31414_v18  ;;  %v31444_v9 = vld [vmem:[#allocation135_spill] sm:$0xff]  ;;  %v31445_v18 = vld [vmem:[#allocation28_spill] sm:$0xff] }
 0xe37   :  { %22431 = vmatprep.subr.bf16.mxu0 %v31415_v6  ;;  %22623 = vmatprep.subr.bf16.mxu1 %v31416_v2  ;;  %v31446_v6 = vld [vmem:[#allocation136_spill] sm:$0xff] }
 0xe38   :  { %v31447_v2 = vld [vmem:[#allocation96_spill] sm:$0xff] }
 0xe3a   :  { %22433 = vmatpush1.bf16.msra.mxu0 %v31417_v17  ;;  %22625 = vmatpush1.bf16.msra.mxu1 %v31418_v8  ;;  %v31448_v17 = vld [vmem:[#allocation137_spill] sm:$0xff]  ;;  %v31449_v8 = vld [vmem:[#allocation30_spill] sm:$0xff] }
 0xe3b   :  { %22435 = vmatprep.subr.bf16.mxu0 %v31419_v0  ;;  %22627 = vmatprep.subr.bf16.mxu1 %v31420_v49  ;;  %v31450_v0 = vld [vmem:[#allocation138_spill] sm:$0xff]  ;;  %v31452_v49 = vld [vmem:[#allocation55_spill] sm:$0xff] }
 0xe3d   :  { %16736 = vmatmul.mubr.f32.vlgmr.msra.gmra.mrb[30].mxu0 %v28875_v4  ;;  %17591 = vmatmul.mubr.f32.vlgmr.msra.gmra.mrb[46].mxu1 %v28875_v4 }
 0xe3e   :  { %22437 = vmatpush1.bf16.msra.mxu0 %v31421_v62  ;;  %22629 = vmatpush1.bf16.msra.mxu1 %v31422_v12  ;;  %v31453_v62 = vld [vmem:[#allocation31_spill] sm:$0xff]  ;;  %v31454_v12 = vld [vmem:[#allocation56_spill] sm:$0xff] }
 0xe3f   :  { %22439 = vmatprep.subr.bf16.mxu0 %v31423_v46  ;;  %22631 = vmatprep.subr.bf16.mxu1 %v31424_v28  ;;  %v31455_v46 = vld [vmem:[#allocation35_spill] sm:$0xff]  ;;  %v31456_v28 = vld [vmem:[#allocation57_spill] sm:$0xff] }
 0xe40   :  { %16870 = vmatprep.mubr.f32.mxu0 %v30575_v30  ;;  %17725 = vmatprep.mubr.f32.mxu1 %v30575_v30 }
 0xe42   :  { %22441 = vmatpush1.bf16.msra.mxu0 %v31425_v15  ;;  %22633 = vmatpush1.bf16.msra.mxu1 %v31426_v58  ;;  %v31457_v15 = vld [vmem:[#allocation20_spill] sm:$0xff]  ;;  %v31458_v58 = vld [vmem:[#allocation58_spill] sm:$0xff] }
 0xe43   :  { %22443 = vmatprep.subr.bf16.mxu0 %v31427_v38  ;;  %22635 = vmatprep.subr.bf16.mxu1 %v31428_v48  ;;  %v31459_v38 = vld [vmem:[#allocation64_spill] sm:$0xff] }
 0xe44   :  { %v31460_v48 = vld [vmem:[#allocation68_spill] sm:$0xff] }
 0xe46   :  { %22445 = vmatpush1.bf16.msra.mxu0 %v31429_v23  ;;  %22637 = vmatpush1.bf16.msra.mxu1 %v31430_v41  ;;  %v31461_v23 = vld [vmem:[#allocation21_spill] sm:$0xff] }
 0xe47   :  { %22447 = vmatprep.subr.bf16.mxu0 %v31431_v47  ;;  %22639 = vmatprep.subr.bf16.mxu1 %v31432_v32  ;;  %v31462_v41 = vld [vmem:[#allocation69_spill] sm:$0xff]  ;;  %v31463_v47 = vld [vmem:[#allocation24_spill] sm:$0xff]  ;;  %v31464_v32 = vld [vmem:[#allocation71_spill] sm:$0xff] }
 0xe4a   :  { %22449 = vmatpush1.bf16.msra.mxu0 %v31433_v25  ;;  %22641 = vmatpush1.bf16.msra.mxu1 %v31434_v19  ;;  %v31465_v25 = vld [vmem:[#allocation29_spill] sm:$0xff] }
 0xe4b   :  { %22451 = vmatprep.subr.bf16.mxu0 %v31435_v45  ;;  %22643 = vmatprep.subr.bf16.mxu1 %v31436_v21  ;;  %v31466_v19 = vld [vmem:[#allocation73_spill] sm:$0xff]  ;;  %v31467_v45 = vld [vmem:[#allocation34_spill] sm:$0xff]  ;;  %v31468_v21 = vld [vmem:[#allocation75_spill] sm:$0xff] }
 0xe4e   :  { %22453 = vmatpush1.bf16.msra.mxu0 %v31437_v54  ;;  %22645 = vmatpush1.bf16.msra.mxu1 %v31438_v11  ;;  %v31469_v54 = vld [vmem:[#allocation37_spill] sm:$0xff]  ;;  %v31470_v11 = vld [vmem:[#allocation59_spill] sm:$0xff] }
 0xe4f   :  { %22455 = vmatprep.subr.bf16.mxu0 %v31439_v34  ;;  %22647 = vmatprep.subr.bf16.mxu1 %v31440_v1  ;;  %v31471_v34 = vld [vmem:[#allocation139_spill] sm:$0xff]  ;;  %v31472_v1 = vld [vmem:[#allocation60_spill] sm:$0xff] }
 0xe52   :  { %22457 = vmatpush1.bf16.msra.mxu0 %v31441_v59  ;;  %22649 = vmatpush1.bf16.msra.mxu1 %v31442_v42  ;;  %v31473_v59 = vld [vmem:[#allocation140_spill] sm:$0xff]  ;;  %v31474_v42 = vld [vmem:[#allocation61_spill] sm:$0xff] }
 0xe53   :  { %22459 = vmatprep.subr.bf16.mxu0 %v31443_v44  ;;  %22651 = vmatprep.subr.bf16.mxu1 %v31444_v9  ;;  %v31475_v44 = vld [vmem:[#allocation141_spill] sm:$0xff]  ;;  %v31476_v9 = vld [vmem:[#allocation63_spill] sm:$0xff] }
 0xe56   :  { %22461 = vmatpush1.bf16.msra.mxu0 %v31445_v18  ;;  %22653 = vmatpush1.bf16.msra.mxu1 %v31446_v6  ;;  %v31477_v18 = vld [vmem:[#allocation142_spill] sm:$0xff]  ;;  %v31478_v6 = vld [vmem:[#allocation65_spill] sm:$0xff] }
 0xe57   :  { %22463 = vmatprep.subr.bf16.mxu0 %v31447_v2  ;;  %22655 = vmatprep.subr.bf16.mxu1 %v31448_v17  ;;  %v31479_v2 = vld [vmem:[#allocation143_spill] sm:$0xff]  ;;  %v31481_v17 = vld [vmem:[#allocation144_spill] sm:$0xff] }
 0xe5a   :  { %22465 = vmatpush1.bf16.msra.mxu0 %v31449_v8  ;;  %22657 = vmatpush1.bf16.msra.mxu1 %v31450_v0  ;;  %v31482_v8 = vld [vmem:[#allocation67_spill] sm:$0xff]  ;;  %v31483_v0 = vld [vmem:[#allocation145_spill] sm:$0xff] }
 0xe5b   :  { %22467 = vmatprep.subr.bf16.mxu0 %v30634_v20  ;;  %22659 = vmatprep.subr.bf16.mxu1 %v30635_v33 }
 0xe5d   :  { %16873 = vmatmul.mubr.f32.vlgmr.msra.gmra.mrb[30].mxu0 %v28878_v55  ;;  %17728 = vmatmul.mubr.f32.vlgmr.msra.gmra.mrb[46].mxu1 %v28878_v55  ;;  %v31451_v55 = vld [vmem:[#allocation25_spill] sm:$0xff] }
 0xe5e   :  { %22469 = vmatpush1.bf16.msra.mxu0 %v30636_v10  ;;  %22661 = vmatpush1.bf16.msra.mxu1 %v30637_v56 }
 0xe5f   :  { %22471 = vmatprep.subr.bf16.mxu0 %v30638_v5  ;;  %22663 = vmatprep.subr.bf16.mxu1 %v30639_v14 }
 0xe60   :  { %16975 = vmatprep.mubr.f32.mxu0 %v30575_v30  ;;  %17830 = vmatprep.mubr.f32.mxu1 %v30575_v30 }
 0xe62   :  { %22473 = vmatpush1.bf16.msra.mxu0 %v30640_v24  ;;  %22665 = vmatpush1.bf16.msra.mxu1 %v30641_v16 }
 0xe63   :  { %22475 = vmatprep.subr.bf16.mxu0 %v30642_v53  ;;  %22667 = vmatprep.subr.bf16.mxu1 %v30643_v51 }
 0xe66   :  { %22477 = vmatpush1.bf16.msra.mxu0 %v30644_v35  ;;  %22669 = vmatpush1.bf16.msra.mxu1 %v30645_v7 }
 0xe67   :  { %22479 = vmatprep.subr.bf16.mxu0 %v31178_v22  ;;  %22671 = vmatprep.subr.bf16.mxu1 %v31451_v55 }
 0xe6a   :  { %22481 = vmatpush1.bf16.msra.mxu0 %v31452_v49  ;;  %22673 = vmatpush1.bf16.msra.mxu1 %v31453_v62 }
 0xe6b   :  { %22483 = vmatprep.subr.bf16.mxu0 %v31454_v12  ;;  %22675 = vmatprep.subr.bf16.mxu1 %v31455_v46 }
 0xe6e   :  { %22485 = vmatpush1.bf16.msra.mxu0 %v31456_v28  ;;  %22677 = vmatpush1.bf16.msra.mxu1 %v31457_v15 }
 0xe6f   :  { %22487 = vmatprep.subr.bf16.mxu0 %v31458_v58  ;;  %22679 = vmatprep.subr.bf16.mxu1 %v31459_v38 }
 0xe72   :  { %22489 = vmatpush1.bf16.msra.mxu0 %v31460_v48  ;;  %22681 = vmatpush1.bf16.msra.mxu1 %v31461_v23 }
 0xe73   :  { %22491 = vmatprep.subr.bf16.mxu0 %v31462_v41  ;;  %22683 = vmatprep.subr.bf16.mxu1 %v31463_v47 }
 0xe76   :  { %22493 = vmatpush1.bf16.msra.mxu0 %v31464_v32  ;;  %22685 = vmatpush1.bf16.msra.mxu1 %v31465_v25 }
 0xe77   :  { %22495 = vmatprep.subr.bf16.mxu0 %v31466_v19  ;;  %22687 = vmatprep.subr.bf16.mxu1 %v31467_v45 }
 0xe7a   :  { %22497 = vmatpush1.bf16.msra.mxu0 %v31468_v21  ;;  %22689 = vmatpush1.bf16.msra.mxu1 %v31469_v54 }
 0xe7b   :  { %22499 = vmatprep.subr.bf16.mxu0 %v31470_v11  ;;  %22691 = vmatprep.subr.bf16.mxu1 %v31471_v34  ;;  %v31484_v11 = vld [vmem:[#allocation70_spill] sm:$0xff] }
 0xe7c   :  { %v31485_v34 = vld [vmem:[#allocation146_spill] sm:$0xff] }
 0xe7d   :  { %16979 = vmatmul.mubr.f32.vlgmr.msra.gmra.mrb[30].mxu0 %v28881_v37  ;;  %17834 = vmatmul.mubr.f32.vlgmr.msra.gmra.mrb[46].mxu1 %v28881_v37  ;;  %v31480_v37 = vld [vmem:[#allocation66_spill] sm:$0xff] }
 0xe7e   :  { %22501 = vmatpush1.bf16.msra.mxu0 %v31472_v1  ;;  %22693 = vmatpush1.bf16.msra.mxu1 %v31473_v59  ;;  %v31486_v1 = vld [vmem:[#allocation72_spill] sm:$0xff]  ;;  %v31487_v59 = vld [vmem:[#allocation147_spill] sm:$0xff] }
 0xe7f   :  { %22503 = vmatprep.subr.bf16.mxu0 %v31474_v42  ;;  %22695 = vmatprep.subr.bf16.mxu1 %v31475_v44  ;;  %v31488_v42 = vld [vmem:[#allocation74_spill] sm:$0xff]  ;;  %v31489_v44 = vld [vmem:[#allocation148_spill] sm:$0xff] }
 0xe80   :  { %17145 = vmatprep.mubr.f32.mxu0 %v30575_v30  ;;  %18000 = vmatprep.mubr.f32.mxu1 %v30575_v30 }
 0xe82   :  { %22505 = vmatpush1.bf16.msra.mxu0 %v31476_v9  ;;  %22697 = vmatpush1.bf16.msra.mxu1 %v31477_v18  ;;  %v31490_v9 = vld [vmem:[#allocation76_spill] sm:$0xff]  ;;  %v31491_v18 = vld [vmem:[#allocation149_spill] sm:$0xff] }
 0xe83   :  { %22507 = vmatprep.subr.bf16.mxu0 %v31478_v6  ;;  %22699 = vmatprep.subr.bf16.mxu1 %v31479_v2  ;;  %v31492_v6 = vld [vmem:[#allocation77_spill] sm:$0xff]  ;;  %v31493_v2 = vld [vmem:[#allocation150_spill] sm:$0xff] }
 0xe86   :  { %22509 = vmatpush1.bf16.msra.mxu0 %v31480_v37  ;;  %22701 = vmatpush1.bf16.msra.mxu1 %v31481_v17  ;;  %v31494_v37 = vld [vmem:[#allocation78_spill] sm:$0xff]  ;;  %v31495_v17 = vld [vmem:[#allocation151_spill] sm:$0xff] }
 0xe87   :  { %22511 = vmatprep.subr.bf16.mxu0 %v31482_v8  ;;  %22703 = vmatprep.subr.bf16.mxu1 %v31483_v0  ;;  %v31496_v8 = vld [vmem:[#allocation79_spill] sm:$0xff]  ;;  %v31497_v0 = vld [vmem:[#allocation152_spill] sm:$0xff] }
 0xe8a   :  { %22513 = vmatpush1.bf16.msra.mxu0 %v31484_v11  ;;  %22705 = vmatpush1.bf16.msra.mxu1 %v31485_v34  ;;  %v31498_v11 = vld [vmem:[#allocation81_spill] sm:$0xff] }
 0xe8b   :  { %22515 = vmatprep.subr.bf16.mxu0 %v31486_v1  ;;  %22707 = vmatprep.subr.bf16.mxu1 %v31487_v59  ;;  %v31499_v34 = vld [vmem:[#allocation153_spill] sm:$0xff]  ;;  %v31500_v1 = vld [vmem:[#allocation82_spill] sm:$0xff] }
 0xe8c   :  { %v31501_v59 = vld [vmem:[#allocation154_spill] sm:$0xff] }
 0xe8e   :  { %22517 = vmatpush1.bf16.msra.mxu0 %v31488_v42  ;;  %22709 = vmatpush1.bf16.msra.mxu1 %v31489_v44  ;;  %v18437_v44 = vld [vmem:[#allocation8 + $0x68] sm:$0xff] }
 0xe8f   :  { %22519 = vmatprep.subr.bf16.mxu0 %v31490_v9  ;;  %22711 = vmatprep.subr.bf16.mxu1 %v31491_v18  ;;  %v18438_v9 = vld [vmem:[#allocation8 + $0x70] sm:$0xff] }
 0xe92   :  { %22521 = vmatpush1.bf16.msra.mxu0 %v31492_v6  ;;  %22713 = vmatpush1.bf16.msra.mxu1 %v31493_v2 }
 0xe93   :  { %22523 = vmatprep.subr.bf16.mxu0 %v31494_v37  ;;  %22715 = vmatprep.subr.bf16.mxu1 %v31495_v17  ;;  %v18439_v17 = vld [vmem:[#allocation8 + $0x78] sm:$0xff] }
 0xe96   :  { %22525 = vmatpush1.bf16.msra.mxu0 %v31496_v8  ;;  %22717 = vmatpush1.bf16.msra.mxu1 %v31497_v0 }
 0xe97   :  { %22527 = vmatprep.subr.bf16.mxu0 %v31498_v11  ;;  %22719 = vmatprep.subr.bf16.mxu1 %v31499_v34 }
 0xe9a   :  { %22529 = vmatpush1.bf16.msra.mxu0 %v31500_v1  ;;  %22721 = vmatpush1.bf16.msra.mxu1 %v31501_v59  ;;  %v18510_v1 = vand.u32 4294901760, %v18437_v44 }
 0xe9b   :  { %22531 = vmatprep.subr.bf16.mxu0 %v30634_v20  ;;  %22723 = vmatprep.subr.bf16.mxu1 %v30635_v33  ;;  %v18425_v20 = vld [vmem:[#allocation8 + $0x8] sm:$0xff]  ;;  %v18428_v33 = vld [vmem:[#allocation8 + $0x20] sm:$0xff] }
 0xe9d   :  { %17147 = vmatmul.mubr.f32.vlgmr.msra.gmra.mrb[30].mxu0 %v28875_v4  ;;  %18002 = vmatmul.mubr.f32.vlgmr.msra.gmra.mrb[46].mxu1 %v28875_v4 }
 0xe9e   :  { %22533 = vmatpush1.bf16.msra.mxu0 %v30636_v10  ;;  %22725 = vmatpush1.bf16.msra.mxu1 %v30637_v56  ;;  %v18424_v10 = vld [vmem:[#allocation8] sm:$0xff] }
 0xe9f   :  { %22535 = vmatprep.subr.bf16.mxu0 %v30638_v5  ;;  %22727 = vmatprep.subr.bf16.mxu1 %v30639_v14  ;;  %v30015_v14 = vmov 0.0|0.0   ;;  %v18427_v5 = vld [vmem:[#allocation8 + $0x18] sm:$0xff] }
 0xea0   :  { %17249 = vmatprep.mubr.f32.mxu0 %v30575_v30  ;;  %18104 = vmatprep.mubr.f32.mxu1 %v30575_v30 }
 0xea2   :  { %22537 = vmatpush1.bf16.msra.mxu0 %v30640_v24  ;;  %22729 = vmatpush1.bf16.msra.mxu1 %v30641_v16  ;;  %v18426_v24 = vld [vmem:[#allocation8 + $0x10] sm:$0xff]  ;;  %v18474_v16 = vand.u32 4294901760, %v18425_v20 }
 0xea3   :  { %22539 = vmatprep.subr.bf16.mxu0 %v30642_v53  ;;  %22731 = vmatprep.subr.bf16.mxu1 %v30643_v51  ;;  %v18471_v53 = vand.u32 4294901760, %v18424_v10  ;;  %v18477_v56 = vand.u32 4294901760, %v18426_v24  ;;  %v18480_v51 = vand.u32 4294901760, %v18427_v5 }
 0xea6   :  { %22541 = vmatpush1.bf16.msra.mxu0 %v30644_v35  ;;  %22733 = vmatpush1.bf16.msra.mxu1 %v30645_v7  ;;  %v18429_v7 = vld [vmem:[#allocation8 + $0x28] sm:$0xff]  ;;  %v18483_v35 = vand.u32 4294901760, %v18428_v33 }
 0xea7   :  { %22543 = vmatprep.subr.bf16.mxu0 %v31178_v22  ;;  %22735 = vmatprep.subr.bf16.mxu1 %v31451_v55  ;;  %v18486_v22 = vand.u32 4294901760, %v18429_v7  ;;  %v18431_v55 = vld [vmem:[#allocation8 + $0x38] sm:$0xff] }
 0xea9   :  { %v29090_v8 = vpack.c.bf16 %v18486_v22, %v18483_v35 }
 0xeaa   :  { %22545 = vmatpush1.bf16.msra.mxu0 %v31452_v49  ;;  %22737 = vmatpush1.bf16.msra.mxu1 %v31453_v62  ;;  %v18432_v49 = vld [vmem:[#allocation8 + $0x40] sm:$0xff]  ;;  %v29066_v62 = vpack.c.bf16 %v18474_v16, %v18471_v53 }
 0xeab   :  { %22547 = vmatprep.subr.bf16.mxu0 %v31454_v12  ;;  %22739 = vmatprep.subr.bf16.mxu1 %v31455_v46  ;;  %v29068_v12 = vsub.f32 %v18424_v10, %v18471_v53  ;;  %v29070_v46 = vsub.f32 %v18425_v20, %v18474_v16  ;;  %31506 = vst [vmem:[#allocation49_spill] sm:$0xff] %v29090_v8  ;;  %v18513_v10 = vand.u32 4294901760, %v18438_v9  ;;  %v18516_v20 = vand.u32 4294901760, %v18439_v17 }
 0xeac   :  { %31502 = vst [vmem:[#allocation46_spill] sm:$0xff] %v29066_v62 }
 0xead   :  { %31503 = vst [vmem:[#allocation33_spill] sm:$0xff] %v29068_v12  ;;  %31504 = vst [vmem:[#allocation48_spill] sm:$0xff] %v29070_v46  ;;  %v29104_v53 = vsub.f32 %v18438_v9, %v18513_v10  ;;  %v29106_v16 = vsub.f32 %v18439_v17, %v18516_v20 }
 0xeae   :  { %22549 = vmatpush1.bf16.msra.mxu0 %v31456_v28  ;;  %22741 = vmatpush1.bf16.msra.mxu1 %v31457_v15  ;;  %v29072_v28 = vsub.f32 %v18426_v24, %v18477_v56  ;;  %v18433_v15 = vld [vmem:[#allocation8 + $0x48] sm:$0xff]  ;;  %v29102_v24 = vsub.f32 %v18437_v44, %v18510_v1 }
 0xeaf   :  { %22551 = vmatprep.subr.bf16.mxu0 %v31458_v58  ;;  %22743 = vmatprep.subr.bf16.mxu1 %v31459_v38  ;;  %v18434_v58 = vld [vmem:[#allocation8 + $0x50] sm:$0xff]  ;;  %v18435_v38 = vld [vmem:[#allocation8 + $0x58] sm:$0xff] }
 0xeb0   :  { %v18504_v42 = vand.u32 4294901760, %v18435_v38 }
 0xeb2   :  { %22553 = vmatpush1.bf16.msra.mxu0 %v31460_v48  ;;  %22745 = vmatpush1.bf16.msra.mxu1 %v31461_v23  ;;  %v29074_v48 = vpack.c.bf16 %v18480_v51, %v18477_v56  ;;  %v29076_v23 = vsub.f32 %v18427_v5, %v18480_v51  ;;  %v29097_v34 = vsub.f32 %v18435_v38, %v18504_v42 }
 0xeb3   :  { %22555 = vmatprep.subr.bf16.mxu0 %v31462_v41  ;;  %22747 = vmatprep.subr.bf16.mxu1 %v31463_v47  ;;  %v29078_v41 = vsub.f32 %v18428_v33, %v18483_v35  ;;  %v18436_v47 = vld [vmem:[#allocation8 + $0x60] sm:$0xff]  ;;  %v29125_v51 = vpack.c.bf16 %v18516_v20, %v18513_v10  ;;  %v30013_v35 = vand.u32 4294901760, %v29068_v12 }
 0xeb4   :  { %31505 = vst [vmem:[#allocation17_spill] sm:$0xff] %v29074_v48  ;;  %v18507_v37 = vand.u32 4294901760, %v18436_v47 }
 0xeb5   :  { %31511 = vst [vmem:[#allocation18_spill] sm:$0xff] %v29125_v51 }
 0xeb6   :  { %22557 = vmatpush1.bf16.msra.mxu0 %v31464_v32  ;;  %22749 = vmatpush1.bf16.msra.mxu1 %v31465_v25  ;;  %v29081_v32 = vsub.f32 %v18429_v7, %v18486_v22  ;;  %v29099_v59 = vsub.f32 %v18436_v47, %v18507_v37  ;;  %v29121_v7 = vpack.c.bf16 %v18510_v1, %v18507_v37  ;;  %v30012_v22 = vand.u32 4294901760, %v29070_v46 }
 0xeb7   :  { %22559 = vmatprep.subr.bf16.mxu0 %v31466_v19  ;;  %22751 = vmatprep.subr.bf16.mxu1 %v31467_v45  ;;  %v18492_v19 = vand.u32 4294901760, %v18431_v55  ;;  %v18495_v45 = vand.u32 4294901760, %v18432_v49 }
 0xeb8   :  { %31510 = vst [vmem:[#allocation52_spill] sm:$0xff] %v29121_v7 }
 0xeb9   :  { %v29086_v6 = vsub.f32 %v18431_v55, %v18492_v19  ;;  %v29088_v2 = vsub.f32 %v18432_v49, %v18495_v45  ;;  %v18572_v55 = vsub.f32 %v29070_v46, %v30012_v22  ;;  %v30011_v49 = vand.u32 4294901760, %v29072_v28 }
 0xeba   :  { %22561 = vmatpush1.bf16.msra.mxu0 %v31468_v21  ;;  %22753 = vmatpush1.bf16.msra.mxu1 %v31469_v54  ;;  %v18498_v21 = vand.u32 4294901760, %v18433_v15  ;;  %v18501_v54 = vand.u32 4294901760, %v18434_v58 }
 0xebb   :  { %22754 = vmatprep.subr.bf16.mxu0 %v30015_v14  ;;  %v18573_v38 = vand.u32 4294901760, %v18572_v55  ;;  %v18579_v47 = vsub.f32 %v29072_v28, %v30011_v49  ;;  %v30001_v10 = vand.u32 4294901760, %v29086_v6 }
 0xebc   :  { %v29092_v0 = vsub.f32 %v18433_v15, %v18498_v21  ;;  %v29094_v11 = vsub.f32 %v18434_v58, %v18501_v54  ;;  %v29113_v56 = vpack.c.bf16 %v18498_v21, %v18495_v45  ;;  %v29117_v33 = vpack.c.bf16 %v18504_v42, %v18501_v54 }
 0xebd   :  { %17251 = vmatmul.mubr.f32.vlgmr.msra.gmra.mrb[30].mxu0 %v28875_v4  ;;  %18106 = vmatmul.mubr.f32.vlgmr.msra.gmra.mrb[46].mxu1 %v28875_v4  ;;  %v18430_v4 = vld [vmem:[#allocation8 + $0x30] sm:$0xff]  ;;  %v30009_v15 = vand.u32 4294901760, %v29076_v23  ;;  %v18580_v45 = vand.u32 4294901760, %v18579_v47  ;;  %v30008_v54 = vand.u32 4294901760, %v29078_v41  ;;  %v30005_v42 = vand.u32 4294901760, %v29081_v32 }
 0xebe   :  { %19456 = vmatprep.mubr.msk.f32.mxu0 %vm24395_vm8, %v30575_v30  ;;  %22756 = vmatpush3.bf16.msra.mxu0 %v29066_v62  ;;  %v18489_v25 = vand.u32 4294901760, %v18430_v4  ;;  %31508 = vst [vmem:[#allocation50_spill] sm:$0xff] %v29113_v56  ;;  %31509 = vst [vmem:[#allocation62_spill] sm:$0xff] %v29117_v33  ;;  %v18614_v55 = vsub.f32 %v29086_v6, %v30001_v10 }
 0xebf   :  { %22757 = vmatprep.subr.bf16.mxu0 %v30015_v14  ;;  %v18593_v9 = vsub.f32 %v29078_v41, %v30008_v54  ;;  %v18600_v37 = vsub.f32 %v29081_v32, %v30005_v42 }
 0xec0   :  { %v29084_v18 = vsub.f32 %v18430_v4, %v18489_v25  ;;  %v29109_v5 = vpack.c.bf16 %v18492_v19, %v18489_v25  ;;  %v18565_v4 = vsub.f32 %v29068_v12, %v30013_v35  ;;  %v18586_v25 = vsub.f32 %v29076_v23, %v30009_v15  ;;  %v31525_v12 = vld [vmem:[#allocation114_spill] sm:$0xff] }
 0xec1   :  { %v18594_v17 = vand.u32 4294901760, %v18593_v9  ;;  %v18601_v20 = vand.u32 4294901760, %v18600_v37  ;;  %v18615_v47 = vand.u32 4294901760, %v18614_v55 }
 0xec2   :  { %22759 = vmatpush3.bf16.msra.mxu0 %v29074_v48  ;;  %31507 = vst [vmem:[#allocation51_spill] sm:$0xff] %v29109_v5  ;;  %v18566_v58 = vand.u32 4294901760, %v18565_v4  ;;  %v18587_v21 = vand.u32 4294901760, %v18586_v25  ;;  %v30000_v1 = vand.u32 4294901760, %v29084_v18  ;;  %v30002_v25 = vand.u32 4294901760, %v29088_v2  ;;  %v31524_v48 = vld [vmem:[#allocation110_spill] sm:$0xff] }
 0xec3   :  { %22760 = vmatprep.subr.bf16.mxu0 %v30015_v14 }
 0xec4   :  { %v29146_v19 = vpack.c.bf16 %v18573_v38, %v18566_v58  ;;  %v29150_v44 = vpack.c.bf16 %v18587_v21, %v18580_v45  ;;  %v18607_v4 = vsub.f32 %v29084_v18, %v30000_v1  ;;  %v29166_v58 = vpack.c.bf16 %v18601_v20, %v18594_v17 }
 0xec5   :  { %v30003_v45 = vand.u32 4294901760, %v29092_v0  ;;  %v18621_v9 = vsub.f32 %v29088_v2, %v30002_v25  ;;  %v30004_v17 = vand.u32 4294901760, %v29094_v11  ;;  %v30006_v20 = vand.u32 4294901760, %v29097_v34 }
 0xec6   :  { %22762 = vmatpush3.bf16.msra.mxu0 %v29090_v8  ;;  %31512 = vst [vmem:[#allocation53_spill] sm:$0xff] %v29150_v44  ;;  %31513 = vst [vmem:[#allocation22_spill] sm:$0xff] %v29166_v58  ;;  %v18608_v38 = vand.u32 4294901760, %v18607_v4 }
 0xec7   :  { %22763 = vmatprep.subr.bf16.mxu0 %v30015_v14  ;;  %v18628_v37 = vsub.f32 %v29092_v0, %v30003_v45  ;;  %v18622_v1 = vand.u32 4294901760, %v18621_v9  ;;  %v18635_v55 = vsub.f32 %v29094_v11, %v30004_v17  ;;  %v30007_v45 = vand.u32 4294901760, %v29099_v59 }
 0xec8   :  { %v29170_v21 = vpack.c.bf16 %v18615_v47, %v18608_v38  ;;  %v18642_v38 = vsub.f32 %v29097_v34, %v30006_v20  ;;  %v30010_v9 = vand.u32 4294901760, %v29102_v24  ;;  %v30014_v20 = vand.u32 4294901760, %v29104_v53 }
 0xec9   :  { %v18629_v10 = vand.u32 4294901760, %v18628_v37  ;;  %v18636_v47 = vand.u32 4294901760, %v18635_v55  ;;  %v30017_v55 = vand.u32 4294901760, %v29106_v16 }
 0xeca   :  { %22765 = vmatpush3.bf16.msra.mxu0 %v29109_v5  ;;  %31514 = vst [vmem:[#allocation175_spill] sm:$0xff] %v29170_v21  ;;  %v18643_v25 = vand.u32 4294901760, %v18642_v38  ;;  %v31523_v5 = vld [vmem:[#allocation106_spill] sm:$0xff] }
 0xecb   :  { %22766 = vmatprep.subr.bf16.mxu0 %v30015_v14  ;;  %v29180_v4 = vpack.c.bf16 %v18629_v10, %v18622_v1  ;;  %v18649_v1 = vsub.f32 %v29099_v59, %v30007_v45  ;;  %v18656_v10 = vsub.f32 %v29102_v24, %v30010_v9 }
 0xecc   :  { %v29190_v37 = vpack.c.bf16 %v18643_v25, %v18636_v47  ;;  %v18663_v25 = vsub.f32 %v29104_v53, %v30014_v20  ;;  %v18670_v47 = vsub.f32 %v29106_v16, %v30017_v55 }
 0xecd   :  { %31515 = vst [vmem:[#allocation176_spill] sm:$0xff] %v29180_v4  ;;  %v18650_v17 = vand.u32 4294901760, %v18649_v1  ;;  %v18657_v42 = vand.u32 4294901760, %v18656_v10 }
 0xece   :  { %22768 = vmatpush3.bf16.msra.mxu0 %v29113_v56  ;;  %31516 = vst [vmem:[#allocation177_spill] sm:$0xff] %v29190_v37  ;;  %v18664_v45 = vand.u32 4294901760, %v18663_v25  ;;  %v18671_v54 = vand.u32 4294901760, %v18670_v47  ;;  %v31519_v47 = vld [vmem:[#allocation157_spill] sm:$0xff] }
 0xecf   :  { %22769 = vmatprep.subr.bf16.mxu0 %v30015_v14  ;;  %v29200_v38 = vpack.c.bf16 %v18657_v42, %v18650_v17 }
 0xed0   :  { %v29208_v15 = vpack.c.bf16 %v18671_v54, %v18664_v45  ;;  %v31520_v45 = vld [vmem:[#allocation97_spill] sm:$0xff] }
 0xed1   :  { %31517 = vst [vmem:[#allocation178_spill] sm:$0xff] %v29200_v38  ;;  %v31526_v38 = vld [vmem:[#allocation156_spill] sm:$0xff] }
 0xed2   :  { %22771 = vmatpush3.bf16.msra.mxu0 %v29117_v33  ;;  %31518 = vst [vmem:[#allocation179_spill] sm:$0xff] %v29208_v15  ;;  %v31522_v33 = vld [vmem:[#allocation103_spill] sm:$0xff] }
 0xed3   :  { %22772 = vmatprep.subr.bf16.mxu0 %v30015_v14 }
 0xed6   :  { %22774 = vmatpush3.bf16.msra.mxu0 %v29121_v7  ;;  %v31521_v7 = vld [vmem:[#allocation100_spill] sm:$0xff] }
 0xed7   :  { %22775 = vmatprep.subr.bf16.mxu0 %v30015_v14 }
 0xeda   :  { %22777 = vmatpush3.bf16.msra.mxu0 %v29125_v51 }
 0xedb   :  { %22778 = vmatprep.subr.bf16.mxu0 %v30015_v14 }
 0xf90   :  { %v17252_v10 = vpop.f32.mrb[30].mxu0  ;;  %v29212_v9 = vpop.f32.mrb[46].mxu1 }
 0xf91   :  { %v18116_v42 = vrot.slane %v17252_v10, 1  ;;  %v18120_v17 = vrot.slane %v17252_v10, 2  ;;  %v18124_v49 = vrot.slane %v17252_v10, 3  ;;  %v18128_v22 = vrot.slane %v17252_v10, 4  ;;  %v29214_v35 = vpop.f32.mrb[31].mxu0  ;;  %v29216_v20 = vpop.f32.mrb[47].mxu1 }
 0xf92   :  { %v18132_v14 = vrot.slane %v17252_v10, 5  ;;  %v18136_v55 = vrot.slane %v17252_v10, 6  ;;  %v18140_v25 = vrot.slane %v17252_v10, 7  ;;  %v18204_v54 = vadd.f32 %v17252_v10, %v31519_v47 }
 0xf93   :  { %v18176_v51 = vadd.f32 %v18116_v42, %v31520_v45  ;;  %v18180_v1 = vadd.f32 %v18120_v17, %v31521_v7  ;;  %v18184_v56 = vadd.f32 %v18124_v49, %v31522_v33  ;;  %v18188_v8 = vadd.f32 %v18128_v22, %v31523_v5  ;;  %v31528_v22 = vld [vmem:[#allocation162_spill] sm:$0xff] }
 0xf94   :  { %v18192_v62 = vadd.f32 %v18132_v14, %v31524_v48  ;;  %v18196_v46 = vadd.f32 %v18136_v55, %v31525_v12  ;;  %v19304_v15 = vmul.f32 -1.442695, %v18204_v54  ;;  %v18200_v37 = vadd.f32 %v18140_v25, %v31526_v38  ;;  %v31532_v38 = vld [vmem:[#allocation170_spill] sm:$0xff] }
 0xf95   :  { %v19297_v4 = vmul.f32 -1.442695, %v18176_v51  ;;  %v19298_v21 = vmul.f32 -1.442695, %v18180_v1  ;;  %v19299_v58 = vmul.f32 -1.442695, %v18184_v56 }
 0xf96   :  { %v19300_v44 = vmul.f32 -1.442695, %v18188_v8  ;;  %24138 = vpow2.f32 %v19304_v15  ;;  %v19301_v10 = vmul.f32 -1.442695, %v18192_v62  ;;  %v18118_v7 = vrot.slane %v29212_v9, 1  ;;  %v31527_v56 = vld [vmem:[#allocation160_spill] sm:$0xff] }
 0xf97   :  { %24140 = vpow2.f32 %v19297_v4  ;;  %v18122_v33 = vrot.slane %v29212_v9, 2  ;;  %v19302_v5 = vmul.f32 -1.442695, %v18196_v46  ;;  %v18126_v14 = vrot.slane %v29212_v9, 3  ;;  %v31529_v15 = vld [vmem:[#allocation164_spill] sm:$0xff]  ;;  %v31530_v46 = vld [vmem:[#allocation166_spill] sm:$0xff] }
 0xf98   :  { %24142 = vpow2.f32 %v19298_v21  ;;  %v19303_v12 = vmul.f32 -1.442695, %v18200_v37  ;;  %v18130_v48 = vrot.slane %v29212_v9, 4  ;;  %v18134_v51 = vrot.slane %v29212_v9, 5  ;;  %v31533_v42 = vld [vmem:[#allocation174_spill] sm:$0xff] }
 0xf99   :  { %24144 = vpow2.f32 %v19299_v58  ;;  %v18178_v8 = vadd.f32 %v18118_v7, %v31527_v56  ;;  %v18182_v62 = vadd.f32 %v18122_v33, %v31528_v22  ;;  %v18138_v49 = vrot.slane %v29212_v9, 6  ;;  %v31531_v58 = vld [vmem:[#allocation168_spill] sm:$0xff] }
 0xf9a   :  { %24146 = vpow2.f32 %v19300_v44  ;;  %v18186_v21 = vadd.f32 %v18126_v14, %v31529_v15  ;;  %v18190_v4 = vadd.f32 %v18130_v48, %v31530_v46  ;;  %v18194_v37 = vadd.f32 %v18134_v51, %v31531_v58 }
 0xf9b   :  { %24148 = vpow2.f32 %v19301_v10  ;;  %v18142_v55 = vrot.slane %v29212_v9, 7  ;;  %v18198_v1 = vadd.f32 %v18138_v49, %v31532_v38  ;;  %v18206_v17 = vadd.f32 %v29212_v9, %v31533_v42  ;;  %v31537_v38 = vld [vmem:[#allocation104_spill] sm:$0xff] }
 0xf9c   :  { %24150 = vpow2.f32 %v19302_v5  ;;  %v18117_v54 = vrot.slane %v29214_v35, 1  ;;  %v18121_v45 = vrot.slane %v29214_v35, 2  ;;  %v18125_v33 = vrot.slane %v29214_v35, 3 }
 0xf9d   :  { %24152 = vpow2.f32 %v19303_v12  ;;  %v18129_v5 = vrot.slane %v29214_v35, 4  ;;  %v18133_v9 = vrot.slane %v29214_v35, 5  ;;  %v18137_v48 = vrot.slane %v29214_v35, 6 }
 0xf9e   :  { %24154 = vtanh.f32 %v18178_v8  ;;  %v31534_v8 = vld [vmem:[#allocation172_spill] sm:$0xff]  ;;  %v18185_v42 = vadd.f32 %v18125_v33, %v31537_v38  ;;  %v18119_v33 = vrot.slane %v29216_v20, 1 }
 0xf9f   :  { %24156 = vtanh.f32 %v18182_v62  ;;  %v18202_v22 = vadd.f32 %v18142_v55, %v31534_v8  ;;  %v18141_v62 = vrot.slane %v29214_v35, 7  ;;  %v31539_v55 = vld [vmem:[#allocation111_spill] sm:$0xff] }
 0xfa0   :  { %v24139_v44 = vpop.eup %24138  ;;  %24158 = vtanh.f32 %v18186_v21  ;;  %v31535_v21 = vld [vmem:[#allocation98_spill] sm:$0xff]  ;;  %v31540_v8 = vld [vmem:[#allocation115_spill] sm:$0xff] }
 0xfa1   :  { %v24141_v25 = vpop.eup %24140  ;;  %v18239_v47 = vadd.f32 1.0, %v24139_v44  ;;  %24160 = vtanh.f32 %v18190_v4  ;;  %v18177_v46 = vadd.f32 %v18117_v54, %v31535_v21  ;;  %v31536_v4 = vld [vmem:[#allocation101_spill] sm:$0xff]  ;;  %v18197_v30 = vadd.f32 %v18137_v48, %v31540_v8  ;;  %v31541_v54 = vld [vmem:[#allocation158_spill] sm:$0xff] }
 0xfa2   :  { %v24143_v10 = vpop.eup %24142  ;;  %v18232_v7 = vadd.f32 1.0, %v24141_v25  ;;  %24162 = vtanh.f32 %v18194_v37  ;;  %v18181_v58 = vadd.f32 %v18121_v45, %v31536_v4  ;;  %v31538_v25 = vld [vmem:[#allocation108_spill] sm:$0xff]  ;;  %v18201_v21 = vadd.f32 %v18141_v62, %v31541_v54  ;;  %v31542_v45 = vld [vmem:[#allocation159_spill] sm:$0xff] }
 0xfa3   :  { %v24145_v14 = vpop.eup %24144  ;;  %v18233_v12 = vadd.f32 1.0, %v24143_v10  ;;  %24164 = vrcp.f32 %v18239_v47  ;;  %v18189_v47 = vadd.f32 %v18129_v5, %v31538_v25  ;;  %v18123_v5 = vrot.slane %v29216_v20, 2 }
 0xfa4   :  { %v24147_v51 = vpop.eup %24146  ;;  %v18234_v56 = vadd.f32 1.0, %v24145_v14  ;;  %24166 = vrcp.f32 %v18232_v7  ;;  %v18193_v14 = vadd.f32 %v18133_v9, %v31539_v55  ;;  %v19305_v9 = vmul.f32 -1.442695, %v18177_v46 }
 0xfa5   :  { %v24149_v49 = vpop.eup %24148  ;;  %v18235_v15 = vadd.f32 1.0, %v24147_v51  ;;  %24168 = vrcp.f32 %v18233_v12  ;;  %v19306_v48 = vmul.f32 -1.442695, %v18181_v58  ;;  %v19310_v25 = vmul.f32 -1.442695, %v18197_v30 }
 0xfa6   :  { %v24151_v37 = vpop.eup %24150  ;;  %v18236_v44 = vadd.f32 1.0, %v24149_v49  ;;  %24170 = vrcp.f32 %v18234_v56  ;;  %v18205_v49 = vadd.f32 %v29214_v35, %v31542_v45  ;;  %v19309_v62 = vmul.f32 -1.442695, %v18193_v14 }
 0xfa7   :  { %v24153_v10 = vpop.eup %24152  ;;  %v18237_v7 = vadd.f32 1.0, %v24151_v37  ;;  %24172 = vrcp.f32 %v18235_v15  ;;  %v18127_v15 = vrot.slane %v29216_v20, 3  ;;  %v19307_v37 = vmul.f32 -1.442695, %v18185_v42 }
 0xfa8   :  { %v24155_v51 = vpop.eup %24154  ;;  %v18238_v12 = vadd.f32 1.0, %v24153_v10  ;;  %24174 = vrcp.f32 %v18236_v44  ;;  %v19308_v44 = vmul.f32 -1.442695, %v18189_v47  ;;  %v19311_v35 = vmul.f32 -1.442695, %v18201_v21 }
 0xfa9   :  { %v24157_v56 = vpop.eup %24156  ;;  %24176 = vrcp.f32 %v18237_v7  ;;  %v18131_v7 = vrot.slane %v29216_v20, 4  ;;  %v18135_v55 = vrot.slane %v29216_v20, 5  ;;  %v18179_v54 = vadd.f32 %v18119_v33, %v30980_v43 }
 0xfaa   :  { %v24159_v4 = vpop.eup %24158  ;;  %24178 = vrcp.f32 %v18238_v12  ;;  %v18183_v46 = vadd.f32 %v18123_v5, %v30981_v52  ;;  %v18187_v58 = vadd.f32 %v18127_v15, %v30982_v27  ;;  %v22806_v30 = vpack.c.bf16 %v29076_v23, %v29072_v28 }
 0xfab   :  { %v24161_v38 = vpop.eup %24160  ;;  %24180 = vtanh.f32 %v18198_v1  ;;  %v22809_v1 = vpack.c.bf16 %v29081_v32, %v29078_v41  ;;  %v22815_v43 = vpack.c.bf16 %v29092_v0, %v29088_v2  ;;  %v22818_v52 = vpack.c.bf16 %v29097_v34, %v29094_v11 }
 0xfac   :  { %v24163_v10 = vpop.eup %24162  ;;  %24182 = vtanh.f32 %v18202_v22  ;;  %v22812_v22 = vpack.c.bf16 %v29086_v6, %v29084_v18  ;;  %v22821_v12 = vpack.c.bf16 %v29102_v24, %v29099_v59  ;;  %v19312_v33 = vmul.f32 -1.442695, %v18205_v49 }
 0xfad   :  { %v24165_v8 = vpop.eup %24164  ;;  %24184 = vtanh.f32 %v18206_v17  ;;  %v18191_v5 = vadd.f32 %v18131_v7, %v30846_v63 }
 0xfae   :  { %v24167_v42 = vpop.eup %24166  ;;  %24186 = vpow2.f32 %v19305_v9 }
 0xfaf   :  { %v24169_v47 = vpop.eup %24168  ;;  %v29272_v14 = vmul.f32 %v24167_v42, %v24155_v51  ;;  %24188 = vpow2.f32 %v19306_v48  ;;  %v19313_v48 = vmul.f32 -1.442695, %v18179_v54  ;;  %v19316_v49 = vmul.f32 -1.442695, %v18191_v5 }
 0xfb0   :  { %v24171_v27 = vpop.eup %24170  ;;  %v29278_v17 = vmul.f32 %v24169_v47, %v24157_v56  ;;  %24190 = vpow2.f32 %v19307_v37  ;;  %v18195_v56 = vadd.f32 %v18135_v55, %v30983_v3  ;;  %v19314_v47 = vmul.f32 -1.442695, %v18183_v46 }
 0xfb1   :  { %v24173_v45 = vpop.eup %24172  ;;  %v29284_v51 = vmul.f32 %v24171_v27, %v24159_v4  ;;  %24192 = vpow2.f32 %v19308_v44  ;;  %v19315_v4 = vmul.f32 -1.442695, %v18187_v58  ;;  %v18139_v3 = vrot.slane %v29216_v20, 6 }
 0xfb2   :  { %v24175_v15 = vpop.eup %24174  ;;  %v29287_v9 = vmul.f32 %v24173_v45, %v24161_v38  ;;  %24194 = vpow2.f32 %v19309_v62  ;;  %v19317_v38 = vmul.f32 -1.442695, %v18195_v56 }
 0xfb3   :  { %v24177_v37 = vpop.eup %24176  ;;  %v29290_v42 = vmul.f32 %v24175_v15, %v24163_v10  ;;  %24196 = vpow2.f32 %v19310_v25 }
 0xfb4   :  { %v24179_v21 = vpop.eup %24178  ;;  %24198 = vpow2.f32 %v19311_v35  ;;  %v18143_v35 = vrot.slane %v29216_v20, 7 }
 0xfb5   :  { %v24181_v27 = vpop.eup %24180  ;;  %24200 = vpow2.f32 %v19312_v33 }
 0xfb6   :  { %v24183_v44 = vpop.eup %24182  ;;  %v29292_v63 = vmul.f32 %v24181_v27, %v24177_v37  ;;  %24202 = vpow2.f32 %v19313_v48  ;;  %v18207_v37 = vadd.f32 %v29216_v20, %v31118_v61 }
 0xfb7   :  { %v24185_v62 = vpop.eup %24184  ;;  %v29294_v7 = vmul.f32 %v24183_v44, %v24179_v21  ;;  %24204 = vpow2.f32 %v19314_v47  ;;  %v18199_v21 = vadd.f32 %v18139_v3, %v30848_v57 }
 0xfb8   :  { %v24187_v10 = vpop.eup %24186  ;;  %v29297_v25 = vmul.f32 %v24185_v62, %v24165_v8  ;;  %24206 = vpow2.f32 %v19315_v4  ;;  %v18203_v8 = vadd.f32 %v18143_v35, %v30849_v29  ;;  %v19320_v29 = vmul.f32 -1.442695, %v18207_v37 }
 0xfb9   :  { %v24189_v55 = vpop.eup %24188  ;;  %v18280_v54 = vadd.f32 1.0, %v24187_v10  ;;  %24208 = vpow2.f32 %v19316_v49  ;;  %v19318_v44 = vmul.f32 -1.442695, %v18199_v21 }
 0xfba   :  { %v24191_v46 = vpop.eup %24190  ;;  %v18281_v58 = vadd.f32 1.0, %v24189_v55  ;;  %24210 = vpow2.f32 %v19317_v38  ;;  %v19319_v62 = vmul.f32 -1.442695, %v18203_v8 }
 0xfbb   :  { %v24193_v45 = vpop.eup %24192  ;;  %v18282_v33 = vadd.f32 1.0, %v24191_v46  ;;  %24212 = vrcp.f32 %v18280_v54  ;;  %v18368_v54 = vrot.slane %v28835_v31, 7 }
 0xfbc   :  { %v24195_v5 = vpop.eup %24194  ;;  %v18283_v15 = vadd.f32 1.0, %v24193_v45  ;;  %24214 = vrcp.f32 %v18281_v58  ;;  %v18369_v45 = vrot.slane %v28839_v39, 7  ;;  %v18373_v39 = vrot.slane %v28855_v60, 7 }
 0xfbd   :  { %v24197_v56 = vpop.eup %24196  ;;  %v18284_v48 = vadd.f32 1.0, %v24195_v5  ;;  %24216 = vrcp.f32 %v18282_v33  ;;  %v18370_v5 = vrot.slane %v28842_v36, 7 }
 0xfbe   :  { %v24199_v47 = vpop.eup %24198  ;;  %v18285_v4 = vadd.f32 1.0, %v24197_v56  ;;  %24218 = vrcp.f32 %v18283_v15  ;;  %v18371_v56 = vrot.slane %v28847_v50, 7 }
 0xfbf   :  { %v24201_v27 = vpop.eup %24200  ;;  %v18286_v49 = vadd.f32 1.0, %v24199_v47  ;;  %24220 = vrcp.f32 %v18284_v48  ;;  %v18372_v48 = vrot.slane %v28851_v26, 7  ;;  %v18374_v26 = vrot.slane %v28859_v13, 7 }
 0xfc0   :  { %v24203_v38 = vpop.eup %24202  ;;  %v18287_v57 = vadd.f32 1.0, %v24201_v27  ;;  %24222 = vrcp.f32 %v18285_v4 }
 0xfc1   :  { %v24205_v3 = vpop.eup %24204  ;;  %24224 = vrcp.f32 %v18286_v49  ;;  %v18336_v35 = vadd.f32 1.0, %v24203_v38 }
 0xfc2   :  { %v24207_v10 = vpop.eup %24206  ;;  %24226 = vrcp.f32 %v18287_v57  ;;  %v18337_v61 = vadd.f32 1.0, %v24205_v3 }
 0xfc3   :  { %v24209_v55 = vpop.eup %24208  ;;  %24228 = vpow2.f32 %v19318_v44  ;;  %v18338_v46 = vadd.f32 1.0, %v24207_v10 }
 0xfc4   :  { %v24211_v20 = vpop.eup %24210  ;;  %24230 = vpow2.f32 %v19319_v62  ;;  %v18339_v33 = vadd.f32 1.0, %v24209_v55 }
 0xfc5   :  { %v24213_v58 = vpop.eup %24212  ;;  %24232 = vpow2.f32 %v19320_v29  ;;  %v18340_v44 = vadd.f32 1.0, %v24211_v20 }
 0xfc6   :  { %v24215_v21 = vpop.eup %24214  ;;  %v18384_v15 = vmul.f32 %v24213_v58, %v18368_v54  ;;  %24234 = vrcp.f32 %v18336_v35 }
 0xfc7   :  { %v24217_v8 = vpop.eup %24216  ;;  %v18385_v37 = vmul.f32 %v24215_v21, %v18369_v45  ;;  %24236 = vrcp.f32 %v18337_v61 }
 0xfc8   :  { %v24219_v31 = vpop.eup %24218  ;;  %v18386_v47 = vmul.f32 %v24217_v8, %v18370_v5  ;;  %v18400_v4 = vadd.f32 %v29272_v14, %v18384_v15  ;;  %24238 = vrcp.f32 %v18338_v46  ;;  %v18375_v14 = vrot.slane %v28862_v40, 7 }
 0xfc9   :  { %v24221_v27 = vpop.eup %24220  ;;  %v18387_v49 = vmul.f32 %v24219_v31, %v18371_v56  ;;  %v18401_v36 = vadd.f32 %v29278_v17, %v18385_v37  ;;  %24240 = vrcp.f32 %v18339_v33 }
 0xfca   :  { %v24223_v38 = vpop.eup %24222  ;;  %v18388_v57 = vmul.f32 %v24221_v27, %v18372_v48  ;;  %v18402_v50 = vadd.f32 %v29284_v51, %v18386_v47  ;;  %24242 = vtanh.f32 %v18400_v4 }
 0xfcb   :  { %v24225_v62 = vpop.eup %24224  ;;  %24244 = vtanh.f32 %v18401_v36  ;;  %v18389_v3 = vmul.f32 %v24223_v38, %v18373_v39  ;;  %v18403_v60 = vadd.f32 %v29287_v9, %v18387_v49 }
 0xfcc   :  { %v24227_v29 = vpop.eup %24226  ;;  %24246 = vtanh.f32 %v18402_v50  ;;  %v18390_v10 = vmul.f32 %v24225_v62, %v18374_v26  ;;  %v18404_v17 = vadd.f32 %v29290_v42, %v18388_v57 }
 0xfcd   :  { %v24229_v35 = vpop.eup %24228  ;;  %24248 = vrcp.f32 %v18340_v44  ;;  %v18391_v55 = vmul.f32 %v24227_v29, %v18375_v14  ;;  %v18405_v51 = vadd.f32 %v29292_v63, %v18389_v3 }
 0xfce   :  { %v24231_v61 = vpop.eup %24230  ;;  %v18341_v20 = vadd.f32 1.0, %v24229_v35  ;;  %v18406_v13 = vadd.f32 %v29294_v7, %v18390_v10  ;;  %24250 = vtanh.f32 %v18403_v60 }
 0xfcf   :  { %v24233_v54 = vpop.eup %24232  ;;  %v18342_v40 = vadd.f32 1.0, %v24231_v61  ;;  %v18407_v46 = vadd.f32 %v29297_v25, %v18391_v55  ;;  %24252 = vtanh.f32 %v18404_v17 }
 0xfd0   :  { %v24235_v9 = vpop.eup %24234  ;;  %v18343_v58 = vadd.f32 1.0, %v24233_v54  ;;  %24254 = vrcp.f32 %v18341_v20 }
 0xfd1   :  { %v24237_v45 = vpop.eup %24236  ;;  %24256 = vrcp.f32 %v18342_v40 }
 0xfd2   :  { %v24239_v42 = vpop.eup %24238  ;;  %24258 = vrcp.f32 %v18343_v58  ;;  %v31543_v58 = vmov 0.0  }
 0xfd3   :  { %v24241_v33 = vpop.eup %24240  ;;  %24260 = vtanh.f32 %v18405_v51 }
 0xfd4   :  { %v24243_v63 = vpop.eup %24242  ;;  %24262 = vtanh.f32 %v18406_v13 }
 0xfd5   :  { %v24245_v21 = vpop.eup %24244  ;;  %24264 = vtanh.f32 %v18407_v46  ;;  %v18416_v7 = vmul.f32 %v24243_v63, %v24235_v9  ;;  %v31547_v63 = vld [vmem:[#allocation175_spill] sm:$0xff] }
 0xfd6   :  { %v24247_v5 = vpop.eup %24246  ;;  %v18417_v15 = vmul.f32 %v24245_v21, %v24237_v45  ;;  %v31544_v45 = vmov 0.0|0.0   ;;  %v31548_v21 = vld [vmem:[#allocation176_spill] sm:$0xff] }
 0xfd7   :  { %v24249_v8 = vpop.eup %24248  ;;  %v18418_v56 = vmul.f32 %v24247_v5, %v24239_v42  ;;  %v18455_v25 = vrot.slane %v18416_v7, 7  ;;  %v31545_v42 = vld [vmem:[#allocation53_spill] sm:$0xff]  ;;  %v31550_v7 = vld [vmem:[#allocation178_spill] sm:$0xff]  ;;  %v31551_v5 = vld [vmem:[#allocation179_spill] sm:$0xff] }
 0xfd8   :  { %v24251_v48 = vpop.eup %24250  ;;  %v18456_v37 = vrot.slane %v18417_v15, 6  ;;  %v31552_v15 = vld [vmem:[#allocation48_spill] sm:$0xff] }
 0xfd9   :  { %v24253_v31 = vpop.eup %24252  ;;  %v18419_v47 = vmul.f32 %v24251_v48, %v24241_v33  ;;  %v18458_v4 = vrot.slane %v18418_v56, 5  ;;  %v31546_v33 = vld [vmem:[#allocation22_spill] sm:$0xff]  ;;  %v31562_v48 = vld [vmem:[#allocation52_spill] sm:$0xff] }
 0xfda   :  { %v24255_v39 = vpop.eup %24254  ;;  %v18420_v27 = vmul.f32 %v24253_v31, %v24249_v8  ;;  %v18457_v49 = vsel %vm4111_vm1, %v18456_v37, %v18455_v25  ;;  %v31553_v8 = vld [vmem:[#allocation33_spill] sm:$0xff]  ;;  %v31561_v25 = vld [vmem:[#allocation62_spill] sm:$0xff] }
 0xfdb   :  { %v24257_v36 = vpop.eup %24256  ;;  %v18459_v44 = vsel %vm4114_vm2, %v18458_v4, %v18457_v49  ;;  %v18460_v38 = vrot.slane %v18419_v47, 4  ;;  %v31554_v56 = vpack.c.bf16 %v31552_v15, %v31553_v8  ;;  %v31563_v37 = vld [vmem:[#allocation18_spill] sm:$0xff]  ;;  %v31564_v31 = vand.u32 4294901760, %v31553_v8 }
 0xfdc   :  { %v24259_v57 = vpop.eup %24258  ;;  %v18462_v50 = vrot.slane %v18420_v27, 3  ;;  %v31565_v47 = vand.u32 4294901760, %v31552_v15  ;;  %v31567_v27 = vand.u32 4294901760, %v29076_v23 }
 0xfdd   :  { %v24261_v26 = vpop.eup %24260  ;;  %v18461_v62 = vsel %vm4117_vm3, %v18460_v38, %v18459_v44  ;;  %v31569_v44 = vand.u32 4294901760, %v29081_v32  ;;  %v31575_v32 = vand.u32 4294901760, %v29097_v34 }
 0xfde   :  { %v24263_v14 = vpop.eup %24262  ;;  %v18421_v3 = vmul.f32 %v24261_v26, %v24255_v39  ;;  %v18463_v60 = vsel %vm4120_vm4, %v18462_v50, %v18461_v62  ;;  %v22851_v4 = vpack.c.bf16 %v31565_v47, %v31564_v31  ;;  %v31566_v39 = vand.u32 4294901760, %v29072_v28 }
 0xfdf   :  { %v24265_v29 = vpop.eup %24264  ;;  %v18422_v10 = vmul.f32 %v24263_v14, %v24257_v36  ;;  %v31568_v36 = vand.u32 4294901760, %v29078_v41  ;;  %v31571_v28 = vand.u32 4294901760, %v29086_v6  ;;  %v31572_v50 = vand.u32 4294901760, %v29088_v2 }
 0xfe0   :  { %v18423_v17 = vmul.f32 %v24265_v29, %v24259_v57  ;;  %v18464_v35 = vrot.slane %v18421_v3, 2  ;;  %v22854_v49 = vpack.c.bf16 %v31567_v27, %v31566_v39  ;;  %v31570_v57 = vand.u32 4294901760, %v29084_v18 }
 0xfe1   :  { %v18466_v55 = vrot.slane %v18422_v10, 1  ;;  %v22857_v38 = vpack.c.bf16 %v31569_v44, %v31568_v36  ;;  %v31573_v26 = vand.u32 4294901760, %v29092_v0  ;;  %v31574_v41 = vand.u32 4294901760, %v29094_v11  ;;  %v19321_v11 = vld [vmem:[%s29482_s5] ss:$0 sm:$0xff] }
 0xfe2   :  { %v18465_v51 = vsel %vm4123_vm5, %v18464_v35, %v18463_v60  ;;  %v22860_v23 = vpack.c.bf16 %v31571_v28, %v31570_v57  ;;  %v31576_v18 = vand.u32 4294901760, %v29099_v59  ;;  %v31577_v6 = vand.u32 4294901760, %v29102_v24 }
 0xfe3   :  { %v18467_v61 = vsel %vm4126_vm6, %v18466_v55, %v18465_v51  ;;  %v22863_v62 = vpack.c.bf16 %v31573_v26, %v31572_v50  ;;  %v22866_v14 = vpack.c.bf16 %v31575_v32, %v31574_v41  ;;  %v31578_v2 = vand.u32 4294901760, %v29104_v53 }
 0xfe4   :  { %v18468_v20 = vsel %vm4129_vm7, %v18423_v17, %v18467_v61  ;;  %v22869_v3 = vpack.c.bf16 %v31577_v6, %v31576_v18  ;;  %v31579_v0 = vand.u32 4294901760, %v29106_v16 }
 0xfe5   :  { %v29327_v13 = vand.u32 4294901760, %v18468_v20 }
 0xfe6   :  { %v22872_v60 = vpack.c.bf16 %v31579_v0, %v31578_v2 }
 0xfe7   :  { %v18552_v54 = vsub.f32 %v18468_v20, %v29327_v13 }
 0xfe9   :  { %v18553_v40 = vand.u32 4294901760, %v18552_v54 }
 0xfeb   :  { %v18554_v46 = vsub.f32 %v18552_v54, %v18553_v40 }
 0xfed   :  { %v18555_v9 = vand.u32 4294901760, %v18554_v46 }
 0xfef   :  { %19457 = vmatmul.mubr.f32.vlgmr.msra.gmra.mrb[32].mxu0 %v18555_v9 }
 0xff0   :  { %22780 = vmatpush3.bf16.msra.mxu0 %v29146_v19  ;;  %19491 = vmatprep.mubr.msk.f32.mxu0 %vm24395_vm8, %v31543_v58  ;;  %v31549_v19 = vld [vmem:[#allocation177_spill] sm:$0xff] }
 0xff1   :  { %22781 = vmatprep.subr.bf16.mxu0 %v31544_v45 }
 0xff4   :  { %22783 = vmatpush3.bf16.msra.mxu0 %v31545_v42 }
 0xff5   :  { %22784 = vmatprep.subr.bf16.mxu0 %v31544_v45 }
 0xff8   :  { %22786 = vmatpush3.bf16.msra.mxu0 %v31546_v33 }
 0xff9   :  { %22787 = vmatprep.subr.bf16.mxu0 %v31544_v45 }
 0xffc   :  { %22789 = vmatpush3.bf16.msra.mxu0 %v31547_v63 }
 0xffd   :  { %22790 = vmatprep.subr.bf16.mxu0 %v31544_v45 }
0x1000   :  { %22792 = vmatpush3.bf16.msra.mxu0 %v31548_v21 }
0x1001   :  { %22793 = vmatprep.subr.bf16.mxu0 %v31544_v45 }
0x1004   :  { %22795 = vmatpush3.bf16.msra.mxu0 %v31549_v19 }
0x1005   :  { %22796 = vmatprep.subr.bf16.mxu0 %v31544_v45 }
0x1008   :  { %22798 = vmatpush3.bf16.msra.mxu0 %v31550_v7 }
0x1009   :  { %22799 = vmatprep.subr.bf16.mxu0 %v31544_v45 }
0x100c   :  { %22801 = vmatpush3.bf16.msra.mxu0 %v31551_v5 }
0x100d   :  { %22802 = vmatprep.subr.bf16.mxu0 %v31544_v45 }
0x100f   :  { %19492 = vmatmul.mubr.f32.vlgmr.msra.gmra.mrb[32].mxu0 %v29327_v13 }
0x1010   :  { %22804 = vmatpush3.bf16.msra.mxu0 %v31554_v56  ;;  %19526 = vmatprep.mubr.msk.f32.mxu0 %vm24395_vm8, %v31543_v58 }
0x1011   :  { %22805 = vmatprep.subr.bf16.mxu0 %v31544_v45 }
0x1014   :  { %22807 = vmatpush3.bf16.msra.mxu0 %v22806_v30  ;;  %v31555_v30 = vpack.c.bf16 %v29106_v16, %v29104_v53 }
0x1015   :  { %22808 = vmatprep.subr.bf16.mxu0 %v31544_v45 }
0x1018   :  { %22810 = vmatpush3.bf16.msra.mxu0 %v22809_v1  ;;  %v31556_v1 = vld [vmem:[#allocation46_spill] sm:$0xff] }
0x1019   :  { %22811 = vmatprep.subr.bf16.mxu0 %v31544_v45 }
0x101c   :  { %22813 = vmatpush3.bf16.msra.mxu0 %v22812_v22  ;;  %v31557_v22 = vld [vmem:[#allocation17_spill] sm:$0xff] }
0x101d   :  { %22814 = vmatprep.subr.bf16.mxu0 %v31544_v45 }
0x1020   :  { %22816 = vmatpush3.bf16.msra.mxu0 %v22815_v43  ;;  %v31558_v43 = vld [vmem:[#allocation49_spill] sm:$0xff] }
0x1021   :  { %22817 = vmatprep.subr.bf16.mxu0 %v31544_v45 }
0x1024   :  { %22819 = vmatpush3.bf16.msra.mxu0 %v22818_v52  ;;  %v31559_v52 = vld [vmem:[#allocation51_spill] sm:$0xff] }
0x1025   :  { %22820 = vmatprep.subr.bf16.mxu0 %v31544_v45 }
0x1028   :  { %22822 = vmatpush3.bf16.msra.mxu0 %v22821_v12  ;;  %v31560_v12 = vld [vmem:[#allocation50_spill] sm:$0xff] }
0x1029   :  { %22823 = vmatprep.subr.bf16.mxu0 %v31544_v45 }
0x102c   :  { %22825 = vmatpush3.bf16.msra.mxu0 %v31555_v30 }
0x102d   :  { %22826 = vmatprep.subr.bf16.mxu0 %v31544_v45 }
0x102f   :  { %19527 = vmatmul.mubr.f32.vlgmr.msra.gmra.mrb[32].mxu0 %v18552_v54 }
0x1030   :  { %22828 = vmatpush3.bf16.msra.mxu0 %v31556_v1  ;;  %19561 = vmatprep.mubr.msk.f32.mxu0 %vm24395_vm8, %v31543_v58 }
0x1031   :  { %22829 = vmatprep.subr.bf16.mxu0 %v31544_v45 }
0x1034   :  { %22831 = vmatpush3.bf16.msra.mxu0 %v31557_v22 }
0x1035   :  { %22832 = vmatprep.subr.bf16.mxu0 %v31544_v45 }
0x1038   :  { %22834 = vmatpush3.bf16.msra.mxu0 %v31558_v43 }
0x1039   :  { %22835 = vmatprep.subr.bf16.mxu0 %v31544_v45 }
0x103c   :  { %22837 = vmatpush3.bf16.msra.mxu0 %v31559_v52 }
0x103d   :  { %22838 = vmatprep.subr.bf16.mxu0 %v31544_v45 }
0x1040   :  { %22840 = vmatpush3.bf16.msra.mxu0 %v31560_v12 }
0x1041   :  { %22841 = vmatprep.subr.bf16.mxu0 %v31544_v45 }
0x1044   :  { %22843 = vmatpush3.bf16.msra.mxu0 %v31561_v25 }
0x1045   :  { %22844 = vmatprep.subr.bf16.mxu0 %v31544_v45 }
0x1048   :  { %22846 = vmatpush3.bf16.msra.mxu0 %v31562_v48 }
0x1049   :  { %22847 = vmatprep.subr.bf16.mxu0 %v31544_v45 }
0x104c   :  { %22849 = vmatpush3.bf16.msra.mxu0 %v31563_v37 }
0x104d   :  { %22850 = vmatprep.subr.bf16.mxu0 %v31544_v45 }
0x104f   :  { %19562 = vmatmul.mubr.f32.vlgmr.msra.gmra.mrb[32].mxu0 %v18553_v40 }
0x1050   :  { %22852 = vmatpush3.bf16.msra.mxu0 %v22851_v4  ;;  %19596 = vmatprep.mubr.msk.f32.mxu0 %vm24395_vm8, %v31543_v58 }
0x1051   :  { %22853 = vmatprep.subr.bf16.mxu0 %v31544_v45 }
0x1054   :  { %22855 = vmatpush3.bf16.msra.mxu0 %v22854_v49 }
0x1055   :  { %22856 = vmatprep.subr.bf16.mxu0 %v31544_v45 }
0x1058   :  { %22858 = vmatpush3.bf16.msra.mxu0 %v22857_v38 }
0x1059   :  { %22859 = vmatprep.subr.bf16.mxu0 %v31544_v45 }
0x105c   :  { %22861 = vmatpush3.bf16.msra.mxu0 %v22860_v23 }
0x105d   :  { %22862 = vmatprep.subr.bf16.mxu0 %v31544_v45 }
0x1060   :  { %22864 = vmatpush3.bf16.msra.mxu0 %v22863_v62 }
0x1061   :  { %22865 = vmatprep.subr.bf16.mxu0 %v31544_v45 }
0x1064   :  { %22867 = vmatpush3.bf16.msra.mxu0 %v22866_v14 }
0x1065   :  { %22868 = vmatprep.subr.bf16.mxu0 %v31544_v45 }
0x1068   :  { %22870 = vmatpush3.bf16.msra.mxu0 %v22869_v3 }
0x1069   :  { %22871 = vmatprep.subr.bf16.mxu0 %v31544_v45 }
0x106c   :  { %22873 = vmatpush3.bf16.msra.mxu0 %v22872_v60 }
0x106d   :  { %22874 = vmatprep.subr.bf16.mxu0 %v31544_v45 }
0x106f   :  { %19597 = vmatmul.mubr.f32.vlgmr.msra.gmra.mrb[32].mxu0 %v29327_v13 }
0x1070   :  { %22876 = vmatpush3.bf16.msra.mxu0 %v31556_v1  ;;  %19631 = vmatprep.mubr.msk.f32.mxu0 %vm24395_vm8, %v31543_v58 }
0x1071   :  { %22877 = vmatprep.subr.bf16.mxu0 %v31544_v45 }
0x1074   :  { %22879 = vmatpush3.bf16.msra.mxu0 %v31557_v22 }
0x1075   :  { %22880 = vmatprep.subr.bf16.mxu0 %v31544_v45 }
0x1078   :  { %22882 = vmatpush3.bf16.msra.mxu0 %v31558_v43 }
0x1079   :  { %22883 = vmatprep.subr.bf16.mxu0 %v31544_v45 }
0x107c   :  { %22885 = vmatpush3.bf16.msra.mxu0 %v31559_v52 }
0x107d   :  { %22886 = vmatprep.subr.bf16.mxu0 %v31544_v45 }
0x1080   :  { %22888 = vmatpush3.bf16.msra.mxu0 %v31560_v12 }
0x1081   :  { %22889 = vmatprep.subr.bf16.mxu0 %v31544_v45 }
0x1084   :  { %22891 = vmatpush3.bf16.msra.mxu0 %v31561_v25 }
0x1085   :  { %22892 = vmatprep.subr.bf16.mxu0 %v31544_v45 }
0x1088   :  { %22894 = vmatpush3.bf16.msra.mxu0 %v31562_v48 }
0x1089   :  { %22895 = vmatprep.subr.bf16.mxu0 %v31544_v45 }
0x108c   :  { %22897 = vmatpush3.bf16.msra.mxu0 %v31563_v37 }
0x108f   :  { %19632 = vmatmul.mubr.f32.vlgmr.msra.gmra.mrb[32].mxu0 %v29327_v13 }
0x1162   :  { %v19107_v34 = vpop.f32.mrb[32].mxu0 }
0x1163   :  { %v22914_v59 = vadd.f32 %v19321_v11, %v19107_v34  ;;  %v19633_v24 = vpop.f32.mrb[33].mxu0 }
0x1165   :  { %19111 = vst [vmem:[#allocation10] sm:$0xff] %v22914_v59 }
0x1166   :  { %24365 = shalt.err (!%p24362_p8)
}
0x1167   :  { %s24366_s28 = scalar_lea.hbm %s29483_s6, 128 }
0x1168   :  { %p24367_p9 = scmp.ne.s32.totalorder %s29483_s6, %s24366_s28  ;;  %p24370_p10 = scmp.lt.u32.totalorder %s24366_s28, %s29483_s6 }
0x116a   :  { %p24372_p11 = pnand %p24370_p10, %p24367_p9 }
0x116c   :  { %24375 = shalt.err (!%p24372_p11)
}
0x116d   :  { %19121 = dma.vmem_to_hbm [thread:$0]  %s19119_s24, 128, %s29483_s6, [#allocation4]  }
0x116e   :  { %24382 = dma.done.wait [#allocation4], 128  }
0x116f   :  { %24383 = vsyncadd [#allocation4], 4294967168 }
0x1170   :  { %19125 = vsyncpa [#allocation3], 1 }
0x1171   :  { %19126 = vsyncpa [#allocation6], 1 }
0x1172   :  { %19127 = vsyncpa [#allocation9], 1 }
0x1173   :  { %19128 = vsyncpa [#allocation4], 1 }

</bundles_post_ra>
